<compile_context>
chip_gen: v7x
topology: tpu7x:2x2x1
jax: 0.10.0
libtpu: 0.0.40
codegen_flags: <defaults>
</compile_context>

<pallas_src>
import numpy as np
import jax
import jax.numpy as jnp
from jax.experimental import pallas as pl
from jax.experimental.pallas import tpu as pltpu

# Packed-layout constants.
C1L = 16          # conv1 channels, padded 10 -> 16 (lanes per pooled column)
C2L = 32          # conv2 channels, padded 20 -> 32
L1 = 12 * C1L     # h1 lane width: (pw in [0,12)) x C1L = 192
L2 = 4 * C2L      # h2 lane width: (pw2 in [0,4)) x C2L = 128
K1 = 5 * 28       # conv1 contraction: 5 taps x 28 columns = 140
JH = 128          # fc1 hidden, padded 50 -> 128
KO = 128          # classes,   padded 10 -> 128


def _round_up(a, m):
    return (a + m - 1) // m * m


# ---------------------------------------------------------------------------
# Fused Pallas kernel: conv1+pool+relu -> conv2+pool+relu -> MLP -> log_softmax
# Processes a batch tile of B images; batch is the M dimension of every matmul.
# ---------------------------------------------------------------------------
def mnist_net_kernel(xt_ref, w1t_ref, b1l_ref, w2t_ref, b2l_ref,
                     wf1_ref, bf1_ref, wf2_ref, bf2_ref, o_ref):
    """Whole Net forward for one batch tile.

    xt_ref : [24, B, 140]    tap-concatenated input: xt[oh, n, dh*28+w] = x[n, oh+dh, w]
    w1t_ref: [2, 140, L1]    conv1 Toeplitz weights per pool-column parity q
    b1l_ref: [1, L1]         conv1 bias broadcast over (pw, c1) lanes
    w2t_ref: [5, L1, 2*L2]   conv2 Toeplitz weights per tap; q2 folded into lanes
    b2l_ref: [1, L2]
    wf1_ref: [4, L2, JH]     fc1 weights, one [L2, JH] block per pooled row ph2
    bf1_ref: [1, JH]
    wf2_ref: [JH, KO]
    bf2_ref: [1, KO]         fc2 bias; padded class lanes pre-set to -1e30
    o_ref  : [B, KO]         log-probs (first 10 lanes valid)
    """
    f32 = jnp.float32
    bf16 = jnp.bfloat16

    b1 = b1l_ref[...]                                # [1, L1] f32
    b2 = b2l_ref[...]                                # [1, L2] f32

    # ---- conv1 (1->10, 5x5, taps folded into K=140) + maxpool(2) + relu ------
    # h1[ph] : [B, L1] bf16, lanes = (pw, c1), for pooled rows ph in [0, 12).
    h1 = []
    for ph in range(12):
        best = None
        for r in range(2):                           # pool-window row offset
            lhs = xt_ref[2 * ph + r]                 # [B, 140] bf16
            for q in range(2):                       # pool-window col offset
                cand = jnp.dot(lhs, w1t_ref[q], preferred_element_type=f32)
                best = cand if best is None else jnp.maximum(best, cand)
        h1.append(jnp.maximum(best + b1, 0.0).astype(bf16))     # [B, L1]

    # ---- conv2 (10->20, 5x5) + Dropout2d(identity) + maxpool(2) + relu -------
    # q2 (pool-column parity) is folded into output lanes [0:L2] / [L2:2*L2].
    h2 = []
    for ph2 in range(4):
        best = None
        for r2 in range(2):                          # pool-window row offset
            oh2 = 2 * ph2 + r2
            acc = jnp.dot(h1[oh2], w2t_ref[0], preferred_element_type=f32)
            for dh2 in range(1, 5):                  # conv tap rows accumulate in K
                acc = acc + jnp.dot(h1[oh2 + dh2], w2t_ref[dh2],
                                    preferred_element_type=f32)
            cand = jnp.maximum(acc[:, :L2], acc[:, L2:])         # aligned lane halves
            best = cand if best is None else jnp.maximum(best, cand)
        h2.append(jnp.maximum(best + b2, 0.0).astype(bf16))     # [B, L2]

    # ---- classifier: Linear(320,50) + ReLU + Linear(50,10) + log_softmax -----
    y = bf1_ref[...]                                 # [1, JH] f32 (broadcasts to B)
    for ph2 in range(4):
        y = y + jnp.dot(h2[ph2], wf1_ref[ph2], preferred_element_type=f32)
    y = jnp.maximum(y, 0.0).astype(bf16)             # [B, JH]

    # Class-lane mask is baked into bf2 (padded lanes = -1e30): no iota/where.
    logits = jnp.dot(y, wf2_ref[...], preferred_element_type=f32) + bf2_ref[...]
    m = jnp.max(logits, axis=-1, keepdims=True)
    lse = m + jnp.log(jnp.sum(jnp.exp(logits - m), axis=-1, keepdims=True))
    o_ref[...] = logits - lse


# ---------------------------------------------------------------------------
# One-time weight packing (plain numpy; lane-padded, pre-transposed, bf16)
# ---------------------------------------------------------------------------
def prepare_params(params):
    w1 = np.asarray(params["conv1_w"], np.float32)   # [10, 1, 5, 5]
    b1 = np.asarray(params["conv1_b"], np.float32)   # [10]
    w2 = np.asarray(params["conv2_w"], np.float32)   # [20, 10, 5, 5]
    b2 = np.asarray(params["conv2_b"], np.float32)   # [20]
    f1 = np.asarray(params["fc1_w"], np.float32)     # [50, 320]
    g1 = np.asarray(params["fc1_b"], np.float32)     # [50]
    f2 = np.asarray(params["fc2_w"], np.float32)     # [10, 50]
    g2 = np.asarray(params["fc2_b"], np.float32)     # [10]

    # conv1 (taps folded): w1t[q, dh*28 + w, pw*C1L + c] = w1[c, 0, dh, w - (2*pw + q)]
    w1t = np.zeros((2, K1, L1), np.float32)
    for q in range(2):
        for dh in range(5):
            for pw in range(12):
                for dw in range(5):
                    w = 2 * pw + q + dw
                    w1t[q, dh * 28 + w, pw * C1L:pw * C1L + 10] = w1[:, 0, dh, dw]
    b1l = np.zeros((1, L1), np.float32)
    for pw in range(12):
        b1l[0, pw * C1L:pw * C1L + 10] = b1

    # conv2 (q2 folded into lanes):
    # w2t[dh2, pw1*C1L + c1, q2*L2 + pw2*C2L + c2] = w2[c2, c1, dh2, pw1 - (2*pw2 + q2)]
    w2t = np.zeros((5, L1, 2 * L2), np.float32)
    for dh2 in range(5):
        for q2 in range(2):
            for pw2 in range(4):
                for dw2 in range(5):
                    pw1 = 2 * pw2 + q2 + dw2
                    lo = q2 * L2 + pw2 * C2L
                    w2t[dh2, pw1 * C1L:pw1 * C1L + 10, lo:lo + 20] = w2[:, :, dh2, dw2].T
    b2l = np.zeros((1, L2), np.float32)
    for pw2 in range(4):
        b2l[0, pw2 * C2L:pw2 * C2L + 20] = b2

    # fc1: PyTorch flatten order (c2, h2, w2) -> column index c2*16 + ph2*4 + pw2
    f1r = f1.reshape(50, 20, 4, 4)                   # [j, c2, ph2, pw2]
    wf1 = np.zeros((4, L2, JH), np.float32)
    for ph2 in range(4):
        for pw2 in range(4):
            wf1[ph2, pw2 * C2L:pw2 * C2L + 20, :50] = f1r[:, :, ph2, pw2].T
    bf1 = np.zeros((1, JH), np.float32)
    bf1[0, :50] = g1

    wf2 = np.zeros((JH, KO), np.float32)
    wf2[:50, :10] = f2.T
    bf2 = np.full((1, KO), -1e30, np.float32)        # padded class lanes masked via bias
    bf2[0, :10] = g2

    return dict(
        w1t=jnp.asarray(w1t, jnp.bfloat16),
        b1l=jnp.asarray(b1l),
        w2t=jnp.asarray(w2t, jnp.bfloat16),
        b2l=jnp.asarray(b2l),
        wf1=jnp.asarray(wf1, jnp.bfloat16),
        bf1=jnp.asarray(bf1),
        wf2=jnp.asarray(wf2, jnp.bfloat16),
        bf2=jnp.asarray(bf2),
    )


# ---------------------------------------------------------------------------
# Forward pass
# ---------------------------------------------------------------------------
@jax.jit
def net_forward(x, kp):
    """x: [N, 1, 28, 28] f32  ->  [N, 10] log-probs."""
    n = x.shape[0]
    # Batch tile: >=256 rows per dot for big batches (fills a 256x256 MXU),
    # and keep the grid >=2 for big batches so v7x shards across both TCs.
    if n >= 512:
        bt = 256
    else:
        bt = min(128, _round_up(n, 16))
    n_pad = _round_up(n, bt)

    xi = x[:, 0]                                     # [n, 28, 28]
    if n_pad != n:
        xi = jnp.pad(xi, ((0, n_pad - n), (0, 0), (0, 0)))
    # Tap-concatenated LHS: xt[oh, n, dh*28 + w] = x[n, oh+dh, w]   (K = 140)
    xt = jnp.stack([xi[:, dh:dh + 24, :] for dh in range(5)], axis=2)   # [n_pad,24,5,28]
    xt = xt.transpose(1, 0, 2, 3).reshape(24, n_pad, K1).astype(jnp.bfloat16)

    out = pl.pallas_call(
        mnist_net_kernel,
        out_shape=jax.ShapeDtypeStruct((n_pad, KO), jnp.float32),
        grid=(n_pad // bt,),
        in_specs=[
            pl.BlockSpec((24, bt, K1), lambda i: (0, i, 0)),      # per-tile input
            pl.BlockSpec((2, K1, L1), lambda i: (0, 0, 0)),       # resident weights
            pl.BlockSpec((1, L1), lambda i: (0, 0)),
            pl.BlockSpec((5, L1, 2 * L2), lambda i: (0, 0, 0)),
            pl.BlockSpec((1, L2), lambda i: (0, 0)),
            pl.BlockSpec((4, L2, JH), lambda i: (0, 0, 0)),
            pl.BlockSpec((1, JH), lambda i: (0, 0)),
            pl.BlockSpec((JH, KO), lambda i: (0, 0)),
            pl.BlockSpec((1, KO), lambda i: (0, 0)),
        ],
        out_specs=pl.BlockSpec((bt, KO), lambda i: (i, 0)),       # lane-dense 2-D store
        compiler_params=pltpu.CompilerParams(
            dimension_semantics=("parallel",)),
    )(xt, kp["w1t"], kp["b1l"], kp["w2t"], kp["b2l"],
      kp["wf1"], kp["bf1"], kp["wf2"], kp["bf2"])

    return out[:n, :10]


# ---------------------------------------------------------------------------
# Pure-JAX reference (eval-mode dropout = identity)
# ---------------------------------------------------------------------------
def net_forward_ref(x, params):
    dn = ("NCHW", "OIHW", "NCHW")
    hp = jax.lax.Precision.HIGHEST

    def conv_pool_relu(h, w, b):
        h = jax.lax.conv_general_dilated(h, w, (1, 1), "VALID",
                                         dimension_numbers=dn, precision=hp)
        h = h + b[None, :, None, None]
        h = jax.lax.reduce_window(h, -jnp.inf, jax.lax.max,
                                  (1, 1, 2, 2), (1, 1, 2, 2), "VALID")
        return jnp.maximum(h, 0.0)

    h = conv_pool_relu(x, params["conv1_w"], params["conv1_b"])
    h = conv_pool_relu(h, params["conv2_w"], params["conv2_b"])
    flat = h.reshape(h.shape[0], -1)
    y = jnp.maximum(jnp.dot(flat, params["fc1_w"].T, precision=hp)
                    + params["fc1_b"], 0.0)
    logits = jnp.dot(y, params["fc2_w"].T, precision=hp) + params["fc2_b"]
    return jax.nn.log_softmax(logits, axis=-1)


# ---------------------------------------------------------------------------
# Deterministic parameter init (PyTorch-default-style uniform(-1/sqrt(fan_in), ·))
# ---------------------------------------------------------------------------
def init_params(key):
    def uniform(k, shape, fan_in):
        bound = 1.0 / (fan_in ** 0.5)
        return jax.random.uniform(k, shape, jnp.float32, -bound, bound)

    ks = jax.random.split(key, 8)
    return {
        "conv1_w": uniform(ks[0], (10, 1, 5, 5), 1 * 5 * 5),
        "conv1_b": uniform(ks[1], (10,), 1 * 5 * 5),
        "conv2_w": uniform(ks[2], (20, 10, 5, 5), 10 * 5 * 5),
        "conv2_b": uniform(ks[3], (20,), 10 * 5 * 5),
        "fc1_w": uniform(ks[4], (50, 320), 320),
        "fc1_b": uniform(ks[5], (50,), 320),
        "fc2_w": uniform(ks[6], (10, 50), 50),
        "fc2_b": uniform(ks[7], (10,), 50),
    }


if __name__ == "__main__":
    key = jax.random.PRNGKey(0)
    k_params, k_x = jax.random.split(key)
    params = init_params(k_params)
    kp = prepare_params(params)

    # MNIST-shaped input (28x28 is implied by Linear(320, 50) after the convs).
    x = jax.random.normal(k_x, (2, 1, 28, 28), dtype=jnp.float32)

    log_probs = net_forward(x, kp)
    jax.block_until_ready(log_probs)

    assert log_probs.shape == (2, 10)
    assert bool(jnp.all(jnp.isfinite(log_probs)))
    # log_softmax rows should sum to ~1 in probability space
    assert bool(jnp.allclose(jnp.sum(jnp.exp(log_probs), axis=-1), 1.0, atol=1e-4))
    # match the pure-JAX f32 reference (bf16 matmul operands, f32 accumulation)
    ref = net_forward_ref(x, params)
    err = float(jnp.max(jnp.abs(log_probs - ref)))
    assert err < 2e-2, err

    print("KERNEL_OK")
</pallas_src>

<mosaic_0001>
module attributes {stable_mosaic.version = 11 : i64} {
  func.func @mnist_net_kernel(%arg0: i32, %arg1: memref<24x16x140xbf16, #tpu.memory_space<vmem>>, %arg2: memref<2x140x192xbf16, #tpu.memory_space<vmem>>, %arg3: memref<1x192xf32, #tpu.memory_space<vmem>>, %arg4: memref<5x192x256xbf16, #tpu.memory_space<vmem>>, %arg5: memref<1x128xf32, #tpu.memory_space<vmem>>, %arg6: memref<4x128x128xbf16, #tpu.memory_space<vmem>>, %arg7: memref<1x128xf32, #tpu.memory_space<vmem>>, %arg8: memref<128x128xbf16, #tpu.memory_space<vmem>>, %arg9: memref<1x128xf32, #tpu.memory_space<vmem>>, %arg10: memref<16x128xf32, #tpu.memory_space<vmem>>) attributes {dimension_semantics = [#tpu.dimension_semantics<parallel>], iteration_bounds = array<i64: 1>, scalar_prefetch = 0 : i64, scratch_operands = 0 : i64, tpu.core_type = #tpu.core_type<tc>, window_params = [{transform_indices = @transform_0, window_bounds = array<i64: 24, 16, 140>}, {pipeline_mode = #tpu.pipeline_mode<synchronous>, transform_indices = @transform_1, window_bounds = array<i64: 2, 140, 192>}, {pipeline_mode = #tpu.pipeline_mode<synchronous>, transform_indices = @transform_2, window_bounds = array<i64: 1, 192>}, {pipeline_mode = #tpu.pipeline_mode<synchronous>, transform_indices = @transform_3, window_bounds = array<i64: 5, 192, 256>}, {pipeline_mode = #tpu.pipeline_mode<synchronous>, transform_indices = @transform_4, window_bounds = array<i64: 1, 128>}, {pipeline_mode = #tpu.pipeline_mode<synchronous>, transform_indices = @transform_5, window_bounds = array<i64: 4, 128, 128>}, {pipeline_mode = #tpu.pipeline_mode<synchronous>, transform_indices = @transform_6, window_bounds = array<i64: 1, 128>}, {pipeline_mode = #tpu.pipeline_mode<synchronous>, transform_indices = @transform_7, window_bounds = array<i64: 128, 128>}, {pipeline_mode = #tpu.pipeline_mode<synchronous>, transform_indices = @transform_8, window_bounds = array<i64: 1, 128>}, {transform_indices = @transform_9, window_bounds = array<i64: 16, 128>}]} {
    %c0 = arith.constant 0 : index
    %c0_0 = arith.constant 0 : index
    %0 = vector.load %arg3[%c0, %c0_0] : memref<1x192xf32, #tpu.memory_space<vmem>>, vector<1x192xf32>
    %c0_1 = arith.constant 0 : index
    %c0_2 = arith.constant 0 : index
    %1 = vector.load %arg5[%c0_1, %c0_2] : memref<1x128xf32, #tpu.memory_space<vmem>>, vector<1x128xf32>
    %c0_3 = arith.constant 0 : index
    %c0_4 = arith.constant 0 : index
    %c0_5 = arith.constant 0 : index
    %2 = vector.load %arg1[%c0_3, %c0_4, %c0_5] : memref<24x16x140xbf16, #tpu.memory_space<vmem>>, vector<1x16x140xbf16>
    %3 = vector.shape_cast %2 : vector<1x16x140xbf16> to vector<16x140xbf16>
    %c0_6 = arith.constant 0 : index
    %c0_7 = arith.constant 0 : index
    %c0_8 = arith.constant 0 : index
    %4 = vector.load %arg2[%c0_6, %c0_7, %c0_8] : memref<2x140x192xbf16, #tpu.memory_space<vmem>>, vector<1x140x192xbf16>
    %5 = vector.shape_cast %4 : vector<1x140x192xbf16> to vector<140x192xbf16>
    %cst = arith.constant dense<0.000000e+00> : vector<16x192xf32>
    %6 = tpu.matmul %3, %5, %cst {dimension_numbers = #tpu.dot_dimension_numbers<[1], [0], [0], [1], [0, 0, 1, 1], [], []>} : vector<16x140xbf16>, vector<140x192xbf16>, vector<16x192xf32> -> vector<16x192xf32>
    %c1 = arith.constant 1 : index
    %c0_9 = arith.constant 0 : index
    %c0_10 = arith.constant 0 : index
    %7 = vector.load %arg2[%c1, %c0_9, %c0_10] : memref<2x140x192xbf16, #tpu.memory_space<vmem>>, vector<1x140x192xbf16>
    %8 = vector.shape_cast %7 : vector<1x140x192xbf16> to vector<140x192xbf16>
    %cst_11 = arith.constant dense<0.000000e+00> : vector<16x192xf32>
    %9 = tpu.matmul %3, %8, %cst_11 {dimension_numbers = #tpu.dot_dimension_numbers<[1], [0], [0], [1], [0, 0, 1, 1], [], []>} : vector<16x140xbf16>, vector<140x192xbf16>, vector<16x192xf32> -> vector<16x192xf32>
    %10 = arith.maximumf %6, %9 : vector<16x192xf32>
    %c1_12 = arith.constant 1 : index
    %c0_13 = arith.constant 0 : index
    %c0_14 = arith.constant 0 : index
    %11 = vector.load %arg1[%c1_12, %c0_13, %c0_14] : memref<24x16x140xbf16, #tpu.memory_space<vmem>>, vector<1x16x140xbf16>
    %12 = vector.shape_cast %11 : vector<1x16x140xbf16> to vector<16x140xbf16>
    %c0_15 = arith.constant 0 : index
    %c0_16 = arith.constant 0 : index
    %c0_17 = arith.constant 0 : index
    %13 = vector.load %arg2[%c0_15, %c0_16, %c0_17] : memref<2x140x192xbf16, #tpu.memory_space<vmem>>, vector<1x140x192xbf16>
    %14 = vector.shape_cast %13 : vector<1x140x192xbf16> to vector<140x192xbf16>
    %cst_18 = arith.constant dense<0.000000e+00> : vector<16x192xf32>
    %15 = tpu.matmul %12, %14, %cst_18 {dimension_numbers = #tpu.dot_dimension_numbers<[1], [0], [0], [1], [0, 0, 1, 1], [], []>} : vector<16x140xbf16>, vector<140x192xbf16>, vector<16x192xf32> -> vector<16x192xf32>
    %16 = arith.maximumf %10, %15 : vector<16x192xf32>
    %c1_19 = arith.constant 1 : index
    %c0_20 = arith.constant 0 : index
    %c0_21 = arith.constant 0 : index
    %17 = vector.load %arg2[%c1_19, %c0_20, %c0_21] : memref<2x140x192xbf16, #tpu.memory_space<vmem>>, vector<1x140x192xbf16>
    %18 = vector.shape_cast %17 : vector<1x140x192xbf16> to vector<140x192xbf16>
    %cst_22 = arith.constant dense<0.000000e+00> : vector<16x192xf32>
    %19 = tpu.matmul %12, %18, %cst_22 {dimension_numbers = #tpu.dot_dimension_numbers<[1], [0], [0], [1], [0, 0, 1, 1], [], []>} : vector<16x140xbf16>, vector<140x192xbf16>, vector<16x192xf32> -> vector<16x192xf32>
    %20 = arith.maximumf %16, %19 : vector<16x192xf32>
    %21 = vector.broadcast %0 : vector<1x192xf32> to vector<16x192xf32>
    %22 = arith.addf %20, %21 : vector<16x192xf32>
    %cst_23 = arith.constant 0.000000e+00 : f32
    %23 = vector.broadcast %cst_23 : f32 to vector<16x192xf32>
    %24 = arith.maximumf %22, %23 : vector<16x192xf32>
    %25 = arith.truncf %24 : vector<16x192xf32> to vector<16x192xbf16>
    %c2 = arith.constant 2 : index
    %c0_24 = arith.constant 0 : index
    %c0_25 = arith.constant 0 : index
    %26 = vector.load %arg1[%c2, %c0_24, %c0_25] : memref<24x16x140xbf16, #tpu.memory_space<vmem>>, vector<1x16x140xbf16>
    %27 = vector.shape_cast %26 : vector<1x16x140xbf16> to vector<16x140xbf16>
    %c0_26 = arith.constant 0 : index
    %c0_27 = arith.constant 0 : index
    %c0_28 = arith.constant 0 : index
    %28 = vector.load %arg2[%c0_26, %c0_27, %c0_28] : memref<2x140x192xbf16, #tpu.memory_space<vmem>>, vector<1x140x192xbf16>
    %29 = vector.shape_cast %28 : vector<1x140x192xbf16> to vector<140x192xbf16>
    %cst_29 = arith.constant dense<0.000000e+00> : vector<16x192xf32>
    %30 = tpu.matmul %27, %29, %cst_29 {dimension_numbers = #tpu.dot_dimension_numbers<[1], [0], [0], [1], [0, 0, 1, 1], [], []>} : vector<16x140xbf16>, vector<140x192xbf16>, vector<16x192xf32> -> vector<16x192xf32>
    %c1_30 = arith.constant 1 : index
    %c0_31 = arith.constant 0 : index
    %c0_32 = arith.constant 0 : index
    %31 = vector.load %arg2[%c1_30, %c0_31, %c0_32] : memref<2x140x192xbf16, #tpu.memory_space<vmem>>, vector<1x140x192xbf16>
    %32 = vector.shape_cast %31 : vector<1x140x192xbf16> to vector<140x192xbf16>
    %cst_33 = arith.constant dense<0.000000e+00> : vector<16x192xf32>
    %33 = tpu.matmul %27, %32, %cst_33 {dimension_numbers = #tpu.dot_dimension_numbers<[1], [0], [0], [1], [0, 0, 1, 1], [], []>} : vector<16x140xbf16>, vector<140x192xbf16>, vector<16x192xf32> -> vector<16x192xf32>
    %34 = arith.maximumf %30, %33 : vector<16x192xf32>
    %c3 = arith.constant 3 : index
    %c0_34 = arith.constant 0 : index
    %c0_35 = arith.constant 0 : index
    %35 = vector.load %arg1[%c3, %c0_34, %c0_35] : memref<24x16x140xbf16, #tpu.memory_space<vmem>>, vector<1x16x140xbf16>
    %36 = vector.shape_cast %35 : vector<1x16x140xbf16> to vector<16x140xbf16>
    %c0_36 = arith.constant 0 : index
    %c0_37 = arith.constant 0 : index
    %c0_38 = arith.constant 0 : index
    %37 = vector.load %arg2[%c0_36, %c0_37, %c0_38] : memref<2x140x192xbf16, #tpu.memory_space<vmem>>, vector<1x140x192xbf16>
    %38 = vector.shape_cast %37 : vector<1x140x192xbf16> to vector<140x192xbf16>
    %cst_39 = arith.constant dense<0.000000e+00> : vector<16x192xf32>
    %39 = tpu.matmul %36, %38, %cst_39 {dimension_numbers = #tpu.dot_dimension_numbers<[1], [0], [0], [1], [0, 0, 1, 1], [], []>} : vector<16x140xbf16>, vector<140x192xbf16>, vector<16x192xf32> -> vector<16x192xf32>
    %40 = arith.maximumf %34, %39 : vector<16x192xf32>
    %c1_40 = arith.constant 1 : index
    %c0_41 = arith.constant 0 : index
    %c0_42 = arith.constant 0 : index
    %41 = vector.load %arg2[%c1_40, %c0_41, %c0_42] : memref<2x140x192xbf16, #tpu.memory_space<vmem>>, vector<1x140x192xbf16>
    %42 = vector.shape_cast %41 : vector<1x140x192xbf16> to vector<140x192xbf16>
    %cst_43 = arith.constant dense<0.000000e+00> : vector<16x192xf32>
    %43 = tpu.matmul %36, %42, %cst_43 {dimension_numbers = #tpu.dot_dimension_numbers<[1], [0], [0], [1], [0, 0, 1, 1], [], []>} : vector<16x140xbf16>, vector<140x192xbf16>, vector<16x192xf32> -> vector<16x192xf32>
    %44 = arith.maximumf %40, %43 : vector<16x192xf32>
    %45 = vector.broadcast %0 : vector<1x192xf32> to vector<16x192xf32>
    %46 = arith.addf %44, %45 : vector<16x192xf32>
    %cst_44 = arith.constant 0.000000e+00 : f32
    %47 = vector.broadcast %cst_44 : f32 to vector<16x192xf32>
    %48 = arith.maximumf %46, %47 : vector<16x192xf32>
    %49 = arith.truncf %48 : vector<16x192xf32> to vector<16x192xbf16>
    %c4 = arith.constant 4 : index
    %c0_45 = arith.constant 0 : index
    %c0_46 = arith.constant 0 : index
    %50 = vector.load %arg1[%c4, %c0_45, %c0_46] : memref<24x16x140xbf16, #tpu.memory_space<vmem>>, vector<1x16x140xbf16>
    %51 = vector.shape_cast %50 : vector<1x16x140xbf16> to vector<16x140xbf16>
    %c0_47 = arith.constant 0 : index
    %c0_48 = arith.constant 0 : index
    %c0_49 = arith.constant 0 : index
    %52 = vector.load %arg2[%c0_47, %c0_48, %c0_49] : memref<2x140x192xbf16, #tpu.memory_space<vmem>>, vector<1x140x192xbf16>
    %53 = vector.shape_cast %52 : vector<1x140x192xbf16> to vector<140x192xbf16>
    %cst_50 = arith.constant dense<0.000000e+00> : vector<16x192xf32>
    %54 = tpu.matmul %51, %53, %cst_50 {dimension_numbers = #tpu.dot_dimension_numbers<[1], [0], [0], [1], [0, 0, 1, 1], [], []>} : vector<16x140xbf16>, vector<140x192xbf16>, vector<16x192xf32> -> vector<16x192xf32>
    %c1_51 = arith.constant 1 : index
    %c0_52 = arith.constant 0 : index
    %c0_53 = arith.constant 0 : index
    %55 = vector.load %arg2[%c1_51, %c0_52, %c0_53] : memref<2x140x192xbf16, #tpu.memory_space<vmem>>, vector<1x140x192xbf16>
    %56 = vector.shape_cast %55 : vector<1x140x192xbf16> to vector<140x192xbf16>
    %cst_54 = arith.constant dense<0.000000e+00> : vector<16x192xf32>
    %57 = tpu.matmul %51, %56, %cst_54 {dimension_numbers = #tpu.dot_dimension_numbers<[1], [0], [0], [1], [0, 0, 1, 1], [], []>} : vector<16x140xbf16>, vector<140x192xbf16>, vector<16x192xf32> -> vector<16x192xf32>
    %58 = arith.maximumf %54, %57 : vector<16x192xf32>
    %c5 = arith.constant 5 : index
    %c0_55 = arith.constant 0 : index
    %c0_56 = arith.constant 0 : index
    %59 = vector.load %arg1[%c5, %c0_55, %c0_56] : memref<24x16x140xbf16, #tpu.memory_space<vmem>>, vector<1x16x140xbf16>
    %60 = vector.shape_cast %59 : vector<1x16x140xbf16> to vector<16x140xbf16>
    %c0_57 = arith.constant 0 : index
    %c0_58 = arith.constant 0 : index
    %c0_59 = arith.constant 0 : index
    %61 = vector.load %arg2[%c0_57, %c0_58, %c0_59] : memref<2x140x192xbf16, #tpu.memory_space<vmem>>, vector<1x140x192xbf16>
    %62 = vector.shape_cast %61 : vector<1x140x192xbf16> to vector<140x192xbf16>
    %cst_60 = arith.constant dense<0.000000e+00> : vector<16x192xf32>
    %63 = tpu.matmul %60, %62, %cst_60 {dimension_numbers = #tpu.dot_dimension_numbers<[1], [0], [0], [1], [0, 0, 1, 1], [], []>} : vector<16x140xbf16>, vector<140x192xbf16>, vector<16x192xf32> -> vector<16x192xf32>
    %64 = arith.maximumf %58, %63 : vector<16x192xf32>
    %c1_61 = arith.constant 1 : index
    %c0_62 = arith.constant 0 : index
    %c0_63 = arith.constant 0 : index
    %65 = vector.load %arg2[%c1_61, %c0_62, %c0_63] : memref<2x140x192xbf16, #tpu.memory_space<vmem>>, vector<1x140x192xbf16>
    %66 = vector.shape_cast %65 : vector<1x140x192xbf16> to vector<140x192xbf16>
    %cst_64 = arith.constant dense<0.000000e+00> : vector<16x192xf32>
    %67 = tpu.matmul %60, %66, %cst_64 {dimension_numbers = #tpu.dot_dimension_numbers<[1], [0], [0], [1], [0, 0, 1, 1], [], []>} : vector<16x140xbf16>, vector<140x192xbf16>, vector<16x192xf32> -> vector<16x192xf32>
    %68 = arith.maximumf %64, %67 : vector<16x192xf32>
    %69 = vector.broadcast %0 : vector<1x192xf32> to vector<16x192xf32>
    %70 = arith.addf %68, %69 : vector<16x192xf32>
    %cst_65 = arith.constant 0.000000e+00 : f32
    %71 = vector.broadcast %cst_65 : f32 to vector<16x192xf32>
    %72 = arith.maximumf %70, %71 : vector<16x192xf32>
    %73 = arith.truncf %72 : vector<16x192xf32> to vector<16x192xbf16>
    %c6 = arith.constant 6 : index
    %c0_66 = arith.constant 0 : index
    %c0_67 = arith.constant 0 : index
    %74 = vector.load %arg1[%c6, %c0_66, %c0_67] : memref<24x16x140xbf16, #tpu.memory_space<vmem>>, vector<1x16x140xbf16>
    %75 = vector.shape_cast %74 : vector<1x16x140xbf16> to vector<16x140xbf16>
    %c0_68 = arith.constant 0 : index
    %c0_69 = arith.constant 0 : index
    %c0_70 = arith.constant 0 : index
    %76 = vector.load %arg2[%c0_68, %c0_69, %c0_70] : memref<2x140x192xbf16, #tpu.memory_space<vmem>>, vector<1x140x192xbf16>
    %77 = vector.shape_cast %76 : vector<1x140x192xbf16> to vector<140x192xbf16>
    %cst_71 = arith.constant dense<0.000000e+00> : vector<16x192xf32>
    %78 = tpu.matmul %75, %77, %cst_71 {dimension_numbers = #tpu.dot_dimension_numbers<[1], [0], [0], [1], [0, 0, 1, 1], [], []>} : vector<16x140xbf16>, vector<140x192xbf16>, vector<16x192xf32> -> vector<16x192xf32>
    %c1_72 = arith.constant 1 : index
    %c0_73 = arith.constant 0 : index
    %c0_74 = arith.constant 0 : index
    %79 = vector.load %arg2[%c1_72, %c0_73, %c0_74] : memref<2x140x192xbf16, #tpu.memory_space<vmem>>, vector<1x140x192xbf16>
    %80 = vector.shape_cast %79 : vector<1x140x192xbf16> to vector<140x192xbf16>
    %cst_75 = arith.constant dense<0.000000e+00> : vector<16x192xf32>
    %81 = tpu.matmul %75, %80, %cst_75 {dimension_numbers = #tpu.dot_dimension_numbers<[1], [0], [0], [1], [0, 0, 1, 1], [], []>} : vector<16x140xbf16>, vector<140x192xbf16>, vector<16x192xf32> -> vector<16x192xf32>
    %82 = arith.maximumf %78, %81 : vector<16x192xf32>
    %c7 = arith.constant 7 : index
    %c0_76 = arith.constant 0 : index
    %c0_77 = arith.constant 0 : index
    %83 = vector.load %arg1[%c7, %c0_76, %c0_77] : memref<24x16x140xbf16, #tpu.memory_space<vmem>>, vector<1x16x140xbf16>
    %84 = vector.shape_cast %83 : vector<1x16x140xbf16> to vector<16x140xbf16>
    %c0_78 = arith.constant 0 : index
    %c0_79 = arith.constant 0 : index
    %c0_80 = arith.constant 0 : index
    %85 = vector.load %arg2[%c0_78, %c0_79, %c0_80] : memref<2x140x192xbf16, #tpu.memory_space<vmem>>, vector<1x140x192xbf16>
    %86 = vector.shape_cast %85 : vector<1x140x192xbf16> to vector<140x192xbf16>
    %cst_81 = arith.constant dense<0.000000e+00> : vector<16x192xf32>
    %87 = tpu.matmul %84, %86, %cst_81 {dimension_numbers = #tpu.dot_dimension_numbers<[1], [0], [0], [1], [0, 0, 1, 1], [], []>} : vector<16x140xbf16>, vector<140x192xbf16>, vector<16x192xf32> -> vector<16x192xf32>
    %88 = arith.maximumf %82, %87 : vector<16x192xf32>
    %c1_82 = arith.constant 1 : index
    %c0_83 = arith.constant 0 : index
    %c0_84 = arith.constant 0 : index
    %89 = vector.load %arg2[%c1_82, %c0_83, %c0_84] : memref<2x140x192xbf16, #tpu.memory_space<vmem>>, vector<1x140x192xbf16>
    %90 = vector.shape_cast %89 : vector<1x140x192xbf16> to vector<140x192xbf16>
    %cst_85 = arith.constant dense<0.000000e+00> : vector<16x192xf32>
    %91 = tpu.matmul %84, %90, %cst_85 {dimension_numbers = #tpu.dot_dimension_numbers<[1], [0], [0], [1], [0, 0, 1, 1], [], []>} : vector<16x140xbf16>, vector<140x192xbf16>, vector<16x192xf32> -> vector<16x192xf32>
    %92 = arith.maximumf %88, %91 : vector<16x192xf32>
    %93 = vector.broadcast %0 : vector<1x192xf32> to vector<16x192xf32>
    %94 = arith.addf %92, %93 : vector<16x192xf32>
    %cst_86 = arith.constant 0.000000e+00 : f32
    %95 = vector.broadcast %cst_86 : f32 to vector<16x192xf32>
    %96 = arith.maximumf %94, %95 : vector<16x192xf32>
    %97 = arith.truncf %96 : vector<16x192xf32> to vector<16x192xbf16>
    %c8 = arith.constant 8 : index
    %c0_87 = arith.constant 0 : index
    %c0_88 = arith.constant 0 : index
    %98 = vector.load %arg1[%c8, %c0_87, %c0_88] : memref<24x16x140xbf16, #tpu.memory_space<vmem>>, vector<1x16x140xbf16>
    %99 = vector.shape_cast %98 : vector<1x16x140xbf16> to vector<16x140xbf16>
    %c0_89 = arith.constant 0 : index
    %c0_90 = arith.constant 0 : index
    %c0_91 = arith.constant 0 : index
    %100 = vector.load %arg2[%c0_89, %c0_90, %c0_91] : memref<2x140x192xbf16, #tpu.memory_space<vmem>>, vector<1x140x192xbf16>
    %101 = vector.shape_cast %100 : vector<1x140x192xbf16> to vector<140x192xbf16>
    %cst_92 = arith.constant dense<0.000000e+00> : vector<16x192xf32>
    %102 = tpu.matmul %99, %101, %cst_92 {dimension_numbers = #tpu.dot_dimension_numbers<[1], [0], [0], [1], [0, 0, 1, 1], [], []>} : vector<16x140xbf16>, vector<140x192xbf16>, vector<16x192xf32> -> vector<16x192xf32>
    %c1_93 = arith.constant 1 : index
    %c0_94 = arith.constant 0 : index
    %c0_95 = arith.constant 0 : index
    %103 = vector.load %arg2[%c1_93, %c0_94, %c0_95] : memref<2x140x192xbf16, #tpu.memory_space<vmem>>, vector<1x140x192xbf16>
    %104 = vector.shape_cast %103 : vector<1x140x192xbf16> to vector<140x192xbf16>
    %cst_96 = arith.constant dense<0.000000e+00> : vector<16x192xf32>
    %105 = tpu.matmul %99, %104, %cst_96 {dimension_numbers = #tpu.dot_dimension_numbers<[1], [0], [0], [1], [0, 0, 1, 1], [], []>} : vector<16x140xbf16>, vector<140x192xbf16>, vector<16x192xf32> -> vector<16x192xf32>
    %106 = arith.maximumf %102, %105 : vector<16x192xf32>
    %c9 = arith.constant 9 : index
    %c0_97 = arith.constant 0 : index
    %c0_98 = arith.constant 0 : index
    %107 = vector.load %arg1[%c9, %c0_97, %c0_98] : memref<24x16x140xbf16, #tpu.memory_space<vmem>>, vector<1x16x140xbf16>
    %108 = vector.shape_cast %107 : vector<1x16x140xbf16> to vector<16x140xbf16>
    %c0_99 = arith.constant 0 : index
    %c0_100 = arith.constant 0 : index
    %c0_101 = arith.constant 0 : index
    %109 = vector.load %arg2[%c0_99, %c0_100, %c0_101] : memref<2x140x192xbf16, #tpu.memory_space<vmem>>, vector<1x140x192xbf16>
    %110 = vector.shape_cast %109 : vector<1x140x192xbf16> to vector<140x192xbf16>
    %cst_102 = arith.constant dense<0.000000e+00> : vector<16x192xf32>
    %111 = tpu.matmul %108, %110, %cst_102 {dimension_numbers = #tpu.dot_dimension_numbers<[1], [0], [0], [1], [0, 0, 1, 1], [], []>} : vector<16x140xbf16>, vector<140x192xbf16>, vector<16x192xf32> -> vector<16x192xf32>
    %112 = arith.maximumf %106, %111 : vector<16x192xf32>
    %c1_103 = arith.constant 1 : index
    %c0_104 = arith.constant 0 : index
    %c0_105 = arith.constant 0 : index
    %113 = vector.load %arg2[%c1_103, %c0_104, %c0_105] : memref<2x140x192xbf16, #tpu.memory_space<vmem>>, vector<1x140x192xbf16>
    %114 = vector.shape_cast %113 : vector<1x140x192xbf16> to vector<140x192xbf16>
    %cst_106 = arith.constant dense<0.000000e+00> : vector<16x192xf32>
    %115 = tpu.matmul %108, %114, %cst_106 {dimension_numbers = #tpu.dot_dimension_numbers<[1], [0], [0], [1], [0, 0, 1, 1], [], []>} : vector<16x140xbf16>, vector<140x192xbf16>, vector<16x192xf32> -> vector<16x192xf32>
    %116 = arith.maximumf %112, %115 : vector<16x192xf32>
    %117 = vector.broadcast %0 : vector<1x192xf32> to vector<16x192xf32>
    %118 = arith.addf %116, %117 : vector<16x192xf32>
    %cst_107 = arith.constant 0.000000e+00 : f32
    %119 = vector.broadcast %cst_107 : f32 to vector<16x192xf32>
    %120 = arith.maximumf %118, %119 : vector<16x192xf32>
    %121 = arith.truncf %120 : vector<16x192xf32> to vector<16x192xbf16>
    %c10 = arith.constant 10 : index
    %c0_108 = arith.constant 0 : index
    %c0_109 = arith.constant 0 : index
    %122 = vector.load %arg1[%c10, %c0_108, %c0_109] : memref<24x16x140xbf16, #tpu.memory_space<vmem>>, vector<1x16x140xbf16>
    %123 = vector.shape_cast %122 : vector<1x16x140xbf16> to vector<16x140xbf16>
    %c0_110 = arith.constant 0 : index
    %c0_111 = arith.constant 0 : index
    %c0_112 = arith.constant 0 : index
    %124 = vector.load %arg2[%c0_110, %c0_111, %c0_112] : memref<2x140x192xbf16, #tpu.memory_space<vmem>>, vector<1x140x192xbf16>
    %125 = vector.shape_cast %124 : vector<1x140x192xbf16> to vector<140x192xbf16>
    %cst_113 = arith.constant dense<0.000000e+00> : vector<16x192xf32>
    %126 = tpu.matmul %123, %125, %cst_113 {dimension_numbers = #tpu.dot_dimension_numbers<[1], [0], [0], [1], [0, 0, 1, 1], [], []>} : vector<16x140xbf16>, vector<140x192xbf16>, vector<16x192xf32> -> vector<16x192xf32>
    %c1_114 = arith.constant 1 : index
    %c0_115 = arith.constant 0 : index
    %c0_116 = arith.constant 0 : index
    %127 = vector.load %arg2[%c1_114, %c0_115, %c0_116] : memref<2x140x192xbf16, #tpu.memory_space<vmem>>, vector<1x140x192xbf16>
    %128 = vector.shape_cast %127 : vector<1x140x192xbf16> to vector<140x192xbf16>
    %cst_117 = arith.constant dense<0.000000e+00> : vector<16x192xf32>
    %129 = tpu.matmul %123, %128, %cst_117 {dimension_numbers = #tpu.dot_dimension_numbers<[1], [0], [0], [1], [0, 0, 1, 1], [], []>} : vector<16x140xbf16>, vector<140x192xbf16>, vector<16x192xf32> -> vector<16x192xf32>
    %130 = arith.maximumf %126, %129 : vector<16x192xf32>
    %c11 = arith.constant 11 : index
    %c0_118 = arith.constant 0 : index
    %c0_119 = arith.constant 0 : index
    %131 = vector.load %arg1[%c11, %c0_118, %c0_119] : memref<24x16x140xbf16, #tpu.memory_space<vmem>>, vector<1x16x140xbf16>
    %132 = vector.shape_cast %131 : vector<1x16x140xbf16> to vector<16x140xbf16>
    %c0_120 = arith.constant 0 : index
    %c0_121 = arith.constant 0 : index
    %c0_122 = arith.constant 0 : index
    %133 = vector.load %arg2[%c0_120, %c0_121, %c0_122] : memref<2x140x192xbf16, #tpu.memory_space<vmem>>, vector<1x140x192xbf16>
    %134 = vector.shape_cast %133 : vector<1x140x192xbf16> to vector<140x192xbf16>
    %cst_123 = arith.constant dense<0.000000e+00> : vector<16x192xf32>
    %135 = tpu.matmul %132, %134, %cst_123 {dimension_numbers = #tpu.dot_dimension_numbers<[1], [0], [0], [1], [0, 0, 1, 1], [], []>} : vector<16x140xbf16>, vector<140x192xbf16>, vector<16x192xf32> -> vector<16x192xf32>
    %136 = arith.maximumf %130, %135 : vector<16x192xf32>
    %c1_124 = arith.constant 1 : index
    %c0_125 = arith.constant 0 : index
    %c0_126 = arith.constant 0 : index
    %137 = vector.load %arg2[%c1_124, %c0_125, %c0_126] : memref<2x140x192xbf16, #tpu.memory_space<vmem>>, vector<1x140x192xbf16>
    %138 = vector.shape_cast %137 : vector<1x140x192xbf16> to vector<140x192xbf16>
    %cst_127 = arith.constant dense<0.000000e+00> : vector<16x192xf32>
    %139 = tpu.matmul %132, %138, %cst_127 {dimension_numbers = #tpu.dot_dimension_numbers<[1], [0], [0], [1], [0, 0, 1, 1], [], []>} : vector<16x140xbf16>, vector<140x192xbf16>, vector<16x192xf32> -> vector<16x192xf32>
    %140 = arith.maximumf %136, %139 : vector<16x192xf32>
    %141 = vector.broadcast %0 : vector<1x192xf32> to vector<16x192xf32>
    %142 = arith.addf %140, %141 : vector<16x192xf32>
    %cst_128 = arith.constant 0.000000e+00 : f32
    %143 = vector.broadcast %cst_128 : f32 to vector<16x192xf32>
    %144 = arith.maximumf %142, %143 : vector<16x192xf32>
    %145 = arith.truncf %144 : vector<16x192xf32> to vector<16x192xbf16>
    %c12 = arith.constant 12 : index
    %c0_129 = arith.constant 0 : index
    %c0_130 = arith.constant 0 : index
    %146 = vector.load %arg1[%c12, %c0_129, %c0_130] : memref<24x16x140xbf16, #tpu.memory_space<vmem>>, vector<1x16x140xbf16>
    %147 = vector.shape_cast %146 : vector<1x16x140xbf16> to vector<16x140xbf16>
    %c0_131 = arith.constant 0 : index
    %c0_132 = arith.constant 0 : index
    %c0_133 = arith.constant 0 : index
    %148 = vector.load %arg2[%c0_131, %c0_132, %c0_133] : memref<2x140x192xbf16, #tpu.memory_space<vmem>>, vector<1x140x192xbf16>
    %149 = vector.shape_cast %148 : vector<1x140x192xbf16> to vector<140x192xbf16>
    %cst_134 = arith.constant dense<0.000000e+00> : vector<16x192xf32>
    %150 = tpu.matmul %147, %149, %cst_134 {dimension_numbers = #tpu.dot_dimension_numbers<[1], [0], [0], [1], [0, 0, 1, 1], [], []>} : vector<16x140xbf16>, vector<140x192xbf16>, vector<16x192xf32> -> vector<16x192xf32>
    %c1_135 = arith.constant 1 : index
    %c0_136 = arith.constant 0 : index
    %c0_137 = arith.constant 0 : index
    %151 = vector.load %arg2[%c1_135, %c0_136, %c0_137] : memref<2x140x192xbf16, #tpu.memory_space<vmem>>, vector<1x140x192xbf16>
    %152 = vector.shape_cast %151 : vector<1x140x192xbf16> to vector<140x192xbf16>
    %cst_138 = arith.constant dense<0.000000e+00> : vector<16x192xf32>
    %153 = tpu.matmul %147, %152, %cst_138 {dimension_numbers = #tpu.dot_dimension_numbers<[1], [0], [0], [1], [0, 0, 1, 1], [], []>} : vector<16x140xbf16>, vector<140x192xbf16>, vector<16x192xf32> -> vector<16x192xf32>
    %154 = arith.maximumf %150, %153 : vector<16x192xf32>
    %c13 = arith.constant 13 : index
    %c0_139 = arith.constant 0 : index
    %c0_140 = arith.constant 0 : index
    %155 = vector.load %arg1[%c13, %c0_139, %c0_140] : memref<24x16x140xbf16, #tpu.memory_space<vmem>>, vector<1x16x140xbf16>
    %156 = vector.shape_cast %155 : vector<1x16x140xbf16> to vector<16x140xbf16>
    %c0_141 = arith.constant 0 : index
    %c0_142 = arith.constant 0 : index
    %c0_143 = arith.constant 0 : index
    %157 = vector.load %arg2[%c0_141, %c0_142, %c0_143] : memref<2x140x192xbf16, #tpu.memory_space<vmem>>, vector<1x140x192xbf16>
    %158 = vector.shape_cast %157 : vector<1x140x192xbf16> to vector<140x192xbf16>
    %cst_144 = arith.constant dense<0.000000e+00> : vector<16x192xf32>
    %159 = tpu.matmul %156, %158, %cst_144 {dimension_numbers = #tpu.dot_dimension_numbers<[1], [0], [0], [1], [0, 0, 1, 1], [], []>} : vector<16x140xbf16>, vector<140x192xbf16>, vector<16x192xf32> -> vector<16x192xf32>
    %160 = arith.maximumf %154, %159 : vector<16x192xf32>
    %c1_145 = arith.constant 1 : index
    %c0_146 = arith.constant 0 : index
    %c0_147 = arith.constant 0 : index
    %161 = vector.load %arg2[%c1_145, %c0_146, %c0_147] : memref<2x140x192xbf16, #tpu.memory_space<vmem>>, vector<1x140x192xbf16>
    %162 = vector.shape_cast %161 : vector<1x140x192xbf16> to vector<140x192xbf16>
    %cst_148 = arith.constant dense<0.000000e+00> : vector<16x192xf32>
    %163 = tpu.matmul %156, %162, %cst_148 {dimension_numbers = #tpu.dot_dimension_numbers<[1], [0], [0], [1], [0, 0, 1, 1], [], []>} : vector<16x140xbf16>, vector<140x192xbf16>, vector<16x192xf32> -> vector<16x192xf32>
    %164 = arith.maximumf %160, %163 : vector<16x192xf32>
    %165 = vector.broadcast %0 : vector<1x192xf32> to vector<16x192xf32>
    %166 = arith.addf %164, %165 : vector<16x192xf32>
    %cst_149 = arith.constant 0.000000e+00 : f32
    %167 = vector.broadcast %cst_149 : f32 to vector<16x192xf32>
    %168 = arith.maximumf %166, %167 : vector<16x192xf32>
    %169 = arith.truncf %168 : vector<16x192xf32> to vector<16x192xbf16>
    %c14 = arith.constant 14 : index
    %c0_150 = arith.constant 0 : index
    %c0_151 = arith.constant 0 : index
    %170 = vector.load %arg1[%c14, %c0_150, %c0_151] : memref<24x16x140xbf16, #tpu.memory_space<vmem>>, vector<1x16x140xbf16>
    %171 = vector.shape_cast %170 : vector<1x16x140xbf16> to vector<16x140xbf16>
    %c0_152 = arith.constant 0 : index
    %c0_153 = arith.constant 0 : index
    %c0_154 = arith.constant 0 : index
    %172 = vector.load %arg2[%c0_152, %c0_153, %c0_154] : memref<2x140x192xbf16, #tpu.memory_space<vmem>>, vector<1x140x192xbf16>
    %173 = vector.shape_cast %172 : vector<1x140x192xbf16> to vector<140x192xbf16>
    %cst_155 = arith.constant dense<0.000000e+00> : vector<16x192xf32>
    %174 = tpu.matmul %171, %173, %cst_155 {dimension_numbers = #tpu.dot_dimension_numbers<[1], [0], [0], [1], [0, 0, 1, 1], [], []>} : vector<16x140xbf16>, vector<140x192xbf16>, vector<16x192xf32> -> vector<16x192xf32>
    %c1_156 = arith.constant 1 : index
    %c0_157 = arith.constant 0 : index
    %c0_158 = arith.constant 0 : index
    %175 = vector.load %arg2[%c1_156, %c0_157, %c0_158] : memref<2x140x192xbf16, #tpu.memory_space<vmem>>, vector<1x140x192xbf16>
    %176 = vector.shape_cast %175 : vector<1x140x192xbf16> to vector<140x192xbf16>
    %cst_159 = arith.constant dense<0.000000e+00> : vector<16x192xf32>
    %177 = tpu.matmul %171, %176, %cst_159 {dimension_numbers = #tpu.dot_dimension_numbers<[1], [0], [0], [1], [0, 0, 1, 1], [], []>} : vector<16x140xbf16>, vector<140x192xbf16>, vector<16x192xf32> -> vector<16x192xf32>
    %178 = arith.maximumf %174, %177 : vector<16x192xf32>
    %c15 = arith.constant 15 : index
    %c0_160 = arith.constant 0 : index
    %c0_161 = arith.constant 0 : index
    %179 = vector.load %arg1[%c15, %c0_160, %c0_161] : memref<24x16x140xbf16, #tpu.memory_space<vmem>>, vector<1x16x140xbf16>
    %180 = vector.shape_cast %179 : vector<1x16x140xbf16> to vector<16x140xbf16>
    %c0_162 = arith.constant 0 : index
    %c0_163 = arith.constant 0 : index
    %c0_164 = arith.constant 0 : index
    %181 = vector.load %arg2[%c0_162, %c0_163, %c0_164] : memref<2x140x192xbf16, #tpu.memory_space<vmem>>, vector<1x140x192xbf16>
    %182 = vector.shape_cast %181 : vector<1x140x192xbf16> to vector<140x192xbf16>
    %cst_165 = arith.constant dense<0.000000e+00> : vector<16x192xf32>
    %183 = tpu.matmul %180, %182, %cst_165 {dimension_numbers = #tpu.dot_dimension_numbers<[1], [0], [0], [1], [0, 0, 1, 1], [], []>} : vector<16x140xbf16>, vector<140x192xbf16>, vector<16x192xf32> -> vector<16x192xf32>
    %184 = arith.maximumf %178, %183 : vector<16x192xf32>
    %c1_166 = arith.constant 1 : index
    %c0_167 = arith.constant 0 : index
    %c0_168 = arith.constant 0 : index
    %185 = vector.load %arg2[%c1_166, %c0_167, %c0_168] : memref<2x140x192xbf16, #tpu.memory_space<vmem>>, vector<1x140x192xbf16>
    %186 = vector.shape_cast %185 : vector<1x140x192xbf16> to vector<140x192xbf16>
    %cst_169 = arith.constant dense<0.000000e+00> : vector<16x192xf32>
    %187 = tpu.matmul %180, %186, %cst_169 {dimension_numbers = #tpu.dot_dimension_numbers<[1], [0], [0], [1], [0, 0, 1, 1], [], []>} : vector<16x140xbf16>, vector<140x192xbf16>, vector<16x192xf32> -> vector<16x192xf32>
    %188 = arith.maximumf %184, %187 : vector<16x192xf32>
    %189 = vector.broadcast %0 : vector<1x192xf32> to vector<16x192xf32>
    %190 = arith.addf %188, %189 : vector<16x192xf32>
    %cst_170 = arith.constant 0.000000e+00 : f32
    %191 = vector.broadcast %cst_170 : f32 to vector<16x192xf32>
    %192 = arith.maximumf %190, %191 : vector<16x192xf32>
    %193 = arith.truncf %192 : vector<16x192xf32> to vector<16x192xbf16>
    %c16 = arith.constant 16 : index
    %c0_171 = arith.constant 0 : index
    %c0_172 = arith.constant 0 : index
    %194 = vector.load %arg1[%c16, %c0_171, %c0_172] : memref<24x16x140xbf16, #tpu.memory_space<vmem>>, vector<1x16x140xbf16>
    %195 = vector.shape_cast %194 : vector<1x16x140xbf16> to vector<16x140xbf16>
    %c0_173 = arith.constant 0 : index
    %c0_174 = arith.constant 0 : index
    %c0_175 = arith.constant 0 : index
    %196 = vector.load %arg2[%c0_173, %c0_174, %c0_175] : memref<2x140x192xbf16, #tpu.memory_space<vmem>>, vector<1x140x192xbf16>
    %197 = vector.shape_cast %196 : vector<1x140x192xbf16> to vector<140x192xbf16>
    %cst_176 = arith.constant dense<0.000000e+00> : vector<16x192xf32>
    %198 = tpu.matmul %195, %197, %cst_176 {dimension_numbers = #tpu.dot_dimension_numbers<[1], [0], [0], [1], [0, 0, 1, 1], [], []>} : vector<16x140xbf16>, vector<140x192xbf16>, vector<16x192xf32> -> vector<16x192xf32>
    %c1_177 = arith.constant 1 : index
    %c0_178 = arith.constant 0 : index
    %c0_179 = arith.constant 0 : index
    %199 = vector.load %arg2[%c1_177, %c0_178, %c0_179] : memref<2x140x192xbf16, #tpu.memory_space<vmem>>, vector<1x140x192xbf16>
    %200 = vector.shape_cast %199 : vector<1x140x192xbf16> to vector<140x192xbf16>
    %cst_180 = arith.constant dense<0.000000e+00> : vector<16x192xf32>
    %201 = tpu.matmul %195, %200, %cst_180 {dimension_numbers = #tpu.dot_dimension_numbers<[1], [0], [0], [1], [0, 0, 1, 1], [], []>} : vector<16x140xbf16>, vector<140x192xbf16>, vector<16x192xf32> -> vector<16x192xf32>
    %202 = arith.maximumf %198, %201 : vector<16x192xf32>
    %c17 = arith.constant 17 : index
    %c0_181 = arith.constant 0 : index
    %c0_182 = arith.constant 0 : index
    %203 = vector.load %arg1[%c17, %c0_181, %c0_182] : memref<24x16x140xbf16, #tpu.memory_space<vmem>>, vector<1x16x140xbf16>
    %204 = vector.shape_cast %203 : vector<1x16x140xbf16> to vector<16x140xbf16>
    %c0_183 = arith.constant 0 : index
    %c0_184 = arith.constant 0 : index
    %c0_185 = arith.constant 0 : index
    %205 = vector.load %arg2[%c0_183, %c0_184, %c0_185] : memref<2x140x192xbf16, #tpu.memory_space<vmem>>, vector<1x140x192xbf16>
    %206 = vector.shape_cast %205 : vector<1x140x192xbf16> to vector<140x192xbf16>
    %cst_186 = arith.constant dense<0.000000e+00> : vector<16x192xf32>
    %207 = tpu.matmul %204, %206, %cst_186 {dimension_numbers = #tpu.dot_dimension_numbers<[1], [0], [0], [1], [0, 0, 1, 1], [], []>} : vector<16x140xbf16>, vector<140x192xbf16>, vector<16x192xf32> -> vector<16x192xf32>
    %208 = arith.maximumf %202, %207 : vector<16x192xf32>
    %c1_187 = arith.constant 1 : index
    %c0_188 = arith.constant 0 : index
    %c0_189 = arith.constant 0 : index
    %209 = vector.load %arg2[%c1_187, %c0_188, %c0_189] : memref<2x140x192xbf16, #tpu.memory_space<vmem>>, vector<1x140x192xbf16>
    %210 = vector.shape_cast %209 : vector<1x140x192xbf16> to vector<140x192xbf16>
    %cst_190 = arith.constant dense<0.000000e+00> : vector<16x192xf32>
    %211 = tpu.matmul %204, %210, %cst_190 {dimension_numbers = #tpu.dot_dimension_numbers<[1], [0], [0], [1], [0, 0, 1, 1], [], []>} : vector<16x140xbf16>, vector<140x192xbf16>, vector<16x192xf32> -> vector<16x192xf32>
    %212 = arith.maximumf %208, %211 : vector<16x192xf32>
    %213 = vector.broadcast %0 : vector<1x192xf32> to vector<16x192xf32>
    %214 = arith.addf %212, %213 : vector<16x192xf32>
    %cst_191 = arith.constant 0.000000e+00 : f32
    %215 = vector.broadcast %cst_191 : f32 to vector<16x192xf32>
    %216 = arith.maximumf %214, %215 : vector<16x192xf32>
    %217 = arith.truncf %216 : vector<16x192xf32> to vector<16x192xbf16>
    %c18 = arith.constant 18 : index
    %c0_192 = arith.constant 0 : index
    %c0_193 = arith.constant 0 : index
    %218 = vector.load %arg1[%c18, %c0_192, %c0_193] : memref<24x16x140xbf16, #tpu.memory_space<vmem>>, vector<1x16x140xbf16>
    %219 = vector.shape_cast %218 : vector<1x16x140xbf16> to vector<16x140xbf16>
    %c0_194 = arith.constant 0 : index
    %c0_195 = arith.constant 0 : index
    %c0_196 = arith.constant 0 : index
    %220 = vector.load %arg2[%c0_194, %c0_195, %c0_196] : memref<2x140x192xbf16, #tpu.memory_space<vmem>>, vector<1x140x192xbf16>
    %221 = vector.shape_cast %220 : vector<1x140x192xbf16> to vector<140x192xbf16>
    %cst_197 = arith.constant dense<0.000000e+00> : vector<16x192xf32>
    %222 = tpu.matmul %219, %221, %cst_197 {dimension_numbers = #tpu.dot_dimension_numbers<[1], [0], [0], [1], [0, 0, 1, 1], [], []>} : vector<16x140xbf16>, vector<140x192xbf16>, vector<16x192xf32> -> vector<16x192xf32>
    %c1_198 = arith.constant 1 : index
    %c0_199 = arith.constant 0 : index
    %c0_200 = arith.constant 0 : index
    %223 = vector.load %arg2[%c1_198, %c0_199, %c0_200] : memref<2x140x192xbf16, #tpu.memory_space<vmem>>, vector<1x140x192xbf16>
    %224 = vector.shape_cast %223 : vector<1x140x192xbf16> to vector<140x192xbf16>
    %cst_201 = arith.constant dense<0.000000e+00> : vector<16x192xf32>
    %225 = tpu.matmul %219, %224, %cst_201 {dimension_numbers = #tpu.dot_dimension_numbers<[1], [0], [0], [1], [0, 0, 1, 1], [], []>} : vector<16x140xbf16>, vector<140x192xbf16>, vector<16x192xf32> -> vector<16x192xf32>
    %226 = arith.maximumf %222, %225 : vector<16x192xf32>
    %c19 = arith.constant 19 : index
    %c0_202 = arith.constant 0 : index
    %c0_203 = arith.constant 0 : index
    %227 = vector.load %arg1[%c19, %c0_202, %c0_203] : memref<24x16x140xbf16, #tpu.memory_space<vmem>>, vector<1x16x140xbf16>
    %228 = vector.shape_cast %227 : vector<1x16x140xbf16> to vector<16x140xbf16>
    %c0_204 = arith.constant 0 : index
    %c0_205 = arith.constant 0 : index
    %c0_206 = arith.constant 0 : index
    %229 = vector.load %arg2[%c0_204, %c0_205, %c0_206] : memref<2x140x192xbf16, #tpu.memory_space<vmem>>, vector<1x140x192xbf16>
    %230 = vector.shape_cast %229 : vector<1x140x192xbf16> to vector<140x192xbf16>
    %cst_207 = arith.constant dense<0.000000e+00> : vector<16x192xf32>
    %231 = tpu.matmul %228, %230, %cst_207 {dimension_numbers = #tpu.dot_dimension_numbers<[1], [0], [0], [1], [0, 0, 1, 1], [], []>} : vector<16x140xbf16>, vector<140x192xbf16>, vector<16x192xf32> -> vector<16x192xf32>
    %232 = arith.maximumf %226, %231 : vector<16x192xf32>
    %c1_208 = arith.constant 1 : index
    %c0_209 = arith.constant 0 : index
    %c0_210 = arith.constant 0 : index
    %233 = vector.load %arg2[%c1_208, %c0_209, %c0_210] : memref<2x140x192xbf16, #tpu.memory_space<vmem>>, vector<1x140x192xbf16>
    %234 = vector.shape_cast %233 : vector<1x140x192xbf16> to vector<140x192xbf16>
    %cst_211 = arith.constant dense<0.000000e+00> : vector<16x192xf32>
    %235 = tpu.matmul %228, %234, %cst_211 {dimension_numbers = #tpu.dot_dimension_numbers<[1], [0], [0], [1], [0, 0, 1, 1], [], []>} : vector<16x140xbf16>, vector<140x192xbf16>, vector<16x192xf32> -> vector<16x192xf32>
    %236 = arith.maximumf %232, %235 : vector<16x192xf32>
    %237 = vector.broadcast %0 : vector<1x192xf32> to vector<16x192xf32>
    %238 = arith.addf %236, %237 : vector<16x192xf32>
    %cst_212 = arith.constant 0.000000e+00 : f32
    %239 = vector.broadcast %cst_212 : f32 to vector<16x192xf32>
    %240 = arith.maximumf %238, %239 : vector<16x192xf32>
    %241 = arith.truncf %240 : vector<16x192xf32> to vector<16x192xbf16>
    %c20 = arith.constant 20 : index
    %c0_213 = arith.constant 0 : index
    %c0_214 = arith.constant 0 : index
    %242 = vector.load %arg1[%c20, %c0_213, %c0_214] : memref<24x16x140xbf16, #tpu.memory_space<vmem>>, vector<1x16x140xbf16>
    %243 = vector.shape_cast %242 : vector<1x16x140xbf16> to vector<16x140xbf16>
    %c0_215 = arith.constant 0 : index
    %c0_216 = arith.constant 0 : index
    %c0_217 = arith.constant 0 : index
    %244 = vector.load %arg2[%c0_215, %c0_216, %c0_217] : memref<2x140x192xbf16, #tpu.memory_space<vmem>>, vector<1x140x192xbf16>
    %245 = vector.shape_cast %244 : vector<1x140x192xbf16> to vector<140x192xbf16>
    %cst_218 = arith.constant dense<0.000000e+00> : vector<16x192xf32>
    %246 = tpu.matmul %243, %245, %cst_218 {dimension_numbers = #tpu.dot_dimension_numbers<[1], [0], [0], [1], [0, 0, 1, 1], [], []>} : vector<16x140xbf16>, vector<140x192xbf16>, vector<16x192xf32> -> vector<16x192xf32>
    %c1_219 = arith.constant 1 : index
    %c0_220 = arith.constant 0 : index
    %c0_221 = arith.constant 0 : index
    %247 = vector.load %arg2[%c1_219, %c0_220, %c0_221] : memref<2x140x192xbf16, #tpu.memory_space<vmem>>, vector<1x140x192xbf16>
    %248 = vector.shape_cast %247 : vector<1x140x192xbf16> to vector<140x192xbf16>
    %cst_222 = arith.constant dense<0.000000e+00> : vector<16x192xf32>
    %249 = tpu.matmul %243, %248, %cst_222 {dimension_numbers = #tpu.dot_dimension_numbers<[1], [0], [0], [1], [0, 0, 1, 1], [], []>} : vector<16x140xbf16>, vector<140x192xbf16>, vector<16x192xf32> -> vector<16x192xf32>
    %250 = arith.maximumf %246, %249 : vector<16x192xf32>
    %c21 = arith.constant 21 : index
    %c0_223 = arith.constant 0 : index
    %c0_224 = arith.constant 0 : index
    %251 = vector.load %arg1[%c21, %c0_223, %c0_224] : memref<24x16x140xbf16, #tpu.memory_space<vmem>>, vector<1x16x140xbf16>
    %252 = vector.shape_cast %251 : vector<1x16x140xbf16> to vector<16x140xbf16>
    %c0_225 = arith.constant 0 : index
    %c0_226 = arith.constant 0 : index
    %c0_227 = arith.constant 0 : index
    %253 = vector.load %arg2[%c0_225, %c0_226, %c0_227] : memref<2x140x192xbf16, #tpu.memory_space<vmem>>, vector<1x140x192xbf16>
    %254 = vector.shape_cast %253 : vector<1x140x192xbf16> to vector<140x192xbf16>
    %cst_228 = arith.constant dense<0.000000e+00> : vector<16x192xf32>
    %255 = tpu.matmul %252, %254, %cst_228 {dimension_numbers = #tpu.dot_dimension_numbers<[1], [0], [0], [1], [0, 0, 1, 1], [], []>} : vector<16x140xbf16>, vector<140x192xbf16>, vector<16x192xf32> -> vector<16x192xf32>
    %256 = arith.maximumf %250, %255 : vector<16x192xf32>
    %c1_229 = arith.constant 1 : index
    %c0_230 = arith.constant 0 : index
    %c0_231 = arith.constant 0 : index
    %257 = vector.load %arg2[%c1_229, %c0_230, %c0_231] : memref<2x140x192xbf16, #tpu.memory_space<vmem>>, vector<1x140x192xbf16>
    %258 = vector.shape_cast %257 : vector<1x140x192xbf16> to vector<140x192xbf16>
    %cst_232 = arith.constant dense<0.000000e+00> : vector<16x192xf32>
    %259 = tpu.matmul %252, %258, %cst_232 {dimension_numbers = #tpu.dot_dimension_numbers<[1], [0], [0], [1], [0, 0, 1, 1], [], []>} : vector<16x140xbf16>, vector<140x192xbf16>, vector<16x192xf32> -> vector<16x192xf32>
    %260 = arith.maximumf %256, %259 : vector<16x192xf32>
    %261 = vector.broadcast %0 : vector<1x192xf32> to vector<16x192xf32>
    %262 = arith.addf %260, %261 : vector<16x192xf32>
    %cst_233 = arith.constant 0.000000e+00 : f32
    %263 = vector.broadcast %cst_233 : f32 to vector<16x192xf32>
    %264 = arith.maximumf %262, %263 : vector<16x192xf32>
    %265 = arith.truncf %264 : vector<16x192xf32> to vector<16x192xbf16>
    %c22 = arith.constant 22 : index
    %c0_234 = arith.constant 0 : index
    %c0_235 = arith.constant 0 : index
    %266 = vector.load %arg1[%c22, %c0_234, %c0_235] : memref<24x16x140xbf16, #tpu.memory_space<vmem>>, vector<1x16x140xbf16>
    %267 = vector.shape_cast %266 : vector<1x16x140xbf16> to vector<16x140xbf16>
    %c0_236 = arith.constant 0 : index
    %c0_237 = arith.constant 0 : index
    %c0_238 = arith.constant 0 : index
    %268 = vector.load %arg2[%c0_236, %c0_237, %c0_238] : memref<2x140x192xbf16, #tpu.memory_space<vmem>>, vector<1x140x192xbf16>
    %269 = vector.shape_cast %268 : vector<1x140x192xbf16> to vector<140x192xbf16>
    %cst_239 = arith.constant dense<0.000000e+00> : vector<16x192xf32>
    %270 = tpu.matmul %267, %269, %cst_239 {dimension_numbers = #tpu.dot_dimension_numbers<[1], [0], [0], [1], [0, 0, 1, 1], [], []>} : vector<16x140xbf16>, vector<140x192xbf16>, vector<16x192xf32> -> vector<16x192xf32>
    %c1_240 = arith.constant 1 : index
    %c0_241 = arith.constant 0 : index
    %c0_242 = arith.constant 0 : index
    %271 = vector.load %arg2[%c1_240, %c0_241, %c0_242] : memref<2x140x192xbf16, #tpu.memory_space<vmem>>, vector<1x140x192xbf16>
    %272 = vector.shape_cast %271 : vector<1x140x192xbf16> to vector<140x192xbf16>
    %cst_243 = arith.constant dense<0.000000e+00> : vector<16x192xf32>
    %273 = tpu.matmul %267, %272, %cst_243 {dimension_numbers = #tpu.dot_dimension_numbers<[1], [0], [0], [1], [0, 0, 1, 1], [], []>} : vector<16x140xbf16>, vector<140x192xbf16>, vector<16x192xf32> -> vector<16x192xf32>
    %274 = arith.maximumf %270, %273 : vector<16x192xf32>
    %c23 = arith.constant 23 : index
    %c0_244 = arith.constant 0 : index
    %c0_245 = arith.constant 0 : index
    %275 = vector.load %arg1[%c23, %c0_244, %c0_245] : memref<24x16x140xbf16, #tpu.memory_space<vmem>>, vector<1x16x140xbf16>
    %276 = vector.shape_cast %275 : vector<1x16x140xbf16> to vector<16x140xbf16>
    %c0_246 = arith.constant 0 : index
    %c0_247 = arith.constant 0 : index
    %c0_248 = arith.constant 0 : index
    %277 = vector.load %arg2[%c0_246, %c0_247, %c0_248] : memref<2x140x192xbf16, #tpu.memory_space<vmem>>, vector<1x140x192xbf16>
    %278 = vector.shape_cast %277 : vector<1x140x192xbf16> to vector<140x192xbf16>
    %cst_249 = arith.constant dense<0.000000e+00> : vector<16x192xf32>
    %279 = tpu.matmul %276, %278, %cst_249 {dimension_numbers = #tpu.dot_dimension_numbers<[1], [0], [0], [1], [0, 0, 1, 1], [], []>} : vector<16x140xbf16>, vector<140x192xbf16>, vector<16x192xf32> -> vector<16x192xf32>
    %280 = arith.maximumf %274, %279 : vector<16x192xf32>
    %c1_250 = arith.constant 1 : index
    %c0_251 = arith.constant 0 : index
    %c0_252 = arith.constant 0 : index
    %281 = vector.load %arg2[%c1_250, %c0_251, %c0_252] : memref<2x140x192xbf16, #tpu.memory_space<vmem>>, vector<1x140x192xbf16>
    %282 = vector.shape_cast %281 : vector<1x140x192xbf16> to vector<140x192xbf16>
    %cst_253 = arith.constant dense<0.000000e+00> : vector<16x192xf32>
    %283 = tpu.matmul %276, %282, %cst_253 {dimension_numbers = #tpu.dot_dimension_numbers<[1], [0], [0], [1], [0, 0, 1, 1], [], []>} : vector<16x140xbf16>, vector<140x192xbf16>, vector<16x192xf32> -> vector<16x192xf32>
    %284 = arith.maximumf %280, %283 : vector<16x192xf32>
    %285 = vector.broadcast %0 : vector<1x192xf32> to vector<16x192xf32>
    %286 = arith.addf %284, %285 : vector<16x192xf32>
    %cst_254 = arith.constant 0.000000e+00 : f32
    %287 = vector.broadcast %cst_254 : f32 to vector<16x192xf32>
    %288 = arith.maximumf %286, %287 : vector<16x192xf32>
    %289 = arith.truncf %288 : vector<16x192xf32> to vector<16x192xbf16>
    %c0_255 = arith.constant 0 : index
    %c0_256 = arith.constant 0 : index
    %c0_257 = arith.constant 0 : index
    %290 = vector.load %arg4[%c0_255, %c0_256, %c0_257] : memref<5x192x256xbf16, #tpu.memory_space<vmem>>, vector<1x192x256xbf16>
    %291 = vector.shape_cast %290 : vector<1x192x256xbf16> to vector<192x256xbf16>
    %cst_258 = arith.constant dense<0.000000e+00> : vector<16x256xf32>
    %292 = tpu.matmul %25, %291, %cst_258 {dimension_numbers = #tpu.dot_dimension_numbers<[1], [0], [0], [1], [0, 0, 1, 1], [], []>} : vector<16x192xbf16>, vector<192x256xbf16>, vector<16x256xf32> -> vector<16x256xf32>
    %c1_259 = arith.constant 1 : index
    %c0_260 = arith.constant 0 : index
    %c0_261 = arith.constant 0 : index
    %293 = vector.load %arg4[%c1_259, %c0_260, %c0_261] : memref<5x192x256xbf16, #tpu.memory_space<vmem>>, vector<1x192x256xbf16>
    %294 = vector.shape_cast %293 : vector<1x192x256xbf16> to vector<192x256xbf16>
    %cst_262 = arith.constant dense<0.000000e+00> : vector<16x256xf32>
    %295 = tpu.matmul %49, %294, %cst_262 {dimension_numbers = #tpu.dot_dimension_numbers<[1], [0], [0], [1], [0, 0, 1, 1], [], []>} : vector<16x192xbf16>, vector<192x256xbf16>, vector<16x256xf32> -> vector<16x256xf32>
    %296 = arith.addf %292, %295 : vector<16x256xf32>
    %c2_263 = arith.constant 2 : index
    %c0_264 = arith.constant 0 : index
    %c0_265 = arith.constant 0 : index
    %297 = vector.load %arg4[%c2_263, %c0_264, %c0_265] : memref<5x192x256xbf16, #tpu.memory_space<vmem>>, vector<1x192x256xbf16>
    %298 = vector.shape_cast %297 : vector<1x192x256xbf16> to vector<192x256xbf16>
    %cst_266 = arith.constant dense<0.000000e+00> : vector<16x256xf32>
    %299 = tpu.matmul %73, %298, %cst_266 {dimension_numbers = #tpu.dot_dimension_numbers<[1], [0], [0], [1], [0, 0, 1, 1], [], []>} : vector<16x192xbf16>, vector<192x256xbf16>, vector<16x256xf32> -> vector<16x256xf32>
    %300 = arith.addf %296, %299 : vector<16x256xf32>
    %c3_267 = arith.constant 3 : index
    %c0_268 = arith.constant 0 : index
    %c0_269 = arith.constant 0 : index
    %301 = vector.load %arg4[%c3_267, %c0_268, %c0_269] : memref<5x192x256xbf16, #tpu.memory_space<vmem>>, vector<1x192x256xbf16>
    %302 = vector.shape_cast %301 : vector<1x192x256xbf16> to vector<192x256xbf16>
    %cst_270 = arith.constant dense<0.000000e+00> : vector<16x256xf32>
    %303 = tpu.matmul %97, %302, %cst_270 {dimension_numbers = #tpu.dot_dimension_numbers<[1], [0], [0], [1], [0, 0, 1, 1], [], []>} : vector<16x192xbf16>, vector<192x256xbf16>, vector<16x256xf32> -> vector<16x256xf32>
    %304 = arith.addf %300, %303 : vector<16x256xf32>
    %c4_271 = arith.constant 4 : index
    %c0_272 = arith.constant 0 : index
    %c0_273 = arith.constant 0 : index
    %305 = vector.load %arg4[%c4_271, %c0_272, %c0_273] : memref<5x192x256xbf16, #tpu.memory_space<vmem>>, vector<1x192x256xbf16>
    %306 = vector.shape_cast %305 : vector<1x192x256xbf16> to vector<192x256xbf16>
    %cst_274 = arith.constant dense<0.000000e+00> : vector<16x256xf32>
    %307 = tpu.matmul %121, %306, %cst_274 {dimension_numbers = #tpu.dot_dimension_numbers<[1], [0], [0], [1], [0, 0, 1, 1], [], []>} : vector<16x192xbf16>, vector<192x256xbf16>, vector<16x256xf32> -> vector<16x256xf32>
    %308 = arith.addf %304, %307 : vector<16x256xf32>
    %309 = vector.extract_strided_slice %308 {offsets = [0, 0], sizes = [16, 128], strides = [1, 1]} : vector<16x256xf32> to vector<16x128xf32>
    %310 = vector.extract_strided_slice %308 {offsets = [0, 128], sizes = [16, 128], strides = [1, 1]} : vector<16x256xf32> to vector<16x128xf32>
    %311 = arith.maximumf %309, %310 : vector<16x128xf32>
    %c0_275 = arith.constant 0 : index
    %c0_276 = arith.constant 0 : index
    %c0_277 = arith.constant 0 : index
    %312 = vector.load %arg4[%c0_275, %c0_276, %c0_277] : memref<5x192x256xbf16, #tpu.memory_space<vmem>>, vector<1x192x256xbf16>
    %313 = vector.shape_cast %312 : vector<1x192x256xbf16> to vector<192x256xbf16>
    %cst_278 = arith.constant dense<0.000000e+00> : vector<16x256xf32>
    %314 = tpu.matmul %49, %313, %cst_278 {dimension_numbers = #tpu.dot_dimension_numbers<[1], [0], [0], [1], [0, 0, 1, 1], [], []>} : vector<16x192xbf16>, vector<192x256xbf16>, vector<16x256xf32> -> vector<16x256xf32>
    %c1_279 = arith.constant 1 : index
    %c0_280 = arith.constant 0 : index
    %c0_281 = arith.constant 0 : index
    %315 = vector.load %arg4[%c1_279, %c0_280, %c0_281] : memref<5x192x256xbf16, #tpu.memory_space<vmem>>, vector<1x192x256xbf16>
    %316 = vector.shape_cast %315 : vector<1x192x256xbf16> to vector<192x256xbf16>
    %cst_282 = arith.constant dense<0.000000e+00> : vector<16x256xf32>
    %317 = tpu.matmul %73, %316, %cst_282 {dimension_numbers = #tpu.dot_dimension_numbers<[1], [0], [0], [1], [0, 0, 1, 1], [], []>} : vector<16x192xbf16>, vector<192x256xbf16>, vector<16x256xf32> -> vector<16x256xf32>
    %318 = arith.addf %314, %317 : vector<16x256xf32>
    %c2_283 = arith.constant 2 : index
    %c0_284 = arith.constant 0 : index
    %c0_285 = arith.constant 0 : index
    %319 = vector.load %arg4[%c2_283, %c0_284, %c0_285] : memref<5x192x256xbf16, #tpu.memory_space<vmem>>, vector<1x192x256xbf16>
    %320 = vector.shape_cast %319 : vector<1x192x256xbf16> to vector<192x256xbf16>
    %cst_286 = arith.constant dense<0.000000e+00> : vector<16x256xf32>
    %321 = tpu.matmul %97, %320, %cst_286 {dimension_numbers = #tpu.dot_dimension_numbers<[1], [0], [0], [1], [0, 0, 1, 1], [], []>} : vector<16x192xbf16>, vector<192x256xbf16>, vector<16x256xf32> -> vector<16x256xf32>
    %322 = arith.addf %318, %321 : vector<16x256xf32>
    %c3_287 = arith.constant 3 : index
    %c0_288 = arith.constant 0 : index
    %c0_289 = arith.constant 0 : index
    %323 = vector.load %arg4[%c3_287, %c0_288, %c0_289] : memref<5x192x256xbf16, #tpu.memory_space<vmem>>, vector<1x192x256xbf16>
    %324 = vector.shape_cast %323 : vector<1x192x256xbf16> to vector<192x256xbf16>
    %cst_290 = arith.constant dense<0.000000e+00> : vector<16x256xf32>
    %325 = tpu.matmul %121, %324, %cst_290 {dimension_numbers = #tpu.dot_dimension_numbers<[1], [0], [0], [1], [0, 0, 1, 1], [], []>} : vector<16x192xbf16>, vector<192x256xbf16>, vector<16x256xf32> -> vector<16x256xf32>
    %326 = arith.addf %322, %325 : vector<16x256xf32>
    %c4_291 = arith.constant 4 : index
    %c0_292 = arith.constant 0 : index
    %c0_293 = arith.constant 0 : index
    %327 = vector.load %arg4[%c4_291, %c0_292, %c0_293] : memref<5x192x256xbf16, #tpu.memory_space<vmem>>, vector<1x192x256xbf16>
    %328 = vector.shape_cast %327 : vector<1x192x256xbf16> to vector<192x256xbf16>
    %cst_294 = arith.constant dense<0.000000e+00> : vector<16x256xf32>
    %329 = tpu.matmul %145, %328, %cst_294 {dimension_numbers = #tpu.dot_dimension_numbers<[1], [0], [0], [1], [0, 0, 1, 1], [], []>} : vector<16x192xbf16>, vector<192x256xbf16>, vector<16x256xf32> -> vector<16x256xf32>
    %330 = arith.addf %326, %329 : vector<16x256xf32>
    %331 = vector.extract_strided_slice %330 {offsets = [0, 0], sizes = [16, 128], strides = [1, 1]} : vector<16x256xf32> to vector<16x128xf32>
    %332 = vector.extract_strided_slice %330 {offsets = [0, 128], sizes = [16, 128], strides = [1, 1]} : vector<16x256xf32> to vector<16x128xf32>
    %333 = arith.maximumf %331, %332 : vector<16x128xf32>
    %334 = arith.maximumf %311, %333 : vector<16x128xf32>
    %335 = vector.broadcast %1 : vector<1x128xf32> to vector<16x128xf32>
    %336 = arith.addf %334, %335 : vector<16x128xf32>
    %cst_295 = arith.constant 0.000000e+00 : f32
    %337 = vector.broadcast %cst_295 : f32 to vector<16x128xf32>
    %338 = arith.maximumf %336, %337 : vector<16x128xf32>
    %339 = arith.truncf %338 : vector<16x128xf32> to vector<16x128xbf16>
    %c0_296 = arith.constant 0 : index
    %c0_297 = arith.constant 0 : index
    %c0_298 = arith.constant 0 : index
    %340 = vector.load %arg4[%c0_296, %c0_297, %c0_298] : memref<5x192x256xbf16, #tpu.memory_space<vmem>>, vector<1x192x256xbf16>
    %341 = vector.shape_cast %340 : vector<1x192x256xbf16> to vector<192x256xbf16>
    %cst_299 = arith.constant dense<0.000000e+00> : vector<16x256xf32>
    %342 = tpu.matmul %73, %341, %cst_299 {dimension_numbers = #tpu.dot_dimension_numbers<[1], [0], [0], [1], [0, 0, 1, 1], [], []>} : vector<16x192xbf16>, vector<192x256xbf16>, vector<16x256xf32> -> vector<16x256xf32>
    %c1_300 = arith.constant 1 : index
    %c0_301 = arith.constant 0 : index
    %c0_302 = arith.constant 0 : index
    %343 = vector.load %arg4[%c1_300, %c0_301, %c0_302] : memref<5x192x256xbf16, #tpu.memory_space<vmem>>, vector<1x192x256xbf16>
    %344 = vector.shape_cast %343 : vector<1x192x256xbf16> to vector<192x256xbf16>
    %cst_303 = arith.constant dense<0.000000e+00> : vector<16x256xf32>
    %345 = tpu.matmul %97, %344, %cst_303 {dimension_numbers = #tpu.dot_dimension_numbers<[1], [0], [0], [1], [0, 0, 1, 1], [], []>} : vector<16x192xbf16>, vector<192x256xbf16>, vector<16x256xf32> -> vector<16x256xf32>
    %346 = arith.addf %342, %345 : vector<16x256xf32>
    %c2_304 = arith.constant 2 : index
    %c0_305 = arith.constant 0 : index
    %c0_306 = arith.constant 0 : index
    %347 = vector.load %arg4[%c2_304, %c0_305, %c0_306] : memref<5x192x256xbf16, #tpu.memory_space<vmem>>, vector<1x192x256xbf16>
    %348 = vector.shape_cast %347 : vector<1x192x256xbf16> to vector<192x256xbf16>
    %cst_307 = arith.constant dense<0.000000e+00> : vector<16x256xf32>
    %349 = tpu.matmul %121, %348, %cst_307 {dimension_numbers = #tpu.dot_dimension_numbers<[1], [0], [0], [1], [0, 0, 1, 1], [], []>} : vector<16x192xbf16>, vector<192x256xbf16>, vector<16x256xf32> -> vector<16x256xf32>
    %350 = arith.addf %346, %349 : vector<16x256xf32>
    %c3_308 = arith.constant 3 : index
    %c0_309 = arith.constant 0 : index
    %c0_310 = arith.constant 0 : index
    %351 = vector.load %arg4[%c3_308, %c0_309, %c0_310] : memref<5x192x256xbf16, #tpu.memory_space<vmem>>, vector<1x192x256xbf16>
    %352 = vector.shape_cast %351 : vector<1x192x256xbf16> to vector<192x256xbf16>
    %cst_311 = arith.constant dense<0.000000e+00> : vector<16x256xf32>
    %353 = tpu.matmul %145, %352, %cst_311 {dimension_numbers = #tpu.dot_dimension_numbers<[1], [0], [0], [1], [0, 0, 1, 1], [], []>} : vector<16x192xbf16>, vector<192x256xbf16>, vector<16x256xf32> -> vector<16x256xf32>
    %354 = arith.addf %350, %353 : vector<16x256xf32>
    %c4_312 = arith.constant 4 : index
    %c0_313 = arith.constant 0 : index
    %c0_314 = arith.constant 0 : index
    %355 = vector.load %arg4[%c4_312, %c0_313, %c0_314] : memref<5x192x256xbf16, #tpu.memory_space<vmem>>, vector<1x192x256xbf16>
    %356 = vector.shape_cast %355 : vector<1x192x256xbf16> to vector<192x256xbf16>
    %cst_315 = arith.constant dense<0.000000e+00> : vector<16x256xf32>
    %357 = tpu.matmul %169, %356, %cst_315 {dimension_numbers = #tpu.dot_dimension_numbers<[1], [0], [0], [1], [0, 0, 1, 1], [], []>} : vector<16x192xbf16>, vector<192x256xbf16>, vector<16x256xf32> -> vector<16x256xf32>
    %358 = arith.addf %354, %357 : vector<16x256xf32>
    %359 = vector.extract_strided_slice %358 {offsets = [0, 0], sizes = [16, 128], strides = [1, 1]} : vector<16x256xf32> to vector<16x128xf32>
    %360 = vector.extract_strided_slice %358 {offsets = [0, 128], sizes = [16, 128], strides = [1, 1]} : vector<16x256xf32> to vector<16x128xf32>
    %361 = arith.maximumf %359, %360 : vector<16x128xf32>
    %c0_316 = arith.constant 0 : index
    %c0_317 = arith.constant 0 : index
    %c0_318 = arith.constant 0 : index
    %362 = vector.load %arg4[%c0_316, %c0_317, %c0_318] : memref<5x192x256xbf16, #tpu.memory_space<vmem>>, vector<1x192x256xbf16>
    %363 = vector.shape_cast %362 : vector<1x192x256xbf16> to vector<192x256xbf16>
    %cst_319 = arith.constant dense<0.000000e+00> : vector<16x256xf32>
    %364 = tpu.matmul %97, %363, %cst_319 {dimension_numbers = #tpu.dot_dimension_numbers<[1], [0], [0], [1], [0, 0, 1, 1], [], []>} : vector<16x192xbf16>, vector<192x256xbf16>, vector<16x256xf32> -> vector<16x256xf32>
    %c1_320 = arith.constant 1 : index
    %c0_321 = arith.constant 0 : index
    %c0_322 = arith.constant 0 : index
    %365 = vector.load %arg4[%c1_320, %c0_321, %c0_322] : memref<5x192x256xbf16, #tpu.memory_space<vmem>>, vector<1x192x256xbf16>
    %366 = vector.shape_cast %365 : vector<1x192x256xbf16> to vector<192x256xbf16>
    %cst_323 = arith.constant dense<0.000000e+00> : vector<16x256xf32>
    %367 = tpu.matmul %121, %366, %cst_323 {dimension_numbers = #tpu.dot_dimension_numbers<[1], [0], [0], [1], [0, 0, 1, 1], [], []>} : vector<16x192xbf16>, vector<192x256xbf16>, vector<16x256xf32> -> vector<16x256xf32>
    %368 = arith.addf %364, %367 : vector<16x256xf32>
    %c2_324 = arith.constant 2 : index
    %c0_325 = arith.constant 0 : index
    %c0_326 = arith.constant 0 : index
    %369 = vector.load %arg4[%c2_324, %c0_325, %c0_326] : memref<5x192x256xbf16, #tpu.memory_space<vmem>>, vector<1x192x256xbf16>
    %370 = vector.shape_cast %369 : vector<1x192x256xbf16> to vector<192x256xbf16>
    %cst_327 = arith.constant dense<0.000000e+00> : vector<16x256xf32>
    %371 = tpu.matmul %145, %370, %cst_327 {dimension_numbers = #tpu.dot_dimension_numbers<[1], [0], [0], [1], [0, 0, 1, 1], [], []>} : vector<16x192xbf16>, vector<192x256xbf16>, vector<16x256xf32> -> vector<16x256xf32>
    %372 = arith.addf %368, %371 : vector<16x256xf32>
    %c3_328 = arith.constant 3 : index
    %c0_329 = arith.constant 0 : index
    %c0_330 = arith.constant 0 : index
    %373 = vector.load %arg4[%c3_328, %c0_329, %c0_330] : memref<5x192x256xbf16, #tpu.memory_space<vmem>>, vector<1x192x256xbf16>
    %374 = vector.shape_cast %373 : vector<1x192x256xbf16> to vector<192x256xbf16>
    %cst_331 = arith.constant dense<0.000000e+00> : vector<16x256xf32>
    %375 = tpu.matmul %169, %374, %cst_331 {dimension_numbers = #tpu.dot_dimension_numbers<[1], [0], [0], [1], [0, 0, 1, 1], [], []>} : vector<16x192xbf16>, vector<192x256xbf16>, vector<16x256xf32> -> vector<16x256xf32>
    %376 = arith.addf %372, %375 : vector<16x256xf32>
    %c4_332 = arith.constant 4 : index
    %c0_333 = arith.constant 0 : index
    %c0_334 = arith.constant 0 : index
    %377 = vector.load %arg4[%c4_332, %c0_333, %c0_334] : memref<5x192x256xbf16, #tpu.memory_space<vmem>>, vector<1x192x256xbf16>
    %378 = vector.shape_cast %377 : vector<1x192x256xbf16> to vector<192x256xbf16>
    %cst_335 = arith.constant dense<0.000000e+00> : vector<16x256xf32>
    %379 = tpu.matmul %193, %378, %cst_335 {dimension_numbers = #tpu.dot_dimension_numbers<[1], [0], [0], [1], [0, 0, 1, 1], [], []>} : vector<16x192xbf16>, vector<192x256xbf16>, vector<16x256xf32> -> vector<16x256xf32>
    %380 = arith.addf %376, %379 : vector<16x256xf32>
    %381 = vector.extract_strided_slice %380 {offsets = [0, 0], sizes = [16, 128], strides = [1, 1]} : vector<16x256xf32> to vector<16x128xf32>
    %382 = vector.extract_strided_slice %380 {offsets = [0, 128], sizes = [16, 128], strides = [1, 1]} : vector<16x256xf32> to vector<16x128xf32>
    %383 = arith.maximumf %381, %382 : vector<16x128xf32>
    %384 = arith.maximumf %361, %383 : vector<16x128xf32>
    %385 = vector.broadcast %1 : vector<1x128xf32> to vector<16x128xf32>
    %386 = arith.addf %384, %385 : vector<16x128xf32>
    %cst_336 = arith.constant 0.000000e+00 : f32
    %387 = vector.broadcast %cst_336 : f32 to vector<16x128xf32>
    %388 = arith.maximumf %386, %387 : vector<16x128xf32>
    %389 = arith.truncf %388 : vector<16x128xf32> to vector<16x128xbf16>
    %c0_337 = arith.constant 0 : index
    %c0_338 = arith.constant 0 : index
    %c0_339 = arith.constant 0 : index
    %390 = vector.load %arg4[%c0_337, %c0_338, %c0_339] : memref<5x192x256xbf16, #tpu.memory_space<vmem>>, vector<1x192x256xbf16>
    %391 = vector.shape_cast %390 : vector<1x192x256xbf16> to vector<192x256xbf16>
    %cst_340 = arith.constant dense<0.000000e+00> : vector<16x256xf32>
    %392 = tpu.matmul %121, %391, %cst_340 {dimension_numbers = #tpu.dot_dimension_numbers<[1], [0], [0], [1], [0, 0, 1, 1], [], []>} : vector<16x192xbf16>, vector<192x256xbf16>, vector<16x256xf32> -> vector<16x256xf32>
    %c1_341 = arith.constant 1 : index
    %c0_342 = arith.constant 0 : index
    %c0_343 = arith.constant 0 : index
    %393 = vector.load %arg4[%c1_341, %c0_342, %c0_343] : memref<5x192x256xbf16, #tpu.memory_space<vmem>>, vector<1x192x256xbf16>
    %394 = vector.shape_cast %393 : vector<1x192x256xbf16> to vector<192x256xbf16>
    %cst_344 = arith.constant dense<0.000000e+00> : vector<16x256xf32>
    %395 = tpu.matmul %145, %394, %cst_344 {dimension_numbers = #tpu.dot_dimension_numbers<[1], [0], [0], [1], [0, 0, 1, 1], [], []>} : vector<16x192xbf16>, vector<192x256xbf16>, vector<16x256xf32> -> vector<16x256xf32>
    %396 = arith.addf %392, %395 : vector<16x256xf32>
    %c2_345 = arith.constant 2 : index
    %c0_346 = arith.constant 0 : index
    %c0_347 = arith.constant 0 : index
    %397 = vector.load %arg4[%c2_345, %c0_346, %c0_347] : memref<5x192x256xbf16, #tpu.memory_space<vmem>>, vector<1x192x256xbf16>
    %398 = vector.shape_cast %397 : vector<1x192x256xbf16> to vector<192x256xbf16>
    %cst_348 = arith.constant dense<0.000000e+00> : vector<16x256xf32>
    %399 = tpu.matmul %169, %398, %cst_348 {dimension_numbers = #tpu.dot_dimension_numbers<[1], [0], [0], [1], [0, 0, 1, 1], [], []>} : vector<16x192xbf16>, vector<192x256xbf16>, vector<16x256xf32> -> vector<16x256xf32>
    %400 = arith.addf %396, %399 : vector<16x256xf32>
    %c3_349 = arith.constant 3 : index
    %c0_350 = arith.constant 0 : index
    %c0_351 = arith.constant 0 : index
    %401 = vector.load %arg4[%c3_349, %c0_350, %c0_351] : memref<5x192x256xbf16, #tpu.memory_space<vmem>>, vector<1x192x256xbf16>
    %402 = vector.shape_cast %401 : vector<1x192x256xbf16> to vector<192x256xbf16>
    %cst_352 = arith.constant dense<0.000000e+00> : vector<16x256xf32>
    %403 = tpu.matmul %193, %402, %cst_352 {dimension_numbers = #tpu.dot_dimension_numbers<[1], [0], [0], [1], [0, 0, 1, 1], [], []>} : vector<16x192xbf16>, vector<192x256xbf16>, vector<16x256xf32> -> vector<16x256xf32>
    %404 = arith.addf %400, %403 : vector<16x256xf32>
    %c4_353 = arith.constant 4 : index
    %c0_354 = arith.constant 0 : index
    %c0_355 = arith.constant 0 : index
    %405 = vector.load %arg4[%c4_353, %c0_354, %c0_355] : memref<5x192x256xbf16, #tpu.memory_space<vmem>>, vector<1x192x256xbf16>
    %406 = vector.shape_cast %405 : vector<1x192x256xbf16> to vector<192x256xbf16>
    %cst_356 = arith.constant dense<0.000000e+00> : vector<16x256xf32>
    %407 = tpu.matmul %217, %406, %cst_356 {dimension_numbers = #tpu.dot_dimension_numbers<[1], [0], [0], [1], [0, 0, 1, 1], [], []>} : vector<16x192xbf16>, vector<192x256xbf16>, vector<16x256xf32> -> vector<16x256xf32>
    %408 = arith.addf %404, %407 : vector<16x256xf32>
    %409 = vector.extract_strided_slice %408 {offsets = [0, 0], sizes = [16, 128], strides = [1, 1]} : vector<16x256xf32> to vector<16x128xf32>
    %410 = vector.extract_strided_slice %408 {offsets = [0, 128], sizes = [16, 128], strides = [1, 1]} : vector<16x256xf32> to vector<16x128xf32>
    %411 = arith.maximumf %409, %410 : vector<16x128xf32>
    %c0_357 = arith.constant 0 : index
    %c0_358 = arith.constant 0 : index
    %c0_359 = arith.constant 0 : index
    %412 = vector.load %arg4[%c0_357, %c0_358, %c0_359] : memref<5x192x256xbf16, #tpu.memory_space<vmem>>, vector<1x192x256xbf16>
    %413 = vector.shape_cast %412 : vector<1x192x256xbf16> to vector<192x256xbf16>
    %cst_360 = arith.constant dense<0.000000e+00> : vector<16x256xf32>
    %414 = tpu.matmul %145, %413, %cst_360 {dimension_numbers = #tpu.dot_dimension_numbers<[1], [0], [0], [1], [0, 0, 1, 1], [], []>} : vector<16x192xbf16>, vector<192x256xbf16>, vector<16x256xf32> -> vector<16x256xf32>
    %c1_361 = arith.constant 1 : index
    %c0_362 = arith.constant 0 : index
    %c0_363 = arith.constant 0 : index
    %415 = vector.load %arg4[%c1_361, %c0_362, %c0_363] : memref<5x192x256xbf16, #tpu.memory_space<vmem>>, vector<1x192x256xbf16>
    %416 = vector.shape_cast %415 : vector<1x192x256xbf16> to vector<192x256xbf16>
    %cst_364 = arith.constant dense<0.000000e+00> : vector<16x256xf32>
    %417 = tpu.matmul %169, %416, %cst_364 {dimension_numbers = #tpu.dot_dimension_numbers<[1], [0], [0], [1], [0, 0, 1, 1], [], []>} : vector<16x192xbf16>, vector<192x256xbf16>, vector<16x256xf32> -> vector<16x256xf32>
    %418 = arith.addf %414, %417 : vector<16x256xf32>
    %c2_365 = arith.constant 2 : index
    %c0_366 = arith.constant 0 : index
    %c0_367 = arith.constant 0 : index
    %419 = vector.load %arg4[%c2_365, %c0_366, %c0_367] : memref<5x192x256xbf16, #tpu.memory_space<vmem>>, vector<1x192x256xbf16>
    %420 = vector.shape_cast %419 : vector<1x192x256xbf16> to vector<192x256xbf16>
    %cst_368 = arith.constant dense<0.000000e+00> : vector<16x256xf32>
    %421 = tpu.matmul %193, %420, %cst_368 {dimension_numbers = #tpu.dot_dimension_numbers<[1], [0], [0], [1], [0, 0, 1, 1], [], []>} : vector<16x192xbf16>, vector<192x256xbf16>, vector<16x256xf32> -> vector<16x256xf32>
    %422 = arith.addf %418, %421 : vector<16x256xf32>
    %c3_369 = arith.constant 3 : index
    %c0_370 = arith.constant 0 : index
    %c0_371 = arith.constant 0 : index
    %423 = vector.load %arg4[%c3_369, %c0_370, %c0_371] : memref<5x192x256xbf16, #tpu.memory_space<vmem>>, vector<1x192x256xbf16>
    %424 = vector.shape_cast %423 : vector<1x192x256xbf16> to vector<192x256xbf16>
    %cst_372 = arith.constant dense<0.000000e+00> : vector<16x256xf32>
    %425 = tpu.matmul %217, %424, %cst_372 {dimension_numbers = #tpu.dot_dimension_numbers<[1], [0], [0], [1], [0, 0, 1, 1], [], []>} : vector<16x192xbf16>, vector<192x256xbf16>, vector<16x256xf32> -> vector<16x256xf32>
    %426 = arith.addf %422, %425 : vector<16x256xf32>
    %c4_373 = arith.constant 4 : index
    %c0_374 = arith.constant 0 : index
    %c0_375 = arith.constant 0 : index
    %427 = vector.load %arg4[%c4_373, %c0_374, %c0_375] : memref<5x192x256xbf16, #tpu.memory_space<vmem>>, vector<1x192x256xbf16>
    %428 = vector.shape_cast %427 : vector<1x192x256xbf16> to vector<192x256xbf16>
    %cst_376 = arith.constant dense<0.000000e+00> : vector<16x256xf32>
    %429 = tpu.matmul %241, %428, %cst_376 {dimension_numbers = #tpu.dot_dimension_numbers<[1], [0], [0], [1], [0, 0, 1, 1], [], []>} : vector<16x192xbf16>, vector<192x256xbf16>, vector<16x256xf32> -> vector<16x256xf32>
    %430 = arith.addf %426, %429 : vector<16x256xf32>
    %431 = vector.extract_strided_slice %430 {offsets = [0, 0], sizes = [16, 128], strides = [1, 1]} : vector<16x256xf32> to vector<16x128xf32>
    %432 = vector.extract_strided_slice %430 {offsets = [0, 128], sizes = [16, 128], strides = [1, 1]} : vector<16x256xf32> to vector<16x128xf32>
    %433 = arith.maximumf %431, %432 : vector<16x128xf32>
    %434 = arith.maximumf %411, %433 : vector<16x128xf32>
    %435 = vector.broadcast %1 : vector<1x128xf32> to vector<16x128xf32>
    %436 = arith.addf %434, %435 : vector<16x128xf32>
    %cst_377 = arith.constant 0.000000e+00 : f32
    %437 = vector.broadcast %cst_377 : f32 to vector<16x128xf32>
    %438 = arith.maximumf %436, %437 : vector<16x128xf32>
    %439 = arith.truncf %438 : vector<16x128xf32> to vector<16x128xbf16>
    %c0_378 = arith.constant 0 : index
    %c0_379 = arith.constant 0 : index
    %c0_380 = arith.constant 0 : index
    %440 = vector.load %arg4[%c0_378, %c0_379, %c0_380] : memref<5x192x256xbf16, #tpu.memory_space<vmem>>, vector<1x192x256xbf16>
    %441 = vector.shape_cast %440 : vector<1x192x256xbf16> to vector<192x256xbf16>
    %cst_381 = arith.constant dense<0.000000e+00> : vector<16x256xf32>
    %442 = tpu.matmul %169, %441, %cst_381 {dimension_numbers = #tpu.dot_dimension_numbers<[1], [0], [0], [1], [0, 0, 1, 1], [], []>} : vector<16x192xbf16>, vector<192x256xbf16>, vector<16x256xf32> -> vector<16x256xf32>
    %c1_382 = arith.constant 1 : index
    %c0_383 = arith.constant 0 : index
    %c0_384 = arith.constant 0 : index
    %443 = vector.load %arg4[%c1_382, %c0_383, %c0_384] : memref<5x192x256xbf16, #tpu.memory_space<vmem>>, vector<1x192x256xbf16>
    %444 = vector.shape_cast %443 : vector<1x192x256xbf16> to vector<192x256xbf16>
    %cst_385 = arith.constant dense<0.000000e+00> : vector<16x256xf32>
    %445 = tpu.matmul %193, %444, %cst_385 {dimension_numbers = #tpu.dot_dimension_numbers<[1], [0], [0], [1], [0, 0, 1, 1], [], []>} : vector<16x192xbf16>, vector<192x256xbf16>, vector<16x256xf32> -> vector<16x256xf32>
    %446 = arith.addf %442, %445 : vector<16x256xf32>
    %c2_386 = arith.constant 2 : index
    %c0_387 = arith.constant 0 : index
    %c0_388 = arith.constant 0 : index
    %447 = vector.load %arg4[%c2_386, %c0_387, %c0_388] : memref<5x192x256xbf16, #tpu.memory_space<vmem>>, vector<1x192x256xbf16>
    %448 = vector.shape_cast %447 : vector<1x192x256xbf16> to vector<192x256xbf16>
    %cst_389 = arith.constant dense<0.000000e+00> : vector<16x256xf32>
    %449 = tpu.matmul %217, %448, %cst_389 {dimension_numbers = #tpu.dot_dimension_numbers<[1], [0], [0], [1], [0, 0, 1, 1], [], []>} : vector<16x192xbf16>, vector<192x256xbf16>, vector<16x256xf32> -> vector<16x256xf32>
    %450 = arith.addf %446, %449 : vector<16x256xf32>
    %c3_390 = arith.constant 3 : index
    %c0_391 = arith.constant 0 : index
    %c0_392 = arith.constant 0 : index
    %451 = vector.load %arg4[%c3_390, %c0_391, %c0_392] : memref<5x192x256xbf16, #tpu.memory_space<vmem>>, vector<1x192x256xbf16>
    %452 = vector.shape_cast %451 : vector<1x192x256xbf16> to vector<192x256xbf16>
    %cst_393 = arith.constant dense<0.000000e+00> : vector<16x256xf32>
    %453 = tpu.matmul %241, %452, %cst_393 {dimension_numbers = #tpu.dot_dimension_numbers<[1], [0], [0], [1], [0, 0, 1, 1], [], []>} : vector<16x192xbf16>, vector<192x256xbf16>, vector<16x256xf32> -> vector<16x256xf32>
    %454 = arith.addf %450, %453 : vector<16x256xf32>
    %c4_394 = arith.constant 4 : index
    %c0_395 = arith.constant 0 : index
    %c0_396 = arith.constant 0 : index
    %455 = vector.load %arg4[%c4_394, %c0_395, %c0_396] : memref<5x192x256xbf16, #tpu.memory_space<vmem>>, vector<1x192x256xbf16>
    %456 = vector.shape_cast %455 : vector<1x192x256xbf16> to vector<192x256xbf16>
    %cst_397 = arith.constant dense<0.000000e+00> : vector<16x256xf32>
    %457 = tpu.matmul %265, %456, %cst_397 {dimension_numbers = #tpu.dot_dimension_numbers<[1], [0], [0], [1], [0, 0, 1, 1], [], []>} : vector<16x192xbf16>, vector<192x256xbf16>, vector<16x256xf32> -> vector<16x256xf32>
    %458 = arith.addf %454, %457 : vector<16x256xf32>
    %459 = vector.extract_strided_slice %458 {offsets = [0, 0], sizes = [16, 128], strides = [1, 1]} : vector<16x256xf32> to vector<16x128xf32>
    %460 = vector.extract_strided_slice %458 {offsets = [0, 128], sizes = [16, 128], strides = [1, 1]} : vector<16x256xf32> to vector<16x128xf32>
    %461 = arith.maximumf %459, %460 : vector<16x128xf32>
    %c0_398 = arith.constant 0 : index
    %c0_399 = arith.constant 0 : index
    %c0_400 = arith.constant 0 : index
    %462 = vector.load %arg4[%c0_398, %c0_399, %c0_400] : memref<5x192x256xbf16, #tpu.memory_space<vmem>>, vector<1x192x256xbf16>
    %463 = vector.shape_cast %462 : vector<1x192x256xbf16> to vector<192x256xbf16>
    %cst_401 = arith.constant dense<0.000000e+00> : vector<16x256xf32>
    %464 = tpu.matmul %193, %463, %cst_401 {dimension_numbers = #tpu.dot_dimension_numbers<[1], [0], [0], [1], [0, 0, 1, 1], [], []>} : vector<16x192xbf16>, vector<192x256xbf16>, vector<16x256xf32> -> vector<16x256xf32>
    %c1_402 = arith.constant 1 : index
    %c0_403 = arith.constant 0 : index
    %c0_404 = arith.constant 0 : index
    %465 = vector.load %arg4[%c1_402, %c0_403, %c0_404] : memref<5x192x256xbf16, #tpu.memory_space<vmem>>, vector<1x192x256xbf16>
    %466 = vector.shape_cast %465 : vector<1x192x256xbf16> to vector<192x256xbf16>
    %cst_405 = arith.constant dense<0.000000e+00> : vector<16x256xf32>
    %467 = tpu.matmul %217, %466, %cst_405 {dimension_numbers = #tpu.dot_dimension_numbers<[1], [0], [0], [1], [0, 0, 1, 1], [], []>} : vector<16x192xbf16>, vector<192x256xbf16>, vector<16x256xf32> -> vector<16x256xf32>
    %468 = arith.addf %464, %467 : vector<16x256xf32>
    %c2_406 = arith.constant 2 : index
    %c0_407 = arith.constant 0 : index
    %c0_408 = arith.constant 0 : index
    %469 = vector.load %arg4[%c2_406, %c0_407, %c0_408] : memref<5x192x256xbf16, #tpu.memory_space<vmem>>, vector<1x192x256xbf16>
    %470 = vector.shape_cast %469 : vector<1x192x256xbf16> to vector<192x256xbf16>
    %cst_409 = arith.constant dense<0.000000e+00> : vector<16x256xf32>
    %471 = tpu.matmul %241, %470, %cst_409 {dimension_numbers = #tpu.dot_dimension_numbers<[1], [0], [0], [1], [0, 0, 1, 1], [], []>} : vector<16x192xbf16>, vector<192x256xbf16>, vector<16x256xf32> -> vector<16x256xf32>
    %472 = arith.addf %468, %471 : vector<16x256xf32>
    %c3_410 = arith.constant 3 : index
    %c0_411 = arith.constant 0 : index
    %c0_412 = arith.constant 0 : index
    %473 = vector.load %arg4[%c3_410, %c0_411, %c0_412] : memref<5x192x256xbf16, #tpu.memory_space<vmem>>, vector<1x192x256xbf16>
    %474 = vector.shape_cast %473 : vector<1x192x256xbf16> to vector<192x256xbf16>
    %cst_413 = arith.constant dense<0.000000e+00> : vector<16x256xf32>
    %475 = tpu.matmul %265, %474, %cst_413 {dimension_numbers = #tpu.dot_dimension_numbers<[1], [0], [0], [1], [0, 0, 1, 1], [], []>} : vector<16x192xbf16>, vector<192x256xbf16>, vector<16x256xf32> -> vector<16x256xf32>
    %476 = arith.addf %472, %475 : vector<16x256xf32>
    %c4_414 = arith.constant 4 : index
    %c0_415 = arith.constant 0 : index
    %c0_416 = arith.constant 0 : index
    %477 = vector.load %arg4[%c4_414, %c0_415, %c0_416] : memref<5x192x256xbf16, #tpu.memory_space<vmem>>, vector<1x192x256xbf16>
    %478 = vector.shape_cast %477 : vector<1x192x256xbf16> to vector<192x256xbf16>
    %cst_417 = arith.constant dense<0.000000e+00> : vector<16x256xf32>
    %479 = tpu.matmul %289, %478, %cst_417 {dimension_numbers = #tpu.dot_dimension_numbers<[1], [0], [0], [1], [0, 0, 1, 1], [], []>} : vector<16x192xbf16>, vector<192x256xbf16>, vector<16x256xf32> -> vector<16x256xf32>
    %480 = arith.addf %476, %479 : vector<16x256xf32>
    %481 = vector.extract_strided_slice %480 {offsets = [0, 0], sizes = [16, 128], strides = [1, 1]} : vector<16x256xf32> to vector<16x128xf32>
    %482 = vector.extract_strided_slice %480 {offsets = [0, 128], sizes = [16, 128], strides = [1, 1]} : vector<16x256xf32> to vector<16x128xf32>
    %483 = arith.maximumf %481, %482 : vector<16x128xf32>
    %484 = arith.maximumf %461, %483 : vector<16x128xf32>
    %485 = vector.broadcast %1 : vector<1x128xf32> to vector<16x128xf32>
    %486 = arith.addf %484, %485 : vector<16x128xf32>
    %cst_418 = arith.constant 0.000000e+00 : f32
    %487 = vector.broadcast %cst_418 : f32 to vector<16x128xf32>
    %488 = arith.maximumf %486, %487 : vector<16x128xf32>
    %489 = arith.truncf %488 : vector<16x128xf32> to vector<16x128xbf16>
    %c0_419 = arith.constant 0 : index
    %c0_420 = arith.constant 0 : index
    %490 = vector.load %arg7[%c0_419, %c0_420] : memref<1x128xf32, #tpu.memory_space<vmem>>, vector<1x128xf32>
    %c0_421 = arith.constant 0 : index
    %c0_422 = arith.constant 0 : index
    %c0_423 = arith.constant 0 : index
    %491 = vector.load %arg6[%c0_421, %c0_422, %c0_423] : memref<4x128x128xbf16, #tpu.memory_space<vmem>>, vector<1x128x128xbf16>
    %492 = vector.shape_cast %491 : vector<1x128x128xbf16> to vector<128x128xbf16>
    %cst_424 = arith.constant dense<0.000000e+00> : vector<16x128xf32>
    %493 = tpu.matmul %339, %492, %cst_424 {dimension_numbers = #tpu.dot_dimension_numbers<[1], [0], [0], [1], [0, 0, 1, 1], [], []>} : vector<16x128xbf16>, vector<128x128xbf16>, vector<16x128xf32> -> vector<16x128xf32>
    %494 = vector.broadcast %490 : vector<1x128xf32> to vector<16x128xf32>
    %495 = arith.addf %494, %493 : vector<16x128xf32>
    %c1_425 = arith.constant 1 : index
    %c0_426 = arith.constant 0 : index
    %c0_427 = arith.constant 0 : index
    %496 = vector.load %arg6[%c1_425, %c0_426, %c0_427] : memref<4x128x128xbf16, #tpu.memory_space<vmem>>, vector<1x128x128xbf16>
    %497 = vector.shape_cast %496 : vector<1x128x128xbf16> to vector<128x128xbf16>
    %cst_428 = arith.constant dense<0.000000e+00> : vector<16x128xf32>
    %498 = tpu.matmul %389, %497, %cst_428 {dimension_numbers = #tpu.dot_dimension_numbers<[1], [0], [0], [1], [0, 0, 1, 1], [], []>} : vector<16x128xbf16>, vector<128x128xbf16>, vector<16x128xf32> -> vector<16x128xf32>
    %499 = arith.addf %495, %498 : vector<16x128xf32>
    %c2_429 = arith.constant 2 : index
    %c0_430 = arith.constant 0 : index
    %c0_431 = arith.constant 0 : index
    %500 = vector.load %arg6[%c2_429, %c0_430, %c0_431] : memref<4x128x128xbf16, #tpu.memory_space<vmem>>, vector<1x128x128xbf16>
    %501 = vector.shape_cast %500 : vector<1x128x128xbf16> to vector<128x128xbf16>
    %cst_432 = arith.constant dense<0.000000e+00> : vector<16x128xf32>
    %502 = tpu.matmul %439, %501, %cst_432 {dimension_numbers = #tpu.dot_dimension_numbers<[1], [0], [0], [1], [0, 0, 1, 1], [], []>} : vector<16x128xbf16>, vector<128x128xbf16>, vector<16x128xf32> -> vector<16x128xf32>
    %503 = arith.addf %499, %502 : vector<16x128xf32>
    %c3_433 = arith.constant 3 : index
    %c0_434 = arith.constant 0 : index
    %c0_435 = arith.constant 0 : index
    %504 = vector.load %arg6[%c3_433, %c0_434, %c0_435] : memref<4x128x128xbf16, #tpu.memory_space<vmem>>, vector<1x128x128xbf16>
    %505 = vector.shape_cast %504 : vector<1x128x128xbf16> to vector<128x128xbf16>
    %cst_436 = arith.constant dense<0.000000e+00> : vector<16x128xf32>
    %506 = tpu.matmul %489, %505, %cst_436 {dimension_numbers = #tpu.dot_dimension_numbers<[1], [0], [0], [1], [0, 0, 1, 1], [], []>} : vector<16x128xbf16>, vector<128x128xbf16>, vector<16x128xf32> -> vector<16x128xf32>
    %507 = arith.addf %503, %506 : vector<16x128xf32>
    %cst_437 = arith.constant 0.000000e+00 : f32
    %508 = vector.broadcast %cst_437 : f32 to vector<16x128xf32>
    %509 = arith.maximumf %507, %508 : vector<16x128xf32>
    %510 = arith.truncf %509 : vector<16x128xf32> to vector<16x128xbf16>
    %c0_438 = arith.constant 0 : index
    %c0_439 = arith.constant 0 : index
    %511 = vector.load %arg8[%c0_438, %c0_439] : memref<128x128xbf16, #tpu.memory_space<vmem>>, vector<128x128xbf16>
    %cst_440 = arith.constant dense<0.000000e+00> : vector<16x128xf32>
    %512 = tpu.matmul %510, %511, %cst_440 {dimension_numbers = #tpu.dot_dimension_numbers<[1], [0], [0], [1], [0, 0, 1, 1], [], []>} : vector<16x128xbf16>, vector<128x128xbf16>, vector<16x128xf32> -> vector<16x128xf32>
    %c0_441 = arith.constant 0 : index
    %c0_442 = arith.constant 0 : index
    %513 = vector.load %arg9[%c0_441, %c0_442] : memref<1x128xf32, #tpu.memory_space<vmem>>, vector<1x128xf32>
    %514 = vector.broadcast %513 : vector<1x128xf32> to vector<16x128xf32>
    %515 = arith.addf %512, %514 : vector<16x128xf32>
    %cst_443 = arith.constant dense<0xFF800000> : vector<16xf32>
    %516 = vector.multi_reduction <maximumf>, %515, %cst_443 [1] : vector<16x128xf32> to vector<16xf32>
    %517 = vector.shape_cast %516 : vector<16xf32> to vector<16x1xf32>
    %518 = vector.broadcast %517 : vector<16x1xf32> to vector<16x128xf32>
    %519 = arith.subf %515, %518 : vector<16x128xf32>
    %520 = math.exp %519 : vector<16x128xf32>
    %cst_444 = arith.constant dense<0.000000e+00> : vector<16xf32>
    %521 = vector.multi_reduction <add>, %520, %cst_444 [1] : vector<16x128xf32> to vector<16xf32>
    %522 = vector.shape_cast %521 : vector<16xf32> to vector<16x1xf32>
    %523 = math.log %522 : vector<16x1xf32>
    %524 = arith.addf %517, %523 : vector<16x1xf32>
    %525 = vector.broadcast %524 : vector<16x1xf32> to vector<16x128xf32>
    %526 = arith.subf %515, %525 : vector<16x128xf32>
    %c0_445 = arith.constant 0 : index
    %c0_446 = arith.constant 0 : index
    %527 = vector.load %arg10[%c0_445, %c0_446] : memref<16x128xf32, #tpu.memory_space<vmem>>, vector<16x128xf32>
    tpu.vector_store %arg10[%c0_445, %c0_446], %526 {strides = array<i32>} : memref<16x128xf32, #tpu.memory_space<vmem>>, vector<16x128xf32>,
    return
  }
  func.func @transform_0(%arg0: i32) -> (i32, i32, i32) {
    %c0_i32 = arith.constant 0 : i32
    %c0_i32_0 = arith.constant 0 : i32
    %c0_i32_1 = arith.constant 0 : i32
    return %c0_i32, %arg0, %c0_i32_0 : i32, i32, i32
  }
  func.func @transform_1(%arg0: i32) -> (i32, i32, i32) {
    %c0_i32 = arith.constant 0 : i32
    %c0_i32_0 = arith.constant 0 : i32
    %c0_i32_1 = arith.constant 0 : i32
    %c0_i32_2 = arith.constant 0 : i32
    return %c0_i32, %c0_i32_0, %c0_i32_1 : i32, i32, i32
  }
  func.func @transform_2(%arg0: i32) -> (i32, i32) {
    %c0_i32 = arith.constant 0 : i32
    %c0_i32_0 = arith.constant 0 : i32
    %c0_i32_1 = arith.constant 0 : i32
    return %c0_i32, %c0_i32_0 : i32, i32
  }
  func.func @transform_3(%arg0: i32) -> (i32, i32, i32) {
    %c0_i32 = arith.constant 0 : i32
    %c0_i32_0 = arith.constant 0 : i32
    %c0_i32_1 = arith.constant 0 : i32
    %c0_i32_2 = arith.constant 0 : i32
    return %c0_i32, %c0_i32_0, %c0_i32_1 : i32, i32, i32
  }
  func.func @transform_4(%arg0: i32) -> (i32, i32) {
    %c0_i32 = arith.constant 0 : i32
    %c0_i32_0 = arith.constant 0 : i32
    %c0_i32_1 = arith.constant 0 : i32
    return %c0_i32, %c0_i32_0 : i32, i32
  }
  func.func @transform_5(%arg0: i32) -> (i32, i32, i32) {
    %c0_i32 = arith.constant 0 : i32
    %c0_i32_0 = arith.constant 0 : i32
    %c0_i32_1 = arith.constant 0 : i32
    %c0_i32_2 = arith.constant 0 : i32
    return %c0_i32, %c0_i32_0, %c0_i32_1 : i32, i32, i32
  }
  func.func @transform_6(%arg0: i32) -> (i32, i32) {
    %c0_i32 = arith.constant 0 : i32
    %c0_i32_0 = arith.constant 0 : i32
    %c0_i32_1 = arith.constant 0 : i32
    return %c0_i32, %c0_i32_0 : i32, i32
  }
  func.func @transform_7(%arg0: i32) -> (i32, i32) {
    %c0_i32 = arith.constant 0 : i32
    %c0_i32_0 = arith.constant 0 : i32
    %c0_i32_1 = arith.constant 0 : i32
    return %c0_i32, %c0_i32_0 : i32, i32
  }
  func.func @transform_8(%arg0: i32) -> (i32, i32) {
    %c0_i32 = arith.constant 0 : i32
    %c0_i32_0 = arith.constant 0 : i32
    %c0_i32_1 = arith.constant 0 : i32
    return %c0_i32, %c0_i32_0 : i32, i32
  }
  func.func @transform_9(%arg0: i32) -> (i32, i32) {
    %c0_i32 = arith.constant 0 : i32
    %c0_i32_0 = arith.constant 0 : i32
    return %arg0, %c0_i32 : i32, i32
  }
}

</mosaic_0001>

<bundles_post_ra>
// kernel: net_forward.1
= control target key start
LH: loop header
LB: loop body
LE: loop exit
PB: predicated region body
PF: predicated region fallthrough
CT: control target
= control target key end

     0   :  { %vm152_vm0 = vcmask 97280   ;;  %vm156_vm1 = vcmask 1045504   ;;  %vm3129_vm2 = vcmask 523264   ;;  %vm7652_vm3 = vmmov 0   ;;  %s12293_s1 = inlined_call_operand.vmem [shape: bf16[2,140,192], index: 1, kind: input, shape index: {}]   ;;  %s12294_s0 = inlined_call_operand.vmem [shape: bf16[24,16,140], index: 0, kind: input, shape index: {}]   ;;  %s12295_s2 = inlined_call_operand.vmem [shape: f32[1,192], index: 2, kind: input, shape index: {}]   ;;  %s12296_s3 = inlined_call_operand.vmem [shape: bf16[5,192,256], index: 3, kind: input, shape index: {}]   ;;  %s12297_s4 = inlined_call_operand.vmem [shape: f32[1,128], index: 4, kind: input, shape index: {}]   ;;  %s12298_s5 = inlined_call_operand.vmem [shape: bf16[4,128,128], index: 5, kind: input, shape index: {}]   ;;  %s12299_s7 = inlined_call_operand.vmem [shape: bf16[128,128], index: 7, kind: input, shape index: {}]   ;;  %s12300_s6 = inlined_call_operand.vmem [shape: f32[1,128], index: 6, kind: input, shape index: {}]   ;;  %s12301_s8 = inlined_call_operand.vmem [shape: f32[1,128], index: 8, kind: input, shape index: {}]   ;;  %s12302_s9 = inlined_call_operand.vmem [shape: f32[16,128], index: 9, kind: output, shape index: {}]  }
   0x1   :  { %v7706_v0 = vld [vmem:[%s12293_s1 + $0x4] ss:$8 sps:$4 sm:$0xff]   ;;  %v7711_v1 = vld [vmem:[%s12293_s1 + $0x94] ss:$8 sps:$4 sm:$0xff]   ;;  %v7717_v2 = vld [vmem:[%s12293_s1] ss:$8 sps:$4 sm:$0xff]  }
   0x2   :  { %163 = vmatprep.subr.bf16.mxu0 %v7706_v0  ;;  %v7722_v3 = vld [vmem:[%s12293_s1 + $0x90] ss:$8 sps:$4 sm:$0xff]   ;;  %319 = vmatprep.subr.bf16.mxu1 %v7711_v1  ;;  %v7728_v4 = vld [vmem:[%s12293_s1 + $0x14] ss:$8 sps:$4 sm:$0xff]   ;;  %v7735_v5 = vld [vmem:[%s12293_s1 + $0xa4] ss:$8 sps:$4 sm:$0xff]  }
   0x3   :  { %164 = vmatpush1.bf16.msra.mxu0 %v7717_v2  ;;  %320 = vmatpush1.bf16.msra.mxu1 %v7722_v3  ;;  %v7740_v6 = vld [vmem:[%s12293_s1 + $0x10] ss:$8 sps:$4 sm:$0xff]   ;;  %v7746_v7 = vld [vmem:[%s12293_s1 + $0xa0] ss:$8 sps:$4 sm:$0xff]   ;;  %v7752_v8 = vld [vmem:[%s12293_s1 + $0x24] ss:$8 sps:$4 sm:$0xff]  }
   0x4   :  { %165 = vmatprep.subr.bf16.mxu0 %v7728_v4  ;;  %321 = vmatprep.subr.bf16.mxu1 %v7735_v5  ;;  %v7757_v9 = vld [vmem:[%s12293_s1 + $0xb4] ss:$8 sps:$4 sm:$0xff]   ;;  %v7762_v10 = vld [vmem:[%s12293_s1 + $0x20] ss:$8 sps:$4 sm:$0xff]   ;;  %v7767_v11 = vld [vmem:[%s12293_s1 + $0xb0] ss:$8 sps:$4 sm:$0xff]  }
   0x5   :  { %v7774_v12 = vld [vmem:[%s12293_s1 + $0x34] ss:$8 sps:$4 sm:$0xff]   ;;  %v7781_v13 = vld [vmem:[%s12293_s1 + $0xc4] ss:$8 sps:$4 sm:$0xff]   ;;  %v7786_v14 = vld [vmem:[%s12293_s1 + $0x30] ss:$8 sps:$4 sm:$0xff]  }
   0x6   :  { %v7793_v15 = vld [vmem:[%s12293_s1 + $0xc0] ss:$8 sps:$4 sm:$0xff]   ;;  %v7798_v16 = vld [vmem:[%s12293_s1 + $0x44] ss:$8 sps:$4 sm:$0xff]   ;;  %v7805_v17 = vld [vmem:[%s12293_s1 + $0xd4] ss:$8 sps:$4 sm:$0xff]  }
   0x7   :  { %166 = vmatpush1.bf16.msra.mxu0 %v7740_v6  ;;  %322 = vmatpush1.bf16.msra.mxu1 %v7746_v7  ;;  %v7810_v18 = vld [vmem:[%s12293_s1 + $0x40] ss:$8 sps:$4 sm:$0xff]   ;;  %v7815_v19 = vld [vmem:[%s12293_s1 + $0xd0] ss:$8 sps:$4 sm:$0xff]   ;;  %v7822_v20 = vld [vmem:[%s12293_s1 + $0x54] ss:$8 sps:$4 sm:$0xff]  }
   0x8   :  { %167 = vmatprep.subr.bf16.mxu0 %v7752_v8  ;;  %323 = vmatprep.subr.bf16.mxu1 %v7757_v9  ;;  %v7829_v21 = vld [vmem:[%s12293_s1 + $0xe4] ss:$8 sps:$4 sm:$0xff]   ;;  %v7834_v22 = vld [vmem:[%s12293_s1 + $0x50] ss:$8 sps:$4 sm:$0xff]   ;;  %v7841_v23 = vld [vmem:[%s12293_s1 + $0xe0] ss:$8 sps:$4 sm:$0xff]  }
   0x9   :  { %v7846_v24 = vld [vmem:[%s12293_s1 + $0x64] ss:$8 sps:$4 sm:$0xff]   ;;  %v7853_v25 = vld [vmem:[%s12293_s1 + $0xf4] ss:$8 sps:$4 sm:$0xff]   ;;  %v7858_v26 = vld [vmem:[%s12293_s1 + $0x60] ss:$8 sps:$4 sm:$0xff]  }
   0xa   :  { %v7863_v27 = vld [vmem:[%s12293_s1 + $0xf0] ss:$8 sps:$4 sm:$0xff]   ;;  %v7870_v28 = vld [vmem:[%s12293_s1 + $0x74] ss:$8 sps:$4 sm:$0xff]   ;;  %v7877_v29 = vld [vmem:[%s12293_s1 + $0x104] ss:$8 sps:$4 sm:$0xff]  }
   0xb   :  { %168 = vmatpush1.bf16.msra.mxu0 %v7762_v10  ;;  %324 = vmatpush1.bf16.msra.mxu1 %v7767_v11  ;;  %v7104_v30 = vld [vmem:[%s12294_s0 + $0x4] ss:$8 sps:$4 sm:$0xff]   ;;  %v7885_v31 = vld [vmem:[%s12293_s1 + $0x70] ss:$8 sps:$4 sm:$0xff]   ;;  %v7890_v32 = vld [vmem:[%s12293_s1 + $0x100] ss:$8 sps:$4 sm:$0xff]  }
   0xc   :  { %169 = vmatprep.subr.bf16.mxu0 %v7774_v12  ;;  %325 = vmatprep.subr.bf16.mxu1 %v7781_v13  ;;  %v7895_v33 = vld [vmem:[%s12293_s1 + $0x84] ss:$8 sps:$4 sm:$0x3f]   ;;  %v7900_v34 = vld [vmem:[%s12293_s1 + $0x114] ss:$8 sps:$4 sm:$0x3f]  }
   0xd   :  { %6189 = vmatprep.mubr.msk.bf16.mxu0 %vm152_vm0, %v7104_v30  ;;  %6227 = vmatprep.mubr.msk.bf16.mxu1 %vm152_vm0, %v7104_v30  ;;  %v7100_v35 = vld [vmem:[%s12293_s1 + $0x80] ss:$8 sps:$4 sm:$0x3f]   ;;  %v7101_v36 = vld [vmem:[%s12293_s1 + $0x110] ss:$8 sps:$4 sm:$0x3f]  }
   0xe   :  { %v7921_v37 = vsel %vm156_vm1, %v7100_v35, 0  ;;  %v7924_v38 = vsel %vm156_vm1, %v7101_v36, 0  ;;  %v7102_v39 = vld [vmem:[%s12294_s0] ss:$8 sps:$4 sm:$0xff]   ;;  %v7105_v40 = vld [vmem:[%s12294_s0 + $0x14] ss:$8 sps:$4 sm:$0xff]   ;;  %v476_v35 = vlaneseq }
   0xf   :  { %170 = vmatpush1.bf16.msra.mxu0 %v7786_v14  ;;  %326 = vmatpush1.bf16.msra.mxu1 %v7793_v15  ;;  %v7107_v41 = vld [vmem:[%s12294_s0 + $0x10] ss:$8 sps:$4 sm:$0xff]   ;;  %v7108_v42 = vld [vmem:[%s12294_s0 + $0x24] ss:$8 sps:$4 sm:$0xff]   ;;  %v7110_v43 = vld [vmem:[%s12294_s0 + $0x20] ss:$8 sps:$4 sm:$0xff]  }
  0x10   :  { %171 = vmatprep.subr.bf16.mxu0 %v7798_v16  ;;  %327 = vmatprep.subr.bf16.mxu1 %v7805_v17  ;;  %v7111_v44 = vld [vmem:[%s12294_s0 + $0x34] ss:$8 sps:$4 sm:$0xff]   ;;  %v7113_v45 = vld [vmem:[%s12294_s0 + $0x30] ss:$8 sps:$4 sm:$0xff]   ;;  %v7114_v46 = vld [vmem:[%s12294_s0 + $0x44] ss:$8 sps:$4 sm:$0xff]  }
  0x11   :  { %v7116_v47 = vld [vmem:[%s12294_s0 + $0x40] ss:$8 sps:$4 sm:$0xff]   ;;  %v7117_v48 = vld [vmem:[%s12294_s0 + $0x54] ss:$8 sps:$4 sm:$0xff]   ;;  %v7119_v49 = vld [vmem:[%s12294_s0 + $0x50] ss:$8 sps:$4 sm:$0xff]  }
  0x12   :  { %v7120_v50 = vld [vmem:[%s12294_s0 + $0x64] ss:$8 sps:$4 sm:$0xff]   ;;  %v7122_v56 = vld [vmem:[%s12294_s0 + $0x60] ss:$8 sps:$4 sm:$0xff]   ;;  %v7123_v30 = vld [vmem:[%s12294_s0 + $0x74] ss:$8 sps:$4 sm:$0xff]  }
  0x13   :  { %172 = vmatpush1.bf16.msra.mxu0 %v7810_v18  ;;  %328 = vmatpush1.bf16.msra.mxu1 %v7815_v19  ;;  %v477_v36 = vshrl.u32 %v476_v35, 7  ;;  %v7126_v35 = vld [vmem:[%s12294_s0 + $0x84] ss:$8 sps:$4 sm:$0xff]  }
  0x14   :  { %173 = vmatprep.subr.bf16.mxu0 %v7822_v20  ;;  %329 = vmatprep.subr.bf16.mxu1 %v7829_v21 }
  0x17   :  { %174 = vmatpush1.bf16.msra.mxu0 %v7834_v22  ;;  %330 = vmatpush1.bf16.msra.mxu1 %v7841_v23 }
  0x18   :  { %175 = vmatprep.subr.bf16.mxu0 %v7846_v24  ;;  %331 = vmatprep.subr.bf16.mxu1 %v7853_v25 }
  0x1b   :  { %176 = vmatpush1.bf16.msra.mxu0 %v7858_v26  ;;  %332 = vmatpush1.bf16.msra.mxu1 %v7863_v27 }
  0x1c   :  { %177 = vmatprep.subr.bf16.mxu0 %v7870_v28  ;;  %333 = vmatprep.subr.bf16.mxu1 %v7877_v29 }
  0x1f   :  { %178 = vmatpush1.bf16.msra.mxu0 %v7885_v31  ;;  %334 = vmatpush1.bf16.msra.mxu1 %v7890_v32 }
  0x20   :  { %6188 = vmatprep.subr.msk.bf16.mxu0 %vm156_vm1, %v7895_v33  ;;  %6226 = vmatprep.subr.msk.bf16.mxu1 %vm156_vm1, %v7900_v34 }
  0x23   :  { %180 = vmatpush1.bf16.msra.mxu0 %v7921_v37  ;;  %336 = vmatpush1.bf16.msra.mxu1 %v7924_v38 }
  0x24   :  { %381 = vmatprep.subr.bf16.mxu0 %v7706_v0  ;;  %428 = vmatprep.subr.bf16.mxu1 %v7711_v1 }
  0x26   :  { %196 = vmatmul.mubr.bf16.vlgmr.msra.gmra.mrb[0].mxu0 %v7102_v39  ;;  %352 = vmatmul.mubr.bf16.vlgmr.msra.gmra.mrb[0].mxu1 %v7102_v39  ;;  %v478_v39 = vsub.s32 0, %v477_v36 }
  0x27   :  { %382 = vmatpush1.bf16.msra.mxu0 %v7717_v2  ;;  %429 = vmatpush1.bf16.msra.mxu1 %v7722_v3 }
  0x28   :  { %383 = vmatprep.subr.bf16.mxu0 %v7728_v4  ;;  %430 = vmatprep.subr.bf16.mxu1 %v7735_v5 }
  0x29   :  { %6233 = vmatprep.mubr.msk.bf16.mxu0 %vm152_vm0, %v7105_v40  ;;  %6235 = vmatprep.mubr.msk.bf16.mxu1 %vm152_vm0, %v7105_v40  ;;  %v33_v40 = vld [vmem:[%s12295_s2] sm:$0x3] }
  0x2b   :  { %384 = vmatpush1.bf16.msra.mxu0 %v7740_v6  ;;  %431 = vmatpush1.bf16.msra.mxu1 %v7746_v7 }
  0x2c   :  { %385 = vmatprep.subr.bf16.mxu0 %v7752_v8  ;;  %432 = vmatprep.subr.bf16.mxu1 %v7757_v9 }
  0x2f   :  { %386 = vmatpush1.bf16.msra.mxu0 %v7762_v10  ;;  %433 = vmatpush1.bf16.msra.mxu1 %v7767_v11 }
  0x30   :  { %387 = vmatprep.subr.bf16.mxu0 %v7774_v12  ;;  %434 = vmatprep.subr.bf16.mxu1 %v7781_v13 }
  0x33   :  { %388 = vmatpush1.bf16.msra.mxu0 %v7786_v14  ;;  %435 = vmatpush1.bf16.msra.mxu1 %v7793_v15 }
  0x34   :  { %389 = vmatprep.subr.bf16.mxu0 %v7798_v16  ;;  %436 = vmatprep.subr.bf16.mxu1 %v7805_v17 }
  0x37   :  { %390 = vmatpush1.bf16.msra.mxu0 %v7810_v18  ;;  %437 = vmatpush1.bf16.msra.mxu1 %v7815_v19 }
  0x38   :  { %391 = vmatprep.subr.bf16.mxu0 %v7822_v20  ;;  %438 = vmatprep.subr.bf16.mxu1 %v7829_v21 }
  0x3b   :  { %392 = vmatpush1.bf16.msra.mxu0 %v7834_v22  ;;  %439 = vmatpush1.bf16.msra.mxu1 %v7841_v23 }
  0x3c   :  { %393 = vmatprep.subr.bf16.mxu0 %v7846_v24  ;;  %440 = vmatprep.subr.bf16.mxu1 %v7853_v25 }
  0x3f   :  { %394 = vmatpush1.bf16.msra.mxu0 %v7858_v26  ;;  %441 = vmatpush1.bf16.msra.mxu1 %v7863_v27 }
  0x40   :  { %395 = vmatprep.subr.bf16.mxu0 %v7870_v28  ;;  %442 = vmatprep.subr.bf16.mxu1 %v7877_v29 }
  0x43   :  { %396 = vmatpush1.bf16.msra.mxu0 %v7885_v31  ;;  %443 = vmatpush1.bf16.msra.mxu1 %v7890_v32 }
  0x44   :  { %6232 = vmatprep.subr.msk.bf16.mxu0 %vm156_vm1, %v7895_v33  ;;  %6234 = vmatprep.subr.msk.bf16.mxu1 %vm156_vm1, %v7900_v34 }
  0x47   :  { %398 = vmatpush1.bf16.msra.mxu0 %v7921_v37  ;;  %445 = vmatpush1.bf16.msra.mxu1 %v7924_v38 }
  0x48   :  { %511 = vmatprep.subr.bf16.mxu0 %v7706_v0  ;;  %554 = vmatprep.subr.bf16.mxu1 %v7711_v1 }
  0x4a   :  { %414 = vmatmul.mubr.bf16.vlgmr.msra.gmra.mrb[4].mxu0 %v7107_v41  ;;  %461 = vmatmul.mubr.bf16.vlgmr.msra.gmra.mrb[4].mxu1 %v7107_v41  ;;  %v482_v41 = vsub.s32 1, %v477_v36 }
  0x4b   :  { %512 = vmatpush1.bf16.msra.mxu0 %v7717_v2  ;;  %555 = vmatpush1.bf16.msra.mxu1 %v7722_v3 }
  0x4c   :  { %513 = vmatprep.subr.bf16.mxu0 %v7728_v4  ;;  %556 = vmatprep.subr.bf16.mxu1 %v7735_v5 }
  0x4d   :  { %6241 = vmatprep.mubr.msk.bf16.mxu0 %vm152_vm0, %v7108_v42  ;;  %6243 = vmatprep.mubr.msk.bf16.mxu1 %vm152_vm0, %v7108_v42 }
  0x4f   :  { %514 = vmatpush1.bf16.msra.mxu0 %v7740_v6  ;;  %557 = vmatpush1.bf16.msra.mxu1 %v7746_v7 }
  0x50   :  { %515 = vmatprep.subr.bf16.mxu0 %v7752_v8  ;;  %558 = vmatprep.subr.bf16.mxu1 %v7757_v9 }
  0x53   :  { %516 = vmatpush1.bf16.msra.mxu0 %v7762_v10  ;;  %559 = vmatpush1.bf16.msra.mxu1 %v7767_v11 }
  0x54   :  { %517 = vmatprep.subr.bf16.mxu0 %v7774_v12  ;;  %560 = vmatprep.subr.bf16.mxu1 %v7781_v13 }
  0x57   :  { %518 = vmatpush1.bf16.msra.mxu0 %v7786_v14  ;;  %561 = vmatpush1.bf16.msra.mxu1 %v7793_v15 }
  0x58   :  { %519 = vmatprep.subr.bf16.mxu0 %v7798_v16  ;;  %562 = vmatprep.subr.bf16.mxu1 %v7805_v17 }
  0x5b   :  { %520 = vmatpush1.bf16.msra.mxu0 %v7810_v18  ;;  %563 = vmatpush1.bf16.msra.mxu1 %v7815_v19 }
  0x5c   :  { %521 = vmatprep.subr.bf16.mxu0 %v7822_v20  ;;  %564 = vmatprep.subr.bf16.mxu1 %v7829_v21 }
  0x5f   :  { %522 = vmatpush1.bf16.msra.mxu0 %v7834_v22  ;;  %565 = vmatpush1.bf16.msra.mxu1 %v7841_v23 }
  0x60   :  { %523 = vmatprep.subr.bf16.mxu0 %v7846_v24  ;;  %566 = vmatprep.subr.bf16.mxu1 %v7853_v25 }
  0x63   :  { %524 = vmatpush1.bf16.msra.mxu0 %v7858_v26  ;;  %567 = vmatpush1.bf16.msra.mxu1 %v7863_v27 }
  0x64   :  { %525 = vmatprep.subr.bf16.mxu0 %v7870_v28  ;;  %568 = vmatprep.subr.bf16.mxu1 %v7877_v29 }
  0x67   :  { %526 = vmatpush1.bf16.msra.mxu0 %v7885_v31  ;;  %569 = vmatpush1.bf16.msra.mxu1 %v7890_v32 }
  0x68   :  { %6240 = vmatprep.subr.msk.bf16.mxu0 %vm156_vm1, %v7895_v33  ;;  %6242 = vmatprep.subr.msk.bf16.mxu1 %vm156_vm1, %v7900_v34 }
  0x6b   :  { %528 = vmatpush1.bf16.msra.mxu0 %v7921_v37  ;;  %571 = vmatpush1.bf16.msra.mxu1 %v7924_v38 }
  0x6c   :  { %616 = vmatprep.subr.bf16.mxu0 %v7706_v0  ;;  %663 = vmatprep.subr.bf16.mxu1 %v7711_v1 }
  0x6e   :  { %544 = vmatmul.mubr.bf16.vlgmr.msra.gmra.mrb[8].mxu0 %v7110_v43  ;;  %587 = vmatmul.mubr.bf16.vlgmr.msra.gmra.mrb[8].mxu1 %v7110_v43 }
  0x6f   :  { %617 = vmatpush1.bf16.msra.mxu0 %v7717_v2  ;;  %664 = vmatpush1.bf16.msra.mxu1 %v7722_v3 }
  0x70   :  { %618 = vmatprep.subr.bf16.mxu0 %v7728_v4  ;;  %665 = vmatprep.subr.bf16.mxu1 %v7735_v5 }
  0x71   :  { %6249 = vmatprep.mubr.msk.bf16.mxu0 %vm152_vm0, %v7111_v44  ;;  %6251 = vmatprep.mubr.msk.bf16.mxu1 %vm152_vm0, %v7111_v44 }
  0x73   :  { %619 = vmatpush1.bf16.msra.mxu0 %v7740_v6  ;;  %666 = vmatpush1.bf16.msra.mxu1 %v7746_v7 }
  0x74   :  { %620 = vmatprep.subr.bf16.mxu0 %v7752_v8  ;;  %667 = vmatprep.subr.bf16.mxu1 %v7757_v9 }
  0x77   :  { %621 = vmatpush1.bf16.msra.mxu0 %v7762_v10  ;;  %668 = vmatpush1.bf16.msra.mxu1 %v7767_v11 }
  0x78   :  { %622 = vmatprep.subr.bf16.mxu0 %v7774_v12  ;;  %669 = vmatprep.subr.bf16.mxu1 %v7781_v13 }
  0x7b   :  { %623 = vmatpush1.bf16.msra.mxu0 %v7786_v14  ;;  %670 = vmatpush1.bf16.msra.mxu1 %v7793_v15 }
  0x7c   :  { %624 = vmatprep.subr.bf16.mxu0 %v7798_v16  ;;  %671 = vmatprep.subr.bf16.mxu1 %v7805_v17 }
  0x7f   :  { %625 = vmatpush1.bf16.msra.mxu0 %v7810_v18  ;;  %672 = vmatpush1.bf16.msra.mxu1 %v7815_v19 }
  0x80   :  { %626 = vmatprep.subr.bf16.mxu0 %v7822_v20  ;;  %673 = vmatprep.subr.bf16.mxu1 %v7829_v21 }
  0x83   :  { %627 = vmatpush1.bf16.msra.mxu0 %v7834_v22  ;;  %674 = vmatpush1.bf16.msra.mxu1 %v7841_v23 }
  0x84   :  { %628 = vmatprep.subr.bf16.mxu0 %v7846_v24  ;;  %675 = vmatprep.subr.bf16.mxu1 %v7853_v25 }
  0x87   :  { %629 = vmatpush1.bf16.msra.mxu0 %v7858_v26  ;;  %676 = vmatpush1.bf16.msra.mxu1 %v7863_v27 }
  0x88   :  { %630 = vmatprep.subr.bf16.mxu0 %v7870_v28  ;;  %677 = vmatprep.subr.bf16.mxu1 %v7877_v29 }
  0x8b   :  { %631 = vmatpush1.bf16.msra.mxu0 %v7885_v31  ;;  %678 = vmatpush1.bf16.msra.mxu1 %v7890_v32 }
  0x8c   :  { %6248 = vmatprep.subr.msk.bf16.mxu0 %vm156_vm1, %v7895_v33  ;;  %6250 = vmatprep.subr.msk.bf16.mxu1 %vm156_vm1, %v7900_v34 }
  0x8f   :  { %633 = vmatpush1.bf16.msra.mxu0 %v7921_v37  ;;  %680 = vmatpush1.bf16.msra.mxu1 %v7924_v38 }
  0x90   :  { %735 = vmatprep.subr.bf16.mxu0 %v7706_v0  ;;  %778 = vmatprep.subr.bf16.mxu1 %v7711_v1 }
  0x92   :  { %649 = vmatmul.mubr.bf16.vlgmr.msra.gmra.mrb[12].mxu0 %v7113_v45  ;;  %696 = vmatmul.mubr.bf16.vlgmr.msra.gmra.mrb[12].mxu1 %v7113_v45  ;;  %v8272_v45 = vrot.slane %v33_v40, %v478_v39 }
  0x93   :  { %736 = vmatpush1.bf16.msra.mxu0 %v7717_v2  ;;  %779 = vmatpush1.bf16.msra.mxu1 %v7722_v3 }
  0x94   :  { %737 = vmatprep.subr.bf16.mxu0 %v7728_v4  ;;  %780 = vmatprep.subr.bf16.mxu1 %v7735_v5 }
  0x95   :  { %6257 = vmatprep.mubr.msk.bf16.mxu0 %vm152_vm0, %v7114_v46  ;;  %6259 = vmatprep.mubr.msk.bf16.mxu1 %vm152_vm0, %v7114_v46 }
  0x97   :  { %738 = vmatpush1.bf16.msra.mxu0 %v7740_v6  ;;  %781 = vmatpush1.bf16.msra.mxu1 %v7746_v7 }
  0x98   :  { %739 = vmatprep.subr.bf16.mxu0 %v7752_v8  ;;  %782 = vmatprep.subr.bf16.mxu1 %v7757_v9 }
  0x9b   :  { %740 = vmatpush1.bf16.msra.mxu0 %v7762_v10  ;;  %783 = vmatpush1.bf16.msra.mxu1 %v7767_v11 }
  0x9c   :  { %741 = vmatprep.subr.bf16.mxu0 %v7774_v12  ;;  %784 = vmatprep.subr.bf16.mxu1 %v7781_v13 }
  0x9f   :  { %742 = vmatpush1.bf16.msra.mxu0 %v7786_v14  ;;  %785 = vmatpush1.bf16.msra.mxu1 %v7793_v15 }
  0xa0   :  { %743 = vmatprep.subr.bf16.mxu0 %v7798_v16  ;;  %786 = vmatprep.subr.bf16.mxu1 %v7805_v17 }
  0xa3   :  { %744 = vmatpush1.bf16.msra.mxu0 %v7810_v18  ;;  %787 = vmatpush1.bf16.msra.mxu1 %v7815_v19 }
  0xa4   :  { %745 = vmatprep.subr.bf16.mxu0 %v7822_v20  ;;  %788 = vmatprep.subr.bf16.mxu1 %v7829_v21 }
  0xa7   :  { %746 = vmatpush1.bf16.msra.mxu0 %v7834_v22  ;;  %789 = vmatpush1.bf16.msra.mxu1 %v7841_v23 }
  0xa8   :  { %747 = vmatprep.subr.bf16.mxu0 %v7846_v24  ;;  %790 = vmatprep.subr.bf16.mxu1 %v7853_v25 }
  0xab   :  { %748 = vmatpush1.bf16.msra.mxu0 %v7858_v26  ;;  %791 = vmatpush1.bf16.msra.mxu1 %v7863_v27 }
  0xac   :  { %749 = vmatprep.subr.bf16.mxu0 %v7870_v28  ;;  %792 = vmatprep.subr.bf16.mxu1 %v7877_v29 }
  0xaf   :  { %750 = vmatpush1.bf16.msra.mxu0 %v7885_v31  ;;  %793 = vmatpush1.bf16.msra.mxu1 %v7890_v32 }
  0xb0   :  { %6256 = vmatprep.subr.msk.bf16.mxu0 %vm156_vm1, %v7895_v33  ;;  %6258 = vmatprep.subr.msk.bf16.mxu1 %vm156_vm1, %v7900_v34 }
  0xb3   :  { %752 = vmatpush1.bf16.msra.mxu0 %v7921_v37  ;;  %795 = vmatpush1.bf16.msra.mxu1 %v7924_v38 }
  0xb4   :  { %840 = vmatprep.subr.bf16.mxu0 %v7706_v0  ;;  %887 = vmatprep.subr.bf16.mxu1 %v7711_v1 }
  0xb6   :  { %768 = vmatmul.mubr.bf16.vlgmr.msra.gmra.mrb[16].mxu0 %v7116_v47  ;;  %811 = vmatmul.mubr.bf16.vlgmr.msra.gmra.mrb[16].mxu1 %v7116_v47 }
  0xb7   :  { %841 = vmatpush1.bf16.msra.mxu0 %v7717_v2  ;;  %888 = vmatpush1.bf16.msra.mxu1 %v7722_v3 }
  0xb8   :  { %842 = vmatprep.subr.bf16.mxu0 %v7728_v4  ;;  %889 = vmatprep.subr.bf16.mxu1 %v7735_v5 }
  0xb9   :  { %6265 = vmatprep.mubr.msk.bf16.mxu0 %vm152_vm0, %v7117_v48  ;;  %6267 = vmatprep.mubr.msk.bf16.mxu1 %vm152_vm0, %v7117_v48  ;;  %v7125_v48 = vld [vmem:[%s12294_s0 + $0x70] ss:$8 sps:$4 sm:$0xff]  }
  0xbb   :  { %843 = vmatpush1.bf16.msra.mxu0 %v7740_v6  ;;  %890 = vmatpush1.bf16.msra.mxu1 %v7746_v7 }
  0xbc   :  { %844 = vmatprep.subr.bf16.mxu0 %v7752_v8  ;;  %891 = vmatprep.subr.bf16.mxu1 %v7757_v9 }
  0xbf   :  { %845 = vmatpush1.bf16.msra.mxu0 %v7762_v10  ;;  %892 = vmatpush1.bf16.msra.mxu1 %v7767_v11 }
  0xc0   :  { %846 = vmatprep.subr.bf16.mxu0 %v7774_v12  ;;  %893 = vmatprep.subr.bf16.mxu1 %v7781_v13 }
  0xc3   :  { %847 = vmatpush1.bf16.msra.mxu0 %v7786_v14  ;;  %894 = vmatpush1.bf16.msra.mxu1 %v7793_v15 }
  0xc4   :  { %848 = vmatprep.subr.bf16.mxu0 %v7798_v16  ;;  %895 = vmatprep.subr.bf16.mxu1 %v7805_v17 }
  0xc7   :  { %849 = vmatpush1.bf16.msra.mxu0 %v7810_v18  ;;  %896 = vmatpush1.bf16.msra.mxu1 %v7815_v19 }
  0xc8   :  { %850 = vmatprep.subr.bf16.mxu0 %v7822_v20  ;;  %897 = vmatprep.subr.bf16.mxu1 %v7829_v21 }
  0xcb   :  { %851 = vmatpush1.bf16.msra.mxu0 %v7834_v22  ;;  %898 = vmatpush1.bf16.msra.mxu1 %v7841_v23 }
  0xcc   :  { %852 = vmatprep.subr.bf16.mxu0 %v7846_v24  ;;  %899 = vmatprep.subr.bf16.mxu1 %v7853_v25 }
  0xcf   :  { %853 = vmatpush1.bf16.msra.mxu0 %v7858_v26  ;;  %900 = vmatpush1.bf16.msra.mxu1 %v7863_v27 }
  0xd0   :  { %854 = vmatprep.subr.bf16.mxu0 %v7870_v28  ;;  %901 = vmatprep.subr.bf16.mxu1 %v7877_v29 }
  0xd3   :  { %855 = vmatpush1.bf16.msra.mxu0 %v7885_v31  ;;  %902 = vmatpush1.bf16.msra.mxu1 %v7890_v32 }
  0xd4   :  { %6264 = vmatprep.subr.msk.bf16.mxu0 %vm156_vm1, %v7895_v33  ;;  %6266 = vmatprep.subr.msk.bf16.mxu1 %vm156_vm1, %v7900_v34 }
  0xd7   :  { %857 = vmatpush1.bf16.msra.mxu0 %v7921_v37  ;;  %904 = vmatpush1.bf16.msra.mxu1 %v7924_v38 }
  0xd8   :  { %959 = vmatprep.subr.bf16.mxu0 %v7706_v0  ;;  %1002 = vmatprep.subr.bf16.mxu1 %v7711_v1 }
  0xda   :  { %873 = vmatmul.mubr.bf16.vlgmr.msra.gmra.mrb[20].mxu0 %v7119_v49  ;;  %920 = vmatmul.mubr.bf16.vlgmr.msra.gmra.mrb[20].mxu1 %v7119_v49 }
  0xdb   :  { %960 = vmatpush1.bf16.msra.mxu0 %v7717_v2  ;;  %1003 = vmatpush1.bf16.msra.mxu1 %v7722_v3 }
  0xdc   :  { %961 = vmatprep.subr.bf16.mxu0 %v7728_v4  ;;  %1004 = vmatprep.subr.bf16.mxu1 %v7735_v5 }
  0xdd   :  { %6273 = vmatprep.mubr.msk.bf16.mxu0 %vm152_vm0, %v7120_v50  ;;  %6275 = vmatprep.mubr.msk.bf16.mxu1 %vm152_vm0, %v7120_v50  ;;  %v8277_v50 = vrot.slane %v33_v40, %v482_v41  ;;  %v8415_v40 = vld [vmem:[%s12293_s1 + $0xa0] ss:$8 sps:$4 sm:$0xff]   ;;  %v8421_v41 = vld [vmem:[%s12293_s1 + $0x24] ss:$8 sps:$4 sm:$0xff]  }
  0xdf   :  { %962 = vmatpush1.bf16.msra.mxu0 %v7740_v6  ;;  %1005 = vmatpush1.bf16.msra.mxu1 %v7746_v7 }
  0xe0   :  { %963 = vmatprep.subr.bf16.mxu0 %v7752_v8  ;;  %1006 = vmatprep.subr.bf16.mxu1 %v7757_v9 }
  0xe3   :  { %964 = vmatpush1.bf16.msra.mxu0 %v7762_v10  ;;  %1007 = vmatpush1.bf16.msra.mxu1 %v7767_v11 }
  0xe4   :  { %965 = vmatprep.subr.bf16.mxu0 %v7774_v12  ;;  %1008 = vmatprep.subr.bf16.mxu1 %v7781_v13 }
  0xe7   :  { %966 = vmatpush1.bf16.msra.mxu0 %v7786_v14  ;;  %1009 = vmatpush1.bf16.msra.mxu1 %v7793_v15 }
  0xe8   :  { %967 = vmatprep.subr.bf16.mxu0 %v7798_v16  ;;  %1010 = vmatprep.subr.bf16.mxu1 %v7805_v17 }
  0xeb   :  { %968 = vmatpush1.bf16.msra.mxu0 %v7810_v18  ;;  %1011 = vmatpush1.bf16.msra.mxu1 %v7815_v19 }
  0xec   :  { %969 = vmatprep.subr.bf16.mxu0 %v7822_v20  ;;  %1012 = vmatprep.subr.bf16.mxu1 %v7829_v21 }
  0xef   :  { %970 = vmatpush1.bf16.msra.mxu0 %v7834_v22  ;;  %1013 = vmatpush1.bf16.msra.mxu1 %v7841_v23 }
  0xf0   :  { %971 = vmatprep.subr.bf16.mxu0 %v7846_v24  ;;  %1014 = vmatprep.subr.bf16.mxu1 %v7853_v25 }
  0xf3   :  { %972 = vmatpush1.bf16.msra.mxu0 %v7858_v26  ;;  %1015 = vmatpush1.bf16.msra.mxu1 %v7863_v27 }
  0xf4   :  { %973 = vmatprep.subr.bf16.mxu0 %v7870_v28  ;;  %1016 = vmatprep.subr.bf16.mxu1 %v7877_v29 }
  0xf7   :  { %974 = vmatpush1.bf16.msra.mxu0 %v7885_v31  ;;  %1017 = vmatpush1.bf16.msra.mxu1 %v7890_v32 }
  0xf8   :  { %6272 = vmatprep.subr.msk.bf16.mxu0 %vm156_vm1, %v7895_v33  ;;  %6274 = vmatprep.subr.msk.bf16.mxu1 %vm156_vm1, %v7900_v34 }
  0xf9   :  { %v8202_v51 = vpop.f32.mrb[0].mxu0  ;;  %v353_v52 = vpop.f32.mrb[0].mxu1 }
  0xfa   :  { %v362_v53 = vmax.f32 %v8202_v51, %v353_v52  ;;  %v8205_v54 = vpop.f32.mrb[1].mxu0  ;;  %v8207_v55 = vpop.f32.mrb[1].mxu1 }
  0xfb   :  { %v363_v57 = vmax.f32 %v8205_v54, %v8207_v55  ;;  %v8214_v58 = vpop.f32.mrb[2].mxu0  ;;  %v8216_v59 = vpop.f32.mrb[2].mxu1  ;;  %976 = vmatpush1.bf16.msra.mxu0 %v7921_v37  ;;  %1019 = vmatpush1.bf16.msra.mxu1 %v7924_v38 }
  0xfc   :  { %v364_v60 = vmax.f32 %v8214_v58, %v8216_v59  ;;  %v8222_v61 = vpop.f32.mrb[3].mxu0  ;;  %v8224_v62 = vpop.f32.mrb[3].mxu1  ;;  %1064 = vmatprep.subr.bf16.mxu0 %v7706_v0  ;;  %1111 = vmatprep.subr.bf16.mxu1 %v7711_v1 }
  0xfd   :  { %v365_v63 = vmax.f32 %v8222_v61, %v8224_v62 }
  0xfe   :  { %992 = vmatmul.mubr.bf16.vlgmr.msra.gmra.mrb[24].mxu0 %v7122_v56  ;;  %1035 = vmatmul.mubr.bf16.vlgmr.msra.gmra.mrb[24].mxu1 %v7122_v56 }
  0xff   :  { %1065 = vmatpush1.bf16.msra.mxu0 %v7717_v2  ;;  %1112 = vmatpush1.bf16.msra.mxu1 %v7722_v3 }
 0x100   :  { %1066 = vmatprep.subr.bf16.mxu0 %v7728_v4  ;;  %1113 = vmatprep.subr.bf16.mxu1 %v7735_v5 }
 0x101   :  { %6281 = vmatprep.mubr.msk.bf16.mxu0 %vm152_vm0, %v7123_v30  ;;  %6283 = vmatprep.mubr.msk.bf16.mxu1 %vm152_vm0, %v7123_v30 }
 0x103   :  { %1067 = vmatpush1.bf16.msra.mxu0 %v7740_v6  ;;  %1114 = vmatpush1.bf16.msra.mxu1 %v7746_v7 }
 0x104   :  { %1068 = vmatprep.subr.bf16.mxu0 %v7752_v8  ;;  %1115 = vmatprep.subr.bf16.mxu1 %v7757_v9 }
 0x107   :  { %1069 = vmatpush1.bf16.msra.mxu0 %v7762_v10  ;;  %1116 = vmatpush1.bf16.msra.mxu1 %v7767_v11 }
 0x108   :  { %1070 = vmatprep.subr.bf16.mxu0 %v7774_v12  ;;  %1117 = vmatprep.subr.bf16.mxu1 %v7781_v13 }
 0x10b   :  { %1071 = vmatpush1.bf16.msra.mxu0 %v7786_v14  ;;  %1118 = vmatpush1.bf16.msra.mxu1 %v7793_v15 }
 0x10c   :  { %1072 = vmatprep.subr.bf16.mxu0 %v7798_v16  ;;  %1119 = vmatprep.subr.bf16.mxu1 %v7805_v17 }
 0x10f   :  { %1073 = vmatpush1.bf16.msra.mxu0 %v7810_v18  ;;  %1120 = vmatpush1.bf16.msra.mxu1 %v7815_v19 }
 0x110   :  { %1074 = vmatprep.subr.bf16.mxu0 %v7822_v20  ;;  %1121 = vmatprep.subr.bf16.mxu1 %v7829_v21 }
 0x113   :  { %1075 = vmatpush1.bf16.msra.mxu0 %v7834_v22  ;;  %1122 = vmatpush1.bf16.msra.mxu1 %v7841_v23 }
 0x114   :  { %1076 = vmatprep.subr.bf16.mxu0 %v7846_v24  ;;  %1123 = vmatprep.subr.bf16.mxu1 %v7853_v25 }
 0x117   :  { %1077 = vmatpush1.bf16.msra.mxu0 %v7858_v26  ;;  %1124 = vmatpush1.bf16.msra.mxu1 %v7863_v27 }
 0x118   :  { %1078 = vmatprep.subr.bf16.mxu0 %v7870_v28  ;;  %1125 = vmatprep.subr.bf16.mxu1 %v7877_v29 }
 0x11b   :  { %1079 = vmatpush1.bf16.msra.mxu0 %v7885_v31  ;;  %1126 = vmatpush1.bf16.msra.mxu1 %v7890_v32 }
 0x11c   :  { %6280 = vmatprep.subr.msk.bf16.mxu0 %vm156_vm1, %v7895_v33  ;;  %6282 = vmatprep.subr.msk.bf16.mxu1 %vm156_vm1, %v7900_v34 }
 0x11d   :  { %v415_v42 = vpop.f32.mrb[4].mxu0  ;;  %v462_v43 = vpop.f32.mrb[4].mxu1 }
 0x11e   :  { %v424_v44 = vmax.f32 %v362_v53, %v415_v42  ;;  %v417_v46 = vpop.f32.mrb[5].mxu0  ;;  %v464_v47 = vpop.f32.mrb[5].mxu1  ;;  %v8427_v42 = vld [vmem:[%s12293_s1 + $0xb4] ss:$8 sps:$4 sm:$0xff]  }
 0x11f   :  { %v425_v49 = vmax.f32 %v363_v57, %v417_v46  ;;  %v419_v51 = vpop.f32.mrb[6].mxu0  ;;  %v466_v52 = vpop.f32.mrb[6].mxu1  ;;  %1081 = vmatpush1.bf16.msra.mxu0 %v7921_v37  ;;  %1128 = vmatpush1.bf16.msra.mxu1 %v7924_v38  ;;  %v8445_v46 = vld [vmem:[%s12293_s1 + $0x34] ss:$8 sps:$4 sm:$0xff]  }
 0x120   :  { %v471_v54 = vmax.f32 %v424_v44, %v462_v43  ;;  %v426_v53 = vmax.f32 %v364_v60, %v419_v51  ;;  %v421_v55 = vpop.f32.mrb[7].mxu0  ;;  %v468_v56 = vpop.f32.mrb[7].mxu1  ;;  %1183 = vmatprep.subr.bf16.mxu0 %v7706_v0  ;;  %1226 = vmatprep.subr.bf16.mxu1 %v7711_v1  ;;  %v8433_v43 = vld [vmem:[%s12293_s1 + $0x20] ss:$8 sps:$4 sm:$0xff]   ;;  %v8439_v44 = vld [vmem:[%s12293_s1 + $0xb0] ss:$8 sps:$4 sm:$0xff]  }
 0x121   :  { %v472_v57 = vmax.f32 %v425_v49, %v464_v47  ;;  %v427_v30 = vmax.f32 %v365_v63, %v421_v55  ;;  %v8451_v47 = vld [vmem:[%s12293_s1 + $0xc4] ss:$8 sps:$4 sm:$0xff]   ;;  %v8463_v49 = vld [vmem:[%s12293_s1 + $0xc0] ss:$8 sps:$4 sm:$0xff]   ;;  %v8493_v55 = vld [vmem:[%s12293_s1 + $0x54] ss:$8 sps:$4 sm:$0xff]  }
 0x122   :  { %v486_v36 = vadd.f32 %v8272_v45, %v471_v54  ;;  %v473_v39 = vmax.f32 %v426_v53, %v466_v52  ;;  %1097 = vmatmul.mubr.bf16.vlgmr.msra.gmra.mrb[28].mxu0 %v7125_v48  ;;  %1144 = vmatmul.mubr.bf16.vlgmr.msra.gmra.mrb[28].mxu1 %v7125_v48  ;;  %v8457_v48 = vld [vmem:[%s12293_s1 + $0x30] ss:$8 sps:$4 sm:$0xff]   ;;  %v8469_v51 = vld [vmem:[%s12293_s1 + $0x44] ss:$8 sps:$4 sm:$0xff]   ;;  %v8475_v52 = vld [vmem:[%s12293_s1 + $0xd4] ss:$8 sps:$4 sm:$0xff]  }
 0x123   :  { %v487_v58 = vadd.f32 %v8277_v50, %v472_v57  ;;  %v474_v59 = vmax.f32 %v427_v30, %v468_v56  ;;  %1184 = vmatpush1.bf16.msra.mxu0 %v7717_v2  ;;  %1227 = vmatpush1.bf16.msra.mxu1 %v7722_v3  ;;  %v8481_v54 = vld [vmem:[%s12293_s1 + $0x40] ss:$8 sps:$4 sm:$0xff]   ;;  %v8487_v53 = vld [vmem:[%s12293_s1 + $0xd0] ss:$8 sps:$4 sm:$0xff]   ;;  %v8499_v56 = vld [vmem:[%s12293_s1 + $0xe4] ss:$8 sps:$4 sm:$0xff]  }
 0x124   :  { %v488_v0 = vadd.f32 %v8272_v45, %v473_v39  ;;  %1185 = vmatprep.subr.bf16.mxu0 %v7728_v4  ;;  %1228 = vmatprep.subr.bf16.mxu1 %v7735_v5  ;;  %v490_v60 = vmax.f32 %v486_v36, 0.0  ;;  %v8505_v57 = vld [vmem:[%s12293_s1 + $0x50] ss:$8 sps:$4 sm:$0xff]   ;;  %v8511_v30 = vld [vmem:[%s12293_s1 + $0xe0] ss:$8 sps:$4 sm:$0xff]  }
 0x125   :  { %v489_v1 = vadd.f32 %v8277_v50, %v474_v59  ;;  %6289 = vmatprep.mubr.msk.bf16.mxu0 %vm152_vm0, %v7126_v35  ;;  %6291 = vmatprep.mubr.msk.bf16.mxu1 %vm152_vm0, %v7126_v35  ;;  %v491_v62 = vmax.f32 %v487_v58, 0.0  ;;  %v8517_v35 = vld [vmem:[%s12293_s1 + $0x64] ss:$8 sps:$4 sm:$0xff]  }
 0x126   :  { %v492_v61 = vmax.f32 %v488_v0, 0.0 }
 0x127   :  { %v493_v63 = vmax.f32 %v489_v1, 0.0  ;;  %1186 = vmatpush1.bf16.msra.mxu0 %v7740_v6  ;;  %1229 = vmatpush1.bf16.msra.mxu1 %v7746_v7 }
 0x128   :  { %v8304_v2 = vpack.c.bf16 %v492_v61, %v490_v60  ;;  %1187 = vmatprep.subr.bf16.mxu0 %v7752_v8  ;;  %1230 = vmatprep.subr.bf16.mxu1 %v7757_v9  ;;  %v7128_v9 = vld [vmem:[%s12294_s0 + $0x80] ss:$8 sps:$4 sm:$0xff]   ;;  %v7132_v60 = vld [vmem:[%s12294_s0 + $0xa4] ss:$8 sps:$4 sm:$0xff]  }
 0x129   :  { %v8308_v3 = vpack.c.bf16 %v493_v63, %v491_v62 }
 0x12b   :  { %1188 = vmatpush1.bf16.msra.mxu0 %v7762_v10  ;;  %1231 = vmatpush1.bf16.msra.mxu1 %v7767_v11 }
 0x12c   :  { %1189 = vmatprep.subr.bf16.mxu0 %v7774_v12  ;;  %1232 = vmatprep.subr.bf16.mxu1 %v7781_v13 }
 0x12f   :  { %1190 = vmatpush1.bf16.msra.mxu0 %v7786_v14  ;;  %1233 = vmatpush1.bf16.msra.mxu1 %v7793_v15 }
 0x130   :  { %1191 = vmatprep.subr.bf16.mxu0 %v7798_v16  ;;  %1234 = vmatprep.subr.bf16.mxu1 %v7805_v17  ;;  %v8366_v16 = vld [vmem:[%s12293_s1 + $0x4] ss:$8 sps:$4 sm:$0xff]   ;;  %v8372_v17 = vld [vmem:[%s12293_s1 + $0x94] ss:$8 sps:$4 sm:$0xff]  }
 0x133   :  { %1192 = vmatpush1.bf16.msra.mxu0 %v7810_v18  ;;  %1235 = vmatpush1.bf16.msra.mxu1 %v7815_v19  ;;  %v7129_v19 = vld [vmem:[%s12294_s0 + $0x94] ss:$8 sps:$4 sm:$0xff]  }
 0x134   :  { %1193 = vmatprep.subr.bf16.mxu0 %v7822_v20  ;;  %1236 = vmatprep.subr.bf16.mxu1 %v7829_v21  ;;  %v8383_v20 = vld [vmem:[%s12293_s1] ss:$8 sps:$4 sm:$0xff]   ;;  %v8389_v21 = vld [vmem:[%s12293_s1 + $0x90] ss:$8 sps:$4 sm:$0xff]  }
 0x137   :  { %1194 = vmatpush1.bf16.msra.mxu0 %v7834_v22  ;;  %1237 = vmatpush1.bf16.msra.mxu1 %v7841_v23  ;;  %v8395_v22 = vld [vmem:[%s12293_s1 + $0x14] ss:$8 sps:$4 sm:$0xff]   ;;  %v8401_v23 = vld [vmem:[%s12293_s1 + $0xa4] ss:$8 sps:$4 sm:$0xff]  }
 0x138   :  { %1195 = vmatprep.subr.bf16.mxu0 %v7846_v24  ;;  %1238 = vmatprep.subr.bf16.mxu1 %v7853_v25  ;;  %v8409_v24 = vld [vmem:[%s12293_s1 + $0x10] ss:$8 sps:$4 sm:$0xff]  }
 0x13b   :  { %1196 = vmatpush1.bf16.msra.mxu0 %v7858_v26  ;;  %1239 = vmatpush1.bf16.msra.mxu1 %v7863_v27 }
 0x13c   :  { %1197 = vmatprep.subr.bf16.mxu0 %v7870_v28  ;;  %1240 = vmatprep.subr.bf16.mxu1 %v7877_v29 }
 0x13f   :  { %1198 = vmatpush1.bf16.msra.mxu0 %v7885_v31  ;;  %1241 = vmatpush1.bf16.msra.mxu1 %v7890_v32 }
 0x140   :  { %6288 = vmatprep.subr.msk.bf16.mxu0 %vm156_vm1, %v7895_v33  ;;  %6290 = vmatprep.subr.msk.bf16.mxu1 %vm156_vm1, %v7900_v34 }
 0x141   :  { %v8336_v4 = vpop.f32.mrb[8].mxu0  ;;  %v8338_v5 = vpop.f32.mrb[8].mxu1 }
 0x142   :  { %v597_v6 = vmax.f32 %v8336_v4, %v8338_v5  ;;  %v8342_v7 = vpop.f32.mrb[9].mxu0  ;;  %v8344_v8 = vpop.f32.mrb[9].mxu1 }
 0x143   :  { %v598_v10 = vmax.f32 %v8342_v7, %v8344_v8  ;;  %v8351_v11 = vpop.f32.mrb[10].mxu0  ;;  %v8353_v12 = vpop.f32.mrb[10].mxu1  ;;  %1200 = vmatpush1.bf16.msra.mxu0 %v7921_v37  ;;  %1243 = vmatpush1.bf16.msra.mxu1 %v7924_v38 }
 0x144   :  { %v599_v13 = vmax.f32 %v8351_v11, %v8353_v12  ;;  %v8359_v14 = vpop.f32.mrb[11].mxu0  ;;  %v8361_v15 = vpop.f32.mrb[11].mxu1  ;;  %1288 = vmatprep.subr.bf16.mxu0 %v8366_v16  ;;  %1335 = vmatprep.subr.bf16.mxu1 %v8372_v17 }
 0x145   :  { %v600_v18 = vmax.f32 %v8359_v14, %v8361_v15  ;;  %v8595_v14 = vld [vmem:[%s12293_s1 + $0x60] ss:$8 sps:$4 sm:$0xff]   ;;  %v8601_v15 = vld [vmem:[%s12293_s1 + $0xf0] ss:$8 sps:$4 sm:$0xff]  }
 0x146   :  { %1216 = vmatmul.mubr.bf16.vlgmr.msra.gmra.mrb[32].mxu0 %v7128_v9  ;;  %1259 = vmatmul.mubr.bf16.vlgmr.msra.gmra.mrb[32].mxu1 %v7128_v9 }
 0x147   :  { %1289 = vmatpush1.bf16.msra.mxu0 %v8383_v20  ;;  %1336 = vmatpush1.bf16.msra.mxu1 %v8389_v21 }
 0x148   :  { %1290 = vmatprep.subr.bf16.mxu0 %v8395_v22  ;;  %1337 = vmatprep.subr.bf16.mxu1 %v8401_v23 }
 0x149   :  { %6297 = vmatprep.mubr.msk.bf16.mxu0 %vm152_vm0, %v7129_v19  ;;  %6299 = vmatprep.mubr.msk.bf16.mxu1 %vm152_vm0, %v7129_v19  ;;  %v8613_v19 = vld [vmem:[%s12293_s1 + $0x104] ss:$8 sps:$4 sm:$0xff]  }
 0x14b   :  { %1291 = vmatpush1.bf16.msra.mxu0 %v8409_v24  ;;  %1338 = vmatpush1.bf16.msra.mxu1 %v8415_v40 }
 0x14c   :  { %1292 = vmatprep.subr.bf16.mxu0 %v8421_v41  ;;  %1339 = vmatprep.subr.bf16.mxu1 %v8427_v42 }
 0x14f   :  { %1293 = vmatpush1.bf16.msra.mxu0 %v8433_v43  ;;  %1340 = vmatpush1.bf16.msra.mxu1 %v8439_v44 }
 0x150   :  { %1294 = vmatprep.subr.bf16.mxu0 %v8445_v46  ;;  %1341 = vmatprep.subr.bf16.mxu1 %v8451_v47 }
 0x153   :  { %1295 = vmatpush1.bf16.msra.mxu0 %v8457_v48  ;;  %1342 = vmatpush1.bf16.msra.mxu1 %v8463_v49 }
 0x154   :  { %1296 = vmatprep.subr.bf16.mxu0 %v8469_v51  ;;  %1343 = vmatprep.subr.bf16.mxu1 %v8475_v52 }
 0x157   :  { %1297 = vmatpush1.bf16.msra.mxu0 %v8481_v54  ;;  %1344 = vmatpush1.bf16.msra.mxu1 %v8487_v53 }
 0x158   :  { %1298 = vmatprep.subr.bf16.mxu0 %v8493_v55  ;;  %1345 = vmatprep.subr.bf16.mxu1 %v8499_v56 }
 0x15b   :  { %1299 = vmatpush1.bf16.msra.mxu0 %v8505_v57  ;;  %1346 = vmatpush1.bf16.msra.mxu1 %v8511_v30 }
 0x15c   :  { %1300 = vmatprep.subr.bf16.mxu0 %v8517_v35  ;;  %1347 = vmatprep.subr.bf16.mxu1 %v7853_v25 }
 0x15f   :  { %1301 = vmatpush1.bf16.msra.mxu0 %v7858_v26  ;;  %1348 = vmatpush1.bf16.msra.mxu1 %v7863_v27 }
 0x160   :  { %1302 = vmatprep.subr.bf16.mxu0 %v7870_v28  ;;  %1349 = vmatprep.subr.bf16.mxu1 %v7877_v29  ;;  %v7131_v29 = vld [vmem:[%s12294_s0 + $0x90] ss:$8 sps:$4 sm:$0xff]  }
 0x163   :  { %1303 = vmatpush1.bf16.msra.mxu0 %v7885_v31  ;;  %1350 = vmatpush1.bf16.msra.mxu1 %v7890_v32 }
 0x164   :  { %6296 = vmatprep.subr.msk.bf16.mxu0 %vm156_vm1, %v7895_v33  ;;  %6298 = vmatprep.subr.msk.bf16.mxu1 %vm156_vm1, %v7900_v34 }
 0x165   :  { %v650_v36 = vpop.f32.mrb[12].mxu0  ;;  %v697_v25 = vpop.f32.mrb[12].mxu1 }
 0x166   :  { %v659_v26 = vmax.f32 %v597_v6, %v650_v36  ;;  %v652_v27 = vpop.f32.mrb[13].mxu0  ;;  %v699_v28 = vpop.f32.mrb[13].mxu1  ;;  %v8619_v36 = vld [vmem:[%s12293_s1 + $0x70] ss:$8 sps:$4 sm:$0xff]  }
 0x167   :  { %v660_v31 = vmax.f32 %v598_v10, %v652_v27  ;;  %v654_v32 = vpop.f32.mrb[14].mxu0  ;;  %v701_v33 = vpop.f32.mrb[14].mxu1  ;;  %1305 = vmatpush1.bf16.msra.mxu0 %v7921_v37  ;;  %1352 = vmatpush1.bf16.msra.mxu1 %v7924_v38  ;;  %v8638_v27 = vld [vmem:[%s12293_s1 + $0x114] ss:$8 sps:$4 sm:$0x3f]  }
 0x168   :  { %v706_v34 = vmax.f32 %v659_v26, %v697_v25  ;;  %v661_v39 = vmax.f32 %v599_v13, %v654_v32  ;;  %v656_v58 = vpop.f32.mrb[15].mxu0  ;;  %v703_v59 = vpop.f32.mrb[15].mxu1  ;;  %1407 = vmatprep.subr.bf16.mxu0 %v8366_v16  ;;  %1450 = vmatprep.subr.bf16.mxu1 %v8372_v17  ;;  %v8589_v13 = vld [vmem:[%s12293_s1 + $0xf4] ss:$8 sps:$4 sm:$0xff]   ;;  %v8625_v25 = vld [vmem:[%s12293_s1 + $0x100] ss:$8 sps:$4 sm:$0xff]  }
 0x169   :  { %v707_v0 = vmax.f32 %v660_v31, %v699_v28  ;;  %v662_v1 = vmax.f32 %v600_v18, %v656_v58  ;;  %v8607_v18 = vld [vmem:[%s12293_s1 + $0x74] ss:$8 sps:$4 sm:$0xff]   ;;  %v8631_v26 = vld [vmem:[%s12293_s1 + $0x84] ss:$8 sps:$4 sm:$0x3f]  }
 0x16a   :  { %v710_v61 = vadd.f32 %v706_v34, %v8272_v45  ;;  %v708_v62 = vmax.f32 %v661_v39, %v701_v33  ;;  %1321 = vmatmul.mubr.bf16.vlgmr.msra.gmra.mrb[36].mxu0 %v7131_v29  ;;  %1368 = vmatmul.mubr.bf16.vlgmr.msra.gmra.mrb[36].mxu1 %v7131_v29  ;;  %v7134_v34 = vld [vmem:[%s12294_s0 + $0xa0] ss:$8 sps:$4 sm:$0xff]  }
 0x16b   :  { %v711_v63 = vadd.f32 %v707_v0, %v8277_v50  ;;  %v709_v4 = vmax.f32 %v662_v1, %v703_v59  ;;  %1408 = vmatpush1.bf16.msra.mxu0 %v8383_v20  ;;  %1451 = vmatpush1.bf16.msra.mxu1 %v8389_v21 }
 0x16c   :  { %v712_v5 = vadd.f32 %v708_v62, %v8272_v45  ;;  %1409 = vmatprep.subr.bf16.mxu0 %v8395_v22  ;;  %1452 = vmatprep.subr.bf16.mxu1 %v8401_v23  ;;  %v714_v7 = vmax.f32 %v710_v61, 0.0  ;;  %v7135_v62 = vld [vmem:[%s12294_s0 + $0xb4] ss:$8 sps:$4 sm:$0xff]  }
 0x16d   :  { %v713_v6 = vadd.f32 %v709_v4, %v8277_v50  ;;  %6305 = vmatprep.mubr.msk.bf16.mxu0 %vm152_vm0, %v7132_v60  ;;  %6307 = vmatprep.mubr.msk.bf16.mxu1 %vm152_vm0, %v7132_v60  ;;  %v715_v9 = vmax.f32 %v711_v63, 0.0 }
 0x16e   :  { %v716_v8 = vmax.f32 %v712_v5, 0.0 }
 0x16f   :  { %v717_v10 = vmax.f32 %v713_v6, 0.0  ;;  %1410 = vmatpush1.bf16.msra.mxu0 %v8409_v24  ;;  %1453 = vmatpush1.bf16.msra.mxu1 %v8415_v40 }
 0x170   :  { %v8565_v11 = vpack.c.bf16 %v716_v8, %v714_v7  ;;  %1411 = vmatprep.subr.bf16.mxu0 %v8421_v41  ;;  %1454 = vmatprep.subr.bf16.mxu1 %v8427_v42  ;;  %v7137_v8 = vld [vmem:[%s12294_s0 + $0xb0] ss:$8 sps:$4 sm:$0xff]  }
 0x171   :  { %v8569_v12 = vpack.c.bf16 %v717_v10, %v715_v9 }
 0x172   :  { %12648 = vst [vmem:[#allocation2_spill] sm:$0xff] %v8565_v11 }
 0x173   :  { %1412 = vmatpush1.bf16.msra.mxu0 %v8433_v43  ;;  %1455 = vmatpush1.bf16.msra.mxu1 %v8439_v44 }
 0x174   :  { %1413 = vmatprep.subr.bf16.mxu0 %v8445_v46  ;;  %1456 = vmatprep.subr.bf16.mxu1 %v8451_v47 }
 0x177   :  { %1414 = vmatpush1.bf16.msra.mxu0 %v8457_v48  ;;  %1457 = vmatpush1.bf16.msra.mxu1 %v8463_v49 }
 0x178   :  { %1415 = vmatprep.subr.bf16.mxu0 %v8469_v51  ;;  %1458 = vmatprep.subr.bf16.mxu1 %v8475_v52 }
 0x17b   :  { %1416 = vmatpush1.bf16.msra.mxu0 %v8481_v54  ;;  %1459 = vmatpush1.bf16.msra.mxu1 %v8487_v53 }
 0x17c   :  { %1417 = vmatprep.subr.bf16.mxu0 %v8493_v55  ;;  %1460 = vmatprep.subr.bf16.mxu1 %v8499_v56 }
 0x17f   :  { %1418 = vmatpush1.bf16.msra.mxu0 %v8505_v57  ;;  %1461 = vmatpush1.bf16.msra.mxu1 %v8511_v30 }
 0x180   :  { %1419 = vmatprep.subr.bf16.mxu0 %v8517_v35  ;;  %1462 = vmatprep.subr.bf16.mxu1 %v8589_v13 }
 0x183   :  { %1420 = vmatpush1.bf16.msra.mxu0 %v8595_v14  ;;  %1463 = vmatpush1.bf16.msra.mxu1 %v8601_v15 }
 0x184   :  { %1421 = vmatprep.subr.bf16.mxu0 %v8607_v18  ;;  %1464 = vmatprep.subr.bf16.mxu1 %v8613_v19 }
 0x187   :  { %1422 = vmatpush1.bf16.msra.mxu0 %v8619_v36  ;;  %1465 = vmatpush1.bf16.msra.mxu1 %v8625_v25 }
 0x188   :  { %6304 = vmatprep.subr.msk.bf16.mxu0 %vm156_vm1, %v8631_v26  ;;  %6306 = vmatprep.subr.msk.bf16.mxu1 %vm156_vm1, %v8638_v27 }
 0x189   :  { %v769_v28 = vpop.f32.mrb[16].mxu0  ;;  %v812_v29 = vpop.f32.mrb[16].mxu1 }
 0x18a   :  { %v821_v31 = vmax.f32 %v769_v28, %v812_v29  ;;  %v771_v32 = vpop.f32.mrb[17].mxu0  ;;  %v814_v33 = vpop.f32.mrb[17].mxu1 }
 0x18b   :  { %v822_v39 = vmax.f32 %v771_v32, %v814_v33  ;;  %v773_v58 = vpop.f32.mrb[18].mxu0  ;;  %v816_v59 = vpop.f32.mrb[18].mxu1  ;;  %1424 = vmatpush1.bf16.msra.mxu0 %v7921_v37  ;;  %1467 = vmatpush1.bf16.msra.mxu1 %v7924_v38 }
 0x18c   :  { %v823_v0 = vmax.f32 %v773_v58, %v816_v59  ;;  %v775_v1 = vpop.f32.mrb[19].mxu0  ;;  %v818_v60 = vpop.f32.mrb[19].mxu1  ;;  %1512 = vmatprep.subr.bf16.mxu0 %v8366_v16  ;;  %1559 = vmatprep.subr.bf16.mxu1 %v8372_v17 }
 0x18d   :  { %v824_v61 = vmax.f32 %v775_v1, %v818_v60 }
 0x18e   :  { %1440 = vmatmul.mubr.bf16.vlgmr.msra.gmra.mrb[40].mxu0 %v7134_v34  ;;  %1483 = vmatmul.mubr.bf16.vlgmr.msra.gmra.mrb[40].mxu1 %v7134_v34 }
 0x18f   :  { %1513 = vmatpush1.bf16.msra.mxu0 %v8383_v20  ;;  %1560 = vmatpush1.bf16.msra.mxu1 %v8389_v21 }
 0x190   :  { %1514 = vmatprep.subr.bf16.mxu0 %v8395_v22  ;;  %1561 = vmatprep.subr.bf16.mxu1 %v8401_v23 }
 0x191   :  { %6313 = vmatprep.mubr.msk.bf16.mxu0 %vm152_vm0, %v7135_v62  ;;  %6315 = vmatprep.mubr.msk.bf16.mxu1 %vm152_vm0, %v7135_v62 }
 0x193   :  { %1515 = vmatpush1.bf16.msra.mxu0 %v8409_v24  ;;  %1562 = vmatpush1.bf16.msra.mxu1 %v8415_v40 }
 0x194   :  { %1516 = vmatprep.subr.bf16.mxu0 %v8421_v41  ;;  %1563 = vmatprep.subr.bf16.mxu1 %v8427_v42 }
 0x197   :  { %1517 = vmatpush1.bf16.msra.mxu0 %v8433_v43  ;;  %1564 = vmatpush1.bf16.msra.mxu1 %v8439_v44 }
 0x198   :  { %1518 = vmatprep.subr.bf16.mxu0 %v8445_v46  ;;  %1565 = vmatprep.subr.bf16.mxu1 %v8451_v47 }
 0x19b   :  { %1519 = vmatpush1.bf16.msra.mxu0 %v8457_v48  ;;  %1566 = vmatpush1.bf16.msra.mxu1 %v8463_v49 }
 0x19c   :  { %1520 = vmatprep.subr.bf16.mxu0 %v8469_v51  ;;  %1567 = vmatprep.subr.bf16.mxu1 %v8475_v52 }
 0x19f   :  { %1521 = vmatpush1.bf16.msra.mxu0 %v8481_v54  ;;  %1568 = vmatpush1.bf16.msra.mxu1 %v8487_v53 }
 0x1a0   :  { %1522 = vmatprep.subr.bf16.mxu0 %v8493_v55  ;;  %1569 = vmatprep.subr.bf16.mxu1 %v8499_v56 }
 0x1a3   :  { %1523 = vmatpush1.bf16.msra.mxu0 %v8505_v57  ;;  %1570 = vmatpush1.bf16.msra.mxu1 %v8511_v30 }
 0x1a4   :  { %1524 = vmatprep.subr.bf16.mxu0 %v8517_v35  ;;  %1571 = vmatprep.subr.bf16.mxu1 %v8589_v13 }
 0x1a7   :  { %1525 = vmatpush1.bf16.msra.mxu0 %v8595_v14  ;;  %1572 = vmatpush1.bf16.msra.mxu1 %v8601_v15 }
 0x1a8   :  { %1526 = vmatprep.subr.bf16.mxu0 %v8607_v18  ;;  %1573 = vmatprep.subr.bf16.mxu1 %v8613_v19 }
 0x1ab   :  { %1527 = vmatpush1.bf16.msra.mxu0 %v8619_v36  ;;  %1574 = vmatpush1.bf16.msra.mxu1 %v8625_v25 }
 0x1ac   :  { %6312 = vmatprep.subr.msk.bf16.mxu0 %vm156_vm1, %v8631_v26  ;;  %6314 = vmatprep.subr.msk.bf16.mxu1 %vm156_vm1, %v8638_v27 }
 0x1ad   :  { %v874_v63 = vpop.f32.mrb[20].mxu0  ;;  %v921_v4 = vpop.f32.mrb[20].mxu1 }
 0x1ae   :  { %v883_v5 = vmax.f32 %v821_v31, %v874_v63  ;;  %v876_v6 = vpop.f32.mrb[21].mxu0  ;;  %v923_v7 = vpop.f32.mrb[21].mxu1 }
 0x1af   :  { %v884_v9 = vmax.f32 %v822_v39, %v876_v6  ;;  %v878_v10 = vpop.f32.mrb[22].mxu0  ;;  %v925_v28 = vpop.f32.mrb[22].mxu1  ;;  %1529 = vmatpush1.bf16.msra.mxu0 %v7921_v37  ;;  %1576 = vmatpush1.bf16.msra.mxu1 %v7924_v38  ;;  %v7138_v39 = vld [vmem:[%s12294_s0 + $0xc4] ss:$8 sps:$4 sm:$0xff]  }
 0x1b0   :  { %v930_v29 = vmax.f32 %v883_v5, %v921_v4  ;;  %v885_v32 = vmax.f32 %v823_v0, %v878_v10  ;;  %v880_v33 = vpop.f32.mrb[23].mxu0  ;;  %v927_v34 = vpop.f32.mrb[23].mxu1  ;;  %1631 = vmatprep.subr.bf16.mxu0 %v8366_v16  ;;  %1674 = vmatprep.subr.bf16.mxu1 %v8372_v17 }
 0x1b1   :  { %v931_v31 = vmax.f32 %v884_v9, %v923_v7  ;;  %v886_v58 = vmax.f32 %v824_v61, %v880_v33  ;;  %v7140_v33 = vld [vmem:[%s12294_s0 + $0xc0] ss:$8 sps:$4 sm:$0xff]  }
 0x1b2   :  { %v934_v59 = vadd.f32 %v930_v29, %v8272_v45  ;;  %v932_v1 = vmax.f32 %v885_v32, %v925_v28  ;;  %1545 = vmatmul.mubr.bf16.vlgmr.msra.gmra.mrb[44].mxu0 %v7137_v8  ;;  %1592 = vmatmul.mubr.bf16.vlgmr.msra.gmra.mrb[44].mxu1 %v7137_v8 }
 0x1b3   :  { %v935_v60 = vadd.f32 %v931_v31, %v8277_v50  ;;  %v933_v0 = vmax.f32 %v886_v58, %v927_v34  ;;  %1632 = vmatpush1.bf16.msra.mxu0 %v8383_v20  ;;  %1675 = vmatpush1.bf16.msra.mxu1 %v8389_v21 }
 0x1b4   :  { %v936_v62 = vadd.f32 %v932_v1, %v8272_v45  ;;  %1633 = vmatprep.subr.bf16.mxu0 %v8395_v22  ;;  %1676 = vmatprep.subr.bf16.mxu1 %v8401_v23  ;;  %v938_v63 = vmax.f32 %v934_v59, 0.0 }
 0x1b5   :  { %v937_v61 = vadd.f32 %v933_v0, %v8277_v50  ;;  %6321 = vmatprep.mubr.msk.bf16.mxu0 %vm152_vm0, %v7138_v39  ;;  %6323 = vmatprep.mubr.msk.bf16.mxu1 %vm152_vm0, %v7138_v39  ;;  %v939_v5 = vmax.f32 %v935_v60, 0.0  ;;  %v7141_v0 = vld [vmem:[%s12294_s0 + $0xd4] ss:$8 sps:$4 sm:$0xff]  }
 0x1b6   :  { %v940_v4 = vmax.f32 %v936_v62, 0.0 }
 0x1b7   :  { %v941_v6 = vmax.f32 %v937_v61, 0.0  ;;  %1634 = vmatpush1.bf16.msra.mxu0 %v8409_v24  ;;  %1677 = vmatpush1.bf16.msra.mxu1 %v8415_v40 }
 0x1b8   :  { %v8710_v7 = vpack.c.bf16 %v940_v4, %v938_v63  ;;  %1635 = vmatprep.subr.bf16.mxu0 %v8421_v41  ;;  %1678 = vmatprep.subr.bf16.mxu1 %v8427_v42 }
 0x1b9   :  { %v8714_v8 = vpack.c.bf16 %v941_v6, %v939_v5  ;;  %v7143_v6 = vld [vmem:[%s12294_s0 + $0xd0] ss:$8 sps:$4 sm:$0xff]  }
 0x1ba   :  { %12649 = vst [vmem:[#allocation3_spill] sm:$0xff] %v8710_v7 }
 0x1bb   :  { %12650 = vst [vmem:[#allocation4_spill] sm:$0xff] %v8714_v8  ;;  %1636 = vmatpush1.bf16.msra.mxu0 %v8433_v43  ;;  %1679 = vmatpush1.bf16.msra.mxu1 %v8439_v44 }
 0x1bc   :  { %1637 = vmatprep.subr.bf16.mxu0 %v8445_v46  ;;  %1680 = vmatprep.subr.bf16.mxu1 %v8451_v47 }
 0x1bf   :  { %1638 = vmatpush1.bf16.msra.mxu0 %v8457_v48  ;;  %1681 = vmatpush1.bf16.msra.mxu1 %v8463_v49 }
 0x1c0   :  { %1639 = vmatprep.subr.bf16.mxu0 %v8469_v51  ;;  %1682 = vmatprep.subr.bf16.mxu1 %v8475_v52 }
 0x1c3   :  { %1640 = vmatpush1.bf16.msra.mxu0 %v8481_v54  ;;  %1683 = vmatpush1.bf16.msra.mxu1 %v8487_v53 }
 0x1c4   :  { %1641 = vmatprep.subr.bf16.mxu0 %v8493_v55  ;;  %1684 = vmatprep.subr.bf16.mxu1 %v8499_v56 }
 0x1c7   :  { %1642 = vmatpush1.bf16.msra.mxu0 %v8505_v57  ;;  %1685 = vmatpush1.bf16.msra.mxu1 %v8511_v30 }
 0x1c8   :  { %1643 = vmatprep.subr.bf16.mxu0 %v8517_v35  ;;  %1686 = vmatprep.subr.bf16.mxu1 %v8589_v13 }
 0x1cb   :  { %1644 = vmatpush1.bf16.msra.mxu0 %v8595_v14  ;;  %1687 = vmatpush1.bf16.msra.mxu1 %v8601_v15 }
 0x1cc   :  { %1645 = vmatprep.subr.bf16.mxu0 %v8607_v18  ;;  %1688 = vmatprep.subr.bf16.mxu1 %v8613_v19 }
 0x1cf   :  { %1646 = vmatpush1.bf16.msra.mxu0 %v8619_v36  ;;  %1689 = vmatpush1.bf16.msra.mxu1 %v8625_v25 }
 0x1d0   :  { %6320 = vmatprep.subr.msk.bf16.mxu0 %vm156_vm1, %v8631_v26  ;;  %6322 = vmatprep.subr.msk.bf16.mxu1 %vm156_vm1, %v8638_v27 }
 0x1d1   :  { %v993_v9 = vpop.f32.mrb[24].mxu0  ;;  %v1036_v10 = vpop.f32.mrb[24].mxu1 }
 0x1d2   :  { %v1045_v28 = vmax.f32 %v993_v9, %v1036_v10  ;;  %v995_v29 = vpop.f32.mrb[25].mxu0  ;;  %v1038_v32 = vpop.f32.mrb[25].mxu1 }
 0x1d3   :  { %v1046_v34 = vmax.f32 %v995_v29, %v1038_v32  ;;  %v997_v31 = vpop.f32.mrb[26].mxu0  ;;  %v1040_v58 = vpop.f32.mrb[26].mxu1  ;;  %1648 = vmatpush1.bf16.msra.mxu0 %v7921_v37  ;;  %1691 = vmatpush1.bf16.msra.mxu1 %v7924_v38 }
 0x1d4   :  { %v1047_v39 = vmax.f32 %v997_v31, %v1040_v58  ;;  %v999_v59 = vpop.f32.mrb[27].mxu0  ;;  %v1042_v1 = vpop.f32.mrb[27].mxu1  ;;  %1736 = vmatprep.subr.bf16.mxu0 %v8366_v16  ;;  %1783 = vmatprep.subr.bf16.mxu1 %v8372_v17 }
 0x1d5   :  { %v1048_v60 = vmax.f32 %v999_v59, %v1042_v1 }
 0x1d6   :  { %1664 = vmatmul.mubr.bf16.vlgmr.msra.gmra.mrb[48].mxu0 %v7140_v33  ;;  %1707 = vmatmul.mubr.bf16.vlgmr.msra.gmra.mrb[48].mxu1 %v7140_v33 }
 0x1d7   :  { %1737 = vmatpush1.bf16.msra.mxu0 %v8383_v20  ;;  %1784 = vmatpush1.bf16.msra.mxu1 %v8389_v21 }
 0x1d8   :  { %1738 = vmatprep.subr.bf16.mxu0 %v8395_v22  ;;  %1785 = vmatprep.subr.bf16.mxu1 %v8401_v23 }
 0x1d9   :  { %6329 = vmatprep.mubr.msk.bf16.mxu0 %vm152_vm0, %v7141_v0  ;;  %6331 = vmatprep.mubr.msk.bf16.mxu1 %vm152_vm0, %v7141_v0 }
 0x1db   :  { %1739 = vmatpush1.bf16.msra.mxu0 %v8409_v24  ;;  %1786 = vmatpush1.bf16.msra.mxu1 %v8415_v40 }
 0x1dc   :  { %1740 = vmatprep.subr.bf16.mxu0 %v8421_v41  ;;  %1787 = vmatprep.subr.bf16.mxu1 %v8427_v42 }
 0x1df   :  { %1741 = vmatpush1.bf16.msra.mxu0 %v8433_v43  ;;  %1788 = vmatpush1.bf16.msra.mxu1 %v8439_v44 }
 0x1e0   :  { %1742 = vmatprep.subr.bf16.mxu0 %v8445_v46  ;;  %1789 = vmatprep.subr.bf16.mxu1 %v8451_v47 }
 0x1e3   :  { %1743 = vmatpush1.bf16.msra.mxu0 %v8457_v48  ;;  %1790 = vmatpush1.bf16.msra.mxu1 %v8463_v49 }
 0x1e4   :  { %1744 = vmatprep.subr.bf16.mxu0 %v8469_v51  ;;  %1791 = vmatprep.subr.bf16.mxu1 %v8475_v52 }
 0x1e7   :  { %1745 = vmatpush1.bf16.msra.mxu0 %v8481_v54  ;;  %1792 = vmatpush1.bf16.msra.mxu1 %v8487_v53 }
 0x1e8   :  { %1746 = vmatprep.subr.bf16.mxu0 %v8493_v55  ;;  %1793 = vmatprep.subr.bf16.mxu1 %v8499_v56 }
 0x1eb   :  { %1747 = vmatpush1.bf16.msra.mxu0 %v8505_v57  ;;  %1794 = vmatpush1.bf16.msra.mxu1 %v8511_v30 }
 0x1ec   :  { %1748 = vmatprep.subr.bf16.mxu0 %v8517_v35  ;;  %1795 = vmatprep.subr.bf16.mxu1 %v8589_v13 }
 0x1ef   :  { %1749 = vmatpush1.bf16.msra.mxu0 %v8595_v14  ;;  %1796 = vmatpush1.bf16.msra.mxu1 %v8601_v15 }
 0x1f0   :  { %1750 = vmatprep.subr.bf16.mxu0 %v8607_v18  ;;  %1797 = vmatprep.subr.bf16.mxu1 %v8613_v19 }
 0x1f3   :  { %1751 = vmatpush1.bf16.msra.mxu0 %v8619_v36  ;;  %1798 = vmatpush1.bf16.msra.mxu1 %v8625_v25 }
 0x1f4   :  { %6328 = vmatprep.subr.msk.bf16.mxu0 %vm156_vm1, %v8631_v26  ;;  %6330 = vmatprep.subr.msk.bf16.mxu1 %vm156_vm1, %v8638_v27 }
 0x1f5   :  { %v1098_v62 = vpop.f32.mrb[28].mxu0  ;;  %v1145_v61 = vpop.f32.mrb[28].mxu1 }
 0x1f6   :  { %v1107_v63 = vmax.f32 %v1045_v28, %v1098_v62  ;;  %v1100_v4 = vpop.f32.mrb[29].mxu0  ;;  %v1147_v5 = vpop.f32.mrb[29].mxu1 }
 0x1f7   :  { %v1108_v9 = vmax.f32 %v1046_v34, %v1100_v4  ;;  %v1102_v10 = vpop.f32.mrb[30].mxu0  ;;  %v1149_v29 = vpop.f32.mrb[30].mxu1  ;;  %1753 = vmatpush1.bf16.msra.mxu0 %v7921_v37  ;;  %1800 = vmatpush1.bf16.msra.mxu1 %v7924_v38  ;;  %v7144_v34 = vld [vmem:[%s12294_s0 + $0xe4] ss:$8 sps:$4 sm:$0xff]  }
 0x1f8   :  { %v1154_v32 = vmax.f32 %v1107_v63, %v1145_v61  ;;  %v1109_v33 = vmax.f32 %v1047_v39, %v1102_v10  ;;  %v1104_v31 = vpop.f32.mrb[31].mxu0  ;;  %v1151_v58 = vpop.f32.mrb[31].mxu1  ;;  %1855 = vmatprep.subr.bf16.mxu0 %v8366_v16  ;;  %1898 = vmatprep.subr.bf16.mxu1 %v8372_v17 }
 0x1f9   :  { %v1155_v28 = vmax.f32 %v1108_v9, %v1147_v5  ;;  %v1110_v59 = vmax.f32 %v1048_v60, %v1104_v31 }
 0x1fa   :  { %v1158_v1 = vadd.f32 %v1154_v32, %v8272_v45  ;;  %v1156_v0 = vmax.f32 %v1109_v33, %v1149_v29  ;;  %1769 = vmatmul.mubr.bf16.vlgmr.msra.gmra.mrb[52].mxu0 %v7143_v6  ;;  %1816 = vmatmul.mubr.bf16.vlgmr.msra.gmra.mrb[52].mxu1 %v7143_v6 }
 0x1fb   :  { %v1159_v62 = vadd.f32 %v1155_v28, %v8277_v50  ;;  %v1157_v39 = vmax.f32 %v1110_v59, %v1151_v58  ;;  %1856 = vmatpush1.bf16.msra.mxu0 %v8383_v20  ;;  %1899 = vmatpush1.bf16.msra.mxu1 %v8389_v21  ;;  %v7146_v28 = vld [vmem:[%s12294_s0 + $0xe0] ss:$8 sps:$4 sm:$0xff]  }
 0x1fc   :  { %v1160_v61 = vadd.f32 %v1156_v0, %v8272_v45  ;;  %1857 = vmatprep.subr.bf16.mxu0 %v8395_v22  ;;  %1900 = vmatprep.subr.bf16.mxu1 %v8401_v23  ;;  %v1162_v63 = vmax.f32 %v1158_v1, 0.0 }
 0x1fd   :  { %v1161_v60 = vadd.f32 %v1157_v39, %v8277_v50  ;;  %6337 = vmatprep.mubr.msk.bf16.mxu0 %vm152_vm0, %v7144_v34  ;;  %6339 = vmatprep.mubr.msk.bf16.mxu1 %vm152_vm0, %v7144_v34  ;;  %v1163_v5 = vmax.f32 %v1159_v62, 0.0 }
 0x1fe   :  { %v1164_v4 = vmax.f32 %v1160_v61, 0.0 }
 0x1ff   :  { %v1165_v6 = vmax.f32 %v1161_v60, 0.0  ;;  %1858 = vmatpush1.bf16.msra.mxu0 %v8409_v24  ;;  %1901 = vmatpush1.bf16.msra.mxu1 %v8415_v40  ;;  %v7147_v60 = vld [vmem:[%s12294_s0 + $0xf4] ss:$8 sps:$4 sm:$0xff]  }
 0x200   :  { %v8810_v9 = vpack.c.bf16 %v1164_v4, %v1162_v63  ;;  %1859 = vmatprep.subr.bf16.mxu0 %v8421_v41  ;;  %1902 = vmatprep.subr.bf16.mxu1 %v8427_v42 }
 0x201   :  { %v8814_v10 = vpack.c.bf16 %v1165_v6, %v1163_v5 }
 0x202   :  { %12651 = vst [vmem:[#allocation5_spill] sm:$0xff] %v8810_v9 }
 0x203   :  { %12652 = vst [vmem:[#allocation6_spill] sm:$0xff] %v8814_v10  ;;  %1860 = vmatpush1.bf16.msra.mxu0 %v8433_v43  ;;  %1903 = vmatpush1.bf16.msra.mxu1 %v8439_v44 }
 0x204   :  { %1861 = vmatprep.subr.bf16.mxu0 %v8445_v46  ;;  %1904 = vmatprep.subr.bf16.mxu1 %v8451_v47 }
 0x207   :  { %1862 = vmatpush1.bf16.msra.mxu0 %v8457_v48  ;;  %1905 = vmatpush1.bf16.msra.mxu1 %v8463_v49 }
 0x208   :  { %1863 = vmatprep.subr.bf16.mxu0 %v8469_v51  ;;  %1906 = vmatprep.subr.bf16.mxu1 %v8475_v52 }
 0x20b   :  { %1864 = vmatpush1.bf16.msra.mxu0 %v8481_v54  ;;  %1907 = vmatpush1.bf16.msra.mxu1 %v8487_v53 }
 0x20c   :  { %1865 = vmatprep.subr.bf16.mxu0 %v8493_v55  ;;  %1908 = vmatprep.subr.bf16.mxu1 %v8499_v56 }
 0x20f   :  { %1866 = vmatpush1.bf16.msra.mxu0 %v8505_v57  ;;  %1909 = vmatpush1.bf16.msra.mxu1 %v8511_v30 }
 0x210   :  { %1867 = vmatprep.subr.bf16.mxu0 %v8517_v35  ;;  %1910 = vmatprep.subr.bf16.mxu1 %v8589_v13 }
 0x213   :  { %1868 = vmatpush1.bf16.msra.mxu0 %v8595_v14  ;;  %1911 = vmatpush1.bf16.msra.mxu1 %v8601_v15 }
 0x214   :  { %1869 = vmatprep.subr.bf16.mxu0 %v8607_v18  ;;  %1912 = vmatprep.subr.bf16.mxu1 %v8613_v19 }
 0x217   :  { %1870 = vmatpush1.bf16.msra.mxu0 %v8619_v36  ;;  %1913 = vmatpush1.bf16.msra.mxu1 %v8625_v25 }
 0x218   :  { %6336 = vmatprep.subr.msk.bf16.mxu0 %vm156_vm1, %v8631_v26  ;;  %6338 = vmatprep.subr.msk.bf16.mxu1 %vm156_vm1, %v8638_v27 }
 0x219   :  { %v1217_v29 = vpop.f32.mrb[32].mxu0  ;;  %v1260_v32 = vpop.f32.mrb[32].mxu1 }
 0x21a   :  { %v1269_v33 = vmax.f32 %v1217_v29, %v1260_v32  ;;  %v1219_v31 = vpop.f32.mrb[33].mxu0  ;;  %v1262_v58 = vpop.f32.mrb[33].mxu1  ;;  %v7149_v32 = vld [vmem:[%s12294_s0 + $0xf0] ss:$8 sps:$4 sm:$0xff]  }
 0x21b   :  { %v1270_v59 = vmax.f32 %v1219_v31, %v1262_v58  ;;  %v1221_v34 = vpop.f32.mrb[34].mxu0  ;;  %v1264_v1 = vpop.f32.mrb[34].mxu1  ;;  %1872 = vmatpush1.bf16.msra.mxu0 %v7921_v37  ;;  %1915 = vmatpush1.bf16.msra.mxu1 %v7924_v38 }
 0x21c   :  { %v1271_v0 = vmax.f32 %v1221_v34, %v1264_v1  ;;  %v1223_v62 = vpop.f32.mrb[35].mxu0  ;;  %v1266_v39 = vpop.f32.mrb[35].mxu1  ;;  %1960 = vmatprep.subr.bf16.mxu0 %v8366_v16  ;;  %2007 = vmatprep.subr.bf16.mxu1 %v8372_v17 }
 0x21d   :  { %v1272_v61 = vmax.f32 %v1223_v62, %v1266_v39 }
 0x21e   :  { %1888 = vmatmul.mubr.bf16.vlgmr.msra.gmra.mrb[56].mxu0 %v7146_v28  ;;  %1931 = vmatmul.mubr.bf16.vlgmr.msra.gmra.mrb[56].mxu1 %v7146_v28 }
 0x21f   :  { %1961 = vmatpush1.bf16.msra.mxu0 %v8383_v20  ;;  %2008 = vmatpush1.bf16.msra.mxu1 %v8389_v21 }
 0x220   :  { %1962 = vmatprep.subr.bf16.mxu0 %v8395_v22  ;;  %2009 = vmatprep.subr.bf16.mxu1 %v8401_v23 }
 0x221   :  { %6345 = vmatprep.mubr.msk.bf16.mxu0 %vm152_vm0, %v7147_v60  ;;  %6347 = vmatprep.mubr.msk.bf16.mxu1 %vm152_vm0, %v7147_v60 }
 0x223   :  { %1963 = vmatpush1.bf16.msra.mxu0 %v8409_v24  ;;  %2010 = vmatpush1.bf16.msra.mxu1 %v8415_v40 }
 0x224   :  { %1964 = vmatprep.subr.bf16.mxu0 %v8421_v41  ;;  %2011 = vmatprep.subr.bf16.mxu1 %v8427_v42 }
 0x227   :  { %1965 = vmatpush1.bf16.msra.mxu0 %v8433_v43  ;;  %2012 = vmatpush1.bf16.msra.mxu1 %v8439_v44 }
 0x228   :  { %1966 = vmatprep.subr.bf16.mxu0 %v8445_v46  ;;  %2013 = vmatprep.subr.bf16.mxu1 %v8451_v47 }
 0x22b   :  { %1967 = vmatpush1.bf16.msra.mxu0 %v8457_v48  ;;  %2014 = vmatpush1.bf16.msra.mxu1 %v8463_v49 }
 0x22c   :  { %1968 = vmatprep.subr.bf16.mxu0 %v8469_v51  ;;  %2015 = vmatprep.subr.bf16.mxu1 %v8475_v52 }
 0x22f   :  { %1969 = vmatpush1.bf16.msra.mxu0 %v8481_v54  ;;  %2016 = vmatpush1.bf16.msra.mxu1 %v8487_v53 }
 0x230   :  { %1970 = vmatprep.subr.bf16.mxu0 %v8493_v55  ;;  %2017 = vmatprep.subr.bf16.mxu1 %v8499_v56 }
 0x233   :  { %1971 = vmatpush1.bf16.msra.mxu0 %v8505_v57  ;;  %2018 = vmatpush1.bf16.msra.mxu1 %v8511_v30 }
 0x234   :  { %1972 = vmatprep.subr.bf16.mxu0 %v8517_v35  ;;  %2019 = vmatprep.subr.bf16.mxu1 %v8589_v13 }
 0x237   :  { %1973 = vmatpush1.bf16.msra.mxu0 %v8595_v14  ;;  %2020 = vmatpush1.bf16.msra.mxu1 %v8601_v15 }
 0x238   :  { %1974 = vmatprep.subr.bf16.mxu0 %v8607_v18  ;;  %2021 = vmatprep.subr.bf16.mxu1 %v8613_v19 }
 0x23b   :  { %1975 = vmatpush1.bf16.msra.mxu0 %v8619_v36  ;;  %2022 = vmatpush1.bf16.msra.mxu1 %v8625_v25 }
 0x23c   :  { %6344 = vmatprep.subr.msk.bf16.mxu0 %vm156_vm1, %v8631_v26  ;;  %6346 = vmatprep.subr.msk.bf16.mxu1 %vm156_vm1, %v8638_v27 }
 0x23d   :  { %v1322_v63 = vpop.f32.mrb[36].mxu0  ;;  %v1369_v4 = vpop.f32.mrb[36].mxu1 }
 0x23e   :  { %v1331_v5 = vmax.f32 %v1269_v33, %v1322_v63  ;;  %v1324_v6 = vpop.f32.mrb[37].mxu0  ;;  %v1371_v29 = vpop.f32.mrb[37].mxu1 }
 0x23f   :  { %v1332_v31 = vmax.f32 %v1270_v59, %v1324_v6  ;;  %v1326_v58 = vpop.f32.mrb[38].mxu0  ;;  %v1373_v28 = vpop.f32.mrb[38].mxu1  ;;  %1977 = vmatpush1.bf16.msra.mxu0 %v7921_v37  ;;  %2024 = vmatpush1.bf16.msra.mxu1 %v7924_v38  ;;  %v7150_v59 = vld [vmem:[%s12294_s0 + $0x104] ss:$8 sps:$4 sm:$0xff]  }
 0x240   :  { %v1378_v34 = vmax.f32 %v1331_v5, %v1369_v4  ;;  %v1333_v1 = vmax.f32 %v1271_v0, %v1326_v58  ;;  %v1328_v62 = vpop.f32.mrb[39].mxu0  ;;  %v1375_v39 = vpop.f32.mrb[39].mxu1  ;;  %2079 = vmatprep.subr.bf16.mxu0 %v8366_v16  ;;  %2122 = vmatprep.subr.bf16.mxu1 %v8372_v17 }
 0x241   :  { %v1379_v33 = vmax.f32 %v1332_v31, %v1371_v29  ;;  %v1334_v60 = vmax.f32 %v1272_v61, %v1328_v62 }
 0x242   :  { %v1382_v63 = vadd.f32 %v1378_v34, %v8272_v45  ;;  %v1380_v6 = vmax.f32 %v1333_v1, %v1373_v28  ;;  %1993 = vmatmul.mubr.bf16.vlgmr.msra.gmra.mrb[60].mxu0 %v7149_v32  ;;  %2040 = vmatmul.mubr.bf16.vlgmr.msra.gmra.mrb[60].mxu1 %v7149_v32 }
 0x243   :  { %v1383_v4 = vadd.f32 %v1379_v33, %v8277_v50  ;;  %v1381_v0 = vmax.f32 %v1334_v60, %v1375_v39  ;;  %2080 = vmatpush1.bf16.msra.mxu0 %v8383_v20  ;;  %2123 = vmatpush1.bf16.msra.mxu1 %v8389_v21 }
 0x244   :  { %v1384_v5 = vadd.f32 %v1380_v6, %v8272_v45  ;;  %2081 = vmatprep.subr.bf16.mxu0 %v8395_v22  ;;  %2124 = vmatprep.subr.bf16.mxu1 %v8401_v23  ;;  %v1386_v29 = vmax.f32 %v1382_v63, 0.0 }
 0x245   :  { %v1385_v61 = vadd.f32 %v1381_v0, %v8277_v50  ;;  %6353 = vmatprep.mubr.msk.bf16.mxu0 %vm152_vm0, %v7150_v59  ;;  %6355 = vmatprep.mubr.msk.bf16.mxu1 %vm152_vm0, %v7150_v59  ;;  %v1387_v31 = vmax.f32 %v1383_v4, 0.0  ;;  %v7152_v59 = vld [vmem:[%s12294_s0 + $0x100] ss:$8 sps:$4 sm:$0xff]  }
 0x246   :  { %v1388_v32 = vmax.f32 %v1384_v5, 0.0 }
 0x247   :  { %v1389_v58 = vmax.f32 %v1385_v61, 0.0  ;;  %2082 = vmatpush1.bf16.msra.mxu0 %v8409_v24  ;;  %2125 = vmatpush1.bf16.msra.mxu1 %v8415_v40 }
 0x248   :  { %v8910_v28 = vpack.c.bf16 %v1388_v32, %v1386_v29  ;;  %2083 = vmatprep.subr.bf16.mxu0 %v8421_v41  ;;  %2126 = vmatprep.subr.bf16.mxu1 %v8427_v42  ;;  %v7153_v32 = vld [vmem:[%s12294_s0 + $0x114] ss:$8 sps:$4 sm:$0xff]  }
 0x249   :  { %v8914_v34 = vpack.c.bf16 %v1389_v58, %v1387_v31  ;;  %v9029_v31 = vld [vmem:[%s12293_s1 + $0x14] ss:$8 sps:$4 sm:$0xff]   ;;  %v9035_v58 = vld [vmem:[%s12293_s1 + $0xa4] ss:$8 sps:$4 sm:$0xff]  }
 0x24a   :  { %12653 = vst [vmem:[#allocation7_spill] sm:$0xff] %v8910_v28 }
 0x24b   :  { %12654 = vst [vmem:[#allocation8_spill] sm:$0xff] %v8914_v34  ;;  %2084 = vmatpush1.bf16.msra.mxu0 %v8433_v43  ;;  %2127 = vmatpush1.bf16.msra.mxu1 %v8439_v44 }
 0x24c   :  { %2085 = vmatprep.subr.bf16.mxu0 %v8445_v46  ;;  %2128 = vmatprep.subr.bf16.mxu1 %v8451_v47 }
 0x24f   :  { %2086 = vmatpush1.bf16.msra.mxu0 %v8457_v48  ;;  %2129 = vmatpush1.bf16.msra.mxu1 %v8463_v49 }
 0x250   :  { %2087 = vmatprep.subr.bf16.mxu0 %v8469_v51  ;;  %2130 = vmatprep.subr.bf16.mxu1 %v8475_v52 }
 0x253   :  { %2088 = vmatpush1.bf16.msra.mxu0 %v8481_v54  ;;  %2131 = vmatpush1.bf16.msra.mxu1 %v8487_v53 }
 0x254   :  { %2089 = vmatprep.subr.bf16.mxu0 %v8493_v55  ;;  %2132 = vmatprep.subr.bf16.mxu1 %v8499_v56 }
 0x257   :  { %2090 = vmatpush1.bf16.msra.mxu0 %v8505_v57  ;;  %2133 = vmatpush1.bf16.msra.mxu1 %v8511_v30 }
 0x258   :  { %2091 = vmatprep.subr.bf16.mxu0 %v8517_v35  ;;  %2134 = vmatprep.subr.bf16.mxu1 %v8589_v13 }
 0x25b   :  { %2092 = vmatpush1.bf16.msra.mxu0 %v8595_v14  ;;  %2135 = vmatpush1.bf16.msra.mxu1 %v8601_v15 }
 0x25c   :  { %2093 = vmatprep.subr.bf16.mxu0 %v8607_v18  ;;  %2136 = vmatprep.subr.bf16.mxu1 %v8613_v19 }
 0x25f   :  { %2094 = vmatpush1.bf16.msra.mxu0 %v8619_v36  ;;  %2137 = vmatpush1.bf16.msra.mxu1 %v8625_v25 }
 0x260   :  { %6352 = vmatprep.subr.msk.bf16.mxu0 %vm156_vm1, %v8631_v26  ;;  %6354 = vmatprep.subr.msk.bf16.mxu1 %vm156_vm1, %v8638_v27 }
 0x261   :  { %v1441_v1 = vpop.f32.mrb[40].mxu0  ;;  %v1484_v62 = vpop.f32.mrb[40].mxu1 }
 0x262   :  { %v1493_v39 = vmax.f32 %v1441_v1, %v1484_v62  ;;  %v1443_v33 = vpop.f32.mrb[41].mxu0  ;;  %v1486_v60 = vpop.f32.mrb[41].mxu1 }
 0x263   :  { %v1494_v63 = vmax.f32 %v1443_v33, %v1486_v60  ;;  %v1445_v6 = vpop.f32.mrb[42].mxu0  ;;  %v1488_v4 = vpop.f32.mrb[42].mxu1  ;;  %2096 = vmatpush1.bf16.msra.mxu0 %v7921_v37  ;;  %2139 = vmatpush1.bf16.msra.mxu1 %v7924_v38 }
 0x264   :  { %v1495_v0 = vmax.f32 %v1445_v6, %v1488_v4  ;;  %v8947_v5 = vpop.f32.mrb[43].mxu0  ;;  %v1490_v61 = vpop.f32.mrb[43].mxu1  ;;  %2184 = vmatprep.subr.bf16.mxu0 %v8366_v16  ;;  %2231 = vmatprep.subr.bf16.mxu1 %v8372_v17  ;;  %v9058_v4 = vld [vmem:[%s12293_s1 + $0x24] ss:$8 sps:$4 sm:$0xff]  }
 0x265   :  { %v1496_v29 = vmax.f32 %v8947_v5, %v1490_v61  ;;  %v9072_v61 = vld [vmem:[%s12293_s1 + $0x20] ss:$8 sps:$4 sm:$0xff]  }
 0x266   :  { %2112 = vmatmul.mubr.bf16.vlgmr.msra.gmra.mrb[64].mxu0 %v7152_v59  ;;  %2155 = vmatmul.mubr.bf16.vlgmr.msra.gmra.mrb[64].mxu1 %v7152_v59  ;;  %v9044_v59 = vld [vmem:[%s12293_s1 + $0x10] ss:$8 sps:$4 sm:$0xff]  }
 0x267   :  { %2185 = vmatpush1.bf16.msra.mxu0 %v8383_v20  ;;  %2232 = vmatpush1.bf16.msra.mxu1 %v8389_v21 }
 0x268   :  { %2186 = vmatprep.subr.bf16.mxu0 %v8395_v22  ;;  %2233 = vmatprep.subr.bf16.mxu1 %v8401_v23  ;;  %v7155_v23 = vld [vmem:[%s12294_s0 + $0x110] ss:$8 sps:$4 sm:$0xff]  }
 0x269   :  { %6361 = vmatprep.mubr.msk.bf16.mxu0 %vm152_vm0, %v7153_v32  ;;  %6363 = vmatprep.mubr.msk.bf16.mxu1 %vm152_vm0, %v7153_v32  ;;  %v9084_v32 = vld [vmem:[%s12293_s1 + $0x34] ss:$8 sps:$4 sm:$0xff]  }
 0x26b   :  { %2187 = vmatpush1.bf16.msra.mxu0 %v8409_v24  ;;  %2234 = vmatpush1.bf16.msra.mxu1 %v8415_v40 }
 0x26c   :  { %2188 = vmatprep.subr.bf16.mxu0 %v8421_v41  ;;  %2235 = vmatprep.subr.bf16.mxu1 %v8427_v42 }
 0x26f   :  { %2189 = vmatpush1.bf16.msra.mxu0 %v8433_v43  ;;  %2236 = vmatpush1.bf16.msra.mxu1 %v8439_v44 }
 0x270   :  { %2190 = vmatprep.subr.bf16.mxu0 %v8445_v46  ;;  %2237 = vmatprep.subr.bf16.mxu1 %v8451_v47  ;;  %v8999_v47 = vld [vmem:[%s12293_s1 + $0x4] ss:$8 sps:$4 sm:$0xff]  }
 0x273   :  { %2191 = vmatpush1.bf16.msra.mxu0 %v8457_v48  ;;  %2238 = vmatpush1.bf16.msra.mxu1 %v8463_v49  ;;  %v9005_v48 = vld [vmem:[%s12293_s1 + $0x94] ss:$8 sps:$4 sm:$0xff]  }
 0x274   :  { %2192 = vmatprep.subr.bf16.mxu0 %v8469_v51  ;;  %2239 = vmatprep.subr.bf16.mxu1 %v8475_v52  ;;  %v7156_v52 = vld [vmem:[%s12294_s0 + $0x124] ss:$8 sps:$4 sm:$0xff]  }
 0x277   :  { %2193 = vmatpush1.bf16.msra.mxu0 %v8481_v54  ;;  %2240 = vmatpush1.bf16.msra.mxu1 %v8487_v53 }
 0x278   :  { %2194 = vmatprep.subr.bf16.mxu0 %v8493_v55  ;;  %2241 = vmatprep.subr.bf16.mxu1 %v8499_v56 }
 0x27b   :  { %2195 = vmatpush1.bf16.msra.mxu0 %v8505_v57  ;;  %2242 = vmatpush1.bf16.msra.mxu1 %v8511_v30  ;;  %v9016_v57 = vld [vmem:[%s12293_s1] ss:$8 sps:$4 sm:$0xff]   ;;  %v9022_v30 = vld [vmem:[%s12293_s1 + $0x90] ss:$8 sps:$4 sm:$0xff]  }
 0x27c   :  { %2196 = vmatprep.subr.bf16.mxu0 %v8517_v35  ;;  %2243 = vmatprep.subr.bf16.mxu1 %v8589_v13 }
 0x27f   :  { %2197 = vmatpush1.bf16.msra.mxu0 %v8595_v14  ;;  %2244 = vmatpush1.bf16.msra.mxu1 %v8601_v15 }
 0x280   :  { %2198 = vmatprep.subr.bf16.mxu0 %v8607_v18  ;;  %2245 = vmatprep.subr.bf16.mxu1 %v8613_v19 }
 0x283   :  { %2199 = vmatpush1.bf16.msra.mxu0 %v8619_v36  ;;  %2246 = vmatpush1.bf16.msra.mxu1 %v8625_v25 }
 0x284   :  { %6360 = vmatprep.subr.msk.bf16.mxu0 %vm156_vm1, %v8631_v26  ;;  %6362 = vmatprep.subr.msk.bf16.mxu1 %vm156_vm1, %v8638_v27 }
 0x285   :  { %v1546_v16 = vpop.f32.mrb[44].mxu0  ;;  %v1593_v17 = vpop.f32.mrb[44].mxu1 }
 0x286   :  { %v1555_v20 = vmax.f32 %v1493_v39, %v1546_v16  ;;  %v1548_v21 = vpop.f32.mrb[45].mxu0  ;;  %v1595_v22 = vpop.f32.mrb[45].mxu1  ;;  %v9090_v16 = vld [vmem:[%s12293_s1 + $0xc4] ss:$8 sps:$4 sm:$0xff]  }
 0x287   :  { %v1556_v24 = vmax.f32 %v1494_v63, %v1548_v21  ;;  %v1550_v40 = vpop.f32.mrb[46].mxu0  ;;  %v1597_v41 = vpop.f32.mrb[46].mxu1  ;;  %2201 = vmatpush1.bf16.msra.mxu0 %v7921_v37  ;;  %2248 = vmatpush1.bf16.msra.mxu1 %v7924_v38  ;;  %v9050_v63 = vld [vmem:[%s12293_s1 + $0xa0] ss:$8 sps:$4 sm:$0xff]   ;;  %v9108_v21 = vld [vmem:[%s12293_s1 + $0x44] ss:$8 sps:$4 sm:$0xff]  }
 0x288   :  { %v1602_v42 = vmax.f32 %v1555_v20, %v1593_v17  ;;  %v1557_v43 = vmax.f32 %v1495_v0, %v1550_v40  ;;  %v1552_v44 = vpop.f32.mrb[47].mxu0  ;;  %v1599_v46 = vpop.f32.mrb[47].mxu1  ;;  %2303 = vmatprep.subr.bf16.mxu0 %v8999_v47  ;;  %2346 = vmatprep.subr.bf16.mxu1 %v9005_v48  ;;  %v9064_v0 = vld [vmem:[%s12293_s1 + $0xb4] ss:$8 sps:$4 sm:$0xff]   ;;  %v9096_v17 = vld [vmem:[%s12293_s1 + $0x30] ss:$8 sps:$4 sm:$0xff]  }
 0x289   :  { %v1603_v49 = vmax.f32 %v1556_v24, %v1595_v22  ;;  %v1558_v51 = vmax.f32 %v1496_v29, %v1552_v44  ;;  %v9078_v29 = vld [vmem:[%s12293_s1 + $0xb0] ss:$8 sps:$4 sm:$0xff]   ;;  %v9102_v20 = vld [vmem:[%s12293_s1 + $0xc0] ss:$8 sps:$4 sm:$0xff]   ;;  %v9114_v22 = vld [vmem:[%s12293_s1 + $0xd4] ss:$8 sps:$4 sm:$0xff]  }
 0x28a   :  { %v1606_v54 = vadd.f32 %v1602_v42, %v8272_v45  ;;  %v1604_v53 = vmax.f32 %v1557_v43, %v1597_v41  ;;  %2217 = vmatmul.mubr.bf16.vlgmr.msra.gmra.mrb[68].mxu0 %v7155_v23  ;;  %2264 = vmatmul.mubr.bf16.vlgmr.msra.gmra.mrb[68].mxu1 %v7155_v23  ;;  %v9120_v23 = vld [vmem:[%s12293_s1 + $0x40] ss:$8 sps:$4 sm:$0xff]   ;;  %v9126_v24 = vld [vmem:[%s12293_s1 + $0xd0] ss:$8 sps:$4 sm:$0xff]   ;;  %v9132_v40 = vld [vmem:[%s12293_s1 + $0x54] ss:$8 sps:$4 sm:$0xff]  }
 0x28b   :  { %v1607_v55 = vadd.f32 %v1603_v49, %v8277_v50  ;;  %v1605_v56 = vmax.f32 %v1558_v51, %v1599_v46  ;;  %2304 = vmatpush1.bf16.msra.mxu0 %v9016_v57  ;;  %2347 = vmatpush1.bf16.msra.mxu1 %v9022_v30  ;;  %v9138_v41 = vld [vmem:[%s12293_s1 + $0xe4] ss:$8 sps:$4 sm:$0xff]   ;;  %v9144_v42 = vld [vmem:[%s12293_s1 + $0x50] ss:$8 sps:$4 sm:$0xff]   ;;  %v9150_v43 = vld [vmem:[%s12293_s1 + $0xe0] ss:$8 sps:$4 sm:$0xff]  }
 0x28c   :  { %v1608_v35 = vadd.f32 %v1604_v53, %v8272_v45  ;;  %2305 = vmatprep.subr.bf16.mxu0 %v9029_v31  ;;  %2348 = vmatprep.subr.bf16.mxu1 %v9035_v58  ;;  %v1610_v62 = vmax.f32 %v1606_v54, 0.0  ;;  %v9156_v44 = vld [vmem:[%s12293_s1 + $0x64] ss:$8 sps:$4 sm:$0xff]   ;;  %v7159_v54 = vld [vmem:[%s12294_s0 + $0x134] ss:$8 sps:$4 sm:$0xff]  }
 0x28d   :  { %v1609_v1 = vadd.f32 %v1605_v56, %v8277_v50  ;;  %6369 = vmatprep.mubr.msk.bf16.mxu0 %vm152_vm0, %v7156_v52  ;;  %6371 = vmatprep.mubr.msk.bf16.mxu1 %vm152_vm0, %v7156_v52  ;;  %v1611_v33 = vmax.f32 %v1607_v55, 0.0  ;;  %v9232_v53 = vld [vmem:[%s12293_s1 + $0xf4] ss:$8 sps:$4 sm:$0xff]   ;;  %v9238_v55 = vld [vmem:[%s12293_s1 + $0x60] ss:$8 sps:$4 sm:$0xff]  }
 0x28e   :  { %v1612_v39 = vmax.f32 %v1608_v35, 0.0  ;;  %v9244_v56 = vld [vmem:[%s12293_s1 + $0xf0] ss:$8 sps:$4 sm:$0xff]   ;;  %v9250_v35 = vld [vmem:[%s12293_s1 + $0x74] ss:$8 sps:$4 sm:$0xff]  }
 0x28f   :  { %v1613_v60 = vmax.f32 %v1609_v1, 0.0  ;;  %2306 = vmatpush1.bf16.msra.mxu0 %v9044_v59  ;;  %2349 = vmatpush1.bf16.msra.mxu1 %v9050_v63  ;;  %v9256_v1 = vld [vmem:[%s12293_s1 + $0x104] ss:$8 sps:$4 sm:$0xff]  }
 0x290   :  { %v9053_v6 = vpack.c.bf16 %v1612_v39, %v1610_v62  ;;  %2307 = vmatprep.subr.bf16.mxu0 %v9058_v4  ;;  %2350 = vmatprep.subr.bf16.mxu1 %v9064_v0  ;;  %v9262_v62 = vld [vmem:[%s12293_s1 + $0x70] ss:$8 sps:$4 sm:$0xff]   ;;  %v9268_v39 = vld [vmem:[%s12293_s1 + $0x100] ss:$8 sps:$4 sm:$0xff]  }
 0x291   :  { %v9067_v5 = vpack.c.bf16 %v1613_v60, %v1611_v33  ;;  %v9274_v33 = vld [vmem:[%s12293_s1 + $0x84] ss:$8 sps:$4 sm:$0x3f]   ;;  %v9281_v60 = vld [vmem:[%s12293_s1 + $0x114] ss:$8 sps:$4 sm:$0x3f]  }
 0x292   :  { %12655 = vst [vmem:[#allocation9_spill] sm:$0xff] %v9053_v6  ;;  %v7161_v6 = vld [vmem:[%s12294_s0 + $0x130] ss:$8 sps:$4 sm:$0xff]  }
 0x293   :  { %12656 = vst [vmem:[#allocation10_spill] sm:$0xff] %v9067_v5  ;;  %2308 = vmatpush1.bf16.msra.mxu0 %v9072_v61  ;;  %2351 = vmatpush1.bf16.msra.mxu1 %v9078_v29 }
 0x294   :  { %2309 = vmatprep.subr.bf16.mxu0 %v9084_v32  ;;  %2352 = vmatprep.subr.bf16.mxu1 %v9090_v16 }
 0x297   :  { %2310 = vmatpush1.bf16.msra.mxu0 %v9096_v17  ;;  %2353 = vmatpush1.bf16.msra.mxu1 %v9102_v20 }
 0x298   :  { %2311 = vmatprep.subr.bf16.mxu0 %v9108_v21  ;;  %2354 = vmatprep.subr.bf16.mxu1 %v9114_v22 }
 0x29b   :  { %2312 = vmatpush1.bf16.msra.mxu0 %v9120_v23  ;;  %2355 = vmatpush1.bf16.msra.mxu1 %v9126_v24 }
 0x29c   :  { %2313 = vmatprep.subr.bf16.mxu0 %v9132_v40  ;;  %2356 = vmatprep.subr.bf16.mxu1 %v9138_v41 }
 0x29f   :  { %2314 = vmatpush1.bf16.msra.mxu0 %v9144_v42  ;;  %2357 = vmatpush1.bf16.msra.mxu1 %v9150_v43 }
 0x2a0   :  { %2315 = vmatprep.subr.bf16.mxu0 %v9156_v44  ;;  %2358 = vmatprep.subr.bf16.mxu1 %v8589_v13 }
 0x2a3   :  { %2316 = vmatpush1.bf16.msra.mxu0 %v8595_v14  ;;  %2359 = vmatpush1.bf16.msra.mxu1 %v8601_v15 }
 0x2a4   :  { %2317 = vmatprep.subr.bf16.mxu0 %v8607_v18  ;;  %2360 = vmatprep.subr.bf16.mxu1 %v8613_v19  ;;  %v7158_v19 = vld [vmem:[%s12294_s0 + $0x120] ss:$8 sps:$4 sm:$0xff]  }
 0x2a7   :  { %2318 = vmatpush1.bf16.msra.mxu0 %v8619_v36  ;;  %2361 = vmatpush1.bf16.msra.mxu1 %v8625_v25 }
 0x2a8   :  { %6368 = vmatprep.subr.msk.bf16.mxu0 %vm156_vm1, %v8631_v26  ;;  %6370 = vmatprep.subr.msk.bf16.mxu1 %vm156_vm1, %v8638_v27 }
 0x2a9   :  { %v9170_v46 = vpop.f32.mrb[48].mxu0  ;;  %v9172_v13 = vpop.f32.mrb[48].mxu1 }
 0x2aa   :  { %v1717_v14 = vmax.f32 %v9170_v46, %v9172_v13  ;;  %v9176_v15 = vpop.f32.mrb[49].mxu0  ;;  %v9178_v18 = vpop.f32.mrb[49].mxu1 }
 0x2ab   :  { %v9185_v25 = vpop.f32.mrb[50].mxu0  ;;  %v9187_v26 = vpop.f32.mrb[50].mxu1  ;;  %2320 = vmatpush1.bf16.msra.mxu0 %v7921_v37  ;;  %2363 = vmatpush1.bf16.msra.mxu1 %v7924_v38  ;;  %v12657_v5 = vmax.f32 %v9176_v15, %v9178_v18  ;;  %v7162_v18 = vld [vmem:[%s12294_s0 + $0x144] ss:$8 sps:$4 sm:$0xff]  }
 0x2ac   :  { %v9193_v49 = vpop.f32.mrb[51].mxu0  ;;  %v9195_v51 = vpop.f32.mrb[51].mxu1  ;;  %2408 = vmatprep.subr.bf16.mxu0 %v8999_v47  ;;  %2455 = vmatprep.subr.bf16.mxu1 %v9005_v48  ;;  %v12658_v46 = vmax.f32 %v9185_v25, %v9187_v26 }
 0x2ae   :  { %2336 = vmatmul.mubr.bf16.vlgmr.msra.gmra.mrb[72].mxu0 %v7158_v19  ;;  %2379 = vmatmul.mubr.bf16.vlgmr.msra.gmra.mrb[72].mxu1 %v7158_v19 }
 0x2af   :  { %2409 = vmatpush1.bf16.msra.mxu0 %v9016_v57  ;;  %2456 = vmatpush1.bf16.msra.mxu1 %v9022_v30 }
 0x2b0   :  { %2410 = vmatprep.subr.bf16.mxu0 %v9029_v31  ;;  %2457 = vmatprep.subr.bf16.mxu1 %v9035_v58 }
 0x2b1   :  { %6377 = vmatprep.mubr.msk.bf16.mxu0 %vm152_vm0, %v7159_v54  ;;  %6379 = vmatprep.mubr.msk.bf16.mxu1 %vm152_vm0, %v7159_v54 }
 0x2b3   :  { %2411 = vmatpush1.bf16.msra.mxu0 %v9044_v59  ;;  %2458 = vmatpush1.bf16.msra.mxu1 %v9050_v63 }
 0x2b4   :  { %2412 = vmatprep.subr.bf16.mxu0 %v9058_v4  ;;  %2459 = vmatprep.subr.bf16.mxu1 %v9064_v0 }
 0x2b7   :  { %2413 = vmatpush1.bf16.msra.mxu0 %v9072_v61  ;;  %2460 = vmatpush1.bf16.msra.mxu1 %v9078_v29 }
 0x2b8   :  { %2414 = vmatprep.subr.bf16.mxu0 %v9084_v32  ;;  %2461 = vmatprep.subr.bf16.mxu1 %v9090_v16 }
 0x2bb   :  { %2415 = vmatpush1.bf16.msra.mxu0 %v9096_v17  ;;  %2462 = vmatpush1.bf16.msra.mxu1 %v9102_v20 }
 0x2bc   :  { %2416 = vmatprep.subr.bf16.mxu0 %v9108_v21  ;;  %2463 = vmatprep.subr.bf16.mxu1 %v9114_v22 }
 0x2bf   :  { %2417 = vmatpush1.bf16.msra.mxu0 %v9120_v23  ;;  %2464 = vmatpush1.bf16.msra.mxu1 %v9126_v24 }
 0x2c0   :  { %2418 = vmatprep.subr.bf16.mxu0 %v9132_v40  ;;  %2465 = vmatprep.subr.bf16.mxu1 %v9138_v41 }
 0x2c3   :  { %2419 = vmatpush1.bf16.msra.mxu0 %v9144_v42  ;;  %2466 = vmatpush1.bf16.msra.mxu1 %v9150_v43 }
 0x2c4   :  { %2420 = vmatprep.subr.bf16.mxu0 %v9156_v44  ;;  %2467 = vmatprep.subr.bf16.mxu1 %v9232_v53 }
 0x2c7   :  { %2421 = vmatpush1.bf16.msra.mxu0 %v9238_v55  ;;  %2468 = vmatpush1.bf16.msra.mxu1 %v9244_v56 }
 0x2c8   :  { %2422 = vmatprep.subr.bf16.mxu0 %v9250_v35  ;;  %2469 = vmatprep.subr.bf16.mxu1 %v9256_v1 }
 0x2cb   :  { %2423 = vmatpush1.bf16.msra.mxu0 %v9262_v62  ;;  %2470 = vmatpush1.bf16.msra.mxu1 %v9268_v39 }
 0x2cc   :  { %6376 = vmatprep.subr.msk.bf16.mxu0 %vm156_vm1, %v9274_v33  ;;  %6378 = vmatprep.subr.msk.bf16.mxu1 %vm156_vm1, %v9281_v60 }
 0x2cd   :  { %v1770_v19 = vpop.f32.mrb[52].mxu0  ;;  %v1817_v54 = vpop.f32.mrb[52].mxu1 }
 0x2ce   :  { %v1779_v52 = vmax.f32 %v1717_v14, %v1770_v19  ;;  %v1772_v27 = vpop.f32.mrb[53].mxu0  ;;  %v1819_v36 = vpop.f32.mrb[53].mxu1 }
 0x2cf   :  { %v1780_v28 = vmax.f32 %v12657_v5, %v1772_v27  ;;  %v1774_v34 = vpop.f32.mrb[54].mxu0  ;;  %v1821_v9 = vpop.f32.mrb[54].mxu1  ;;  %2425 = vmatpush1.bf16.msra.mxu0 %v7921_v37  ;;  %2472 = vmatpush1.bf16.msra.mxu1 %v7924_v38  ;;  %v12659_v5 = vmax.f32 %v9193_v49, %v9195_v51 }
 0x2d0   :  { %v1826_v10 = vmax.f32 %v1779_v52, %v1817_v54  ;;  %v1781_v13 = vmax.f32 %v12658_v46, %v1774_v34  ;;  %v1776_v14 = vpop.f32.mrb[55].mxu0  ;;  %v1823_v19 = vpop.f32.mrb[55].mxu1  ;;  %2527 = vmatprep.subr.bf16.mxu0 %v8999_v47  ;;  %2570 = vmatprep.subr.bf16.mxu1 %v9005_v48 }
 0x2d1   :  { %v1827_v7 = vmax.f32 %v1780_v28, %v1819_v36  ;;  %v1782_v15 = vmax.f32 %v12659_v5, %v1776_v14 }
 0x2d2   :  { %v1830_v27 = vadd.f32 %v1826_v10, %v8272_v45  ;;  %v1828_v52 = vmax.f32 %v1781_v13, %v1821_v9  ;;  %2441 = vmatmul.mubr.bf16.vlgmr.msra.gmra.mrb[76].mxu0 %v7161_v6  ;;  %2488 = vmatmul.mubr.bf16.vlgmr.msra.gmra.mrb[76].mxu1 %v7161_v6 }
 0x2d3   :  { %v1831_v34 = vadd.f32 %v1827_v7, %v8277_v50  ;;  %v1829_v25 = vmax.f32 %v1782_v15, %v1823_v19  ;;  %2528 = vmatpush1.bf16.msra.mxu0 %v9016_v57  ;;  %2571 = vmatpush1.bf16.msra.mxu1 %v9022_v30  ;;  %v7164_v19 = vld [vmem:[%s12294_s0 + $0x140] ss:$8 sps:$4 sm:$0xff]  }
 0x2d4   :  { %v1832_v28 = vadd.f32 %v1828_v52, %v8272_v45  ;;  %2529 = vmatprep.subr.bf16.mxu0 %v9029_v31  ;;  %2572 = vmatprep.subr.bf16.mxu1 %v9035_v58  ;;  %v1834_v9 = vmax.f32 %v1830_v27, 0.0 }
 0x2d5   :  { %v1833_v36 = vadd.f32 %v1829_v25, %v8277_v50  ;;  %6385 = vmatprep.mubr.msk.bf16.mxu0 %vm152_vm0, %v7162_v18  ;;  %6387 = vmatprep.mubr.msk.bf16.mxu1 %vm152_vm0, %v7162_v18  ;;  %v1835_v7 = vmax.f32 %v1831_v34, 0.0 }
 0x2d6   :  { %v1836_v10 = vmax.f32 %v1832_v28, 0.0  ;;  %v7165_v28 = vld [vmem:[%s12294_s0 + $0x154] ss:$8 sps:$4 sm:$0xff]  }
 0x2d7   :  { %v1837_v6 = vmax.f32 %v1833_v36, 0.0  ;;  %2530 = vmatpush1.bf16.msra.mxu0 %v9044_v59  ;;  %2573 = vmatpush1.bf16.msra.mxu1 %v9050_v63 }
 0x2d8   :  { %v9319_v26 = vpack.c.bf16 %v1836_v10, %v1834_v9  ;;  %2531 = vmatprep.subr.bf16.mxu0 %v9058_v4  ;;  %2574 = vmatprep.subr.bf16.mxu1 %v9064_v0 }
 0x2d9   :  { %v9323_v49 = vpack.c.bf16 %v1837_v6, %v1835_v7 }
 0x2da   :  { %12660 = vst [vmem:[#allocation11_spill] sm:$0xff] %v9319_v26  ;;  %v9836_v26 = vld [vmem:[%s12296_s3 + $0x184] ss:$8 sps:$4 sm:$0xff]  }
 0x2db   :  { %12661 = vst [vmem:[#allocation12_spill] sm:$0xff] %v9323_v49  ;;  %2532 = vmatpush1.bf16.msra.mxu0 %v9072_v61  ;;  %2575 = vmatpush1.bf16.msra.mxu1 %v9078_v29  ;;  %12708 = vst [vmem:[#allocation59_spill] sm:$0xff] %v9836_v26  ;;  %v9844_v49 = vld [vmem:[%s12296_s3 + $0x180] ss:$8 sps:$4 sm:$0xff]  }
 0x2dc   :  { %2533 = vmatprep.subr.bf16.mxu0 %v9084_v32  ;;  %2576 = vmatprep.subr.bf16.mxu1 %v9090_v16  ;;  %12709 = vst [vmem:[#allocation60_spill] sm:$0xff] %v9844_v49 }
 0x2df   :  { %2534 = vmatpush1.bf16.msra.mxu0 %v9096_v17  ;;  %2577 = vmatpush1.bf16.msra.mxu1 %v9102_v20 }
 0x2e0   :  { %2535 = vmatprep.subr.bf16.mxu0 %v9108_v21  ;;  %2578 = vmatprep.subr.bf16.mxu1 %v9114_v22 }
 0x2e3   :  { %2536 = vmatpush1.bf16.msra.mxu0 %v9120_v23  ;;  %2579 = vmatpush1.bf16.msra.mxu1 %v9126_v24 }
 0x2e4   :  { %2537 = vmatprep.subr.bf16.mxu0 %v9132_v40  ;;  %2580 = vmatprep.subr.bf16.mxu1 %v9138_v41 }
 0x2e7   :  { %2538 = vmatpush1.bf16.msra.mxu0 %v9144_v42  ;;  %2581 = vmatpush1.bf16.msra.mxu1 %v9150_v43 }
 0x2e8   :  { %2539 = vmatprep.subr.bf16.mxu0 %v9156_v44  ;;  %2582 = vmatprep.subr.bf16.mxu1 %v9232_v53 }
 0x2eb   :  { %2540 = vmatpush1.bf16.msra.mxu0 %v9238_v55  ;;  %2583 = vmatpush1.bf16.msra.mxu1 %v9244_v56 }
 0x2ec   :  { %2541 = vmatprep.subr.bf16.mxu0 %v9250_v35  ;;  %2584 = vmatprep.subr.bf16.mxu1 %v9256_v1 }
 0x2ef   :  { %2542 = vmatpush1.bf16.msra.mxu0 %v9262_v62  ;;  %2585 = vmatpush1.bf16.msra.mxu1 %v9268_v39 }
 0x2f0   :  { %6384 = vmatprep.subr.msk.bf16.mxu0 %vm156_vm1, %v9274_v33  ;;  %6386 = vmatprep.subr.msk.bf16.mxu1 %vm156_vm1, %v9281_v60 }
 0x2f1   :  { %v1889_v51 = vpop.f32.mrb[56].mxu0  ;;  %v1932_v54 = vpop.f32.mrb[56].mxu1 }
 0x2f2   :  { %v1941_v46 = vmax.f32 %v1889_v51, %v1932_v54  ;;  %v1891_v13 = vpop.f32.mrb[57].mxu0  ;;  %v1934_v14 = vpop.f32.mrb[57].mxu1  ;;  %v7167_v51 = vld [vmem:[%s12294_s0 + $0x150] ss:$8 sps:$4 sm:$0xff]  }
 0x2f3   :  { %v1942_v5 = vmax.f32 %v1891_v13, %v1934_v14  ;;  %v1893_v15 = vpop.f32.mrb[58].mxu0  ;;  %v1936_v18 = vpop.f32.mrb[58].mxu1  ;;  %2544 = vmatpush1.bf16.msra.mxu0 %v7921_v37  ;;  %2587 = vmatpush1.bf16.msra.mxu1 %v7924_v38 }
 0x2f4   :  { %v1943_v27 = vmax.f32 %v1893_v15, %v1936_v18  ;;  %v1895_v52 = vpop.f32.mrb[59].mxu0  ;;  %v1938_v34 = vpop.f32.mrb[59].mxu1  ;;  %2632 = vmatprep.subr.bf16.mxu0 %v8999_v47  ;;  %2679 = vmatprep.subr.bf16.mxu1 %v9005_v48 }
 0x2f5   :  { %v1944_v25 = vmax.f32 %v1895_v52, %v1938_v34 }
 0x2f6   :  { %2560 = vmatmul.mubr.bf16.vlgmr.msra.gmra.mrb[80].mxu0 %v7164_v19  ;;  %2603 = vmatmul.mubr.bf16.vlgmr.msra.gmra.mrb[80].mxu1 %v7164_v19 }
 0x2f7   :  { %2633 = vmatpush1.bf16.msra.mxu0 %v9016_v57  ;;  %2680 = vmatpush1.bf16.msra.mxu1 %v9022_v30 }
 0x2f8   :  { %2634 = vmatprep.subr.bf16.mxu0 %v9029_v31  ;;  %2681 = vmatprep.subr.bf16.mxu1 %v9035_v58 }
 0x2f9   :  { %6393 = vmatprep.mubr.msk.bf16.mxu0 %vm152_vm0, %v7165_v28  ;;  %6395 = vmatprep.mubr.msk.bf16.mxu1 %vm152_vm0, %v7165_v28 }
 0x2fb   :  { %2635 = vmatpush1.bf16.msra.mxu0 %v9044_v59  ;;  %2682 = vmatpush1.bf16.msra.mxu1 %v9050_v63 }
 0x2fc   :  { %2636 = vmatprep.subr.bf16.mxu0 %v9058_v4  ;;  %2683 = vmatprep.subr.bf16.mxu1 %v9064_v0 }
 0x2ff   :  { %2637 = vmatpush1.bf16.msra.mxu0 %v9072_v61  ;;  %2684 = vmatpush1.bf16.msra.mxu1 %v9078_v29 }
 0x300   :  { %2638 = vmatprep.subr.bf16.mxu0 %v9084_v32  ;;  %2685 = vmatprep.subr.bf16.mxu1 %v9090_v16 }
 0x303   :  { %2639 = vmatpush1.bf16.msra.mxu0 %v9096_v17  ;;  %2686 = vmatpush1.bf16.msra.mxu1 %v9102_v20 }
 0x304   :  { %2640 = vmatprep.subr.bf16.mxu0 %v9108_v21  ;;  %2687 = vmatprep.subr.bf16.mxu1 %v9114_v22 }
 0x307   :  { %2641 = vmatpush1.bf16.msra.mxu0 %v9120_v23  ;;  %2688 = vmatpush1.bf16.msra.mxu1 %v9126_v24 }
 0x308   :  { %2642 = vmatprep.subr.bf16.mxu0 %v9132_v40  ;;  %2689 = vmatprep.subr.bf16.mxu1 %v9138_v41 }
 0x30b   :  { %2643 = vmatpush1.bf16.msra.mxu0 %v9144_v42  ;;  %2690 = vmatpush1.bf16.msra.mxu1 %v9150_v43 }
 0x30c   :  { %2644 = vmatprep.subr.bf16.mxu0 %v9156_v44  ;;  %2691 = vmatprep.subr.bf16.mxu1 %v9232_v53 }
 0x30f   :  { %2645 = vmatpush1.bf16.msra.mxu0 %v9238_v55  ;;  %2692 = vmatpush1.bf16.msra.mxu1 %v9244_v56 }
 0x310   :  { %2646 = vmatprep.subr.bf16.mxu0 %v9250_v35  ;;  %2693 = vmatprep.subr.bf16.mxu1 %v9256_v1 }
 0x313   :  { %2647 = vmatpush1.bf16.msra.mxu0 %v9262_v62  ;;  %2694 = vmatpush1.bf16.msra.mxu1 %v9268_v39 }
 0x314   :  { %6392 = vmatprep.subr.msk.bf16.mxu0 %vm156_vm1, %v9274_v33  ;;  %6394 = vmatprep.subr.msk.bf16.mxu1 %vm156_vm1, %v9281_v60 }
 0x315   :  { %v1994_v36 = vpop.f32.mrb[60].mxu0  ;;  %v2041_v9 = vpop.f32.mrb[60].mxu1 }
 0x316   :  { %v2003_v10 = vmax.f32 %v1941_v46, %v1994_v36  ;;  %v1996_v7 = vpop.f32.mrb[61].mxu0  ;;  %v2043_v6 = vpop.f32.mrb[61].mxu1 }
 0x317   :  { %v2004_v54 = vmax.f32 %v1942_v5, %v1996_v7  ;;  %v1998_v13 = vpop.f32.mrb[62].mxu0  ;;  %v2045_v14 = vpop.f32.mrb[62].mxu1  ;;  %2649 = vmatpush1.bf16.msra.mxu0 %v7921_v37  ;;  %2696 = vmatpush1.bf16.msra.mxu1 %v7924_v38  ;;  %v7168_v5 = vld [vmem:[%s12294_s0 + $0x164] ss:$8 sps:$4 sm:$0xff]  }
 0x318   :  { %v2050_v19 = vmax.f32 %v2003_v10, %v2041_v9  ;;  %v2005_v15 = vmax.f32 %v1943_v27, %v1998_v13  ;;  %v2000_v18 = vpop.f32.mrb[63].mxu0  ;;  %v2047_v52 = vpop.f32.mrb[63].mxu1  ;;  %2751 = vmatprep.subr.bf16.mxu0 %v8999_v47  ;;  %2794 = vmatprep.subr.bf16.mxu1 %v9005_v48 }
 0x319   :  { %v2051_v46 = vmax.f32 %v2004_v54, %v2043_v6  ;;  %v2006_v34 = vmax.f32 %v1944_v25, %v2000_v18 }
 0x31a   :  { %v2054_v28 = vadd.f32 %v2050_v19, %v8272_v45  ;;  %v2052_v36 = vmax.f32 %v2005_v15, %v2045_v14  ;;  %2665 = vmatmul.mubr.bf16.vlgmr.msra.gmra.mrb[84].mxu0 %v7167_v51  ;;  %2712 = vmatmul.mubr.bf16.vlgmr.msra.gmra.mrb[84].mxu1 %v7167_v51 }
 0x31b   :  { %v2055_v9 = vadd.f32 %v2051_v46, %v8277_v50  ;;  %v2053_v27 = vmax.f32 %v2006_v34, %v2047_v52  ;;  %2752 = vmatpush1.bf16.msra.mxu0 %v9016_v57  ;;  %2795 = vmatpush1.bf16.msra.mxu1 %v9022_v30  ;;  %v7170_v34 = vld [vmem:[%s12294_s0 + $0x160] ss:$8 sps:$4 sm:$0xff]  }
 0x31c   :  { %v2056_v10 = vadd.f32 %v2052_v36, %v8272_v45  ;;  %2753 = vmatprep.subr.bf16.mxu0 %v9029_v31  ;;  %2796 = vmatprep.subr.bf16.mxu1 %v9035_v58  ;;  %v2058_v7 = vmax.f32 %v2054_v28, 0.0 }
 0x31d   :  { %v2057_v25 = vadd.f32 %v2053_v27, %v8277_v50  ;;  %6401 = vmatprep.mubr.msk.bf16.mxu0 %vm152_vm0, %v7168_v5  ;;  %6403 = vmatprep.mubr.msk.bf16.mxu1 %vm152_vm0, %v7168_v5  ;;  %v2059_v51 = vmax.f32 %v2055_v9, 0.0 }
 0x31e   :  { %v2060_v6 = vmax.f32 %v2056_v10, 0.0 }
 0x31f   :  { %v2061_v54 = vmax.f32 %v2057_v25, 0.0  ;;  %2754 = vmatpush1.bf16.msra.mxu0 %v9044_v59  ;;  %2797 = vmatpush1.bf16.msra.mxu1 %v9050_v63 }
 0x320   :  { %v9419_v13 = vpack.c.bf16 %v2060_v6, %v2058_v7  ;;  %2755 = vmatprep.subr.bf16.mxu0 %v9058_v4  ;;  %2798 = vmatprep.subr.bf16.mxu1 %v9064_v0  ;;  %v7171_v7 = vld [vmem:[%s12294_s0 + $0x174] ss:$8 sps:$4 sm:$0xff]   ;;  %v9588_v6 = vld [vmem:[%s12296_s3 + $0x20] ss:$8 sps:$4 sm:$0xff]  }
 0x321   :  { %v9423_v14 = vpack.c.bf16 %v2061_v54, %v2059_v51  ;;  %12675 = vst [vmem:[#allocation26_spill] sm:$0xff] %v9588_v6  ;;  %v9593_v51 = vld [vmem:[%s12296_s3 + $0xf4] ss:$8 sps:$4 sm:$0xff]  }
 0x322   :  { %12662 = vst [vmem:[#allocation13_spill] sm:$0xff] %v9419_v13  ;;  %12676 = vst [vmem:[#allocation27_spill] sm:$0xff] %v9593_v51  ;;  %v9823_v13 = vld [vmem:[%s12296_s3 + $0x170] ss:$8 sps:$4 sm:$0xff]  }
 0x323   :  { %12663 = vst [vmem:[#allocation14_spill] sm:$0xff] %v9423_v14  ;;  %2756 = vmatpush1.bf16.msra.mxu0 %v9072_v61  ;;  %2799 = vmatpush1.bf16.msra.mxu1 %v9078_v29  ;;  %12706 = vst [vmem:[#allocation57_spill] sm:$0xff] %v9823_v13  ;;  %v9830_v14 = vld [vmem:[%s12296_s3 + $0xb0] ss:$8 sps:$4 sm:$0xff]  }
 0x324   :  { %2757 = vmatprep.subr.bf16.mxu0 %v9084_v32  ;;  %2800 = vmatprep.subr.bf16.mxu1 %v9090_v16  ;;  %12707 = vst [vmem:[#allocation58_spill] sm:$0xff] %v9830_v14 }
 0x327   :  { %2758 = vmatpush1.bf16.msra.mxu0 %v9096_v17  ;;  %2801 = vmatpush1.bf16.msra.mxu1 %v9102_v20 }
 0x328   :  { %2759 = vmatprep.subr.bf16.mxu0 %v9108_v21  ;;  %2802 = vmatprep.subr.bf16.mxu1 %v9114_v22 }
 0x32b   :  { %2760 = vmatpush1.bf16.msra.mxu0 %v9120_v23  ;;  %2803 = vmatpush1.bf16.msra.mxu1 %v9126_v24 }
 0x32c   :  { %2761 = vmatprep.subr.bf16.mxu0 %v9132_v40  ;;  %2804 = vmatprep.subr.bf16.mxu1 %v9138_v41 }
 0x32f   :  { %2762 = vmatpush1.bf16.msra.mxu0 %v9144_v42  ;;  %2805 = vmatpush1.bf16.msra.mxu1 %v9150_v43 }
 0x330   :  { %2763 = vmatprep.subr.bf16.mxu0 %v9156_v44  ;;  %2806 = vmatprep.subr.bf16.mxu1 %v9232_v53 }
 0x333   :  { %2764 = vmatpush1.bf16.msra.mxu0 %v9238_v55  ;;  %2807 = vmatpush1.bf16.msra.mxu1 %v9244_v56 }
 0x334   :  { %2765 = vmatprep.subr.bf16.mxu0 %v9250_v35  ;;  %2808 = vmatprep.subr.bf16.mxu1 %v9256_v1 }
 0x337   :  { %2766 = vmatpush1.bf16.msra.mxu0 %v9262_v62  ;;  %2809 = vmatpush1.bf16.msra.mxu1 %v9268_v39 }
 0x338   :  { %6400 = vmatprep.subr.msk.bf16.mxu0 %vm156_vm1, %v9274_v33  ;;  %6402 = vmatprep.subr.msk.bf16.mxu1 %vm156_vm1, %v9281_v60 }
 0x339   :  { %v2113_v19 = vpop.f32.mrb[64].mxu0  ;;  %v2156_v15 = vpop.f32.mrb[64].mxu1 }
 0x33a   :  { %v2165_v18 = vmax.f32 %v2113_v19, %v2156_v15  ;;  %v2115_v52 = vpop.f32.mrb[65].mxu0  ;;  %v2158_v46 = vpop.f32.mrb[65].mxu1  ;;  %v9601_v19 = vld [vmem:[%s12296_s3 + $0x34] ss:$8 sps:$4 sm:$0xff]   ;;  %v9607_v15 = vld [vmem:[%s12296_s3 + $0xf0] ss:$8 sps:$4 sm:$0xff]  }
 0x33b   :  { %v2166_v5 = vmax.f32 %v2115_v52, %v2158_v46  ;;  %v9454_v28 = vpop.f32.mrb[66].mxu0  ;;  %v2160_v36 = vpop.f32.mrb[66].mxu1  ;;  %2768 = vmatpush1.bf16.msra.mxu0 %v7921_v37  ;;  %2811 = vmatpush1.bf16.msra.mxu1 %v7924_v38  ;;  %12678 = vst [vmem:[#allocation29_spill] sm:$0xff] %v9601_v19  ;;  %12679 = vst [vmem:[#allocation30_spill] sm:$0xff] %v9607_v15  ;;  %v9619_v52 = vld [vmem:[%s12296_s3 + $0x104] ss:$8 sps:$4 sm:$0xff]  }
 0x33c   :  { %v2167_v9 = vmax.f32 %v9454_v28, %v2160_v36  ;;  %v9459_v27 = vpop.f32.mrb[67].mxu0  ;;  %v9461_v10 = vpop.f32.mrb[67].mxu1  ;;  %2856 = vmatprep.subr.bf16.mxu0 %v8999_v47  ;;  %2903 = vmatprep.subr.bf16.mxu1 %v9005_v48  ;;  %v9509_v47 = vld [vmem:[%s12296_s3 + $0xc4] ss:$8 sps:$4 sm:$0xff]   ;;  %12681 = vst [vmem:[#allocation32_spill] sm:$0xff] %v9619_v52 }
 0x33d   :  { %v2168_v25 = vmax.f32 %v9459_v27, %v9461_v10  ;;  %12664 = vst [vmem:[#allocation15_spill] sm:$0xff] %v9509_v47  ;;  %v9514_v48 = vld [vmem:[%s12296_s3 + $0x4] ss:$8 sps:$4 sm:$0xff]   ;;  %v9643_v28 = vld [vmem:[%s12296_s3 + $0x114] ss:$8 sps:$4 sm:$0xff]  }
 0x33e   :  { %2784 = vmatmul.mubr.bf16.vlgmr.msra.gmra.mrb[88].mxu0 %v7170_v34  ;;  %2827 = vmatmul.mubr.bf16.vlgmr.msra.gmra.mrb[88].mxu1 %v7170_v34  ;;  %v9625_v46 = vld [vmem:[%s12296_s3 + $0x44] ss:$8 sps:$4 sm:$0xff]   ;;  %v9631_v34 = vld [vmem:[%s12296_s3 + $0x100] ss:$8 sps:$4 sm:$0xff]   ;;  %12685 = vst [vmem:[#allocation36_spill] sm:$0xff] %v9643_v28 }
 0x33f   :  { %2857 = vmatpush1.bf16.msra.mxu0 %v9016_v57  ;;  %2904 = vmatpush1.bf16.msra.mxu1 %v9022_v30  ;;  %12682 = vst [vmem:[#allocation33_spill] sm:$0xff] %v9625_v46  ;;  %12683 = vst [vmem:[#allocation34_spill] sm:$0xff] %v9631_v34  ;;  %v9649_v36 = vld [vmem:[%s12296_s3 + $0x54] ss:$8 sps:$4 sm:$0xff]   ;;  %v9662_v27 = vld [vmem:[%s12296_s3 + $0x50] ss:$8 sps:$4 sm:$0xff]  }
 0x340   :  { %2858 = vmatprep.subr.bf16.mxu0 %v9029_v31  ;;  %2905 = vmatprep.subr.bf16.mxu1 %v9035_v58  ;;  %12686 = vst [vmem:[#allocation37_spill] sm:$0xff] %v9649_v36  ;;  %12687 = vst [vmem:[#allocation38_spill] sm:$0xff] %v9662_v27  ;;  %v9667_v10 = vld [vmem:[%s12296_s3 + $0x124] ss:$8 sps:$4 sm:$0xff]  }
 0x341   :  { %6409 = vmatprep.mubr.msk.bf16.mxu0 %vm152_vm0, %v7171_v7  ;;  %6411 = vmatprep.mubr.msk.bf16.mxu1 %vm152_vm0, %v7171_v7  ;;  %v9679_v7 = vld [vmem:[%s12296_s3 + $0x120] ss:$8 sps:$4 sm:$0xff]  }
 0x343   :  { %2859 = vmatpush1.bf16.msra.mxu0 %v9044_v59  ;;  %2906 = vmatpush1.bf16.msra.mxu1 %v9050_v63  ;;  %v7173_v63 = vld [vmem:[%s12294_s0 + $0x170] ss:$8 sps:$4 sm:$0xff]  }
 0x344   :  { %2860 = vmatprep.subr.bf16.mxu0 %v9058_v4  ;;  %2907 = vmatprep.subr.bf16.mxu1 %v9064_v0 }
 0x347   :  { %2861 = vmatpush1.bf16.msra.mxu0 %v9072_v61  ;;  %2908 = vmatpush1.bf16.msra.mxu1 %v9078_v29  ;;  %v9524_v29 = vld [vmem:[%s12296_s3 + $0xc0] ss:$8 sps:$4 sm:$0xff]  }
 0x348   :  { %2862 = vmatprep.subr.bf16.mxu0 %v9084_v32  ;;  %2909 = vmatprep.subr.bf16.mxu1 %v9090_v16  ;;  %12665 = vst [vmem:[#allocation16_spill] sm:$0xff] %v9524_v29 }
 0x34b   :  { %2863 = vmatpush1.bf16.msra.mxu0 %v9096_v17  ;;  %2910 = vmatpush1.bf16.msra.mxu1 %v9102_v20 }
 0x34c   :  { %2864 = vmatprep.subr.bf16.mxu0 %v9108_v21  ;;  %2911 = vmatprep.subr.bf16.mxu1 %v9114_v22  ;;  %v9536_v22 = vld [vmem:[%s12296_s3 + $0xd4] ss:$8 sps:$4 sm:$0xff]  }
 0x34d   :  { %12667 = vst [vmem:[#allocation18_spill] sm:$0xff] %v9536_v22 }
 0x34f   :  { %2865 = vmatpush1.bf16.msra.mxu0 %v9120_v23  ;;  %2912 = vmatpush1.bf16.msra.mxu1 %v9126_v24  ;;  %v9541_v23 = vld [vmem:[%s12296_s3 + $0x14] ss:$8 sps:$4 sm:$0xff]  }
 0x350   :  { %2866 = vmatprep.subr.bf16.mxu0 %v9132_v40  ;;  %2913 = vmatprep.subr.bf16.mxu1 %v9138_v41  ;;  %12668 = vst [vmem:[#allocation19_spill] sm:$0xff] %v9541_v23 }
 0x353   :  { %2867 = vmatpush1.bf16.msra.mxu0 %v9144_v42  ;;  %2914 = vmatpush1.bf16.msra.mxu1 %v9150_v43  ;;  %v9551_v43 = vld [vmem:[%s12296_s3 + $0xd0] ss:$8 sps:$4 sm:$0xff]  }
 0x354   :  { %2868 = vmatprep.subr.bf16.mxu0 %v9156_v44  ;;  %2915 = vmatprep.subr.bf16.mxu1 %v9232_v53  ;;  %12669 = vst [vmem:[#allocation20_spill] sm:$0xff] %v9551_v43  ;;  %v9560_v53 = vld [vmem:[%s12296_s3 + $0x10] ss:$8 sps:$4 sm:$0xff]  }
 0x355   :  { %12670 = vst [vmem:[#allocation21_spill] sm:$0xff] %v9560_v53 }
 0x357   :  { %2869 = vmatpush1.bf16.msra.mxu0 %v9238_v55  ;;  %2916 = vmatpush1.bf16.msra.mxu1 %v9244_v56  ;;  %v9565_v55 = vld [vmem:[%s12296_s3 + $0xe4] ss:$8 sps:$4 sm:$0xff]  }
 0x358   :  { %2870 = vmatprep.subr.bf16.mxu0 %v9250_v35  ;;  %2917 = vmatprep.subr.bf16.mxu1 %v9256_v1  ;;  %12671 = vst [vmem:[#allocation22_spill] sm:$0xff] %v9565_v55 }
 0x35b   :  { %2871 = vmatpush1.bf16.msra.mxu0 %v9262_v62  ;;  %2918 = vmatpush1.bf16.msra.mxu1 %v9268_v39 }
 0x35c   :  { %6408 = vmatprep.subr.msk.bf16.mxu0 %vm156_vm1, %v9274_v33  ;;  %6410 = vmatprep.subr.msk.bf16.mxu1 %vm156_vm1, %v9281_v60  ;;  %v9579_v33 = vld [vmem:[%s12296_s3 + $0xe0] ss:$8 sps:$4 sm:$0xff]  }
 0x35d   :  { %v2218_v57 = vpop.f32.mrb[68].mxu0  ;;  %v2265_v30 = vpop.f32.mrb[68].mxu1  ;;  %12673 = vst [vmem:[#allocation24_spill] sm:$0xff] %v9579_v33 }
 0x35e   :  { %v2227_v31 = vmax.f32 %v2165_v18, %v2218_v57  ;;  %v2220_v58 = vpop.f32.mrb[69].mxu0  ;;  %v2267_v59 = vpop.f32.mrb[69].mxu1  ;;  %v9614_v18 = vld [vmem:[%s12296_s3 + $0x30] ss:$8 sps:$4 sm:$0xff]   ;;  %v9686_v57 = vld [vmem:[%s12296_s3 + $0x60] ss:$8 sps:$4 sm:$0xff]  }
 0x35f   :  { %v2228_v4 = vmax.f32 %v2166_v5, %v2220_v58  ;;  %v2222_v0 = vpop.f32.mrb[70].mxu0  ;;  %v2269_v61 = vpop.f32.mrb[70].mxu1  ;;  %2873 = vmatpush1.bf16.msra.mxu0 %v7921_v37  ;;  %2920 = vmatpush1.bf16.msra.mxu1 %v7924_v38  ;;  %v9531_v37 = vld [vmem:[%s12296_s3] ss:$8 sps:$4 sm:$0xff]   ;;  %12680 = vst [vmem:[#allocation31_spill] sm:$0xff] %v9614_v18  ;;  %12689 = vst [vmem:[#allocation40_spill] sm:$0xff] %v9686_v57 }
 0x360   :  { %v2274_v32 = vmax.f32 %v2227_v31, %v2265_v30  ;;  %v2229_v16 = vmax.f32 %v2167_v9, %v2222_v0  ;;  %v2224_v17 = vpop.f32.mrb[71].mxu0  ;;  %v2271_v20 = vpop.f32.mrb[71].mxu1  ;;  %3133 = vmatprep.subr.bf16.mxu1 %v9509_v47  ;;  %3299 = vmatprep.subr.bf16.mxu0 %v9514_v48  ;;  %12666 = vst [vmem:[#allocation17_spill] sm:$0xff] %v9531_v37  ;;  %v9638_v5 = vld [vmem:[%s12296_s3 + $0x40] ss:$8 sps:$4 sm:$0xff]  }
 0x361   :  { %v2275_v38 = vmax.f32 %v2228_v4, %v2267_v59  ;;  %v2230_v21 = vmax.f32 %v2168_v25, %v2224_v17  ;;  %12684 = vst [vmem:[#allocation35_spill] sm:$0xff] %v9638_v5  ;;  %v9655_v9 = vld [vmem:[%s12296_s3 + $0x110] ss:$8 sps:$4 sm:$0xff]   ;;  %v9673_v25 = vld [vmem:[%s12296_s3 + $0x64] ss:$8 sps:$4 sm:$0xff]  }
 0x362   :  { %v2278_v24 = vadd.f32 %v2274_v32, %v8272_v45  ;;  %v2276_v40 = vmax.f32 %v2229_v16, %v2269_v61  ;;  %2889 = vmatmul.mubr.bf16.vlgmr.msra.gmra.mrb[92].mxu0 %v7173_v63  ;;  %2936 = vmatmul.mubr.bf16.vlgmr.msra.gmra.mrb[92].mxu1 %v7173_v63  ;;  %12688 = vst [vmem:[#allocation39_spill] sm:$0xff] %v9673_v25  ;;  %v9691_v30 = vld [vmem:[%s12296_s3 + $0x134] ss:$8 sps:$4 sm:$0xff]   ;;  %v9703_v58 = vld [vmem:[%s12296_s3 + $0x130] ss:$8 sps:$4 sm:$0xff]  }
 0x363   :  { %v2279_v41 = vadd.f32 %v2275_v38, %v8277_v50  ;;  %v2277_v42 = vmax.f32 %v2230_v21, %v2271_v20  ;;  %3134 = vmatpush1.bf16.msra.mxu1 %v9524_v29  ;;  %6460 = vmatprep.mubr.msk.bf16.mxu1 %vm3129_vm2, %v8569_v12  ;;  %v9697_v31 = vld [vmem:[%s12296_s3 + $0x74] ss:$8 sps:$4 sm:$0xff]   ;;  %v9710_v59 = vld [vmem:[%s12296_s3 + $0x70] ss:$8 sps:$4 sm:$0xff]   ;;  %v9715_v63 = vld [vmem:[%s12296_s3 + $0x144] ss:$8 sps:$4 sm:$0xff]  }
 0x364   :  { %v2280_v44 = vadd.f32 %v2276_v40, %v8272_v45  ;;  %3300 = vmatpush1.bf16.msra.mxu0 %v9531_v37  ;;  %6485 = vmatprep.mubr.msk.bf16.mxu0 %vm3129_vm2, %v8308_v3  ;;  %v9573_v3 = vld [vmem:[%s12296_s3 + $0x24] ss:$8 sps:$4 sm:$0xff]   ;;  %v2282_v35 = vmax.f32 %v2278_v24, 0.0  ;;  %12690 = vst [vmem:[#allocation41_spill] sm:$0xff] %v9697_v31  ;;  %12691 = vst [vmem:[#allocation42_spill] sm:$0xff] %v9710_v59 }
 0x365   :  { %v2281_v56 = vadd.f32 %v2277_v42, %v8277_v50  ;;  %3135 = vmatprep.subr.bf16.mxu1 %v9536_v22  ;;  %3301 = vmatprep.subr.bf16.mxu0 %v9541_v23  ;;  %12672 = vst [vmem:[#allocation23_spill] sm:$0xff] %v9573_v3  ;;  %v2283_v62 = vmax.f32 %v2279_v41, 0.0  ;;  %12692 = vst [vmem:[#allocation43_spill] sm:$0xff] %v9715_v63  ;;  %v9721_v4 = vld [vmem:[%s12296_s3 + $0x84] ss:$8 sps:$4 sm:$0xff]  }
 0x366   :  { %v2284_v1 = vmax.f32 %v2280_v44, 0.0  ;;  %12693 = vst [vmem:[#allocation44_spill] sm:$0xff] %v9721_v4  ;;  %v9727_v0 = vld [vmem:[%s12296_s3 + $0x140] ss:$8 sps:$4 sm:$0xff]   ;;  %v9739_v32 = vld [vmem:[%s12296_s3 + $0x154] ss:$8 sps:$4 sm:$0xff]  }
 0x367   :  { %v2285_v39 = vmax.f32 %v2281_v56, 0.0  ;;  %3136 = vmatpush1.bf16.msra.mxu1 %v9551_v43  ;;  %12694 = vst [vmem:[#allocation45_spill] sm:$0xff] %v9727_v0  ;;  %v9734_v61 = vld [vmem:[%s12296_s3 + $0x80] ss:$8 sps:$4 sm:$0xff]   ;;  %12696 = vst [vmem:[#allocation47_spill] sm:$0xff] %v9739_v32 }
 0x368   :  { %v9581_v60 = vpack.c.bf16 %v2284_v1, %v2282_v35  ;;  %3302 = vmatpush1.bf16.msra.mxu0 %v9560_v53  ;;  %3137 = vmatprep.subr.bf16.mxu1 %v9565_v55  ;;  %12695 = vst [vmem:[#allocation46_spill] sm:$0xff] %v9734_v61  ;;  %v9749_v20 = vld [vmem:[%s12296_s3 + $0x94] ss:$8 sps:$4 sm:$0xff]   ;;  %v9767_v44 = vld [vmem:[%s12296_s3 + $0x150] ss:$8 sps:$4 sm:$0xff]  }
 0x369   :  { %v9595_v54 = vpack.c.bf16 %v2285_v39, %v2283_v62  ;;  %3303 = vmatprep.subr.bf16.mxu0 %v9573_v3  ;;  %12697 = vst [vmem:[#allocation48_spill] sm:$0xff] %v9749_v20  ;;  %12698 = vst [vmem:[#allocation49_spill] sm:$0xff] %v9767_v44  ;;  %v9780_v62 = vld [vmem:[%s12296_s3 + $0x90] ss:$8 sps:$4 sm:$0xff]   ;;  %v9785_v39 = vld [vmem:[%s12296_s3 + $0x164] ss:$8 sps:$4 sm:$0xff]  }
 0x36a   :  { %12674 = vst [vmem:[#allocation25_spill] sm:$0xff] %v9581_v60  ;;  %12699 = vst [vmem:[#allocation50_spill] sm:$0xff] %v9780_v62  ;;  %v9793_v40 = vld [vmem:[%s12296_s3 + $0xa4] ss:$8 sps:$4 sm:$0xff]   ;;  %v9799_v38 = vld [vmem:[%s12296_s3 + $0x160] ss:$8 sps:$4 sm:$0xff]  }
 0x36b   :  { %12677 = vst [vmem:[#allocation28_spill] sm:$0xff] %v9595_v54  ;;  %3138 = vmatpush1.bf16.msra.mxu1 %v9579_v33  ;;  %12700 = vst [vmem:[#allocation51_spill] sm:$0xff] %v9785_v39  ;;  %v9806_v56 = vld [vmem:[%s12296_s3 + $0xa0] ss:$8 sps:$4 sm:$0xff]   ;;  %v9811_v60 = vld [vmem:[%s12296_s3 + $0x174] ss:$8 sps:$4 sm:$0xff]  }
 0x36c   :  { %3304 = vmatpush1.bf16.msra.mxu0 %v9588_v6  ;;  %3139 = vmatprep.subr.bf16.mxu1 %v9593_v51  ;;  %12701 = vst [vmem:[#allocation52_spill] sm:$0xff] %v9793_v40  ;;  %12702 = vst [vmem:[#allocation53_spill] sm:$0xff] %v9799_v38  ;;  %v9817_v54 = vld [vmem:[%s12296_s3 + $0xb4] ss:$8 sps:$4 sm:$0xff]  }
 0x36d   :  { %3305 = vmatprep.subr.bf16.mxu0 %v9601_v19  ;;  %12703 = vst [vmem:[#allocation54_spill] sm:$0xff] %v9806_v56  ;;  %12704 = vst [vmem:[#allocation55_spill] sm:$0xff] %v9811_v60 }
 0x36e   :  { %12705 = vst [vmem:[#allocation56_spill] sm:$0xff] %v9817_v54 }
 0x36f   :  { %3140 = vmatpush1.bf16.msra.mxu1 %v9607_v15 }
 0x370   :  { %3306 = vmatpush1.bf16.msra.mxu0 %v9614_v18  ;;  %3141 = vmatprep.subr.bf16.mxu1 %v9619_v52 }
 0x371   :  { %3307 = vmatprep.subr.bf16.mxu0 %v9625_v46 }
 0x373   :  { %3142 = vmatpush1.bf16.msra.mxu1 %v9631_v34 }
 0x374   :  { %3308 = vmatpush1.bf16.msra.mxu0 %v9638_v5  ;;  %3143 = vmatprep.subr.bf16.mxu1 %v9643_v28 }
 0x375   :  { %3309 = vmatprep.subr.bf16.mxu0 %v9649_v36 }
 0x377   :  { %3144 = vmatpush1.bf16.msra.mxu1 %v9655_v9 }
 0x378   :  { %3310 = vmatpush1.bf16.msra.mxu0 %v9662_v27  ;;  %3145 = vmatprep.subr.bf16.mxu1 %v9667_v10 }
 0x379   :  { %3311 = vmatprep.subr.bf16.mxu0 %v9673_v25 }
 0x37b   :  { %3146 = vmatpush1.bf16.msra.mxu1 %v9679_v7 }
 0x37c   :  { %3312 = vmatpush1.bf16.msra.mxu0 %v9686_v57  ;;  %3147 = vmatprep.subr.bf16.mxu1 %v9691_v30 }
 0x37d   :  { %3313 = vmatprep.subr.bf16.mxu0 %v9697_v31 }
 0x37f   :  { %3148 = vmatpush1.bf16.msra.mxu1 %v9703_v58 }
 0x380   :  { %3314 = vmatpush1.bf16.msra.mxu0 %v9710_v59  ;;  %3149 = vmatprep.subr.bf16.mxu1 %v9715_v63 }
 0x381   :  { %v9741_v16 = vpop.f32.mrb[72].mxu0  ;;  %v9743_v17 = vpop.f32.mrb[72].mxu1  ;;  %3315 = vmatprep.subr.bf16.mxu0 %v9721_v4 }
 0x382   :  { %v9753_v21 = vpop.f32.mrb[73].mxu0  ;;  %v9755_v24 = vpop.f32.mrb[73].mxu1 }
 0x383   :  { %v9759_v41 = vpop.f32.mrb[74].mxu0  ;;  %v9761_v42 = vpop.f32.mrb[74].mxu1  ;;  %3150 = vmatpush1.bf16.msra.mxu1 %v9727_v0 }
 0x384   :  { %3316 = vmatpush1.bf16.msra.mxu0 %v9734_v61  ;;  %v9772_v35 = vpop.f32.mrb[75].mxu0  ;;  %v9774_v1 = vpop.f32.mrb[75].mxu1  ;;  %3151 = vmatprep.subr.bf16.mxu1 %v9739_v32 }
 0x385   :  { %3317 = vmatprep.subr.bf16.mxu0 %v9749_v20 }
 0x387   :  { %3152 = vmatpush1.bf16.msra.mxu1 %v9767_v44 }
 0x388   :  { %3318 = vmatpush1.bf16.msra.mxu0 %v9780_v62  ;;  %3153 = vmatprep.subr.bf16.mxu1 %v9785_v39 }
 0x389   :  { %3319 = vmatprep.subr.bf16.mxu0 %v9793_v40 }
 0x38b   :  { %3154 = vmatpush1.bf16.msra.mxu1 %v9799_v38 }
 0x38c   :  { %3320 = vmatpush1.bf16.msra.mxu0 %v9806_v56  ;;  %3155 = vmatprep.subr.bf16.mxu1 %v9811_v60 }
 0x38d   :  { %3321 = vmatprep.subr.bf16.mxu0 %v9817_v54  ;;  %v9850_v54 = vld [vmem:[%s12296_s3 + $0x194] ss:$8 sps:$4 sm:$0xff]  }
 0x38e   :  { %12710 = vst [vmem:[#allocation61_spill] sm:$0xff] %v9850_v54 }
 0x38f   :  { %3156 = vmatpush1.bf16.msra.mxu1 %v9823_v13 }
 0x390   :  { %3322 = vmatpush1.bf16.msra.mxu0 %v9830_v14  ;;  %3929 = vmatprep.subr.bf16.mxu1 %v9509_v47  ;;  %v9861_v47 = vld [vmem:[%s12296_s3 + $0x190] ss:$8 sps:$4 sm:$0xff]  }
 0x391   :  { %3490 = vmatprep.subr.bf16.mxu0 %v9836_v26  ;;  %12711 = vst [vmem:[#allocation62_spill] sm:$0xff] %v9861_v47 }
 0x392   :  { %3166 = vmatmul.mubr.bf16.vlgmr.msra.gmra.mrb[96].mxu1 %v8565_v11 }
 0x393   :  { %3332 = vmatmul.mubr.bf16.vlgmr.msra.gmra.mrb[96].mxu0 %v8304_v2  ;;  %3930 = vmatpush1.bf16.msra.mxu1 %v9524_v29  ;;  %v9869_v2 = vld [vmem:[%s12296_s3 + $0x1a4] ss:$8 sps:$4 sm:$0xff]   ;;  %v9878_v29 = vld [vmem:[%s12296_s3 + $0x1a0] ss:$8 sps:$4 sm:$0xff]  }
 0x394   :  { %3491 = vmatpush1.bf16.msra.mxu0 %v9844_v49  ;;  %6534 = vmatprep.mubr.msk.bf16.mxu0 %vm3129_vm2, %v8714_v8  ;;  %12712 = vst [vmem:[#allocation63_spill] sm:$0xff] %v9869_v2  ;;  %12713 = vst [vmem:[#allocation64_spill] sm:$0xff] %v9878_v29 }
 0x395   :  { %6633 = vmatprep.mubr.msk.bf16.mxu1 %vm3129_vm2, %v8714_v8  ;;  %3492 = vmatprep.subr.bf16.mxu0 %v9850_v54  ;;  %v9884_v8 = vld [vmem:[%s12296_s3 + $0x1b4] ss:$8 sps:$4 sm:$0xff]   ;;  %v12723_v54 = vmax.f32 %v9759_v41, %v9761_v42 }
 0x396   :  { %3931 = vmatprep.subr.bf16.mxu1 %v9536_v22  ;;  %12714 = vst [vmem:[#allocation65_spill] sm:$0xff] %v9884_v8 }
 0x397   :  { %3932 = vmatpush1.bf16.msra.mxu1 %v9551_v43  ;;  %v9898_v43 = vld [vmem:[%s12296_s3 + $0x1c4] ss:$8 sps:$4 sm:$0xff]  }
 0x398   :  { %3493 = vmatpush1.bf16.msra.mxu0 %v9861_v47  ;;  %3933 = vmatprep.subr.bf16.mxu1 %v9565_v55  ;;  %v9892_v55 = vld [vmem:[%s12296_s3 + $0x1b0] ss:$8 sps:$4 sm:$0xff]   ;;  %12716 = vst [vmem:[#allocation67_spill] sm:$0xff] %v9898_v43 }
 0x399   :  { %3494 = vmatprep.subr.bf16.mxu0 %v9869_v2  ;;  %12715 = vst [vmem:[#allocation66_spill] sm:$0xff] %v9892_v55 }
 0x39b   :  { %3934 = vmatpush1.bf16.msra.mxu1 %v9579_v33  ;;  %v9912_v33 = vld [vmem:[%s12296_s3 + $0x1d4] ss:$8 sps:$4 sm:$0xff]  }
 0x39c   :  { %3495 = vmatpush1.bf16.msra.mxu0 %v9878_v29  ;;  %3935 = vmatprep.subr.bf16.mxu1 %v9593_v51  ;;  %v9906_v51 = vld [vmem:[%s12296_s3 + $0x1c0] ss:$8 sps:$4 sm:$0xff]   ;;  %12718 = vst [vmem:[#allocation69_spill] sm:$0xff] %v9912_v33 }
 0x39d   :  { %3496 = vmatprep.subr.bf16.mxu0 %v9884_v8  ;;  %12717 = vst [vmem:[#allocation68_spill] sm:$0xff] %v9906_v51  ;;  %v12722_v8 = vmax.f32 %v9753_v21, %v9755_v24 }
 0x39f   :  { %3936 = vmatpush1.bf16.msra.mxu1 %v9607_v15 }
 0x3a0   :  { %3497 = vmatpush1.bf16.msra.mxu0 %v9892_v55  ;;  %3937 = vmatprep.subr.bf16.mxu1 %v9619_v52  ;;  %v9920_v52 = vld [vmem:[%s12296_s3 + $0x1d0] ss:$8 sps:$4 sm:$0xff]  }
 0x3a1   :  { %3498 = vmatprep.subr.bf16.mxu0 %v9898_v43  ;;  %12719 = vst [vmem:[#allocation70_spill] sm:$0xff] %v9920_v52  ;;  %v9926_v43 = vld [vmem:[%s12296_s3 + $0x1e4] ss:$8 sps:$4 sm:$0xff]  }
 0x3a2   :  { %12720 = vst [vmem:[#allocation71_spill] sm:$0xff] %v9926_v43 }
 0x3a3   :  { %3938 = vmatpush1.bf16.msra.mxu1 %v9631_v34  ;;  %v12721_v34 = vmax.f32 %v9741_v16, %v9743_v17 }
 0x3a4   :  { %3499 = vmatpush1.bf16.msra.mxu0 %v9906_v51  ;;  %3939 = vmatprep.subr.bf16.mxu1 %v9643_v28 }
 0x3a5   :  { %v2442_v15 = vpop.f32.mrb[76].mxu0  ;;  %v2489_v22 = vpop.f32.mrb[76].mxu1  ;;  %3500 = vmatprep.subr.bf16.mxu0 %v9912_v33 }
 0x3a6   :  { %v2451_v51 = vmax.f32 %v12721_v34, %v2442_v15  ;;  %v2444_v55 = vpop.f32.mrb[77].mxu0  ;;  %v2491_v28 = vpop.f32.mrb[77].mxu1  ;;  %v9943_v15 = vld [vmem:[%s12296_s3 + $0x1e0] ss:$8 sps:$4 sm:$0xff]  }
 0x3a7   :  { %v2452_v29 = vmax.f32 %v12722_v8, %v2444_v55  ;;  %v2446_v2 = vpop.f32.mrb[78].mxu0  ;;  %v2493_v47 = vpop.f32.mrb[78].mxu1  ;;  %3940 = vmatpush1.bf16.msra.mxu1 %v9655_v9  ;;  %12724 = vst [vmem:[#allocation72_spill] sm:$0xff] %v9943_v15  ;;  %v12725_v55 = vmax.f32 %v9772_v35, %v9774_v1  ;;  %v9980_v35 = vld [vmem:[%s12296_s3 + $0x200] ss:$8 sps:$4 sm:$0xff]  }
 0x3a8   :  { %v2498_v33 = vmax.f32 %v2451_v51, %v2489_v22  ;;  %v2453_v49 = vmax.f32 %v12723_v54, %v2446_v2  ;;  %3501 = vmatpush1.bf16.msra.mxu0 %v9920_v52  ;;  %v2448_v11 = vpop.f32.mrb[79].mxu0  ;;  %v2495_v16 = vpop.f32.mrb[79].mxu1  ;;  %3941 = vmatprep.subr.bf16.mxu1 %v9667_v10  ;;  %v9952_v51 = vld [vmem:[%s12296_s3 + $0x1f4] ss:$8 sps:$4 sm:$0xff]  }
 0x3a9   :  { %v2499_v8 = vmax.f32 %v2452_v29, %v2491_v28  ;;  %v2454_v22 = vmax.f32 %v12725_v55, %v2448_v11  ;;  %3502 = vmatprep.subr.bf16.mxu0 %v9926_v43  ;;  %12726 = vst [vmem:[#allocation73_spill] sm:$0xff] %v9952_v51  ;;  %v9963_v11 = vld [vmem:[%s12296_s3 + $0x1f0] ss:$8 sps:$4 sm:$0xff]   ;;  %v9988_v2 = vld [vmem:[%s12296_s3 + $0x214] ss:$8 sps:$4 sm:$0xff]  }
 0x3aa   :  { %v2502_v54 = vadd.f32 %v2498_v33, %v8272_v45  ;;  %v2500_v34 = vmax.f32 %v2453_v49, %v2493_v47  ;;  %12727 = vst [vmem:[#allocation74_spill] sm:$0xff] %v9963_v11  ;;  %v9970_v49 = vld [vmem:[%s12296_s3 + $0x204] ss:$8 sps:$4 sm:$0xff]   ;;  %v10010_v55 = vld [vmem:[%s12296_s3 + $0x220] ss:$8 sps:$4 sm:$0xff]  }
 0x3ab   :  { %v2503_v17 = vadd.f32 %v2499_v8, %v8277_v50  ;;  %v2501_v21 = vmax.f32 %v2454_v22, %v2495_v16  ;;  %3942 = vmatpush1.bf16.msra.mxu1 %v9679_v7  ;;  %12728 = vst [vmem:[#allocation75_spill] sm:$0xff] %v9970_v49  ;;  %v9996_v16 = vld [vmem:[%s12296_s3 + $0x210] ss:$8 sps:$4 sm:$0xff]   ;;  %v10002_v8 = vld [vmem:[%s12296_s3 + $0x224] ss:$8 sps:$4 sm:$0xff]  }
 0x3ac   :  { %v2504_v29 = vadd.f32 %v2500_v34, %v8272_v45  ;;  %3503 = vmatpush1.bf16.msra.mxu0 %v9943_v15  ;;  %3943 = vmatprep.subr.bf16.mxu1 %v9691_v30  ;;  %v2506_v47 = vmax.f32 %v2502_v54, 0.0  ;;  %v10016_v22 = vld [vmem:[%s12296_s3 + $0x234] ss:$8 sps:$4 sm:$0xff]   ;;  %v10024_v54 = vld [vmem:[%s12296_s3 + $0x230] ss:$8 sps:$4 sm:$0xff]  }
 0x3ad   :  { %v2505_v28 = vadd.f32 %v2501_v21, %v8277_v50  ;;  %3504 = vmatprep.subr.bf16.mxu0 %v9952_v51  ;;  %v2507_v24 = vmax.f32 %v2503_v17, 0.0  ;;  %12731 = vst [vmem:[#allocation78_spill] sm:$0xff] %v10024_v54  ;;  %v10030_v34 = vld [vmem:[%s12296_s3 + $0x244] ss:$8 sps:$4 sm:$0xff]   ;;  %v10038_v17 = vld [vmem:[%s12296_s3 + $0x240] ss:$8 sps:$4 sm:$0xff]  }
 0x3ae   :  { %v2508_v33 = vmax.f32 %v2504_v29, 0.0  ;;  %12732 = vst [vmem:[#allocation79_spill] sm:$0xff] %v10030_v34  ;;  %12733 = vst [vmem:[#allocation80_spill] sm:$0xff] %v10038_v17  ;;  %v10044_v21 = vld [vmem:[%s12296_s3 + $0x254] ss:$8 sps:$4 sm:$0xff]   ;;  %v12735_v29 = vld [vmem:[#allocation3_spill] sm:$0xff] }
 0x3af   :  { %v2509_v41 = vmax.f32 %v2505_v28, 0.0  ;;  %3944 = vmatpush1.bf16.msra.mxu1 %v9703_v58  ;;  %12734 = vst [vmem:[#allocation81_spill] sm:$0xff] %v10044_v21  ;;  %v10055_v28 = vld [vmem:[%s12296_s3 + $0x250] ss:$8 sps:$4 sm:$0xff]  }
 0x3b0   :  { %v9973_v42 = vpack.c.bf16 %v2508_v33, %v2506_v47  ;;  %3505 = vmatpush1.bf16.msra.mxu0 %v9963_v11  ;;  %3945 = vmatprep.subr.bf16.mxu1 %v9715_v63  ;;  %12737 = vst [vmem:[#allocation82_spill] sm:$0xff] %v10055_v28  ;;  %v10063_v47 = vld [vmem:[%s12296_s3 + $0x264] ss:$8 sps:$4 sm:$0xff]   ;;  %v10072_v33 = vld [vmem:[%s12296_s3 + $0x260] ss:$8 sps:$4 sm:$0xff]  }
 0x3b1   :  { %v9982_v1 = vpack.c.bf16 %v2509_v41, %v2507_v24  ;;  %3506 = vmatprep.subr.bf16.mxu0 %v9970_v49  ;;  %12738 = vst [vmem:[#allocation83_spill] sm:$0xff] %v10063_v47  ;;  %12739 = vst [vmem:[#allocation84_spill] sm:$0xff] %v10072_v33  ;;  %v10082_v41 = vld [vmem:[%s12296_s3 + $0x274] ss:$8 sps:$4 sm:$0xff]  }
 0x3b2   :  { %12729 = vst [vmem:[#allocation76_spill] sm:$0xff] %v9973_v42  ;;  %12740 = vst [vmem:[#allocation85_spill] sm:$0xff] %v10082_v41 }
 0x3b3   :  { %12730 = vst [vmem:[#allocation77_spill] sm:$0xff] %v9982_v1  ;;  %3946 = vmatpush1.bf16.msra.mxu1 %v9727_v0 }
 0x3b4   :  { %3507 = vmatpush1.bf16.msra.mxu0 %v9980_v35  ;;  %3947 = vmatprep.subr.bf16.mxu1 %v9739_v32 }
 0x3b5   :  { %3508 = vmatprep.subr.bf16.mxu0 %v9988_v2 }
 0x3b7   :  { %3948 = vmatpush1.bf16.msra.mxu1 %v9767_v44 }
 0x3b8   :  { %3509 = vmatpush1.bf16.msra.mxu0 %v9996_v16  ;;  %3949 = vmatprep.subr.bf16.mxu1 %v9785_v39  ;;  %v10228_v39 = vld [vmem:[%s12296_s3 + $0x304] ss:$8 sps:$4 sm:$0xff]  }
 0x3b9   :  { %3510 = vmatprep.subr.bf16.mxu0 %v10002_v8 }
 0x3bb   :  { %3950 = vmatpush1.bf16.msra.mxu1 %v9799_v38 }
 0x3bc   :  { %3511 = vmatpush1.bf16.msra.mxu0 %v10010_v55  ;;  %3951 = vmatprep.subr.bf16.mxu1 %v9811_v60  ;;  %v10130_v60 = vld [vmem:[%s12296_s3 + $0x294] ss:$8 sps:$4 sm:$0xff]  }
 0x3bd   :  { %3512 = vmatprep.subr.bf16.mxu0 %v10016_v22  ;;  %12744 = vst [vmem:[#allocation89_spill] sm:$0xff] %v10130_v60 }
 0x3bf   :  { %3952 = vmatpush1.bf16.msra.mxu1 %v9823_v13 }
 0x3c0   :  { %3513 = vmatpush1.bf16.msra.mxu0 %v10024_v54  ;;  %3972 = vmatprep.subr.bf16.mxu1 %v9514_v48  ;;  %v12736_v48 = vld [vmem:[#allocation6_spill] sm:$0xff] }
 0x3c1   :  { %3685 = vmatprep.subr.bf16.mxu0 %v10030_v34 }
 0x3c2   :  { %3962 = vmatmul.mubr.bf16.vlgmr.msra.gmra.mrb[100].mxu1 %v12735_v29 }
 0x3c3   :  { %3523 = vmatmul.mubr.bf16.vlgmr.msra.gmra.mrb[96].mxu0 %v12735_v29  ;;  %3973 = vmatpush1.bf16.msra.mxu1 %v9531_v37  ;;  %v10116_v37 = vld [vmem:[%s12296_s3 + $0x284] ss:$8 sps:$4 sm:$0xff]  }
 0x3c4   :  { %3686 = vmatpush1.bf16.msra.mxu0 %v10038_v17  ;;  %6583 = vmatprep.mubr.msk.bf16.mxu0 %vm3129_vm2, %v12736_v48  ;;  %12742 = vst [vmem:[#allocation87_spill] sm:$0xff] %v10116_v37 }
 0x3c5   :  { %6634 = vmatprep.mubr.msk.bf16.mxu1 %vm3129_vm2, %v8569_v12  ;;  %3687 = vmatprep.subr.bf16.mxu0 %v10044_v21 }
 0x3c6   :  { %3974 = vmatprep.subr.bf16.mxu1 %v9541_v23 }
 0x3c7   :  { %3975 = vmatpush1.bf16.msra.mxu1 %v9560_v53 }
 0x3c8   :  { %3688 = vmatpush1.bf16.msra.mxu0 %v10055_v28  ;;  %3976 = vmatprep.subr.bf16.mxu1 %v9573_v3  ;;  %v10108_v3 = vld [vmem:[%s12296_s3 + $0x270] ss:$8 sps:$4 sm:$0xff]  }
 0x3c9   :  { %v10074_v12 = vpop.f32.mrb[80].mxu0  ;;  %v10076_v24 = vpop.f32.mrb[80].mxu1  ;;  %3689 = vmatprep.subr.bf16.mxu0 %v10063_v47  ;;  %12741 = vst [vmem:[#allocation86_spill] sm:$0xff] %v10108_v3 }
 0x3ca   :  { %v10086_v1 = vpop.f32.mrb[81].mxu0  ;;  %v10088_v29 = vpop.f32.mrb[81].mxu1 }
 0x3cb   :  { %v10092_v53 = vpop.f32.mrb[82].mxu0  ;;  %v10094_v23 = vpop.f32.mrb[82].mxu1  ;;  %3977 = vmatpush1.bf16.msra.mxu1 %v9588_v6  ;;  %v12753_v44 = vmax.f32 %v10086_v1, %v10088_v29  ;;  %v12760_v29 = vld [vmem:[#allocation61_spill] sm:$0xff] }
 0x3cc   :  { %3690 = vmatpush1.bf16.msra.mxu0 %v10072_v33  ;;  %v10100_v13 = vpop.f32.mrb[83].mxu0  ;;  %v10102_v42 = vpop.f32.mrb[83].mxu1  ;;  %3978 = vmatprep.subr.bf16.mxu1 %v9601_v19  ;;  %v10124_v19 = vld [vmem:[%s12296_s3 + $0x280] ss:$8 sps:$4 sm:$0xff]   ;;  %v12754_v0 = vmax.f32 %v10092_v53, %v10094_v23  ;;  %v10254_v23 = vld [vmem:[%s12296_s3 + $0x314] ss:$8 sps:$4 sm:$0xff]  }
 0x3cd   :  { %3691 = vmatprep.subr.bf16.mxu0 %v10082_v41  ;;  %12743 = vst [vmem:[#allocation88_spill] sm:$0xff] %v10124_v19 }
 0x3cf   :  { %3979 = vmatpush1.bf16.msra.mxu1 %v9614_v18  ;;  %v10144_v18 = vld [vmem:[%s12296_s3 + $0x2a4] ss:$8 sps:$4 sm:$0xff]  }
 0x3d0   :  { %3692 = vmatpush1.bf16.msra.mxu0 %v10108_v3  ;;  %3980 = vmatprep.subr.bf16.mxu1 %v9625_v46  ;;  %v10138_v46 = vld [vmem:[%s12296_s3 + $0x290] ss:$8 sps:$4 sm:$0xff]  }
 0x3d1   :  { %3693 = vmatprep.subr.bf16.mxu0 %v10116_v37 }
 0x3d3   :  { %3981 = vmatpush1.bf16.msra.mxu1 %v9638_v5  ;;  %v10158_v5 = vld [vmem:[%s12296_s3 + $0x2b4] ss:$8 sps:$4 sm:$0xff]  }
 0x3d4   :  { %3694 = vmatpush1.bf16.msra.mxu0 %v10124_v19  ;;  %3982 = vmatprep.subr.bf16.mxu1 %v9649_v36  ;;  %v10152_v36 = vld [vmem:[%s12296_s3 + $0x2a0] ss:$8 sps:$4 sm:$0xff]  }
 0x3d5   :  { %3695 = vmatprep.subr.bf16.mxu0 %v10130_v60 }
 0x3d7   :  { %3983 = vmatpush1.bf16.msra.mxu1 %v9662_v27  ;;  %v10172_v27 = vld [vmem:[%s12296_s3 + $0x2c4] ss:$8 sps:$4 sm:$0xff]  }
 0x3d8   :  { %3696 = vmatpush1.bf16.msra.mxu0 %v10138_v46  ;;  %3984 = vmatprep.subr.bf16.mxu1 %v9673_v25  ;;  %v10166_v25 = vld [vmem:[%s12296_s3 + $0x2b0] ss:$8 sps:$4 sm:$0xff]  }
 0x3d9   :  { %3697 = vmatprep.subr.bf16.mxu0 %v10144_v18 }
 0x3db   :  { %3985 = vmatpush1.bf16.msra.mxu1 %v9686_v57  ;;  %v10186_v57 = vld [vmem:[%s12296_s3 + $0x2d4] ss:$8 sps:$4 sm:$0xff]  }
 0x3dc   :  { %3698 = vmatpush1.bf16.msra.mxu0 %v10152_v36  ;;  %3986 = vmatprep.subr.bf16.mxu1 %v9697_v31  ;;  %v10180_v31 = vld [vmem:[%s12296_s3 + $0x2c0] ss:$8 sps:$4 sm:$0xff]   ;;  %12746 = vst [vmem:[#allocation91_spill] sm:$0xff] %v10186_v57 }
 0x3dd   :  { %3699 = vmatprep.subr.bf16.mxu0 %v10158_v5  ;;  %12745 = vst [vmem:[#allocation90_spill] sm:$0xff] %v10180_v31 }
 0x3df   :  { %3987 = vmatpush1.bf16.msra.mxu1 %v9710_v59  ;;  %v10200_v59 = vld [vmem:[%s12296_s3 + $0x2e4] ss:$8 sps:$4 sm:$0xff]  }
 0x3e0   :  { %3700 = vmatpush1.bf16.msra.mxu0 %v10166_v25  ;;  %3988 = vmatprep.subr.bf16.mxu1 %v9721_v4  ;;  %v10194_v4 = vld [vmem:[%s12296_s3 + $0x2d0] ss:$8 sps:$4 sm:$0xff]   ;;  %12748 = vst [vmem:[#allocation93_spill] sm:$0xff] %v10200_v59 }
 0x3e1   :  { %3701 = vmatprep.subr.bf16.mxu0 %v10172_v27  ;;  %12747 = vst [vmem:[#allocation92_spill] sm:$0xff] %v10194_v4 }
 0x3e3   :  { %3989 = vmatpush1.bf16.msra.mxu1 %v9734_v61  ;;  %v10214_v61 = vld [vmem:[%s12296_s3 + $0x2f4] ss:$8 sps:$4 sm:$0xff]  }
 0x3e4   :  { %3702 = vmatpush1.bf16.msra.mxu0 %v10180_v31  ;;  %3990 = vmatprep.subr.bf16.mxu1 %v9749_v20  ;;  %v10208_v20 = vld [vmem:[%s12296_s3 + $0x2e0] ss:$8 sps:$4 sm:$0xff]   ;;  %12750 = vst [vmem:[#allocation95_spill] sm:$0xff] %v10214_v61 }
 0x3e5   :  { %3703 = vmatprep.subr.bf16.mxu0 %v10186_v57  ;;  %12749 = vst [vmem:[#allocation94_spill] sm:$0xff] %v10208_v20 }
 0x3e7   :  { %3991 = vmatpush1.bf16.msra.mxu1 %v9780_v62  ;;  %v12751_v62 = vld [vmem:[#allocation56_spill] sm:$0xff] }
 0x3e8   :  { %3704 = vmatpush1.bf16.msra.mxu0 %v10194_v4  ;;  %3992 = vmatprep.subr.bf16.mxu1 %v9793_v40  ;;  %v10222_v40 = vld [vmem:[%s12296_s3 + $0x2f0] ss:$8 sps:$4 sm:$0xff]  }
 0x3e9   :  { %3705 = vmatprep.subr.bf16.mxu0 %v10200_v59 }
 0x3eb   :  { %3993 = vmatpush1.bf16.msra.mxu1 %v9806_v56  ;;  %v12752_v56 = vmax.f32 %v10074_v12, %v10076_v24 }
 0x3ec   :  { %3706 = vmatpush1.bf16.msra.mxu0 %v10208_v20  ;;  %3994 = vmatprep.subr.bf16.mxu1 %v12751_v62 }
 0x3ed   :  { %v2666_v6 = vpop.f32.mrb[84].mxu0  ;;  %v2713_v38 = vpop.f32.mrb[84].mxu1  ;;  %3707 = vmatprep.subr.bf16.mxu0 %v10214_v61 }
 0x3ee   :  { %v2675_v20 = vmax.f32 %v12752_v56, %v2666_v6  ;;  %v2668_v59 = vpop.f32.mrb[85].mxu0  ;;  %v2715_v62 = vpop.f32.mrb[85].mxu1  ;;  %v10245_v6 = vld [vmem:[%s12296_s3 + $0x300] ss:$8 sps:$4 sm:$0xff]  }
 0x3ef   :  { %v2676_v4 = vmax.f32 %v12753_v44, %v2668_v59  ;;  %v2670_v32 = vpop.f32.mrb[86].mxu0  ;;  %v2717_v57 = vpop.f32.mrb[86].mxu1  ;;  %3995 = vmatpush1.bf16.msra.mxu1 %v9830_v14  ;;  %v12755_v44 = vmax.f32 %v10100_v13, %v10102_v42 }
 0x3f0   :  { %v2722_v61 = vmax.f32 %v2675_v20, %v2713_v38  ;;  %v2677_v31 = vmax.f32 %v12754_v0, %v2670_v32  ;;  %3708 = vmatpush1.bf16.msra.mxu0 %v10222_v40  ;;  %v2672_v63 = vpop.f32.mrb[87].mxu0  ;;  %v2719_v12 = vpop.f32.mrb[87].mxu1  ;;  %4015 = vmatprep.subr.bf16.mxu1 %v9836_v26  ;;  %v12756_v32 = vld [vmem:[#allocation2_spill] sm:$0xff] }
 0x3f1   :  { %v2723_v59 = vmax.f32 %v2676_v4, %v2715_v62  ;;  %v2678_v20 = vmax.f32 %v12755_v44, %v2672_v63  ;;  %3880 = vmatprep.subr.bf16.mxu0 %v10228_v39  ;;  %v12757_v4 = vld [vmem:[#allocation5_spill] sm:$0xff]  ;;  %v12758_v62 = vld [vmem:[#allocation60_spill] sm:$0xff] }
 0x3f2   :  { %v2726_v53 = vadd.f32 %v2722_v61, %v8272_v45  ;;  %v2724_v0 = vmax.f32 %v2677_v31, %v2717_v57  ;;  %4005 = vmatmul.mubr.bf16.vlgmr.msra.gmra.mrb[100].mxu1 %v12756_v32  ;;  %v12759_v63 = vld [vmem:[#allocation8_spill] sm:$0xff]  ;;  %v10277_v61 = vld [vmem:[%s12296_s3 + $0x324] ss:$8 sps:$4 sm:$0xff]  }
 0x3f3   :  { %v2727_v38 = vadd.f32 %v2723_v59, %v8277_v50  ;;  %v2725_v56 = vmax.f32 %v2678_v20, %v2719_v12  ;;  %3718 = vmatmul.mubr.bf16.vlgmr.msra.gmra.mrb[96].mxu0 %v12757_v4  ;;  %4016 = vmatpush1.bf16.msra.mxu1 %v12758_v62  ;;  %v10268_v57 = vld [vmem:[%s12296_s3 + $0x310] ss:$8 sps:$4 sm:$0xff]   ;;  %v12761_v59 = vld [vmem:[#allocation62_spill] sm:$0xff]  ;;  %v12763_v20 = vld [vmem:[#allocation63_spill] sm:$0xff] }
 0x3f4   :  { %v2728_v13 = vadd.f32 %v2724_v0, %v8272_v45  ;;  %3881 = vmatpush1.bf16.msra.mxu0 %v10245_v6  ;;  %6632 = vmatprep.mubr.msk.bf16.mxu0 %vm3129_vm2, %v12759_v63  ;;  %v2730_v42 = vmax.f32 %v2726_v53, 0.0  ;;  %v10288_v0 = vld [vmem:[%s12296_s3 + $0x320] ss:$8 sps:$4 sm:$0xff]   ;;  %v10296_v53 = vld [vmem:[%s12296_s3 + $0x334] ss:$8 sps:$4 sm:$0xff]  }
 0x3f5   :  { %v2729_v31 = vadd.f32 %v2725_v56, %v8277_v50  ;;  %6635 = vmatprep.mubr.msk.bf16.mxu1 %vm3129_vm2, %v12736_v48  ;;  %3882 = vmatprep.subr.bf16.mxu0 %v10254_v23  ;;  %v2731_v24 = vmax.f32 %v2727_v38, 0.0  ;;  %12765 = vst [vmem:[#allocation96_spill] sm:$0xff] %v10296_v53  ;;  %v12766_v38 = vld [vmem:[#allocation64_spill] sm:$0xff]  ;;  %v12767_v56 = vld [vmem:[#allocation65_spill] sm:$0xff] }
 0x3f6   :  { %v2732_v1 = vmax.f32 %v2728_v13, 0.0  ;;  %4017 = vmatprep.subr.bf16.mxu1 %v12760_v29  ;;  %v10304_v13 = vld [vmem:[%s12296_s3 + $0x330] ss:$8 sps:$4 sm:$0xff]  }
 0x3f7   :  { %v2733_v12 = vmax.f32 %v2729_v31, 0.0  ;;  %4018 = vmatpush1.bf16.msra.mxu1 %v12761_v59  ;;  %12768 = vst [vmem:[#allocation97_spill] sm:$0xff] %v10304_v13  ;;  %v10310_v31 = vld [vmem:[%s12296_s3 + $0x344] ss:$8 sps:$4 sm:$0xff]  }
 0x3f8   :  { %v10281_v44 = vpack.c.bf16 %v2732_v1, %v2730_v42  ;;  %3883 = vmatpush1.bf16.msra.mxu0 %v10268_v57  ;;  %4019 = vmatprep.subr.bf16.mxu1 %v12763_v20  ;;  %12769 = vst [vmem:[#allocation98_spill] sm:$0xff] %v10310_v31  ;;  %v12770_v42 = vld [vmem:[#allocation66_spill] sm:$0xff]  ;;  %v12771_v1 = vld [vmem:[#allocation67_spill] sm:$0xff] }
 0x3f9   :  { %v10290_v32 = vpack.c.bf16 %v2733_v12, %v2731_v24  ;;  %3884 = vmatprep.subr.bf16.mxu0 %v10277_v61  ;;  %v10318_v24 = vld [vmem:[%s12296_s3 + $0x340] ss:$8 sps:$4 sm:$0xff]   ;;  %v10324_v12 = vld [vmem:[%s12296_s3 + $0x354] ss:$8 sps:$4 sm:$0xff]  }
 0x3fa   :  { %12762 = vst [vmem:[#allocation2_spill] sm:$0xff] %v10281_v44  ;;  %12772 = vst [vmem:[#allocation99_spill] sm:$0xff] %v10318_v24  ;;  %v12773_v44 = vld [vmem:[#allocation68_spill] sm:$0xff] }
 0x3fb   :  { %12764 = vst [vmem:[#allocation5_spill] sm:$0xff] %v10290_v32  ;;  %4020 = vmatpush1.bf16.msra.mxu1 %v12766_v38  ;;  %v12774_v32 = vld [vmem:[#allocation69_spill] sm:$0xff] }
 0x3fc   :  { %3885 = vmatpush1.bf16.msra.mxu0 %v10288_v0  ;;  %4021 = vmatprep.subr.bf16.mxu1 %v12767_v56  ;;  %v10380_v38 = vld [vmem:[%s12296_s3 + $0x394] ss:$8 sps:$4 sm:$0xff]  }
 0x3fd   :  { %3886 = vmatprep.subr.bf16.mxu0 %v10296_v53 }
 0x3ff   :  { %4022 = vmatpush1.bf16.msra.mxu1 %v12770_v42  ;;  %v10338_v42 = vld [vmem:[%s12296_s3 + $0x364] ss:$8 sps:$4 sm:$0xff]  }
 0x400   :  { %3887 = vmatpush1.bf16.msra.mxu0 %v10304_v13  ;;  %4023 = vmatprep.subr.bf16.mxu1 %v12771_v1  ;;  %v10332_v1 = vld [vmem:[%s12296_s3 + $0x350] ss:$8 sps:$4 sm:$0xff]  }
 0x401   :  { %3888 = vmatprep.subr.bf16.mxu0 %v10310_v31 }
 0x403   :  { %4024 = vmatpush1.bf16.msra.mxu1 %v12773_v44  ;;  %v10352_v44 = vld [vmem:[%s12296_s3 + $0x374] ss:$8 sps:$4 sm:$0xff]  }
 0x404   :  { %3889 = vmatpush1.bf16.msra.mxu0 %v10318_v24  ;;  %4025 = vmatprep.subr.bf16.mxu1 %v12774_v32  ;;  %v10346_v32 = vld [vmem:[%s12296_s3 + $0x360] ss:$8 sps:$4 sm:$0xff]  }
 0x405   :  { %3890 = vmatprep.subr.bf16.mxu0 %v10324_v12 }
 0x407   :  { %4026 = vmatpush1.bf16.msra.mxu1 %v9920_v52  ;;  %v10366_v52 = vld [vmem:[%s12296_s3 + $0x384] ss:$8 sps:$4 sm:$0xff]  }
 0x408   :  { %3891 = vmatpush1.bf16.msra.mxu0 %v10332_v1  ;;  %4027 = vmatprep.subr.bf16.mxu1 %v9926_v43  ;;  %v10360_v43 = vld [vmem:[%s12296_s3 + $0x370] ss:$8 sps:$4 sm:$0xff]   ;;  %12776 = vst [vmem:[#allocation101_spill] sm:$0xff] %v10366_v52 }
 0x409   :  { %3892 = vmatprep.subr.bf16.mxu0 %v10338_v42  ;;  %12775 = vst [vmem:[#allocation100_spill] sm:$0xff] %v10360_v43 }
 0x40b   :  { %4028 = vmatpush1.bf16.msra.mxu1 %v9943_v15 }
 0x40c   :  { %3893 = vmatpush1.bf16.msra.mxu0 %v10346_v32  ;;  %4029 = vmatprep.subr.bf16.mxu1 %v9952_v51  ;;  %v10374_v51 = vld [vmem:[%s12296_s3 + $0x380] ss:$8 sps:$4 sm:$0xff]  }
 0x40d   :  { %3894 = vmatprep.subr.bf16.mxu0 %v10352_v44 }
 0x40f   :  { %4030 = vmatpush1.bf16.msra.mxu1 %v9963_v11 }
 0x410   :  { %3895 = vmatpush1.bf16.msra.mxu0 %v10360_v43  ;;  %4031 = vmatprep.subr.bf16.mxu1 %v9970_v49 }
 0x411   :  { %v2785_v15 = vpop.f32.mrb[88].mxu0  ;;  %v2828_v56 = vpop.f32.mrb[88].mxu1  ;;  %3896 = vmatprep.subr.bf16.mxu0 %v10366_v52  ;;  %v10390_v52 = vld [vmem:[%s12296_s3 + $0x390] ss:$8 sps:$4 sm:$0xff]  }
 0x412   :  { %v2837_v20 = vmax.f32 %v2785_v15, %v2828_v56  ;;  %v2787_v11 = vpop.f32.mrb[89].mxu0  ;;  %v2830_v59 = vpop.f32.mrb[89].mxu1  ;;  %v12779_v56 = vld [vmem:[#allocation16_spill] sm:$0xff] }
 0x413   :  { %v2838_v29 = vmax.f32 %v2787_v11, %v2830_v59  ;;  %v2789_v62 = vpop.f32.mrb[90].mxu0  ;;  %v2832_v49 = vpop.f32.mrb[90].mxu1  ;;  %4032 = vmatpush1.bf16.msra.mxu1 %v9980_v35  ;;  %v10397_v11 = vld [vmem:[%s12296_s3 + $0x3a4] ss:$8 sps:$4 sm:$0xff]  }
 0x414   :  { %v2839_v26 = vmax.f32 %v2789_v62, %v2832_v49  ;;  %3897 = vmatpush1.bf16.msra.mxu0 %v10374_v51  ;;  %v10384_v14 = vpop.f32.mrb[91].mxu0  ;;  %v2834_v43 = vpop.f32.mrb[91].mxu1  ;;  %4033 = vmatprep.subr.bf16.mxu1 %v9988_v2  ;;  %v10405_v49 = vld [vmem:[%s12296_s3 + $0x3a0] ss:$8 sps:$4 sm:$0xff]  }
 0x415   :  { %v2840_v15 = vmax.f32 %v10384_v14, %v2834_v43  ;;  %3898 = vmatprep.subr.bf16.mxu0 %v10380_v38  ;;  %v10411_v14 = vld [vmem:[%s12296_s3 + $0x3b4] ss:$8 sps:$4 sm:$0xff]   ;;  %v10419_v43 = vld [vmem:[%s12296_s3 + $0x3b0] ss:$8 sps:$4 sm:$0xff]   ;;  %v12777_v62 = vld [vmem:[#allocation15_spill] sm:$0xff] }
 0x416   :  { %v12778_v59 = vld [vmem:[#allocation7_spill] sm:$0xff] }
 0x417   :  { %4034 = vmatpush1.bf16.msra.mxu1 %v9996_v16 }
 0x418   :  { %3899 = vmatpush1.bf16.msra.mxu0 %v10390_v52  ;;  %4035 = vmatprep.subr.bf16.mxu1 %v10002_v8 }
 0x419   :  { %3900 = vmatprep.subr.bf16.mxu0 %v10397_v11 }
 0x41b   :  { %4036 = vmatpush1.bf16.msra.mxu1 %v10010_v55 }
 0x41c   :  { %3901 = vmatpush1.bf16.msra.mxu0 %v10405_v49  ;;  %4037 = vmatprep.subr.bf16.mxu1 %v10016_v22 }
 0x41d   :  { %3902 = vmatprep.subr.bf16.mxu0 %v10411_v14 }
 0x41f   :  { %4038 = vmatpush1.bf16.msra.mxu1 %v10024_v54  ;;  %v12780_v54 = vld [vmem:[#allocation18_spill] sm:$0xff] }
 0x420   :  { %3903 = vmatpush1.bf16.msra.mxu0 %v10419_v43  ;;  %4062 = vmatprep.subr.bf16.mxu1 %v10030_v34  ;;  %v12782_v34 = vld [vmem:[#allocation22_spill] sm:$0xff] }
 0x421   :  { %4174 = vmatprep.subr.bf16.mxu0 %v12777_v62  ;;  %v12781_v62 = vld [vmem:[#allocation20_spill] sm:$0xff] }
 0x422   :  { %4048 = vmatmul.mubr.bf16.vlgmr.msra.gmra.mrb[100].mxu1 %v12757_v4 }
 0x423   :  { %3913 = vmatmul.mubr.bf16.vlgmr.msra.gmra.mrb[96].mxu0 %v12778_v59  ;;  %4063 = vmatpush1.bf16.msra.mxu1 %v10038_v17  ;;  %v12783_v17 = vld [vmem:[#allocation24_spill] sm:$0xff] }
 0x424   :  { %6636 = vmatprep.mubr.msk.bf16.mxu1 %vm3129_vm2, %v12759_v63  ;;  %4175 = vmatpush1.bf16.msra.mxu0 %v12779_v56  ;;  %v12784_v56 = vld [vmem:[#allocation27_spill] sm:$0xff] }
 0x425   :  { %6639 = vmatprep.mubr.msk.bf16.mxu0 %vm3129_vm2, %v12736_v48  ;;  %4064 = vmatprep.subr.bf16.mxu1 %v10044_v21  ;;  %v12785_v21 = vld [vmem:[#allocation30_spill] sm:$0xff] }
 0x426   :  { %4176 = vmatprep.subr.bf16.mxu0 %v12780_v54  ;;  %v12786_v54 = vld [vmem:[#allocation32_spill] sm:$0xff] }
 0x427   :  { %4065 = vmatpush1.bf16.msra.mxu1 %v10055_v28 }
 0x428   :  { %4177 = vmatpush1.bf16.msra.mxu0 %v12781_v62  ;;  %4066 = vmatprep.subr.bf16.mxu1 %v10063_v47  ;;  %v12787_v62 = vld [vmem:[#allocation34_spill] sm:$0xff] }
 0x429   :  { %4178 = vmatprep.subr.bf16.mxu0 %v12782_v34 }
 0x42b   :  { %4067 = vmatpush1.bf16.msra.mxu1 %v10072_v33  ;;  %v12788_v33 = vld [vmem:[#allocation36_spill] sm:$0xff] }
 0x42c   :  { %4179 = vmatpush1.bf16.msra.mxu0 %v12783_v17  ;;  %4068 = vmatprep.subr.bf16.mxu1 %v10082_v41 }
 0x42d   :  { %4180 = vmatprep.subr.bf16.mxu0 %v12784_v56 }
 0x42f   :  { %4069 = vmatpush1.bf16.msra.mxu1 %v10108_v3 }
 0x430   :  { %4181 = vmatpush1.bf16.msra.mxu0 %v12785_v21  ;;  %4070 = vmatprep.subr.bf16.mxu1 %v10116_v37 }
 0x431   :  { %4182 = vmatprep.subr.bf16.mxu0 %v12786_v54 }
 0x433   :  { %4071 = vmatpush1.bf16.msra.mxu1 %v10124_v19 }
 0x434   :  { %4183 = vmatpush1.bf16.msra.mxu0 %v12787_v62  ;;  %4072 = vmatprep.subr.bf16.mxu1 %v10130_v60 }
 0x435   :  { %v2890_v34 = vpop.f32.mrb[92].mxu0  ;;  %v2937_v17 = vpop.f32.mrb[92].mxu1  ;;  %4184 = vmatprep.subr.bf16.mxu0 %v12788_v33 }
 0x436   :  { %v2899_v41 = vmax.f32 %v2837_v20, %v2890_v34  ;;  %v2892_v56 = vpop.f32.mrb[93].mxu0  ;;  %v2939_v47 = vpop.f32.mrb[93].mxu1 }
 0x437   :  { %v2900_v3 = vmax.f32 %v2838_v29, %v2892_v56  ;;  %v2894_v28 = vpop.f32.mrb[94].mxu0  ;;  %v2941_v21 = vpop.f32.mrb[94].mxu1  ;;  %4073 = vmatpush1.bf16.msra.mxu1 %v10138_v46  ;;  %v12801_v56 = vld [vmem:[#allocation53_spill] sm:$0xff] }
 0x438   :  { %v2946_v37 = vmax.f32 %v2899_v41, %v2937_v17  ;;  %v2901_v54 = vmax.f32 %v2839_v26, %v2894_v28  ;;  %4185 = vmatpush1.bf16.msra.mxu0 %v9655_v9  ;;  %v2896_v19 = vpop.f32.mrb[95].mxu0  ;;  %v2943_v62 = vpop.f32.mrb[95].mxu1  ;;  %4074 = vmatprep.subr.bf16.mxu1 %v10144_v18  ;;  %v12795_v28 = vld [vmem:[#allocation47_spill] sm:$0xff]  ;;  %v12797_v41 = vld [vmem:[#allocation49_spill] sm:$0xff]  ;;  %v12800_v17 = vld [vmem:[#allocation94_spill] sm:$0xff] }
 0x439   :  { %v2947_v60 = vmax.f32 %v2900_v3, %v2939_v47  ;;  %v2902_v48 = vmax.f32 %v2840_v15, %v2896_v19  ;;  %4186 = vmatprep.subr.bf16.mxu0 %v9667_v10  ;;  %v12796_v47 = vld [vmem:[#allocation92_spill] sm:$0xff]  ;;  %v12798_v15 = vld [vmem:[#allocation93_spill] sm:$0xff] }
 0x43a   :  { %v2950_v33 = vadd.f32 %v2946_v37, %v8272_v45  ;;  %v2948_v20 = vmax.f32 %v2901_v54, %v2941_v21  ;;  %v12802_v21 = vld [vmem:[#allocation95_spill] sm:$0xff] }
 0x43b   :  { %v2951_v29 = vadd.f32 %v2947_v60, %v8277_v50  ;;  %v2949_v34 = vmax.f32 %v2902_v48, %v2943_v62  ;;  %4075 = vmatpush1.bf16.msra.mxu1 %v10152_v36  ;;  %v12792_v48 = vld [vmem:[#allocation90_spill] sm:$0xff]  ;;  %v12803_v54 = vld [vmem:[#allocation55_spill] sm:$0xff]  ;;  %v12804_v62 = vld [vmem:[#allocation57_spill] sm:$0xff] }
 0x43c   :  { %v2952_v26 = vadd.f32 %v2948_v20, %v8272_v45  ;;  %4187 = vmatpush1.bf16.msra.mxu0 %v9679_v7  ;;  %4076 = vmatprep.subr.bf16.mxu1 %v10158_v5  ;;  %v2954_v3 = vmax.f32 %v2950_v33, 0.0  ;;  %v12791_v7 = vld [vmem:[#allocation43_spill] sm:$0xff]  ;;  %v12806_v20 = vld [vmem:[#allocation10_spill] sm:$0xff] }
 0x43d   :  { %v2953_v9 = vadd.f32 %v2949_v34, %v8277_v50  ;;  %4188 = vmatprep.subr.bf16.mxu0 %v9691_v30  ;;  %v2955_v10 = vmax.f32 %v2951_v29, 0.0  ;;  %v12793_v50 = vld [vmem:[#allocation45_spill] sm:$0xff]  ;;  %v12794_v30 = vld [vmem:[#allocation91_spill] sm:$0xff]  ;;  %v12808_v34 = vld [vmem:[#allocation4_spill] sm:$0xff] }
 0x43e   :  { %v2956_v19 = vmax.f32 %v2952_v26, 0.0  ;;  %v10490_v33 = vld [vmem:[%s12296_s3 + $0x4] ss:$8 sps:$4 sm:$0xff]   ;;  %v12807_v29 = vld [vmem:[#allocation17_spill] sm:$0xff] }
 0x43f   :  { %v2957_v37 = vmax.f32 %v2953_v9, 0.0  ;;  %4077 = vmatpush1.bf16.msra.mxu1 %v10166_v25  ;;  %12805 = vst [vmem:[#allocation18_spill] sm:$0xff] %v10490_v33  ;;  %v12809_v26 = vld [vmem:[#allocation19_spill] sm:$0xff]  ;;  %v12810_v9 = vld [vmem:[#allocation21_spill] sm:$0xff] }
 0x440   :  { %v10465_v60 = vpack.c.bf16 %v2956_v19, %v2954_v3  ;;  %4189 = vmatpush1.bf16.msra.mxu0 %v9703_v58  ;;  %4078 = vmatprep.subr.bf16.mxu1 %v10172_v27  ;;  %v12799_v58 = vld [vmem:[#allocation51_spill] sm:$0xff]  ;;  %v12812_v19 = vld [vmem:[#allocation26_spill] sm:$0xff] }
 0x441   :  { %v10469_v45 = vpack.c.bf16 %v2957_v37, %v2955_v10  ;;  %4190 = vmatprep.subr.bf16.mxu0 %v12791_v7  ;;  %v12811_v3 = vld [vmem:[#allocation23_spill] sm:$0xff]  ;;  %v12813_v10 = vld [vmem:[#allocation29_spill] sm:$0xff] }
 0x442   :  { %12789 = vst [vmem:[#allocation15_spill] sm:$0xff] %v10465_v60  ;;  %v12814_v37 = vld [vmem:[#allocation31_spill] sm:$0xff]  ;;  %v12815_v7 = vld [vmem:[#allocation33_spill] sm:$0xff]  ;;  %v12826_v60 = vld [vmem:[#allocation46_spill] sm:$0xff] }
 0x443   :  { %12790 = vst [vmem:[#allocation16_spill] sm:$0xff] %v10469_v45  ;;  %4079 = vmatpush1.bf16.msra.mxu1 %v12792_v48  ;;  %v10583_v45 = vld [vmem:[%s12296_s3 + $0xd0] ss:$8 sps:$4 sm:$0xff]  }
 0x444   :  { %4191 = vmatpush1.bf16.msra.mxu0 %v12793_v50  ;;  %4080 = vmatprep.subr.bf16.mxu1 %v12794_v30  ;;  %v12816_v50 = vld [vmem:[#allocation35_spill] sm:$0xff]  ;;  %12840 = vst [vmem:[#allocation24_spill] sm:$0xff] %v10583_v45 }
 0x445   :  { %4192 = vmatprep.subr.bf16.mxu0 %v12795_v28 }
 0x447   :  { %4081 = vmatpush1.bf16.msra.mxu1 %v12796_v47 }
 0x448   :  { %4193 = vmatpush1.bf16.msra.mxu0 %v12797_v41  ;;  %4082 = vmatprep.subr.bf16.mxu1 %v12798_v15 }
 0x449   :  { %4194 = vmatprep.subr.bf16.mxu0 %v12799_v58 }
 0x44b   :  { %4083 = vmatpush1.bf16.msra.mxu1 %v12800_v17 }
 0x44c   :  { %4195 = vmatpush1.bf16.msra.mxu0 %v12801_v56  ;;  %4084 = vmatprep.subr.bf16.mxu1 %v12802_v21 }
 0x44d   :  { %4196 = vmatprep.subr.bf16.mxu0 %v12803_v54 }
 0x44f   :  { %4085 = vmatpush1.bf16.msra.mxu1 %v10222_v40 }
 0x450   :  { %4197 = vmatpush1.bf16.msra.mxu0 %v12804_v62  ;;  %4112 = vmatprep.subr.bf16.mxu1 %v10228_v39 }
 0x451   :  { %4217 = vmatprep.subr.bf16.mxu0 %v10490_v33 }
 0x452   :  { %4095 = vmatmul.mubr.bf16.vlgmr.msra.gmra.mrb[100].mxu1 %v12778_v59 }
 0x453   :  { %4207 = vmatmul.mubr.bf16.vlgmr.msra.gmra.mrb[100].mxu0 %v12757_v4  ;;  %4113 = vmatpush1.bf16.msra.mxu1 %v10245_v6 }
 0x454   :  { %6637 = vmatprep.mubr.msk.bf16.mxu1 %vm3129_vm2, %v12806_v20  ;;  %4218 = vmatpush1.bf16.msra.mxu0 %v12807_v29  ;;  %v12817_v29 = vld [vmem:[#allocation37_spill] sm:$0xff] }
 0x455   :  { %6640 = vmatprep.mubr.msk.bf16.mxu0 %vm3129_vm2, %v12808_v34  ;;  %4114 = vmatprep.subr.bf16.mxu1 %v10254_v23 }
 0x456   :  { %4219 = vmatprep.subr.bf16.mxu0 %v12809_v26 }
 0x457   :  { %4115 = vmatpush1.bf16.msra.mxu1 %v10268_v57 }
 0x458   :  { %4220 = vmatpush1.bf16.msra.mxu0 %v12810_v9  ;;  %4116 = vmatprep.subr.bf16.mxu1 %v10277_v61  ;;  %v12818_v9 = vld [vmem:[#allocation38_spill] sm:$0xff] }
 0x459   :  { %4221 = vmatprep.subr.bf16.mxu0 %v12811_v3 }
 0x45b   :  { %4117 = vmatpush1.bf16.msra.mxu1 %v10288_v0 }
 0x45c   :  { %4222 = vmatpush1.bf16.msra.mxu0 %v12812_v19  ;;  %4118 = vmatprep.subr.bf16.mxu1 %v10296_v53  ;;  %v12819_v19 = vld [vmem:[#allocation39_spill] sm:$0xff] }
 0x45d   :  { %4223 = vmatprep.subr.bf16.mxu0 %v12813_v10  ;;  %v12820_v10 = vld [vmem:[#allocation40_spill] sm:$0xff] }
 0x45f   :  { %4119 = vmatpush1.bf16.msra.mxu1 %v10304_v13 }
 0x460   :  { %4224 = vmatpush1.bf16.msra.mxu0 %v12814_v37  ;;  %4120 = vmatprep.subr.bf16.mxu1 %v10310_v31  ;;  %v12821_v37 = vld [vmem:[#allocation41_spill] sm:$0xff] }
 0x461   :  { %4225 = vmatprep.subr.bf16.mxu0 %v12815_v7  ;;  %v12822_v7 = vld [vmem:[#allocation100_spill] sm:$0xff] }
 0x463   :  { %4121 = vmatpush1.bf16.msra.mxu1 %v10318_v24 }
 0x464   :  { %4226 = vmatpush1.bf16.msra.mxu0 %v12816_v50  ;;  %4122 = vmatprep.subr.bf16.mxu1 %v10324_v12  ;;  %v12823_v50 = vld [vmem:[#allocation42_spill] sm:$0xff] }
 0x465   :  { %v10518_v28 = vpop.f32.mrb[96].mxu1  ;;  %4227 = vmatprep.subr.bf16.mxu0 %v12817_v29  ;;  %v12824_v29 = vld [vmem:[#allocation101_spill] sm:$0xff] }
 0x466   :  { %v10521_v34 = vpop.f32.mrb[97].mxu1 }
 0x467   :  { %v10523_v26 = vpop.f32.mrb[98].mxu1  ;;  %4123 = vmatpush1.bf16.msra.mxu1 %v10332_v1 }
 0x468   :  { %4228 = vmatpush1.bf16.msra.mxu0 %v12818_v9  ;;  %v10527_v3 = vpop.f32.mrb[99].mxu1  ;;  %4124 = vmatprep.subr.bf16.mxu1 %v10338_v42  ;;  %v12825_v9 = vld [vmem:[#allocation44_spill] sm:$0xff] }
 0x469   :  { %4229 = vmatprep.subr.bf16.mxu0 %v12819_v19  ;;  %v12827_v19 = vld [vmem:[#allocation48_spill] sm:$0xff] }
 0x46b   :  { %4125 = vmatpush1.bf16.msra.mxu1 %v10346_v32 }
 0x46c   :  { %4230 = vmatpush1.bf16.msra.mxu0 %v12820_v10  ;;  %4126 = vmatprep.subr.bf16.mxu1 %v10352_v44  ;;  %v12828_v10 = vld [vmem:[#allocation50_spill] sm:$0xff] }
 0x46d   :  { %4231 = vmatprep.subr.bf16.mxu0 %v12821_v37  ;;  %v12829_v37 = vld [vmem:[#allocation52_spill] sm:$0xff] }
 0x46f   :  { %4127 = vmatpush1.bf16.msra.mxu1 %v12822_v7 }
 0x470   :  { %4232 = vmatpush1.bf16.msra.mxu0 %v12823_v50  ;;  %4128 = vmatprep.subr.bf16.mxu1 %v12824_v29  ;;  %v12830_v50 = vld [vmem:[#allocation54_spill] sm:$0xff] }
 0x471   :  { %4233 = vmatprep.subr.bf16.mxu0 %v12825_v9  ;;  %v12831_v9 = vld [vmem:[#allocation56_spill] sm:$0xff] }
 0x473   :  { %4129 = vmatpush1.bf16.msra.mxu1 %v10374_v51 }
 0x474   :  { %4234 = vmatpush1.bf16.msra.mxu0 %v12826_v60  ;;  %4130 = vmatprep.subr.bf16.mxu1 %v10380_v38  ;;  %v12832_v60 = vld [vmem:[#allocation58_spill] sm:$0xff] }
 0x475   :  { %4235 = vmatprep.subr.bf16.mxu0 %v12827_v19  ;;  %v10556_v19 = vld [vmem:[%s12296_s3 + $0xc4] ss:$8 sps:$4 sm:$0xff]  }
 0x477   :  { %4131 = vmatpush1.bf16.msra.mxu1 %v10390_v52 }
 0x478   :  { %4236 = vmatpush1.bf16.msra.mxu0 %v12828_v10  ;;  %4132 = vmatprep.subr.bf16.mxu1 %v10397_v11  ;;  %v12833_v10 = vld [vmem:[#allocation59_spill] sm:$0xff] }
 0x479   :  { %4237 = vmatprep.subr.bf16.mxu0 %v12829_v37  ;;  %v12834_v37 = vld [vmem:[#allocation9_spill] sm:$0xff] }
 0x47b   :  { %4133 = vmatpush1.bf16.msra.mxu1 %v10405_v49 }
 0x47c   :  { %4238 = vmatpush1.bf16.msra.mxu0 %v12830_v50  ;;  %4134 = vmatprep.subr.bf16.mxu1 %v10411_v14  ;;  %v12835_v50 = vld [vmem:[#allocation3_spill] sm:$0xff] }
 0x47d   :  { %4239 = vmatprep.subr.bf16.mxu0 %v12831_v9  ;;  %v10565_v9 = vld [vmem:[%s12296_s3 + $0xc0] ss:$8 sps:$4 sm:$0xff]  }
 0x47e   :  { %12836 = vst [vmem:[#allocation20_spill] sm:$0xff] %v10565_v9 }
 0x47f   :  { %4135 = vmatpush1.bf16.msra.mxu1 %v10419_v43 }
 0x480   :  { %4240 = vmatpush1.bf16.msra.mxu0 %v12832_v60  ;;  %4406 = vmatprep.subr.bf16.mxu1 %v10556_v19  ;;  %v12837_v60 = vld [vmem:[#allocation60_spill] sm:$0xff] }
 0x481   :  { %4260 = vmatprep.subr.bf16.mxu0 %v12833_v10  ;;  %v12838_v10 = vld [vmem:[#allocation61_spill] sm:$0xff] }
 0x482   :  { %4145 = vmatmul.mubr.bf16.vlgmr.msra.gmra.mrb[100].mxu1 %v12834_v37 }
 0x483   :  { %4250 = vmatmul.mubr.bf16.vlgmr.msra.gmra.mrb[100].mxu0 %v12835_v50  ;;  %4407 = vmatpush1.bf16.msra.mxu1 %v10565_v9  ;;  %v10577_v50 = vld [vmem:[%s12296_s3 + $0xd4] ss:$8 sps:$4 sm:$0xff]  }
 0x484   :  { %4261 = vmatpush1.bf16.msra.mxu0 %v12837_v60  ;;  %6641 = vmatprep.mubr.msk.bf16.mxu0 %vm3129_vm2, %v12759_v63  ;;  %12839 = vst [vmem:[#allocation22_spill] sm:$0xff] %v10577_v50  ;;  %v12841_v60 = vld [vmem:[#allocation62_spill] sm:$0xff]  ;;  %v12845_v9 = vld [vmem:[#allocation64_spill] sm:$0xff] }
 0x485   :  { %6644 = vmatprep.mubr.msk.bf16.mxu1 %vm3129_vm2, %v12759_v63  ;;  %4262 = vmatprep.subr.bf16.mxu0 %v12838_v10  ;;  %v10590_v10 = vld [vmem:[%s12296_s3 + $0xe4] ss:$8 sps:$4 sm:$0xff]  }
 0x486   :  { %4408 = vmatprep.subr.bf16.mxu1 %v10577_v50  ;;  %12842 = vst [vmem:[#allocation27_spill] sm:$0xff] %v10590_v10  ;;  %v12843_v63 = vld [vmem:[#allocation63_spill] sm:$0xff] }
 0x487   :  { %4409 = vmatpush1.bf16.msra.mxu1 %v10583_v45  ;;  %v10597_v50 = vld [vmem:[%s12296_s3 + $0xe0] ss:$8 sps:$4 sm:$0xff]   ;;  %v12847_v45 = vld [vmem:[#allocation65_spill] sm:$0xff] }
 0x488   :  { %4263 = vmatpush1.bf16.msra.mxu0 %v12841_v60  ;;  %4410 = vmatprep.subr.bf16.mxu1 %v10590_v10  ;;  %12844 = vst [vmem:[#allocation30_spill] sm:$0xff] %v10597_v50  ;;  %v10604_v60 = vld [vmem:[%s12296_s3 + $0xf4] ss:$8 sps:$4 sm:$0xff]   ;;  %v12849_v10 = vld [vmem:[#allocation66_spill] sm:$0xff] }
 0x489   :  { %4264 = vmatprep.subr.bf16.mxu0 %v12843_v63  ;;  %12846 = vst [vmem:[#allocation32_spill] sm:$0xff] %v10604_v60  ;;  %v10611_v63 = vld [vmem:[%s12296_s3 + $0xf0] ss:$8 sps:$4 sm:$0xff]  }
 0x48a   :  { %12848 = vst [vmem:[#allocation34_spill] sm:$0xff] %v10611_v63 }
 0x48b   :  { %4411 = vmatpush1.bf16.msra.mxu1 %v10597_v50  ;;  %v12851_v50 = vld [vmem:[#allocation67_spill] sm:$0xff] }
 0x48c   :  { %4265 = vmatpush1.bf16.msra.mxu0 %v12845_v9  ;;  %4412 = vmatprep.subr.bf16.mxu1 %v10604_v60  ;;  %v10618_v9 = vld [vmem:[%s12296_s3 + $0x104] ss:$8 sps:$4 sm:$0xff]   ;;  %v12853_v60 = vld [vmem:[#allocation68_spill] sm:$0xff] }
 0x48d   :  { %4266 = vmatprep.subr.bf16.mxu0 %v12847_v45  ;;  %12850 = vst [vmem:[#allocation36_spill] sm:$0xff] %v10618_v9  ;;  %v10625_v45 = vld [vmem:[%s12296_s3 + $0x100] ss:$8 sps:$4 sm:$0xff]  }
 0x48e   :  { %12852 = vst [vmem:[#allocation43_spill] sm:$0xff] %v10625_v45 }
 0x48f   :  { %4413 = vmatpush1.bf16.msra.mxu1 %v10611_v63  ;;  %v12855_v63 = vld [vmem:[#allocation69_spill] sm:$0xff] }
 0x490   :  { %4267 = vmatpush1.bf16.msra.mxu0 %v12849_v10  ;;  %4414 = vmatprep.subr.bf16.mxu1 %v10618_v9  ;;  %v10632_v10 = vld [vmem:[%s12296_s3 + $0x114] ss:$8 sps:$4 sm:$0xff]   ;;  %v12857_v9 = vld [vmem:[#allocation70_spill] sm:$0xff] }
 0x491   :  { %4268 = vmatprep.subr.bf16.mxu0 %v12851_v50  ;;  %12854 = vst [vmem:[#allocation90_spill] sm:$0xff] %v10632_v10  ;;  %v10639_v50 = vld [vmem:[%s12296_s3 + $0x110] ss:$8 sps:$4 sm:$0xff]  }
 0x492   :  { %12856 = vst [vmem:[#allocation45_spill] sm:$0xff] %v10639_v50 }
 0x493   :  { %4415 = vmatpush1.bf16.msra.mxu1 %v10625_v45  ;;  %v12859_v45 = vld [vmem:[#allocation71_spill] sm:$0xff] }
 0x494   :  { %4269 = vmatpush1.bf16.msra.mxu0 %v12853_v60  ;;  %4416 = vmatprep.subr.bf16.mxu1 %v10632_v10  ;;  %v10646_v60 = vld [vmem:[%s12296_s3 + $0x124] ss:$8 sps:$4 sm:$0xff]   ;;  %v12861_v10 = vld [vmem:[#allocation72_spill] sm:$0xff] }
 0x495   :  { %4270 = vmatprep.subr.bf16.mxu0 %v12855_v63  ;;  %12858 = vst [vmem:[#allocation91_spill] sm:$0xff] %v10646_v60  ;;  %v10653_v63 = vld [vmem:[%s12296_s3 + $0x120] ss:$8 sps:$4 sm:$0xff]  }
 0x496   :  { %12860 = vst [vmem:[#allocation47_spill] sm:$0xff] %v10653_v63 }
 0x497   :  { %4417 = vmatpush1.bf16.msra.mxu1 %v10639_v50  ;;  %v12863_v50 = vld [vmem:[#allocation73_spill] sm:$0xff] }
 0x498   :  { %4271 = vmatpush1.bf16.msra.mxu0 %v12857_v9  ;;  %4418 = vmatprep.subr.bf16.mxu1 %v10646_v60  ;;  %v10660_v9 = vld [vmem:[%s12296_s3 + $0x134] ss:$8 sps:$4 sm:$0xff]   ;;  %v12865_v60 = vld [vmem:[#allocation74_spill] sm:$0xff] }
 0x499   :  { %4272 = vmatprep.subr.bf16.mxu0 %v12859_v45  ;;  %12862 = vst [vmem:[#allocation92_spill] sm:$0xff] %v10660_v9  ;;  %v10667_v45 = vld [vmem:[%s12296_s3 + $0x130] ss:$8 sps:$4 sm:$0xff]  }
 0x49a   :  { %12864 = vst [vmem:[#allocation49_spill] sm:$0xff] %v10667_v45 }
 0x49b   :  { %4419 = vmatpush1.bf16.msra.mxu1 %v10653_v63  ;;  %v12867_v63 = vld [vmem:[#allocation75_spill] sm:$0xff] }
 0x49c   :  { %4273 = vmatpush1.bf16.msra.mxu0 %v12861_v10  ;;  %4420 = vmatprep.subr.bf16.mxu1 %v10660_v9  ;;  %v10674_v10 = vld [vmem:[%s12296_s3 + $0x144] ss:$8 sps:$4 sm:$0xff]  }
 0x49d   :  { %4274 = vmatprep.subr.bf16.mxu0 %v12863_v50  ;;  %12866 = vst [vmem:[#allocation93_spill] sm:$0xff] %v10674_v10  ;;  %v10681_v50 = vld [vmem:[%s12296_s3 + $0x140] ss:$8 sps:$4 sm:$0xff]  }
 0x49e   :  { %12868 = vst [vmem:[#allocation51_spill] sm:$0xff] %v10681_v50  ;;  %v12888_v9 = vld [vmem:[#allocation87_spill] sm:$0xff] }
 0x49f   :  { %4421 = vmatpush1.bf16.msra.mxu1 %v10667_v45  ;;  %v12886_v45 = vld [vmem:[#allocation86_spill] sm:$0xff] }
 0x4a0   :  { %4275 = vmatpush1.bf16.msra.mxu0 %v12865_v60  ;;  %4422 = vmatprep.subr.bf16.mxu1 %v10674_v10  ;;  %v10688_v60 = vld [vmem:[%s12296_s3 + $0x154] ss:$8 sps:$4 sm:$0xff]  }
 0x4a1   :  { %4276 = vmatprep.subr.bf16.mxu0 %v12867_v63  ;;  %12869 = vst [vmem:[#allocation94_spill] sm:$0xff] %v10688_v60  ;;  %v12870_v63 = vld [vmem:[#allocation78_spill] sm:$0xff]  ;;  %v12884_v10 = vld [vmem:[#allocation85_spill] sm:$0xff] }
 0x4a3   :  { %4423 = vmatpush1.bf16.msra.mxu1 %v10681_v50  ;;  %v12882_v50 = vld [vmem:[#allocation84_spill] sm:$0xff] }
 0x4a4   :  { %4277 = vmatpush1.bf16.msra.mxu0 %v9980_v35  ;;  %4424 = vmatprep.subr.bf16.mxu1 %v10688_v60  ;;  %v12880_v60 = vld [vmem:[#allocation83_spill] sm:$0xff] }
 0x4a5   :  { %4278 = vmatprep.subr.bf16.mxu0 %v9988_v2 }
 0x4a7   :  { %4425 = vmatpush1.bf16.msra.mxu1 %v12797_v41  ;;  %v12871_v41 = vld [vmem:[#allocation79_spill] sm:$0xff] }
 0x4a8   :  { %4279 = vmatpush1.bf16.msra.mxu0 %v9996_v16  ;;  %4426 = vmatprep.subr.bf16.mxu1 %v12799_v58  ;;  %v10709_v58 = vld [vmem:[%s12296_s3] ss:$8 sps:$4 sm:$0xff]  }
 0x4a9   :  { %4280 = vmatprep.subr.bf16.mxu0 %v10002_v8  ;;  %12872 = vst [vmem:[#allocation53_spill] sm:$0xff] %v10709_v58 }
 0x4ab   :  { %4427 = vmatpush1.bf16.msra.mxu1 %v12801_v56  ;;  %v12873_v56 = vld [vmem:[#allocation80_spill] sm:$0xff] }
 0x4ac   :  { %4281 = vmatpush1.bf16.msra.mxu0 %v10010_v55  ;;  %4428 = vmatprep.subr.bf16.mxu1 %v12803_v54  ;;  %v12874_v54 = vld [vmem:[#allocation6_spill] sm:$0xff] }
 0x4ad   :  { %4282 = vmatprep.subr.bf16.mxu0 %v10016_v22 }
 0x4af   :  { %4429 = vmatpush1.bf16.msra.mxu1 %v12804_v62  ;;  %v12875_v62 = vld [vmem:[#allocation81_spill] sm:$0xff] }
 0x4b0   :  { %4283 = vmatpush1.bf16.msra.mxu0 %v12870_v63  ;;  %4449 = vmatprep.subr.bf16.mxu1 %v10490_v33  ;;  %v12878_v33 = vld [vmem:[#allocation82_spill] sm:$0xff] }
 0x4b1   :  { %4307 = vmatprep.subr.bf16.mxu0 %v12871_v41 }
 0x4b2   :  { %4439 = vmatmul.mubr.bf16.vlgmr.msra.gmra.mrb[104].mxu1 %v12778_v59 }
 0x4b3   :  { %4293 = vmatmul.mubr.bf16.vlgmr.msra.gmra.mrb[100].mxu0 %v12778_v59  ;;  %4450 = vmatpush1.bf16.msra.mxu1 %v10709_v58  ;;  %v10721_v59 = vld [vmem:[%s12296_s3 + $0x14] ss:$8 sps:$4 sm:$0xff]   ;;  %v10727_v58 = vld [vmem:[%s12296_s3 + $0x10] ss:$8 sps:$4 sm:$0xff]  }
 0x4b4   :  { %4308 = vmatpush1.bf16.msra.mxu0 %v12873_v56  ;;  %6642 = vmatprep.mubr.msk.bf16.mxu0 %vm3129_vm2, %v12806_v20  ;;  %12876 = vst [vmem:[#allocation95_spill] sm:$0xff] %v10721_v59  ;;  %12877 = vst [vmem:[#allocation55_spill] sm:$0xff] %v10727_v58 }
 0x4b5   :  { %6645 = vmatprep.mubr.msk.bf16.mxu1 %vm3129_vm2, %v12874_v54  ;;  %4309 = vmatprep.subr.bf16.mxu0 %v12875_v62  ;;  %v10734_v54 = vld [vmem:[%s12296_s3 + $0x24] ss:$8 sps:$4 sm:$0xff]  }
 0x4b6   :  { %4451 = vmatprep.subr.bf16.mxu1 %v10721_v59  ;;  %12879 = vst [vmem:[#allocation57_spill] sm:$0xff] %v10734_v54  ;;  %v10741_v59 = vld [vmem:[%s12296_s3 + $0x20] ss:$8 sps:$4 sm:$0xff]  }
 0x4b7   :  { %4452 = vmatpush1.bf16.msra.mxu1 %v10727_v58  ;;  %12881 = vst [vmem:[#allocation10_spill] sm:$0xff] %v10741_v59  ;;  %v10748_v58 = vld [vmem:[%s12296_s3 + $0x34] ss:$8 sps:$4 sm:$0xff]  }
 0x4b8   :  { %4310 = vmatpush1.bf16.msra.mxu0 %v12878_v33  ;;  %4453 = vmatprep.subr.bf16.mxu1 %v10734_v54  ;;  %12883 = vst [vmem:[#allocation17_spill] sm:$0xff] %v10748_v58  ;;  %v10755_v54 = vld [vmem:[%s12296_s3 + $0x30] ss:$8 sps:$4 sm:$0xff]  }
 0x4b9   :  { %4311 = vmatprep.subr.bf16.mxu0 %v12880_v60  ;;  %12885 = vst [vmem:[#allocation4_spill] sm:$0xff] %v10755_v54 }
 0x4bb   :  { %4454 = vmatpush1.bf16.msra.mxu1 %v10741_v59  ;;  %v10762_v59 = vld [vmem:[%s12296_s3 + $0x44] ss:$8 sps:$4 sm:$0xff]  }
 0x4bc   :  { %4312 = vmatpush1.bf16.msra.mxu0 %v12882_v50  ;;  %4455 = vmatprep.subr.bf16.mxu1 %v10748_v58  ;;  %12887 = vst [vmem:[#allocation19_spill] sm:$0xff] %v10762_v59  ;;  %v10769_v58 = vld [vmem:[%s12296_s3 + $0x40] ss:$8 sps:$4 sm:$0xff]  }
 0x4bd   :  { %4313 = vmatprep.subr.bf16.mxu0 %v12884_v10  ;;  %12889 = vst [vmem:[#allocation21_spill] sm:$0xff] %v10769_v58  ;;  %v12890_v10 = vld [vmem:[#allocation88_spill] sm:$0xff] }
 0x4bf   :  { %4456 = vmatpush1.bf16.msra.mxu1 %v10755_v54  ;;  %v10776_v54 = vld [vmem:[%s12296_s3 + $0x54] ss:$8 sps:$4 sm:$0xff]  }
 0x4c0   :  { %4314 = vmatpush1.bf16.msra.mxu0 %v12886_v45  ;;  %4457 = vmatprep.subr.bf16.mxu1 %v10762_v59  ;;  %12891 = vst [vmem:[#allocation23_spill] sm:$0xff] %v10776_v54  ;;  %v12892_v45 = vld [vmem:[#allocation89_spill] sm:$0xff] }
 0x4c1   :  { %4315 = vmatprep.subr.bf16.mxu0 %v12888_v9  ;;  %v10783_v59 = vld [vmem:[%s12296_s3 + $0x50] ss:$8 sps:$4 sm:$0xff]  }
 0x4c2   :  { %12893 = vst [vmem:[#allocation26_spill] sm:$0xff] %v10783_v59 }
 0x4c3   :  { %4458 = vmatpush1.bf16.msra.mxu1 %v10769_v58  ;;  %v10790_v58 = vld [vmem:[%s12296_s3 + $0x64] ss:$8 sps:$4 sm:$0xff]  }
 0x4c4   :  { %4316 = vmatpush1.bf16.msra.mxu0 %v12890_v10  ;;  %4459 = vmatprep.subr.bf16.mxu1 %v10776_v54  ;;  %12894 = vst [vmem:[#allocation29_spill] sm:$0xff] %v10790_v58  ;;  %v10797_v54 = vld [vmem:[%s12296_s3 + $0x60] ss:$8 sps:$4 sm:$0xff]  }
 0x4c5   :  { %4317 = vmatprep.subr.bf16.mxu0 %v12892_v45  ;;  %12895 = vst [vmem:[#allocation31_spill] sm:$0xff] %v10797_v54 }
 0x4c7   :  { %4460 = vmatpush1.bf16.msra.mxu1 %v10783_v59  ;;  %v10804_v59 = vld [vmem:[%s12296_s3 + $0x74] ss:$8 sps:$4 sm:$0xff]  }
 0x4c8   :  { %4318 = vmatpush1.bf16.msra.mxu0 %v10138_v46  ;;  %4461 = vmatprep.subr.bf16.mxu1 %v10790_v58  ;;  %12896 = vst [vmem:[#allocation33_spill] sm:$0xff] %v10804_v59  ;;  %v10811_v58 = vld [vmem:[%s12296_s3 + $0x70] ss:$8 sps:$4 sm:$0xff]  }
 0x4c9   :  { %4319 = vmatprep.subr.bf16.mxu0 %v10144_v18  ;;  %12897 = vst [vmem:[#allocation35_spill] sm:$0xff] %v10811_v58 }
 0x4cb   :  { %4462 = vmatpush1.bf16.msra.mxu1 %v10797_v54  ;;  %v10818_v54 = vld [vmem:[%s12296_s3 + $0x84] ss:$8 sps:$4 sm:$0xff]  }
 0x4cc   :  { %4320 = vmatpush1.bf16.msra.mxu0 %v10152_v36  ;;  %4463 = vmatprep.subr.bf16.mxu1 %v10804_v59  ;;  %12898 = vst [vmem:[#allocation37_spill] sm:$0xff] %v10818_v54  ;;  %v10825_v59 = vld [vmem:[%s12296_s3 + $0x80] ss:$8 sps:$4 sm:$0xff]  }
 0x4cd   :  { %4321 = vmatprep.subr.bf16.mxu0 %v10158_v5  ;;  %12899 = vst [vmem:[#allocation38_spill] sm:$0xff] %v10825_v59 }
 0x4cf   :  { %4464 = vmatpush1.bf16.msra.mxu1 %v10811_v58  ;;  %v10832_v58 = vld [vmem:[%s12296_s3 + $0x94] ss:$8 sps:$4 sm:$0xff]  }
 0x4d0   :  { %4322 = vmatpush1.bf16.msra.mxu0 %v10166_v25  ;;  %4465 = vmatprep.subr.bf16.mxu1 %v10818_v54  ;;  %12900 = vst [vmem:[#allocation39_spill] sm:$0xff] %v10832_v58  ;;  %v10839_v54 = vld [vmem:[%s12296_s3 + $0x90] ss:$8 sps:$4 sm:$0xff]  }
 0x4d1   :  { %4323 = vmatprep.subr.bf16.mxu0 %v10172_v27  ;;  %12901 = vst [vmem:[#allocation40_spill] sm:$0xff] %v10839_v54 }
 0x4d3   :  { %4466 = vmatpush1.bf16.msra.mxu1 %v10825_v59  ;;  %v10846_v59 = vld [vmem:[%s12296_s3 + $0xa4] ss:$8 sps:$4 sm:$0xff]  }
 0x4d4   :  { %4324 = vmatpush1.bf16.msra.mxu0 %v12792_v48  ;;  %4467 = vmatprep.subr.bf16.mxu1 %v10832_v58  ;;  %12902 = vst [vmem:[#allocation41_spill] sm:$0xff] %v10846_v59  ;;  %v10853_v58 = vld [vmem:[%s12296_s3 + $0xa0] ss:$8 sps:$4 sm:$0xff]  }
 0x4d5   :  { %4325 = vmatprep.subr.bf16.mxu0 %v12794_v30  ;;  %12903 = vst [vmem:[#allocation100_spill] sm:$0xff] %v10853_v58 }
 0x4d7   :  { %4468 = vmatpush1.bf16.msra.mxu1 %v10839_v54  ;;  %v10860_v54 = vld [vmem:[%s12296_s3 + $0xb4] ss:$8 sps:$4 sm:$0xff]  }
 0x4d8   :  { %4326 = vmatpush1.bf16.msra.mxu0 %v12796_v47  ;;  %4469 = vmatprep.subr.bf16.mxu1 %v10846_v59  ;;  %12904 = vst [vmem:[#allocation42_spill] sm:$0xff] %v10860_v54  ;;  %v10867_v59 = vld [vmem:[%s12296_s3 + $0xb0] ss:$8 sps:$4 sm:$0xff]  }
 0x4d9   :  { %4327 = vmatprep.subr.bf16.mxu0 %v12798_v15  ;;  %12905 = vst [vmem:[#allocation101_spill] sm:$0xff] %v10867_v59 }
 0x4db   :  { %4470 = vmatpush1.bf16.msra.mxu1 %v10853_v58  ;;  %v10874_v58 = vld [vmem:[%s12296_s3 + $0x184] ss:$8 sps:$4 sm:$0xff]  }
 0x4dc   :  { %4328 = vmatpush1.bf16.msra.mxu0 %v12800_v17  ;;  %4471 = vmatprep.subr.bf16.mxu1 %v10860_v54  ;;  %12906 = vst [vmem:[#allocation44_spill] sm:$0xff] %v10874_v58  ;;  %v10883_v54 = vld [vmem:[%s12296_s3 + $0x180] ss:$8 sps:$4 sm:$0xff]  }
 0x4dd   :  { %4329 = vmatprep.subr.bf16.mxu0 %v12802_v21  ;;  %12907 = vst [vmem:[#allocation46_spill] sm:$0xff] %v10883_v54 }
 0x4df   :  { %4472 = vmatpush1.bf16.msra.mxu1 %v10867_v59  ;;  %v12908_v59 = vld [vmem:[#allocation12_spill] sm:$0xff] }
 0x4e0   :  { %4330 = vmatpush1.bf16.msra.mxu0 %v10222_v40  ;;  %4492 = vmatprep.subr.bf16.mxu1 %v10874_v58  ;;  %v10908_v58 = vld [vmem:[%s12296_s3 + $0x1a4] ss:$8 sps:$4 sm:$0xff]  }
 0x4e1   :  { %4357 = vmatprep.subr.bf16.mxu0 %v10228_v39  ;;  %12911 = vst [vmem:[#allocation52_spill] sm:$0xff] %v10908_v58 }
 0x4e2   :  { %4482 = vmatmul.mubr.bf16.vlgmr.msra.gmra.mrb[104].mxu1 %v12757_v4  ;;  %v10895_v4 = vld [vmem:[%s12296_s3 + $0x194] ss:$8 sps:$4 sm:$0xff]  }
 0x4e3   :  { %4340 = vmatmul.mubr.bf16.vlgmr.msra.gmra.mrb[100].mxu0 %v12834_v37  ;;  %4493 = vmatpush1.bf16.msra.mxu1 %v10883_v54  ;;  %12909 = vst [vmem:[#allocation48_spill] sm:$0xff] %v10895_v4  ;;  %v10901_v54 = vld [vmem:[%s12296_s3 + $0x190] ss:$8 sps:$4 sm:$0xff]  }
 0x4e4   :  { %4358 = vmatpush1.bf16.msra.mxu0 %v10245_v6  ;;  %6643 = vmatprep.mubr.msk.bf16.mxu0 %vm3129_vm2, %v12908_v59  ;;  %12910 = vst [vmem:[#allocation50_spill] sm:$0xff] %v10901_v54 }
 0x4e5   :  { %6646 = vmatprep.mubr.msk.bf16.mxu1 %vm3129_vm2, %v12806_v20  ;;  %4359 = vmatprep.subr.bf16.mxu0 %v10254_v23 }
 0x4e6   :  { %4494 = vmatprep.subr.bf16.mxu1 %v10895_v4  ;;  %v10915_v4 = vld [vmem:[%s12296_s3 + $0x1a0] ss:$8 sps:$4 sm:$0xff]  }
 0x4e7   :  { %4495 = vmatpush1.bf16.msra.mxu1 %v10901_v54  ;;  %12912 = vst [vmem:[#allocation54_spill] sm:$0xff] %v10915_v4  ;;  %v10922_v54 = vld [vmem:[%s12296_s3 + $0x1b4] ss:$8 sps:$4 sm:$0xff]  }
 0x4e8   :  { %4360 = vmatpush1.bf16.msra.mxu0 %v10268_v57  ;;  %4496 = vmatprep.subr.bf16.mxu1 %v10908_v58  ;;  %12913 = vst [vmem:[#allocation56_spill] sm:$0xff] %v10922_v54  ;;  %v10929_v58 = vld [vmem:[%s12296_s3 + $0x1b0] ss:$8 sps:$4 sm:$0xff]  }
 0x4e9   :  { %4361 = vmatprep.subr.bf16.mxu0 %v10277_v61  ;;  %12914 = vst [vmem:[#allocation58_spill] sm:$0xff] %v10929_v58 }
 0x4eb   :  { %4497 = vmatpush1.bf16.msra.mxu1 %v10915_v4  ;;  %v10936_v4 = vld [vmem:[%s12296_s3 + $0x1c4] ss:$8 sps:$4 sm:$0xff]  }
 0x4ec   :  { %4362 = vmatpush1.bf16.msra.mxu0 %v10288_v0  ;;  %4498 = vmatprep.subr.bf16.mxu1 %v10922_v54  ;;  %12915 = vst [vmem:[#allocation59_spill] sm:$0xff] %v10936_v4  ;;  %v10943_v54 = vld [vmem:[%s12296_s3 + $0x1c0] ss:$8 sps:$4 sm:$0xff]  }
 0x4ed   :  { %4363 = vmatprep.subr.bf16.mxu0 %v10296_v53  ;;  %12916 = vst [vmem:[#allocation3_spill] sm:$0xff] %v10943_v54 }
 0x4ef   :  { %4499 = vmatpush1.bf16.msra.mxu1 %v10929_v58  ;;  %v10950_v58 = vld [vmem:[%s12296_s3 + $0x1d4] ss:$8 sps:$4 sm:$0xff]  }
 0x4f0   :  { %4364 = vmatpush1.bf16.msra.mxu0 %v10304_v13  ;;  %4500 = vmatprep.subr.bf16.mxu1 %v10936_v4  ;;  %12917 = vst [vmem:[#allocation60_spill] sm:$0xff] %v10950_v58 }
 0x4f1   :  { %4365 = vmatprep.subr.bf16.mxu0 %v10310_v31 }
 0x4f3   :  { %4501 = vmatpush1.bf16.msra.mxu1 %v10943_v54  ;;  %v10960_v54 = vld [vmem:[%s12296_s3 + $0x1d0] ss:$8 sps:$4 sm:$0xff]  }
 0x4f4   :  { %4366 = vmatpush1.bf16.msra.mxu0 %v10318_v24  ;;  %4502 = vmatprep.subr.bf16.mxu1 %v10950_v58  ;;  %12918 = vst [vmem:[#allocation61_spill] sm:$0xff] %v10960_v54  ;;  %v10970_v58 = vld [vmem:[%s12296_s3 + $0x1e4] ss:$8 sps:$4 sm:$0xff]  }
 0x4f5   :  { %4367 = vmatprep.subr.bf16.mxu0 %v10324_v12  ;;  %12919 = vst [vmem:[#allocation62_spill] sm:$0xff] %v10970_v58 }
 0x4f6   :  { %v3914_v4 = vpop.f32.mrb[96].mxu0 }
 0x4f7   :  { %v10955_v31 = vadd.f32 %v3914_v4, %v10518_v28  ;;  %v3916_v13 = vpop.f32.mrb[97].mxu0  ;;  %4503 = vmatpush1.bf16.msra.mxu1 %v10960_v54  ;;  %v10985_v54 = vld [vmem:[%s12296_s3 + $0x1e0] ss:$8 sps:$4 sm:$0xff]  }
 0x4f8   :  { %v10964_v24 = vadd.f32 %v3916_v13, %v10521_v34  ;;  %v3918_v53 = vpop.f32.mrb[98].mxu0  ;;  %4368 = vmatpush1.bf16.msra.mxu0 %v10332_v1  ;;  %4504 = vmatprep.subr.bf16.mxu1 %v10970_v58  ;;  %v12957_v13 = vld [vmem:[#allocation96_spill] sm:$0xff] }
 0x4f9   :  { %v10974_v28 = vadd.f32 %v3918_v53, %v10523_v26  ;;  %v3920_v4 = vpop.f32.mrb[99].mxu0  ;;  %4369 = vmatprep.subr.bf16.mxu0 %v10338_v42  ;;  %v10994_v26 = vld [vmem:[%s12296_s3 + $0x1f4] ss:$8 sps:$4 sm:$0xff]  }
 0x4fa   :  { %v10980_v34 = vadd.f32 %v3920_v4, %v10527_v3  ;;  %12920 = vst [vmem:[#allocation63_spill] sm:$0xff] %v10994_v26  ;;  %v11001_v3 = vld [vmem:[%s12296_s3 + $0x1f0] ss:$8 sps:$4 sm:$0xff]   ;;  %v11008_v4 = vld [vmem:[%s12296_s3 + $0x204] ss:$8 sps:$4 sm:$0xff]  }
 0x4fb   :  { %4505 = vmatpush1.bf16.msra.mxu1 %v10985_v54  ;;  %12921 = vst [vmem:[#allocation64_spill] sm:$0xff] %v11001_v3  ;;  %12922 = vst [vmem:[#allocation65_spill] sm:$0xff] %v11008_v4  ;;  %v12955_v53 = vld [vmem:[#allocation57_spill] sm:$0xff] }
 0x4fc   :  { %4370 = vmatpush1.bf16.msra.mxu0 %v10346_v32  ;;  %4506 = vmatprep.subr.bf16.mxu1 %v10994_v26 }
 0x4fd   :  { %4371 = vmatprep.subr.bf16.mxu0 %v10352_v44 }
 0x4ff   :  { %4507 = vmatpush1.bf16.msra.mxu1 %v11001_v3 }
 0x500   :  { %4372 = vmatpush1.bf16.msra.mxu0 %v12822_v7  ;;  %4508 = vmatprep.subr.bf16.mxu1 %v11008_v4 }
 0x501   :  { %4373 = vmatprep.subr.bf16.mxu0 %v12824_v29 }
 0x503   :  { %4509 = vmatpush1.bf16.msra.mxu1 %v9980_v35  ;;  %v12923_v35 = vld [vmem:[#allocation11_spill] sm:$0xff] }
 0x504   :  { %4374 = vmatpush1.bf16.msra.mxu0 %v10374_v51  ;;  %4510 = vmatprep.subr.bf16.mxu1 %v9988_v2  ;;  %v12924_v2 = vld [vmem:[#allocation20_spill] sm:$0xff] }
 0x505   :  { %4375 = vmatprep.subr.bf16.mxu0 %v10380_v38 }
 0x507   :  { %4511 = vmatpush1.bf16.msra.mxu1 %v9996_v16  ;;  %v12925_v16 = vld [vmem:[#allocation22_spill] sm:$0xff] }
 0x508   :  { %4376 = vmatpush1.bf16.msra.mxu0 %v10390_v52  ;;  %4512 = vmatprep.subr.bf16.mxu1 %v10002_v8  ;;  %v12926_v8 = vld [vmem:[#allocation24_spill] sm:$0xff] }
 0x509   :  { %4377 = vmatprep.subr.bf16.mxu0 %v10397_v11 }
 0x50b   :  { %4513 = vmatpush1.bf16.msra.mxu1 %v10010_v55  ;;  %v12927_v55 = vld [vmem:[#allocation27_spill] sm:$0xff] }
 0x50c   :  { %4378 = vmatpush1.bf16.msra.mxu0 %v10405_v49  ;;  %4514 = vmatprep.subr.bf16.mxu1 %v10016_v22  ;;  %v12928_v22 = vld [vmem:[#allocation30_spill] sm:$0xff] }
 0x50d   :  { %4379 = vmatprep.subr.bf16.mxu0 %v10411_v14 }
 0x50f   :  { %4515 = vmatpush1.bf16.msra.mxu1 %v12870_v63  ;;  %v12929_v63 = vld [vmem:[#allocation85_spill] sm:$0xff] }
 0x510   :  { %4380 = vmatpush1.bf16.msra.mxu0 %v10419_v43  ;;  %4539 = vmatprep.subr.bf16.mxu1 %v12871_v41  ;;  %v12930_v41 = vld [vmem:[#allocation32_spill] sm:$0xff] }
 0x511   :  { %4645 = vmatprep.subr.bf16.mxu0 %v10556_v19 }
 0x512   :  { %4525 = vmatmul.mubr.bf16.vlgmr.msra.gmra.mrb[104].mxu1 %v12834_v37 }
 0x513   :  { %4390 = vmatmul.mubr.bf16.vlgmr.msra.gmra.mrb[100].mxu0 %v12923_v35  ;;  %4540 = vmatpush1.bf16.msra.mxu1 %v12873_v56  ;;  %v12931_v56 = vld [vmem:[#allocation86_spill] sm:$0xff] }
 0x514   :  { %6647 = vmatprep.mubr.msk.bf16.mxu1 %vm3129_vm2, %v12908_v59  ;;  %4646 = vmatpush1.bf16.msra.mxu0 %v12924_v2 }
 0x515   :  { %6649 = vmatprep.mubr.msk.bf16.mxu0 %vm3129_vm2, %v12806_v20  ;;  %4541 = vmatprep.subr.bf16.mxu1 %v12875_v62  ;;  %v12932_v62 = vld [vmem:[#allocation34_spill] sm:$0xff] }
 0x516   :  { %4647 = vmatprep.subr.bf16.mxu0 %v12925_v16 }
 0x517   :  { %4542 = vmatpush1.bf16.msra.mxu1 %v12878_v33  ;;  %v12933_v33 = vld [vmem:[#allocation36_spill] sm:$0xff] }
 0x518   :  { %4648 = vmatpush1.bf16.msra.mxu0 %v12926_v8  ;;  %4543 = vmatprep.subr.bf16.mxu1 %v12880_v60  ;;  %v12934_v60 = vld [vmem:[#allocation43_spill] sm:$0xff] }
 0x519   :  { %4649 = vmatprep.subr.bf16.mxu0 %v12927_v55 }
 0x51b   :  { %4544 = vmatpush1.bf16.msra.mxu1 %v12882_v50  ;;  %v12935_v50 = vld [vmem:[#allocation90_spill] sm:$0xff] }
 0x51c   :  { %4650 = vmatpush1.bf16.msra.mxu0 %v12928_v22  ;;  %4545 = vmatprep.subr.bf16.mxu1 %v12929_v63  ;;  %v12936_v63 = vld [vmem:[#allocation45_spill] sm:$0xff] }
 0x51d   :  { %4651 = vmatprep.subr.bf16.mxu0 %v12930_v41 }
 0x51f   :  { %4546 = vmatpush1.bf16.msra.mxu1 %v12931_v56  ;;  %v12937_v56 = vld [vmem:[#allocation91_spill] sm:$0xff] }
 0x520   :  { %4652 = vmatpush1.bf16.msra.mxu0 %v12932_v62  ;;  %4547 = vmatprep.subr.bf16.mxu1 %v12888_v9  ;;  %v12938_v9 = vld [vmem:[#allocation47_spill] sm:$0xff] }
 0x521   :  { %4653 = vmatprep.subr.bf16.mxu0 %v12933_v33 }
 0x523   :  { %4548 = vmatpush1.bf16.msra.mxu1 %v12890_v10  ;;  %v12939_v10 = vld [vmem:[#allocation92_spill] sm:$0xff] }
 0x524   :  { %4654 = vmatpush1.bf16.msra.mxu0 %v12934_v60  ;;  %4549 = vmatprep.subr.bf16.mxu1 %v12892_v45  ;;  %v12940_v45 = vld [vmem:[#allocation49_spill] sm:$0xff] }
 0x525   :  { %4655 = vmatprep.subr.bf16.mxu0 %v12935_v50 }
 0x527   :  { %4550 = vmatpush1.bf16.msra.mxu1 %v10138_v46  ;;  %v12941_v46 = vld [vmem:[#allocation93_spill] sm:$0xff] }
 0x528   :  { %4656 = vmatpush1.bf16.msra.mxu0 %v12936_v63  ;;  %4551 = vmatprep.subr.bf16.mxu1 %v10144_v18  ;;  %v12942_v18 = vld [vmem:[#allocation51_spill] sm:$0xff] }
 0x529   :  { %4657 = vmatprep.subr.bf16.mxu0 %v12937_v56 }
 0x52b   :  { %4552 = vmatpush1.bf16.msra.mxu1 %v10152_v36  ;;  %v12943_v36 = vld [vmem:[#allocation94_spill] sm:$0xff] }
 0x52c   :  { %4658 = vmatpush1.bf16.msra.mxu0 %v12938_v9  ;;  %4553 = vmatprep.subr.bf16.mxu1 %v10158_v5  ;;  %v11074_v5 = vld [vmem:[%s12296_s3 + $0x150] ss:$8 sps:$4 sm:$0xff]  }
 0x52d   :  { %4659 = vmatprep.subr.bf16.mxu0 %v12939_v10  ;;  %12944 = vst [vmem:[#allocation66_spill] sm:$0xff] %v11074_v5 }
 0x52f   :  { %4554 = vmatpush1.bf16.msra.mxu1 %v10166_v25  ;;  %v11088_v25 = vld [vmem:[%s12296_s3 + $0x160] ss:$8 sps:$4 sm:$0xff]  }
 0x530   :  { %4660 = vmatpush1.bf16.msra.mxu0 %v12940_v45  ;;  %4555 = vmatprep.subr.bf16.mxu1 %v10172_v27  ;;  %v11081_v27 = vld [vmem:[%s12296_s3 + $0x164] ss:$8 sps:$4 sm:$0xff]   ;;  %12946 = vst [vmem:[#allocation68_spill] sm:$0xff] %v11088_v25 }
 0x531   :  { %4661 = vmatprep.subr.bf16.mxu0 %v12941_v46  ;;  %12945 = vst [vmem:[#allocation67_spill] sm:$0xff] %v11081_v27 }
 0x533   :  { %4556 = vmatpush1.bf16.msra.mxu1 %v12792_v48  ;;  %v11095_v48 = vld [vmem:[%s12296_s3 + $0x174] ss:$8 sps:$4 sm:$0xff]  }
 0x534   :  { %4662 = vmatpush1.bf16.msra.mxu0 %v12942_v18  ;;  %4557 = vmatprep.subr.bf16.mxu1 %v12794_v30  ;;  %12947 = vst [vmem:[#allocation69_spill] sm:$0xff] %v11095_v48  ;;  %v11102_v30 = vld [vmem:[%s12296_s3 + $0x170] ss:$8 sps:$4 sm:$0xff]  }
 0x535   :  { %4663 = vmatprep.subr.bf16.mxu0 %v12943_v36  ;;  %12948 = vst [vmem:[#allocation70_spill] sm:$0xff] %v11102_v30 }
 0x537   :  { %4558 = vmatpush1.bf16.msra.mxu1 %v12796_v47  ;;  %v12949_v47 = vld [vmem:[#allocation18_spill] sm:$0xff] }
 0x538   :  { %4664 = vmatpush1.bf16.msra.mxu0 %v11074_v5  ;;  %4559 = vmatprep.subr.bf16.mxu1 %v12798_v15  ;;  %v12950_v15 = vld [vmem:[#allocation14_spill] sm:$0xff] }
 0x539   :  { %4665 = vmatprep.subr.bf16.mxu0 %v11081_v27 }
 0x53b   :  { %4560 = vmatpush1.bf16.msra.mxu1 %v12800_v17  ;;  %v12952_v17 = vld [vmem:[#allocation8_spill] sm:$0xff] }
 0x53c   :  { %4666 = vmatpush1.bf16.msra.mxu0 %v11088_v25  ;;  %4561 = vmatprep.subr.bf16.mxu1 %v12802_v21  ;;  %v12953_v21 = vld [vmem:[#allocation95_spill] sm:$0xff] }
 0x53d   :  { %4667 = vmatprep.subr.bf16.mxu0 %v11095_v48 }
 0x53f   :  { %4562 = vmatpush1.bf16.msra.mxu1 %v10222_v40  ;;  %v12951_v40 = vld [vmem:[#allocation53_spill] sm:$0xff] }
 0x540   :  { %4668 = vmatpush1.bf16.msra.mxu0 %v11102_v30  ;;  %4589 = vmatprep.subr.bf16.mxu1 %v10228_v39  ;;  %v12954_v39 = vld [vmem:[#allocation55_spill] sm:$0xff] }
 0x541   :  { %4688 = vmatprep.subr.bf16.mxu0 %v12949_v47 }
 0x542   :  { %4572 = vmatmul.mubr.bf16.vlgmr.msra.gmra.mrb[104].mxu1 %v12923_v35 }
 0x543   :  { %4678 = vmatmul.mubr.bf16.vlgmr.msra.gmra.mrb[104].mxu0 %v12834_v37  ;;  %4590 = vmatpush1.bf16.msra.mxu1 %v10245_v6  ;;  %v12956_v6 = vld [vmem:[#allocation10_spill] sm:$0xff]  ;;  %v12958_v37 = vld [vmem:[#allocation17_spill] sm:$0xff] }
 0x544   :  { %6648 = vmatprep.mubr.msk.bf16.mxu1 %vm3129_vm2, %v12950_v15  ;;  %4689 = vmatpush1.bf16.msra.mxu0 %v12951_v40 }
 0x545   :  { %6650 = vmatprep.mubr.msk.bf16.mxu0 %vm3129_vm2, %v12952_v17  ;;  %4591 = vmatprep.subr.bf16.mxu1 %v10254_v23  ;;  %v12959_v17 = vld [vmem:[#allocation97_spill] sm:$0xff]  ;;  %v12960_v23 = vld [vmem:[#allocation4_spill] sm:$0xff] }
 0x546   :  { %4690 = vmatprep.subr.bf16.mxu0 %v12953_v21  ;;  %v12961_v21 = vld [vmem:[#allocation98_spill] sm:$0xff] }
 0x547   :  { %4592 = vmatpush1.bf16.msra.mxu1 %v10268_v57  ;;  %v12962_v57 = vld [vmem:[#allocation19_spill] sm:$0xff] }
 0x548   :  { %4691 = vmatpush1.bf16.msra.mxu0 %v12954_v39  ;;  %4593 = vmatprep.subr.bf16.mxu1 %v10277_v61  ;;  %v12963_v39 = vld [vmem:[#allocation99_spill] sm:$0xff]  ;;  %v12964_v61 = vld [vmem:[#allocation21_spill] sm:$0xff] }
 0x549   :  { %4692 = vmatprep.subr.bf16.mxu0 %v12955_v53 }
 0x54b   :  { %4594 = vmatpush1.bf16.msra.mxu1 %v10288_v0 }
 0x54c   :  { %4693 = vmatpush1.bf16.msra.mxu0 %v12956_v6  ;;  %4595 = vmatprep.subr.bf16.mxu1 %v12957_v13  ;;  %v12965_v6 = vld [vmem:[#allocation23_spill] sm:$0xff] }
 0x54d   :  { %4694 = vmatprep.subr.bf16.mxu0 %v12958_v37 }
 0x54f   :  { %4596 = vmatpush1.bf16.msra.mxu1 %v12959_v17  ;;  %v12967_v17 = vld [vmem:[#allocation26_spill] sm:$0xff] }
 0x550   :  { %4695 = vmatpush1.bf16.msra.mxu0 %v12960_v23  ;;  %4597 = vmatprep.subr.bf16.mxu1 %v12961_v21  ;;  %v11137_v21 = vld [vmem:[%s12297_s4] ss:$0 sm:$0xff]  ;;  %v12971_v23 = vld [vmem:[#allocation31_spill] sm:$0xff] }
 0x551   :  { %4696 = vmatprep.subr.bf16.mxu0 %v12962_v57  ;;  %12966 = vst [vmem:[#allocation71_spill] sm:$0xff] %v11137_v21  ;;  %v12969_v57 = vld [vmem:[#allocation29_spill] sm:$0xff] }
 0x553   :  { %4598 = vmatpush1.bf16.msra.mxu1 %v12963_v39 }
 0x554   :  { %4697 = vmatpush1.bf16.msra.mxu0 %v12964_v61  ;;  %4599 = vmatprep.subr.bf16.mxu1 %v10324_v12  ;;  %v12968_v12 = vmax.f32 %v10955_v31, %v10964_v24 }
 0x555   :  { %v4146_v0 = vpop.f32.mrb[100].mxu1  ;;  %4698 = vmatprep.subr.bf16.mxu0 %v12965_v6 }
 0x556   :  { %v4148_v13 = vpop.f32.mrb[101].mxu1 }
 0x557   :  { %v4159_v53 = vmax.f32 %v4146_v0, %v4148_v13  ;;  %v4150_v37 = vpop.f32.mrb[102].mxu1  ;;  %4600 = vmatpush1.bf16.msra.mxu1 %v10332_v1  ;;  %v12970_v1 = vmax.f32 %v10974_v28, %v10980_v34  ;;  %v12975_v34 = vld [vmem:[#allocation37_spill] sm:$0xff] }
 0x558   :  { %4699 = vmatpush1.bf16.msra.mxu0 %v12967_v17  ;;  %v4152_v39 = vpop.f32.mrb[103].mxu1  ;;  %4601 = vmatprep.subr.bf16.mxu1 %v10338_v42  ;;  %v12972_v17 = vld [vmem:[#allocation33_spill] sm:$0xff] }
 0x559   :  { %v4161_v61 = vmax.f32 %v12968_v12, %v4159_v53  ;;  %v4160_v6 = vmax.f32 %v4150_v37, %v4152_v39  ;;  %4700 = vmatprep.subr.bf16.mxu0 %v12969_v57  ;;  %v12973_v37 = vld [vmem:[#allocation35_spill] sm:$0xff]  ;;  %v12978_v53 = vld [vmem:[#allocation40_spill] sm:$0xff]  ;;  %v12990_v39 = vld [vmem:[#allocation54_spill] sm:$0xff] }
 0x55a   :  { %v12991_v12 = vld [vmem:[#allocation56_spill] sm:$0xff] }
 0x55b   :  { %v4169_v0 = vadd.f32 %v11137_v21, %v4161_v61  ;;  %v4162_v13 = vmax.f32 %v12970_v1, %v4160_v6  ;;  %4602 = vmatpush1.bf16.msra.mxu1 %v10346_v32  ;;  %v12976_v32 = vld [vmem:[#allocation38_spill] sm:$0xff]  ;;  %v12984_v6 = vld [vmem:[#allocation13_spill] sm:$0xff]  ;;  %v12989_v61 = vld [vmem:[#allocation52_spill] sm:$0xff] }
 0x55c   :  { %4701 = vmatpush1.bf16.msra.mxu0 %v12971_v23  ;;  %4603 = vmatprep.subr.bf16.mxu1 %v10352_v44  ;;  %v12977_v44 = vld [vmem:[#allocation39_spill] sm:$0xff] }
 0x55d   :  { %v4170_v42 = vadd.f32 %v11137_v21, %v4162_v13  ;;  %4702 = vmatprep.subr.bf16.mxu0 %v12972_v17  ;;  %v4171_v31 = vmax.f32 %v4169_v0, 0.0  ;;  %v12992_v0 = vld [vmem:[#allocation58_spill] sm:$0xff]  ;;  %v12993_v1 = vld [vmem:[#allocation59_spill] sm:$0xff] }
 0x55e   :  { %v12994_v13 = vld [vmem:[#allocation3_spill] sm:$0xff] }
 0x55f   :  { %v4172_v24 = vmax.f32 %v4170_v42, 0.0  ;;  %4604 = vmatpush1.bf16.msra.mxu1 %v12822_v7  ;;  %v12979_v7 = vld [vmem:[#allocation41_spill] sm:$0xff]  ;;  %v12995_v42 = vld [vmem:[#allocation60_spill] sm:$0xff]  ;;  %v11239_v21 = vld [vmem:[%s12296_s3 + $0x224] ss:$8 sps:$4 sm:$0xff]  }
 0x560   :  { %4703 = vmatpush1.bf16.msra.mxu0 %v12973_v37  ;;  %4605 = vmatprep.subr.bf16.mxu1 %v12824_v29  ;;  %v12980_v29 = vld [vmem:[#allocation100_spill] sm:$0xff]  ;;  %13000 = vst [vmem:[#allocation78_spill] sm:$0xff] %v11239_v21 }
 0x561   :  { %v11157_v28 = vpack.c.bf16 %v4172_v24, %v4171_v31  ;;  %4704 = vmatprep.subr.bf16.mxu0 %v12975_v34  ;;  %v12996_v31 = vld [vmem:[#allocation61_spill] sm:$0xff]  ;;  %v11218_v24 = vld [vmem:[%s12296_s3 + $0x200] ss:$8 sps:$4 sm:$0xff]  }
 0x562   :  { %12997 = vst [vmem:[#allocation73_spill] sm:$0xff] %v11218_v24 }
 0x563   :  { %12974 = vst [vmem:[#allocation72_spill] sm:$0xff] %v11157_v28  ;;  %4606 = vmatpush1.bf16.msra.mxu1 %v10374_v51  ;;  %v12981_v51 = vld [vmem:[#allocation42_spill] sm:$0xff]  ;;  %v11232_v28 = vld [vmem:[%s12296_s3 + $0x210] ss:$8 sps:$4 sm:$0xff]  }
 0x564   :  { %4705 = vmatpush1.bf16.msra.mxu0 %v12976_v32  ;;  %4607 = vmatprep.subr.bf16.mxu1 %v10380_v38  ;;  %v12982_v38 = vld [vmem:[#allocation101_spill] sm:$0xff]  ;;  %12999 = vst [vmem:[#allocation75_spill] sm:$0xff] %v11232_v28 }
 0x565   :  { %4706 = vmatprep.subr.bf16.mxu0 %v12977_v44 }
 0x567   :  { %4608 = vmatpush1.bf16.msra.mxu1 %v10390_v52  ;;  %v12983_v52 = vld [vmem:[#allocation44_spill] sm:$0xff] }
 0x568   :  { %4707 = vmatpush1.bf16.msra.mxu0 %v12978_v53  ;;  %4609 = vmatprep.subr.bf16.mxu1 %v10397_v11  ;;  %v12985_v11 = vld [vmem:[#allocation7_spill] sm:$0xff] }
 0x569   :  { %4708 = vmatprep.subr.bf16.mxu0 %v12979_v7 }
 0x56b   :  { %4610 = vmatpush1.bf16.msra.mxu1 %v10405_v49  ;;  %v12986_v49 = vld [vmem:[#allocation46_spill] sm:$0xff] }
 0x56c   :  { %4709 = vmatpush1.bf16.msra.mxu0 %v12980_v29  ;;  %4611 = vmatprep.subr.bf16.mxu1 %v10411_v14  ;;  %v12987_v14 = vld [vmem:[#allocation48_spill] sm:$0xff] }
 0x56d   :  { %4710 = vmatprep.subr.bf16.mxu0 %v12981_v51 }
 0x56f   :  { %4612 = vmatpush1.bf16.msra.mxu1 %v10419_v43  ;;  %v12988_v43 = vld [vmem:[#allocation50_spill] sm:$0xff] }
 0x570   :  { %4711 = vmatpush1.bf16.msra.mxu0 %v12982_v38  ;;  %4877 = vmatprep.subr.bf16.mxu1 %v10556_v19 }
 0x571   :  { %4731 = vmatprep.subr.bf16.mxu0 %v12983_v52 }
 0x572   :  { %4622 = vmatmul.mubr.bf16.vlgmr.msra.gmra.mrb[104].mxu1 %v12984_v6 }
 0x573   :  { %4721 = vmatmul.mubr.bf16.vlgmr.msra.gmra.mrb[104].mxu0 %v12985_v11  ;;  %4878 = vmatpush1.bf16.msra.mxu1 %v12924_v2  ;;  %v11225_v11 = vld [vmem:[%s12296_s3 + $0x214] ss:$8 sps:$4 sm:$0xff]  }
 0x574   :  { %4732 = vmatpush1.bf16.msra.mxu0 %v12986_v49  ;;  %6651 = vmatprep.mubr.msk.bf16.mxu0 %vm3129_vm2, %v12908_v59  ;;  %12998 = vst [vmem:[#allocation74_spill] sm:$0xff] %v11225_v11 }
 0x575   :  { %6654 = vmatprep.mubr.msk.bf16.mxu1 %vm3129_vm2, %v12908_v59  ;;  %4733 = vmatprep.subr.bf16.mxu0 %v12987_v14  ;;  %v11246_v59 = vld [vmem:[%s12296_s3 + $0x220] ss:$8 sps:$4 sm:$0xff]  }
 0x576   :  { %4879 = vmatprep.subr.bf16.mxu1 %v12925_v16  ;;  %13001 = vst [vmem:[#allocation79_spill] sm:$0xff] %v11246_v59 }
 0x577   :  { %4880 = vmatpush1.bf16.msra.mxu1 %v12926_v8 }
 0x578   :  { %4734 = vmatpush1.bf16.msra.mxu0 %v12988_v43  ;;  %4881 = vmatprep.subr.bf16.mxu1 %v12927_v55 }
 0x579   :  { %4735 = vmatprep.subr.bf16.mxu0 %v12989_v61 }
 0x57b   :  { %4882 = vmatpush1.bf16.msra.mxu1 %v12928_v22 }
 0x57c   :  { %4736 = vmatpush1.bf16.msra.mxu0 %v12990_v39  ;;  %4883 = vmatprep.subr.bf16.mxu1 %v12930_v41 }
 0x57d   :  { %4737 = vmatprep.subr.bf16.mxu0 %v12991_v12 }
 0x57f   :  { %4884 = vmatpush1.bf16.msra.mxu1 %v12932_v62 }
 0x580   :  { %4738 = vmatpush1.bf16.msra.mxu0 %v12992_v0  ;;  %4885 = vmatprep.subr.bf16.mxu1 %v12933_v33 }
 0x581   :  { %4739 = vmatprep.subr.bf16.mxu0 %v12993_v1 }
 0x583   :  { %4886 = vmatpush1.bf16.msra.mxu1 %v12934_v60 }
 0x584   :  { %4740 = vmatpush1.bf16.msra.mxu0 %v12994_v13  ;;  %4887 = vmatprep.subr.bf16.mxu1 %v12935_v50 }
 0x585   :  { %4741 = vmatprep.subr.bf16.mxu0 %v12995_v42 }
 0x587   :  { %4888 = vmatpush1.bf16.msra.mxu1 %v12936_v63 }
 0x588   :  { %4742 = vmatpush1.bf16.msra.mxu0 %v12996_v31  ;;  %4889 = vmatprep.subr.bf16.mxu1 %v12937_v56  ;;  %v13012_v56 = vld [vmem:[#allocation26_spill] sm:$0xff] }
 0x589   :  { %4743 = vmatprep.subr.bf16.mxu0 %v10970_v58 }
 0x58b   :  { %4890 = vmatpush1.bf16.msra.mxu1 %v12938_v9  ;;  %v13011_v9 = vld [vmem:[#allocation23_spill] sm:$0xff] }
 0x58c   :  { %4744 = vmatpush1.bf16.msra.mxu0 %v10985_v54  ;;  %4891 = vmatprep.subr.bf16.mxu1 %v12939_v10  ;;  %v13010_v10 = vld [vmem:[#allocation21_spill] sm:$0xff] }
 0x58d   :  { %4745 = vmatprep.subr.bf16.mxu0 %v10994_v26 }
 0x58f   :  { %4892 = vmatpush1.bf16.msra.mxu1 %v12940_v45  ;;  %v13009_v45 = vld [vmem:[#allocation19_spill] sm:$0xff] }
 0x590   :  { %4746 = vmatpush1.bf16.msra.mxu0 %v11001_v3  ;;  %4893 = vmatprep.subr.bf16.mxu1 %v12941_v46  ;;  %v13008_v46 = vld [vmem:[#allocation4_spill] sm:$0xff] }
 0x591   :  { %4747 = vmatprep.subr.bf16.mxu0 %v11008_v4 }
 0x593   :  { %4894 = vmatpush1.bf16.msra.mxu1 %v12942_v18  ;;  %v13006_v18 = vld [vmem:[#allocation10_spill] sm:$0xff] }
 0x594   :  { %4748 = vmatpush1.bf16.msra.mxu0 %v11218_v24  ;;  %4895 = vmatprep.subr.bf16.mxu1 %v12943_v36  ;;  %v13005_v36 = vld [vmem:[#allocation57_spill] sm:$0xff] }
 0x595   :  { %4749 = vmatprep.subr.bf16.mxu0 %v11225_v11 }
 0x597   :  { %4896 = vmatpush1.bf16.msra.mxu1 %v11074_v5  ;;  %v11294_v5 = vld [vmem:[%s12296_s3 + $0x250] ss:$8 sps:$4 sm:$0xff]  }
 0x598   :  { %4750 = vmatpush1.bf16.msra.mxu0 %v11232_v28  ;;  %4897 = vmatprep.subr.bf16.mxu1 %v11081_v27  ;;  %v11253_v27 = vld [vmem:[%s12296_s3 + $0x234] ss:$8 sps:$4 sm:$0xff]  }
 0x599   :  { %4751 = vmatprep.subr.bf16.mxu0 %v11239_v21  ;;  %13002 = vst [vmem:[#allocation80_spill] sm:$0xff] %v11253_v27 }
 0x59b   :  { %4898 = vmatpush1.bf16.msra.mxu1 %v11088_v25  ;;  %v11260_v25 = vld [vmem:[%s12296_s3 + $0x230] ss:$8 sps:$4 sm:$0xff]  }
 0x59c   :  { %4752 = vmatpush1.bf16.msra.mxu0 %v11246_v59  ;;  %4899 = vmatprep.subr.bf16.mxu1 %v11095_v48  ;;  %v11267_v48 = vld [vmem:[%s12296_s3 + $0x244] ss:$8 sps:$4 sm:$0xff]  }
 0x59d   :  { %4753 = vmatprep.subr.bf16.mxu0 %v11253_v27 }
 0x59f   :  { %4900 = vmatpush1.bf16.msra.mxu1 %v11102_v30  ;;  %v11276_v30 = vld [vmem:[%s12296_s3 + $0x240] ss:$8 sps:$4 sm:$0xff]  }
 0x5a0   :  { %4754 = vmatpush1.bf16.msra.mxu0 %v11260_v25  ;;  %4920 = vmatprep.subr.bf16.mxu1 %v12949_v47  ;;  %v11286_v47 = vld [vmem:[%s12296_s3 + $0x254] ss:$8 sps:$4 sm:$0xff]  }
 0x5a1   :  { %4778 = vmatprep.subr.bf16.mxu0 %v11267_v48 }
 0x5a2   :  { %4910 = vmatmul.mubr.bf16.vlgmr.msra.gmra.mrb[108].mxu1 %v12923_v35 }
 0x5a3   :  { %4764 = vmatmul.mubr.bf16.vlgmr.msra.gmra.mrb[104].mxu0 %v12923_v35  ;;  %4921 = vmatpush1.bf16.msra.mxu1 %v12951_v40  ;;  %v13003_v35 = vld [vmem:[#allocation95_spill] sm:$0xff] }
 0x5a4   :  { %4779 = vmatpush1.bf16.msra.mxu0 %v11276_v30  ;;  %6652 = vmatprep.mubr.msk.bf16.mxu0 %vm3129_vm2, %v12950_v15  ;;  %v13004_v40 = vld [vmem:[#allocation55_spill] sm:$0xff] }
 0x5a5   :  { %6655 = vmatprep.mubr.msk.bf16.mxu1 %vm3129_vm2, %v12806_v20  ;;  %4780 = vmatprep.subr.bf16.mxu0 %v11286_v47  ;;  %v11301_v20 = vld [vmem:[%s12296_s3 + $0x264] ss:$8 sps:$4 sm:$0xff]  }
 0x5a6   :  { %4922 = vmatprep.subr.bf16.mxu1 %v13003_v35  ;;  %v13007_v35 = vld [vmem:[#allocation17_spill] sm:$0xff] }
 0x5a7   :  { %4923 = vmatpush1.bf16.msra.mxu1 %v13004_v40  ;;  %v11308_v40 = vld [vmem:[%s12296_s3 + $0x260] ss:$8 sps:$4 sm:$0xff]  }
 0x5a8   :  { %4781 = vmatpush1.bf16.msra.mxu0 %v11294_v5  ;;  %4924 = vmatprep.subr.bf16.mxu1 %v13005_v36  ;;  %v11315_v36 = vld [vmem:[%s12296_s3 + $0x274] ss:$8 sps:$4 sm:$0xff]  }
 0x5a9   :  { %4782 = vmatprep.subr.bf16.mxu0 %v11301_v20 }
 0x5ab   :  { %4925 = vmatpush1.bf16.msra.mxu1 %v13006_v18  ;;  %v11322_v18 = vld [vmem:[%s12296_s3 + $0x270] ss:$8 sps:$4 sm:$0xff]  }
 0x5ac   :  { %4783 = vmatpush1.bf16.msra.mxu0 %v11308_v40  ;;  %4926 = vmatprep.subr.bf16.mxu1 %v13007_v35  ;;  %v11329_v35 = vld [vmem:[%s12296_s3 + $0x284] ss:$8 sps:$4 sm:$0xff]  }
 0x5ad   :  { %4784 = vmatprep.subr.bf16.mxu0 %v11315_v36 }
 0x5af   :  { %4927 = vmatpush1.bf16.msra.mxu1 %v13008_v46  ;;  %v11336_v46 = vld [vmem:[%s12296_s3 + $0x280] ss:$8 sps:$4 sm:$0xff]  }
 0x5b0   :  { %4785 = vmatpush1.bf16.msra.mxu0 %v11322_v18  ;;  %4928 = vmatprep.subr.bf16.mxu1 %v13009_v45  ;;  %v11343_v45 = vld [vmem:[%s12296_s3 + $0x294] ss:$8 sps:$4 sm:$0xff]  }
 0x5b1   :  { %4786 = vmatprep.subr.bf16.mxu0 %v11329_v35 }
 0x5b3   :  { %4929 = vmatpush1.bf16.msra.mxu1 %v13010_v10  ;;  %v11350_v10 = vld [vmem:[%s12296_s3 + $0x290] ss:$8 sps:$4 sm:$0xff]  }
 0x5b4   :  { %4787 = vmatpush1.bf16.msra.mxu0 %v11336_v46  ;;  %4930 = vmatprep.subr.bf16.mxu1 %v13011_v9  ;;  %v11357_v9 = vld [vmem:[%s12296_s3 + $0x2a4] ss:$8 sps:$4 sm:$0xff]  }
 0x5b5   :  { %4788 = vmatprep.subr.bf16.mxu0 %v11343_v45 }
 0x5b7   :  { %4931 = vmatpush1.bf16.msra.mxu1 %v13012_v56  ;;  %v11364_v56 = vld [vmem:[%s12296_s3 + $0x2a0] ss:$8 sps:$4 sm:$0xff]  }
 0x5b8   :  { %4789 = vmatpush1.bf16.msra.mxu0 %v11350_v10  ;;  %4932 = vmatprep.subr.bf16.mxu1 %v12969_v57  ;;  %v11371_v57 = vld [vmem:[%s12296_s3 + $0x2b4] ss:$8 sps:$4 sm:$0xff]  }
 0x5b9   :  { %4790 = vmatprep.subr.bf16.mxu0 %v11357_v9 }
 0x5bb   :  { %4933 = vmatpush1.bf16.msra.mxu1 %v12971_v23  ;;  %v11378_v23 = vld [vmem:[%s12296_s3 + $0x2b0] ss:$8 sps:$4 sm:$0xff]  }
 0x5bc   :  { %4791 = vmatpush1.bf16.msra.mxu0 %v11364_v56  ;;  %4934 = vmatprep.subr.bf16.mxu1 %v12972_v17  ;;  %v11385_v17 = vld [vmem:[%s12296_s3 + $0x2c4] ss:$8 sps:$4 sm:$0xff]  }
 0x5bd   :  { %4792 = vmatprep.subr.bf16.mxu0 %v11371_v57 }
 0x5bf   :  { %4935 = vmatpush1.bf16.msra.mxu1 %v12973_v37  ;;  %v11392_v37 = vld [vmem:[%s12296_s3 + $0x2c0] ss:$8 sps:$4 sm:$0xff]  }
 0x5c0   :  { %4793 = vmatpush1.bf16.msra.mxu0 %v11378_v23  ;;  %4936 = vmatprep.subr.bf16.mxu1 %v12975_v34  ;;  %v11399_v34 = vld [vmem:[%s12296_s3 + $0x2d4] ss:$8 sps:$4 sm:$0xff]  }
 0x5c1   :  { %4794 = vmatprep.subr.bf16.mxu0 %v11385_v17 }
 0x5c3   :  { %4937 = vmatpush1.bf16.msra.mxu1 %v12976_v32  ;;  %v11406_v32 = vld [vmem:[%s12296_s3 + $0x2d0] ss:$8 sps:$4 sm:$0xff]  }
 0x5c4   :  { %4795 = vmatpush1.bf16.msra.mxu0 %v11392_v37  ;;  %4938 = vmatprep.subr.bf16.mxu1 %v12977_v44  ;;  %v11413_v44 = vld [vmem:[%s12296_s3 + $0x2e4] ss:$8 sps:$4 sm:$0xff]  }
 0x5c5   :  { %4796 = vmatprep.subr.bf16.mxu0 %v11399_v34 }
 0x5c7   :  { %4939 = vmatpush1.bf16.msra.mxu1 %v12978_v53  ;;  %v11420_v53 = vld [vmem:[%s12296_s3 + $0x2e0] ss:$8 sps:$4 sm:$0xff]  }
 0x5c8   :  { %4797 = vmatpush1.bf16.msra.mxu0 %v11406_v32  ;;  %4940 = vmatprep.subr.bf16.mxu1 %v12979_v7  ;;  %13013 = vst [vmem:[#allocation6_spill] sm:$0xff] %v11420_v53  ;;  %v11427_v7 = vld [vmem:[%s12296_s3 + $0x2f4] ss:$8 sps:$4 sm:$0xff]  }
 0x5c9   :  { %4798 = vmatprep.subr.bf16.mxu0 %v11413_v44  ;;  %13014 = vst [vmem:[#allocation81_spill] sm:$0xff] %v11427_v7 }
 0x5cb   :  { %4941 = vmatpush1.bf16.msra.mxu1 %v12980_v29  ;;  %v11434_v29 = vld [vmem:[%s12296_s3 + $0x2f0] ss:$8 sps:$4 sm:$0xff]  }
 0x5cc   :  { %4799 = vmatpush1.bf16.msra.mxu0 %v11420_v53  ;;  %4942 = vmatprep.subr.bf16.mxu1 %v12981_v51  ;;  %13015 = vst [vmem:[#allocation82_spill] sm:$0xff] %v11434_v29  ;;  %v11441_v51 = vld [vmem:[%s12296_s3 + $0x304] ss:$8 sps:$4 sm:$0xff]   ;;  %v13017_v53 = vld [vmem:[#allocation9_spill] sm:$0xff] }
 0x5cd   :  { %4800 = vmatprep.subr.bf16.mxu0 %v11427_v7  ;;  %13016 = vst [vmem:[#allocation83_spill] sm:$0xff] %v11441_v51 }
 0x5cf   :  { %4943 = vmatpush1.bf16.msra.mxu1 %v12982_v38  ;;  %v11450_v38 = vld [vmem:[%s12296_s3 + $0x300] ss:$8 sps:$4 sm:$0xff]  }
 0x5d0   :  { %4801 = vmatpush1.bf16.msra.mxu0 %v11434_v29  ;;  %4963 = vmatprep.subr.bf16.mxu1 %v12983_v52  ;;  %13018 = vst [vmem:[#allocation84_spill] sm:$0xff] %v11450_v38  ;;  %v13019_v52 = vld [vmem:[#allocation28_spill] sm:$0xff] }
 0x5d1   :  { %4828 = vmatprep.subr.bf16.mxu0 %v11441_v51 }
 0x5d2   :  { %4953 = vmatmul.mubr.bf16.vlgmr.msra.gmra.mrb[108].mxu1 %v13017_v53  ;;  %v11460_v53 = vld [vmem:[%s12296_s3 + $0x314] ss:$8 sps:$4 sm:$0xff]  }
 0x5d3   :  { %4811 = vmatmul.mubr.bf16.vlgmr.msra.gmra.mrb[104].mxu0 %v12984_v6  ;;  %4964 = vmatpush1.bf16.msra.mxu1 %v12986_v49  ;;  %13020 = vst [vmem:[#allocation87_spill] sm:$0xff] %v11460_v53  ;;  %v11468_v49 = vld [vmem:[%s12296_s3 + $0x310] ss:$8 sps:$4 sm:$0xff]  }
 0x5d4   :  { %4829 = vmatpush1.bf16.msra.mxu0 %v11450_v38  ;;  %6653 = vmatprep.mubr.msk.bf16.mxu0 %vm3129_vm2, %v13019_v52  ;;  %13021 = vst [vmem:[#allocation88_spill] sm:$0xff] %v11468_v49  ;;  %v11475_v38 = vld [vmem:[%s12296_s3 + $0x324] ss:$8 sps:$4 sm:$0xff]  }
 0x5d5   :  { %6656 = vmatprep.mubr.msk.bf16.mxu1 %vm3129_vm2, %v12950_v15  ;;  %4830 = vmatprep.subr.bf16.mxu0 %v11460_v53  ;;  %13022 = vst [vmem:[#allocation89_spill] sm:$0xff] %v11475_v38 }
 0x5d6   :  { %4965 = vmatprep.subr.bf16.mxu1 %v12987_v14 }
 0x5d7   :  { %4966 = vmatpush1.bf16.msra.mxu1 %v12988_v43  ;;  %v11482_v43 = vld [vmem:[%s12296_s3 + $0x320] ss:$8 sps:$4 sm:$0xff]  }
 0x5d8   :  { %4831 = vmatpush1.bf16.msra.mxu0 %v11468_v49  ;;  %4967 = vmatprep.subr.bf16.mxu1 %v12989_v61  ;;  %13023 = vst [vmem:[#allocation20_spill] sm:$0xff] %v11482_v43  ;;  %v11489_v61 = vld [vmem:[%s12296_s3 + $0x334] ss:$8 sps:$4 sm:$0xff]  }
 0x5d9   :  { %4832 = vmatprep.subr.bf16.mxu0 %v11475_v38  ;;  %13024 = vst [vmem:[#allocation22_spill] sm:$0xff] %v11489_v61 }
 0x5db   :  { %4968 = vmatpush1.bf16.msra.mxu1 %v12990_v39  ;;  %v11496_v39 = vld [vmem:[%s12296_s3 + $0x330] ss:$8 sps:$4 sm:$0xff]  }
 0x5dc   :  { %4833 = vmatpush1.bf16.msra.mxu0 %v11482_v43  ;;  %4969 = vmatprep.subr.bf16.mxu1 %v12991_v12  ;;  %13025 = vst [vmem:[#allocation24_spill] sm:$0xff] %v11496_v39  ;;  %v11503_v12 = vld [vmem:[%s12296_s3 + $0x344] ss:$8 sps:$4 sm:$0xff]  }
 0x5dd   :  { %4834 = vmatprep.subr.bf16.mxu0 %v11489_v61  ;;  %13026 = vst [vmem:[#allocation27_spill] sm:$0xff] %v11503_v12 }
 0x5df   :  { %4970 = vmatpush1.bf16.msra.mxu1 %v12992_v0  ;;  %v11510_v0 = vld [vmem:[%s12296_s3 + $0x340] ss:$8 sps:$4 sm:$0xff]  }
 0x5e0   :  { %4835 = vmatpush1.bf16.msra.mxu0 %v11496_v39  ;;  %4971 = vmatprep.subr.bf16.mxu1 %v12993_v1  ;;  %13027 = vst [vmem:[#allocation30_spill] sm:$0xff] %v11510_v0  ;;  %v11517_v1 = vld [vmem:[%s12296_s3 + $0x354] ss:$8 sps:$4 sm:$0xff]  }
 0x5e1   :  { %4836 = vmatprep.subr.bf16.mxu0 %v11503_v12  ;;  %13028 = vst [vmem:[#allocation85_spill] sm:$0xff] %v11517_v1 }
 0x5e3   :  { %4972 = vmatpush1.bf16.msra.mxu1 %v12994_v13  ;;  %v11564_v13 = vld [vmem:[%s12296_s3 + $0x370] ss:$8 sps:$4 sm:$0xff]  }
 0x5e4   :  { %4837 = vmatpush1.bf16.msra.mxu0 %v11510_v0  ;;  %4973 = vmatprep.subr.bf16.mxu1 %v12995_v42  ;;  %v11532_v42 = vld [vmem:[%s12296_s3 + $0x350] ss:$8 sps:$4 sm:$0xff]  }
 0x5e5   :  { %4838 = vmatprep.subr.bf16.mxu0 %v11517_v1 }
 0x5e6   :  { %v11520_v14 = vpop.f32.mrb[100].mxu0 }
 0x5e7   :  { %v11522_v12 = vpop.f32.mrb[101].mxu0  ;;  %4974 = vmatpush1.bf16.msra.mxu1 %v12996_v31  ;;  %v11541_v31 = vld [vmem:[%s12296_s3 + $0x364] ss:$8 sps:$4 sm:$0xff]  }
 0x5e8   :  { %13029 = vst [vmem:[#allocation32_spill] sm:$0xff] %v11522_v12  ;;  %v11527_v39 = vpop.f32.mrb[102].mxu0  ;;  %4839 = vmatpush1.bf16.msra.mxu0 %v11532_v42  ;;  %4975 = vmatprep.subr.bf16.mxu1 %v10970_v58  ;;  %13030 = vst [vmem:[#allocation86_spill] sm:$0xff] %v11541_v31  ;;  %v11550_v12 = vld [vmem:[%s12296_s3 + $0x360] ss:$8 sps:$4 sm:$0xff]  }
 0x5e9   :  { %v11536_v1 = vpop.f32.mrb[103].mxu0  ;;  %4840 = vmatprep.subr.bf16.mxu0 %v11541_v31  ;;  %v11557_v58 = vld [vmem:[%s12296_s3 + $0x374] ss:$8 sps:$4 sm:$0xff]  }
 0x5eb   :  { %4976 = vmatpush1.bf16.msra.mxu1 %v10985_v54 }
 0x5ec   :  { %4841 = vmatpush1.bf16.msra.mxu0 %v11550_v12  ;;  %4977 = vmatprep.subr.bf16.mxu1 %v10994_v26  ;;  %v11571_v26 = vld [vmem:[%s12296_s3 + $0x384] ss:$8 sps:$4 sm:$0xff]  }
 0x5ed   :  { %4842 = vmatprep.subr.bf16.mxu0 %v11557_v58 }
 0x5ef   :  { %4978 = vmatpush1.bf16.msra.mxu1 %v11001_v3  ;;  %v11578_v3 = vld [vmem:[%s12296_s3 + $0x380] ss:$8 sps:$4 sm:$0xff]  }
 0x5f0   :  { %4843 = vmatpush1.bf16.msra.mxu0 %v11564_v13  ;;  %4979 = vmatprep.subr.bf16.mxu1 %v11008_v4  ;;  %v11585_v4 = vld [vmem:[%s12296_s3 + $0x394] ss:$8 sps:$4 sm:$0xff]  }
 0x5f1   :  { %4844 = vmatprep.subr.bf16.mxu0 %v11571_v26 }
 0x5f3   :  { %4980 = vmatpush1.bf16.msra.mxu1 %v11218_v24  ;;  %v11592_v24 = vld [vmem:[%s12296_s3 + $0x390] ss:$8 sps:$4 sm:$0xff]  }
 0x5f4   :  { %4845 = vmatpush1.bf16.msra.mxu0 %v11578_v3  ;;  %4981 = vmatprep.subr.bf16.mxu1 %v11225_v11  ;;  %v11599_v11 = vld [vmem:[%s12296_s3 + $0x3a4] ss:$8 sps:$4 sm:$0xff]  }
 0x5f5   :  { %4846 = vmatprep.subr.bf16.mxu0 %v11585_v4 }
 0x5f7   :  { %4982 = vmatpush1.bf16.msra.mxu1 %v11232_v28  ;;  %v11606_v28 = vld [vmem:[%s12296_s3 + $0x3a0] ss:$8 sps:$4 sm:$0xff]  }
 0x5f8   :  { %4847 = vmatpush1.bf16.msra.mxu0 %v11592_v24  ;;  %4983 = vmatprep.subr.bf16.mxu1 %v11239_v21  ;;  %v11613_v21 = vld [vmem:[%s12296_s3 + $0x3b4] ss:$8 sps:$4 sm:$0xff]  }
 0x5f9   :  { %4848 = vmatprep.subr.bf16.mxu0 %v11599_v11 }
 0x5fb   :  { %4984 = vmatpush1.bf16.msra.mxu1 %v11246_v59  ;;  %v11620_v59 = vld [vmem:[%s12296_s3 + $0x3b0] ss:$8 sps:$4 sm:$0xff]  }
 0x5fc   :  { %4849 = vmatpush1.bf16.msra.mxu0 %v11606_v28  ;;  %4985 = vmatprep.subr.bf16.mxu1 %v11253_v27  ;;  %v13031_v27 = vld [vmem:[#allocation25_spill] sm:$0xff] }
 0x5fd   :  { %4850 = vmatprep.subr.bf16.mxu0 %v11613_v21 }
 0x5ff   :  { %4986 = vmatpush1.bf16.msra.mxu1 %v11260_v25 }
 0x600   :  { %4851 = vmatpush1.bf16.msra.mxu0 %v11620_v59  ;;  %5010 = vmatprep.subr.bf16.mxu1 %v11267_v48 }
 0x601   :  { %5116 = vmatprep.subr.bf16.mxu0 %v10556_v19  ;;  %v13032_v19 = vld [vmem:[#allocation91_spill] sm:$0xff] }
 0x602   :  { %4996 = vmatmul.mubr.bf16.vlgmr.msra.gmra.mrb[108].mxu1 %v12984_v6 }
 0x603   :  { %4861 = vmatmul.mubr.bf16.vlgmr.msra.gmra.mrb[104].mxu0 %v13031_v27  ;;  %5011 = vmatpush1.bf16.msra.mxu1 %v11276_v30 }
 0x604   :  { %6657 = vmatprep.mubr.msk.bf16.mxu1 %vm3129_vm2, %v13019_v52  ;;  %5117 = vmatpush1.bf16.msra.mxu0 %v12924_v2  ;;  %v13033_v2 = vld [vmem:[#allocation47_spill] sm:$0xff] }
 0x605   :  { %6659 = vmatprep.mubr.msk.bf16.mxu0 %vm3129_vm2, %v12950_v15  ;;  %5012 = vmatprep.subr.bf16.mxu1 %v11286_v47 }
 0x606   :  { %5118 = vmatprep.subr.bf16.mxu0 %v12925_v16  ;;  %v13034_v16 = vld [vmem:[#allocation92_spill] sm:$0xff] }
 0x607   :  { %5013 = vmatpush1.bf16.msra.mxu1 %v11294_v5 }
 0x608   :  { %5119 = vmatpush1.bf16.msra.mxu0 %v12926_v8  ;;  %5014 = vmatprep.subr.bf16.mxu1 %v11301_v20  ;;  %v13035_v8 = vld [vmem:[#allocation49_spill] sm:$0xff] }
 0x609   :  { %5120 = vmatprep.subr.bf16.mxu0 %v12927_v55  ;;  %v13036_v55 = vld [vmem:[#allocation93_spill] sm:$0xff] }
 0x60b   :  { %5015 = vmatpush1.bf16.msra.mxu1 %v11308_v40 }
 0x60c   :  { %5121 = vmatpush1.bf16.msra.mxu0 %v12928_v22  ;;  %5016 = vmatprep.subr.bf16.mxu1 %v11315_v36  ;;  %v13037_v22 = vld [vmem:[#allocation51_spill] sm:$0xff] }
 0x60d   :  { %5122 = vmatprep.subr.bf16.mxu0 %v12930_v41  ;;  %v13038_v41 = vld [vmem:[#allocation94_spill] sm:$0xff] }
 0x60f   :  { %5017 = vmatpush1.bf16.msra.mxu1 %v11322_v18 }
 0x610   :  { %5123 = vmatpush1.bf16.msra.mxu0 %v12932_v62  ;;  %5018 = vmatprep.subr.bf16.mxu1 %v11329_v35  ;;  %v13039_v62 = vld [vmem:[#allocation66_spill] sm:$0xff] }
 0x611   :  { %5124 = vmatprep.subr.bf16.mxu0 %v12933_v33  ;;  %v13040_v33 = vld [vmem:[#allocation67_spill] sm:$0xff] }
 0x613   :  { %5019 = vmatpush1.bf16.msra.mxu1 %v11336_v46 }
 0x614   :  { %5125 = vmatpush1.bf16.msra.mxu0 %v12934_v60  ;;  %5020 = vmatprep.subr.bf16.mxu1 %v11343_v45  ;;  %v13041_v60 = vld [vmem:[#allocation6_spill] sm:$0xff] }
 0x615   :  { %5126 = vmatprep.subr.bf16.mxu0 %v12935_v50  ;;  %v13042_v50 = vld [vmem:[#allocation68_spill] sm:$0xff] }
 0x617   :  { %5021 = vmatpush1.bf16.msra.mxu1 %v11350_v10 }
 0x618   :  { %5127 = vmatpush1.bf16.msra.mxu0 %v12936_v63  ;;  %5022 = vmatprep.subr.bf16.mxu1 %v11357_v9  ;;  %v13043_v63 = vld [vmem:[#allocation69_spill] sm:$0xff] }
 0x619   :  { %5128 = vmatprep.subr.bf16.mxu0 %v13032_v19  ;;  %v13044_v19 = vld [vmem:[#allocation70_spill] sm:$0xff] }
 0x61b   :  { %5023 = vmatpush1.bf16.msra.mxu1 %v11364_v56 }
 0x61c   :  { %5129 = vmatpush1.bf16.msra.mxu0 %v13033_v2  ;;  %5024 = vmatprep.subr.bf16.mxu1 %v11371_v57  ;;  %v11681_v2 = vld [vmem:[%s12296_s3 + $0x4] ss:$8 sps:$4 sm:$0xff]  }
 0x61d   :  { %5130 = vmatprep.subr.bf16.mxu0 %v13034_v16  ;;  %v13045_v16 = vld [vmem:[#allocation84_spill] sm:$0xff] }
 0x61f   :  { %5025 = vmatpush1.bf16.msra.mxu1 %v11378_v23 }
 0x620   :  { %5131 = vmatpush1.bf16.msra.mxu0 %v13035_v8  ;;  %5026 = vmatprep.subr.bf16.mxu1 %v11385_v17  ;;  %v13046_v8 = vld [vmem:[#allocation77_spill] sm:$0xff] }
 0x621   :  { %5132 = vmatprep.subr.bf16.mxu0 %v13036_v55  ;;  %v13047_v55 = vld [vmem:[#allocation53_spill] sm:$0xff] }
 0x623   :  { %5027 = vmatpush1.bf16.msra.mxu1 %v11392_v37 }
 0x624   :  { %5133 = vmatpush1.bf16.msra.mxu0 %v13037_v22  ;;  %5028 = vmatprep.subr.bf16.mxu1 %v11399_v34  ;;  %v13048_v22 = vld [vmem:[#allocation12_spill] sm:$0xff] }
 0x625   :  { %5134 = vmatprep.subr.bf16.mxu0 %v13038_v41  ;;  %v13049_v41 = vld [vmem:[#allocation95_spill] sm:$0xff] }
 0x627   :  { %5029 = vmatpush1.bf16.msra.mxu1 %v11406_v32 }
 0x628   :  { %5135 = vmatpush1.bf16.msra.mxu0 %v13039_v62  ;;  %5030 = vmatprep.subr.bf16.mxu1 %v11413_v44 }
 0x629   :  { %5136 = vmatprep.subr.bf16.mxu0 %v13040_v33 }
 0x62b   :  { %5031 = vmatpush1.bf16.msra.mxu1 %v13041_v60 }
 0x62c   :  { %5137 = vmatpush1.bf16.msra.mxu0 %v13042_v50  ;;  %5032 = vmatprep.subr.bf16.mxu1 %v11427_v7 }
 0x62d   :  { %5138 = vmatprep.subr.bf16.mxu0 %v13043_v63 }
 0x62f   :  { %5033 = vmatpush1.bf16.msra.mxu1 %v11434_v29  ;;  %v13064_v29 = vld [vmem:[#allocation29_spill] sm:$0xff] }
 0x630   :  { %5139 = vmatpush1.bf16.msra.mxu0 %v13044_v19  ;;  %5060 = vmatprep.subr.bf16.mxu1 %v11441_v51  ;;  %v13050_v51 = vld [vmem:[#allocation55_spill] sm:$0xff] }
 0x631   :  { %5159 = vmatprep.subr.bf16.mxu0 %v11681_v2 }
 0x632   :  { %5043 = vmatmul.mubr.bf16.vlgmr.msra.gmra.mrb[108].mxu1 %v13031_v27 }
 0x633   :  { %5149 = vmatmul.mubr.bf16.vlgmr.msra.gmra.mrb[108].mxu0 %v12984_v6  ;;  %5061 = vmatpush1.bf16.msra.mxu1 %v13045_v16  ;;  %v13051_v6 = vld [vmem:[#allocation57_spill] sm:$0xff]  ;;  %v13052_v16 = vld [vmem:[#allocation10_spill] sm:$0xff] }
 0x634   :  { %6658 = vmatprep.mubr.msk.bf16.mxu1 %vm3129_vm2, %v13046_v8  ;;  %5160 = vmatpush1.bf16.msra.mxu0 %v13047_v55  ;;  %v13053_v55 = vld [vmem:[#allocation17_spill] sm:$0xff] }
 0x635   :  { %6660 = vmatprep.mubr.msk.bf16.mxu0 %vm3129_vm2, %v13048_v22  ;;  %5062 = vmatprep.subr.bf16.mxu1 %v11460_v53  ;;  %v13054_v22 = vld [vmem:[#allocation24_spill] sm:$0xff] }
 0x636   :  { %5161 = vmatprep.subr.bf16.mxu0 %v13049_v41  ;;  %v13055_v53 = vld [vmem:[#allocation4_spill] sm:$0xff]  ;;  %v13056_v41 = vld [vmem:[#allocation27_spill] sm:$0xff] }
 0x637   :  { %5063 = vmatpush1.bf16.msra.mxu1 %v11468_v49  ;;  %v13057_v49 = vld [vmem:[#allocation19_spill] sm:$0xff] }
 0x638   :  { %5162 = vmatpush1.bf16.msra.mxu0 %v13050_v51  ;;  %5064 = vmatprep.subr.bf16.mxu1 %v11475_v38  ;;  %v13058_v51 = vld [vmem:[#allocation21_spill] sm:$0xff] }
 0x639   :  { %5163 = vmatprep.subr.bf16.mxu0 %v13051_v6  ;;  %v13059_v6 = vld [vmem:[#allocation85_spill] sm:$0xff] }
 0x63b   :  { %5065 = vmatpush1.bf16.msra.mxu1 %v11482_v43 }
 0x63c   :  { %5164 = vmatpush1.bf16.msra.mxu0 %v13052_v16  ;;  %5066 = vmatprep.subr.bf16.mxu1 %v11489_v61  ;;  %v13060_v16 = vld [vmem:[#allocation23_spill] sm:$0xff] }
 0x63d   :  { %5165 = vmatprep.subr.bf16.mxu0 %v13053_v55 }
 0x63f   :  { %5067 = vmatpush1.bf16.msra.mxu1 %v13054_v22  ;;  %v13061_v22 = vld [vmem:[#allocation26_spill] sm:$0xff] }
 0x640   :  { %5166 = vmatpush1.bf16.msra.mxu0 %v13055_v53  ;;  %5068 = vmatprep.subr.bf16.mxu1 %v13056_v41 }
 0x641   :  { %5167 = vmatprep.subr.bf16.mxu0 %v13057_v49  ;;  %v13062_v49 = vld [vmem:[#allocation32_spill] sm:$0xff] }
 0x643   :  { %5069 = vmatpush1.bf16.msra.mxu1 %v11510_v0  ;;  %v13063_v0 = vmax.f32 %v11520_v14, %v13062_v49  ;;  %v7591_v49 = vld [vmem:[%s12296_s3 + $0xc4] ss:$8 sps:$4 sm:$0xff]  }
 0x644   :  { %5168 = vmatpush1.bf16.msra.mxu0 %v13058_v51  ;;  %5070 = vmatprep.subr.bf16.mxu1 %v13059_v6  ;;  %v13065_v6 = vld [vmem:[#allocation71_spill] sm:$0xff] }
 0x645   :  { %v4623_v43 = vpop.f32.mrb[104].mxu1  ;;  %5169 = vmatprep.subr.bf16.mxu0 %v13060_v16  ;;  %v13067_v16 = vld [vmem:[#allocation31_spill] sm:$0xff] }
 0x646   :  { %v4625_v61 = vpop.f32.mrb[105].mxu1 }
 0x647   :  { %v4636_v38 = vmax.f32 %v4623_v43, %v4625_v61  ;;  %v4627_v55 = vpop.f32.mrb[106].mxu1  ;;  %5071 = vmatpush1.bf16.msra.mxu1 %v11532_v42  ;;  %v13066_v43 = vmax.f32 %v11527_v39, %v11536_v1  ;;  %v13071_v1 = vld [vmem:[#allocation38_spill] sm:$0xff] }
 0x648   :  { %5170 = vmatpush1.bf16.msra.mxu0 %v13061_v22  ;;  %v4629_v53 = vpop.f32.mrb[107].mxu1  ;;  %5072 = vmatprep.subr.bf16.mxu1 %v11541_v31  ;;  %v13068_v31 = vld [vmem:[#allocation33_spill] sm:$0xff] }
 0x649   :  { %v4638_v41 = vmax.f32 %v13063_v0, %v4636_v38  ;;  %v4637_v51 = vmax.f32 %v4627_v55, %v4629_v53  ;;  %5171 = vmatprep.subr.bf16.mxu0 %v13064_v29  ;;  %v13069_v29 = vld [vmem:[#allocation35_spill] sm:$0xff]  ;;  %v13070_v0 = vld [vmem:[#allocation37_spill] sm:$0xff]  ;;  %v13076_v55 = vld [vmem:[#allocation42_spill] sm:$0xff] }
 0x64a   :  { %v13077_v53 = vld [vmem:[#allocation101_spill] sm:$0xff] }
 0x64b   :  { %v4640_v7 = vadd.f32 %v13065_v6, %v4638_v41  ;;  %v4639_v61 = vmax.f32 %v13066_v43, %v4637_v51  ;;  %5073 = vmatpush1.bf16.msra.mxu1 %v11550_v12  ;;  %v13072_v41 = vld [vmem:[#allocation39_spill] sm:$0xff]  ;;  %v13078_v51 = vld [vmem:[#allocation44_spill] sm:$0xff] }
 0x64c   :  { %5172 = vmatpush1.bf16.msra.mxu0 %v13067_v16  ;;  %5074 = vmatprep.subr.bf16.mxu1 %v11557_v58  ;;  %v13079_v43 = vld [vmem:[#allocation76_spill] sm:$0xff]  ;;  %v7592_v16 = vld [vmem:[%s12296_s3 + $0xc0] ss:$8 sps:$4 sm:$0xff]  }
 0x64d   :  { %v4641_v22 = vadd.f32 %v13065_v6, %v4639_v61  ;;  %5173 = vmatprep.subr.bf16.mxu0 %v13068_v31  ;;  %v4642_v38 = vmax.f32 %v4640_v7, 0.0  ;;  %v13073_v7 = vld [vmem:[#allocation40_spill] sm:$0xff]  ;;  %v13074_v31 = vld [vmem:[#allocation41_spill] sm:$0xff]  ;;  %v13080_v61 = vld [vmem:[#allocation11_spill] sm:$0xff] }
 0x64e   :  { %v13075_v6 = vld [vmem:[#allocation100_spill] sm:$0xff] }
 0x64f   :  { %v4643_v14 = vmax.f32 %v4641_v22, 0.0  ;;  %5075 = vmatpush1.bf16.msra.mxu1 %v11564_v13  ;;  %v13081_v22 = vld [vmem:[#allocation46_spill] sm:$0xff] }
 0x650   :  { %5174 = vmatpush1.bf16.msra.mxu0 %v13069_v29  ;;  %5076 = vmatprep.subr.bf16.mxu1 %v11571_v26  ;;  %v7594_v29 = vld [vmem:[%s12296_s3 + $0xd0] ss:$8 sps:$4 sm:$0xff]  }
 0x651   :  { %v11729_v39 = vpack.c.bf16 %v4643_v14, %v4642_v38  ;;  %5175 = vmatprep.subr.bf16.mxu0 %v13070_v0  ;;  %v13082_v38 = vld [vmem:[#allocation48_spill] sm:$0xff]  ;;  %v13083_v0 = vld [vmem:[#allocation50_spill] sm:$0xff] }
 0x652   :  { %v7593_v14 = vld [vmem:[%s12296_s3 + $0xd4] ss:$8 sps:$4 sm:$0xff]  }
 0x653   :  { %5077 = vmatpush1.bf16.msra.mxu1 %v11578_v3 }
 0x654   :  { %5176 = vmatpush1.bf16.msra.mxu0 %v13071_v1  ;;  %5078 = vmatprep.subr.bf16.mxu1 %v11585_v4  ;;  %v7595_v1 = vld [vmem:[%s12296_s3 + $0xe4] ss:$8 sps:$4 sm:$0xff]  }
 0x655   :  { %5177 = vmatprep.subr.bf16.mxu0 %v13072_v41  ;;  %v7596_v41 = vld [vmem:[%s12296_s3 + $0xe0] ss:$8 sps:$4 sm:$0xff]  }
 0x657   :  { %5079 = vmatpush1.bf16.msra.mxu1 %v11592_v24 }
 0x658   :  { %5178 = vmatpush1.bf16.msra.mxu0 %v13073_v7  ;;  %5080 = vmatprep.subr.bf16.mxu1 %v11599_v11  ;;  %v13085_v7 = vld [vmem:[#allocation54_spill] sm:$0xff] }
 0x659   :  { %5179 = vmatprep.subr.bf16.mxu0 %v13074_v31  ;;  %v7597_v31 = vld [vmem:[%s12296_s3 + $0xf4] ss:$8 sps:$4 sm:$0xff]  }
 0x65b   :  { %5081 = vmatpush1.bf16.msra.mxu1 %v11606_v28 }
 0x65c   :  { %5180 = vmatpush1.bf16.msra.mxu0 %v13075_v6  ;;  %5082 = vmatprep.subr.bf16.mxu1 %v11613_v21  ;;  %v13086_v6 = vld [vmem:[#allocation56_spill] sm:$0xff] }
 0x65d   :  { %5181 = vmatprep.subr.bf16.mxu0 %v13076_v55  ;;  %v7598_v55 = vld [vmem:[%s12296_s3 + $0xf0] ss:$8 sps:$4 sm:$0xff]  }
 0x65f   :  { %5083 = vmatpush1.bf16.msra.mxu1 %v11620_v59 }
 0x660   :  { %5182 = vmatpush1.bf16.msra.mxu0 %v13077_v53  ;;  %5348 = vmatprep.subr.bf16.mxu1 %v7591_v49  ;;  %v13087_v53 = vld [vmem:[#allocation58_spill] sm:$0xff] }
 0x661   :  { %5202 = vmatprep.subr.bf16.mxu0 %v13078_v51  ;;  %v7599_v49 = vld [vmem:[%s12296_s3 + $0x104] ss:$8 sps:$4 sm:$0xff]  }
 0x662   :  { %5093 = vmatmul.mubr.bf16.vlgmr.msra.gmra.mrb[108].mxu1 %v13079_v43  ;;  %v13088_v51 = vld [vmem:[#allocation59_spill] sm:$0xff] }
 0x663   :  { %5192 = vmatmul.mubr.bf16.vlgmr.msra.gmra.mrb[108].mxu0 %v13080_v61  ;;  %5349 = vmatpush1.bf16.msra.mxu1 %v7592_v16  ;;  %v7600_v61 = vld [vmem:[%s12296_s3 + $0x100] ss:$8 sps:$4 sm:$0xff]  }
 0x664   :  { %5203 = vmatpush1.bf16.msra.mxu0 %v13081_v22  ;;  %6661 = vmatprep.mubr.msk.bf16.mxu0 %vm3129_vm2, %v13019_v52  ;;  %v13089_v16 = vld [vmem:[#allocation3_spill] sm:$0xff]  ;;  %v7601_v22 = vld [vmem:[%s12296_s3 + $0x114] ss:$8 sps:$4 sm:$0xff]  }
 0x665   :  { %6664 = vmatprep.mubr.msk.bf16.mxu1 %vm3129_vm2, %v13019_v52  ;;  %5204 = vmatprep.subr.bf16.mxu0 %v13082_v38  ;;  %v13084_v52 = vld [vmem:[#allocation52_spill] sm:$0xff] }
 0x666   :  { %5350 = vmatprep.subr.bf16.mxu1 %v7593_v14  ;;  %v13090_v38 = vld [vmem:[#allocation60_spill] sm:$0xff] }
 0x667   :  { %5351 = vmatpush1.bf16.msra.mxu1 %v7594_v29  ;;  %v7602_v14 = vld [vmem:[%s12296_s3 + $0x110] ss:$8 sps:$4 sm:$0xff]  }
 0x668   :  { %5205 = vmatpush1.bf16.msra.mxu0 %v13083_v0  ;;  %5352 = vmatprep.subr.bf16.mxu1 %v7595_v1  ;;  %v13091_v29 = vld [vmem:[#allocation61_spill] sm:$0xff]  ;;  %v7603_v0 = vld [vmem:[%s12296_s3 + $0x124] ss:$8 sps:$4 sm:$0xff]  }
 0x669   :  { %5206 = vmatprep.subr.bf16.mxu0 %v13084_v52  ;;  %v13092_v1 = vld [vmem:[#allocation62_spill] sm:$0xff] }
 0x66a   :  { %v7604_v52 = vld [vmem:[%s12296_s3 + $0x120] ss:$8 sps:$4 sm:$0xff]  }
 0x66b   :  { %5353 = vmatpush1.bf16.msra.mxu1 %v7596_v41  ;;  %v7605_v41 = vld [vmem:[%s12296_s3 + $0x134] ss:$8 sps:$4 sm:$0xff]  }
 0x66c   :  { %5207 = vmatpush1.bf16.msra.mxu0 %v13085_v7  ;;  %5354 = vmatprep.subr.bf16.mxu1 %v7597_v31  ;;  %v13093_v7 = vld [vmem:[#allocation63_spill] sm:$0xff]  ;;  %v7606_v31 = vld [vmem:[%s12296_s3 + $0x130] ss:$8 sps:$4 sm:$0xff]  }
 0x66d   :  { %5208 = vmatprep.subr.bf16.mxu0 %v13086_v6  ;;  %v13094_v6 = vld [vmem:[#allocation64_spill] sm:$0xff] }
 0x66f   :  { %5355 = vmatpush1.bf16.msra.mxu1 %v7598_v55  ;;  %v7607_v55 = vld [vmem:[%s12296_s3 + $0x144] ss:$8 sps:$4 sm:$0xff]  }
 0x670   :  { %5209 = vmatpush1.bf16.msra.mxu0 %v13087_v53  ;;  %5356 = vmatprep.subr.bf16.mxu1 %v7599_v49  ;;  %v7608_v53 = vld [vmem:[%s12296_s3 + $0x140] ss:$8 sps:$4 sm:$0xff]   ;;  %v13096_v49 = vld [vmem:[#allocation73_spill] sm:$0xff] }
 0x671   :  { %5210 = vmatprep.subr.bf16.mxu0 %v13088_v51  ;;  %v7609_v51 = vld [vmem:[%s12296_s3 + $0x154] ss:$8 sps:$4 sm:$0xff]  }
 0x673   :  { %5357 = vmatpush1.bf16.msra.mxu1 %v7600_v61  ;;  %v13097_v61 = vld [vmem:[#allocation74_spill] sm:$0xff] }
 0x674   :  { %5211 = vmatpush1.bf16.msra.mxu0 %v13089_v16  ;;  %5358 = vmatprep.subr.bf16.mxu1 %v7601_v22  ;;  %v13098_v16 = vld [vmem:[#allocation75_spill] sm:$0xff]  ;;  %v13099_v22 = vld [vmem:[#allocation78_spill] sm:$0xff] }
 0x675   :  { %5212 = vmatprep.subr.bf16.mxu0 %v13090_v38  ;;  %v13100_v38 = vld [vmem:[#allocation79_spill] sm:$0xff] }
 0x677   :  { %5359 = vmatpush1.bf16.msra.mxu1 %v7602_v14  ;;  %v13101_v14 = vld [vmem:[#allocation80_spill] sm:$0xff] }
 0x678   :  { %5213 = vmatpush1.bf16.msra.mxu0 %v13091_v29  ;;  %5360 = vmatprep.subr.bf16.mxu1 %v7603_v0  ;;  %v7618_v29 = vld [vmem:[%s12296_s3 + $0x40] ss:$8 sps:$4 sm:$0xff]   ;;  %v7619_v0 = vld [vmem:[%s12296_s3 + $0x54] ss:$8 sps:$4 sm:$0xff]  }
 0x679   :  { %5214 = vmatprep.subr.bf16.mxu0 %v13092_v1  ;;  %v7620_v1 = vld [vmem:[%s12296_s3 + $0x50] ss:$8 sps:$4 sm:$0xff]  }
 0x67b   :  { %5361 = vmatpush1.bf16.msra.mxu1 %v7604_v52  ;;  %v7621_v52 = vld [vmem:[%s12296_s3 + $0x64] ss:$8 sps:$4 sm:$0xff]  }
 0x67c   :  { %5215 = vmatpush1.bf16.msra.mxu0 %v10985_v54  ;;  %5362 = vmatprep.subr.bf16.mxu1 %v7605_v41  ;;  %v13095_v54 = vld [vmem:[#allocation65_spill] sm:$0xff]  ;;  %v7622_v41 = vld [vmem:[%s12296_s3 + $0x60] ss:$8 sps:$4 sm:$0xff]  }
 0x67d   :  { %5216 = vmatprep.subr.bf16.mxu0 %v13093_v7  ;;  %v7623_v7 = vld [vmem:[%s12296_s3 + $0x74] ss:$8 sps:$4 sm:$0xff]  }
 0x67f   :  { %5363 = vmatpush1.bf16.msra.mxu1 %v7606_v31  ;;  %v7624_v31 = vld [vmem:[%s12296_s3 + $0x70] ss:$8 sps:$4 sm:$0xff]  }
 0x680   :  { %5217 = vmatpush1.bf16.msra.mxu0 %v13094_v6  ;;  %5364 = vmatprep.subr.bf16.mxu1 %v7607_v55  ;;  %v7625_v6 = vld [vmem:[%s12296_s3 + $0x84] ss:$8 sps:$4 sm:$0xff]   ;;  %v7626_v55 = vld [vmem:[%s12296_s3 + $0x80] ss:$8 sps:$4 sm:$0xff]  }
 0x681   :  { %5218 = vmatprep.subr.bf16.mxu0 %v13095_v54  ;;  %v7627_v54 = vld [vmem:[%s12296_s3 + $0x94] ss:$8 sps:$4 sm:$0xff]  }
 0x683   :  { %5365 = vmatpush1.bf16.msra.mxu1 %v7608_v53  ;;  %v7628_v53 = vld [vmem:[%s12296_s3 + $0x90] ss:$8 sps:$4 sm:$0xff]  }
 0x684   :  { %5219 = vmatpush1.bf16.msra.mxu0 %v13096_v49  ;;  %5366 = vmatprep.subr.bf16.mxu1 %v7609_v51  ;;  %v7629_v51 = vld [vmem:[%s12296_s3 + $0xa4] ss:$8 sps:$4 sm:$0xff]  }
 0x685   :  { %5220 = vmatprep.subr.bf16.mxu0 %v13097_v61 }
 0x687   :  { %5367 = vmatpush1.bf16.msra.mxu1 %v13039_v62  ;;  %v7610_v62 = vld [vmem:[%s12296_s3] ss:$8 sps:$4 sm:$0xff]  }
 0x688   :  { %5221 = vmatpush1.bf16.msra.mxu0 %v13098_v16  ;;  %5368 = vmatprep.subr.bf16.mxu1 %v13040_v33  ;;  %v7611_v33 = vld [vmem:[%s12296_s3 + $0x14] ss:$8 sps:$4 sm:$0xff]  }
 0x689   :  { %5222 = vmatprep.subr.bf16.mxu0 %v13099_v22 }
 0x68b   :  { %5369 = vmatpush1.bf16.msra.mxu1 %v13042_v50  ;;  %v7613_v50 = vld [vmem:[%s12296_s3 + $0x24] ss:$8 sps:$4 sm:$0xff]  }
 0x68c   :  { %5223 = vmatpush1.bf16.msra.mxu0 %v13100_v38  ;;  %5370 = vmatprep.subr.bf16.mxu1 %v13043_v63  ;;  %v7615_v63 = vld [vmem:[%s12296_s3 + $0x34] ss:$8 sps:$4 sm:$0xff]  }
 0x68d   :  { %5224 = vmatprep.subr.bf16.mxu0 %v13101_v14 }
 0x68f   :  { %5371 = vmatpush1.bf16.msra.mxu1 %v13044_v19  ;;  %v7616_v19 = vld [vmem:[%s12296_s3 + $0x30] ss:$8 sps:$4 sm:$0xff]  }
 0x690   :  { %5225 = vmatpush1.bf16.msra.mxu0 %v11260_v25  ;;  %5391 = vmatprep.subr.bf16.mxu1 %v11681_v2  ;;  %v7617_v2 = vld [vmem:[%s12296_s3 + $0x44] ss:$8 sps:$4 sm:$0xff]  }
 0x691   :  { %5249 = vmatprep.subr.bf16.mxu0 %v11267_v48 }
 0x692   :  { %5381 = vmatmul.mubr.bf16.vlgmr.msra.gmra.mrb[112].mxu1 %v13031_v27 }
 0x693   :  { %5235 = vmatmul.mubr.bf16.vlgmr.msra.gmra.mrb[108].mxu0 %v13031_v27  ;;  %5392 = vmatpush1.bf16.msra.mxu1 %v7610_v62  ;;  %v7612_v27 = vld [vmem:[%s12296_s3 + $0x10] ss:$8 sps:$4 sm:$0xff]   ;;  %v7630_v62 = vld [vmem:[%s12296_s3 + $0xa0] ss:$8 sps:$4 sm:$0xff]  }
 0x694   :  { %5250 = vmatpush1.bf16.msra.mxu0 %v11276_v30  ;;  %6662 = vmatprep.mubr.msk.bf16.mxu0 %vm3129_vm2, %v13046_v8 }
 0x695   :  { %6665 = vmatprep.mubr.msk.bf16.mxu1 %vm3129_vm2, %v12950_v15  ;;  %5251 = vmatprep.subr.bf16.mxu0 %v11286_v47  ;;  %v7614_v15 = vld [vmem:[%s12296_s3 + $0x20] ss:$8 sps:$4 sm:$0xff]  }
 0x696   :  { %5393 = vmatprep.subr.bf16.mxu1 %v7611_v33  ;;  %v7631_v33 = vld [vmem:[%s12296_s3 + $0xb4] ss:$8 sps:$4 sm:$0xff]  }
 0x697   :  { %5394 = vmatpush1.bf16.msra.mxu1 %v7612_v27  ;;  %v13102_v27 = vld [vmem:[#allocation81_spill] sm:$0xff] }
 0x698   :  { %5252 = vmatpush1.bf16.msra.mxu0 %v11294_v5  ;;  %5395 = vmatprep.subr.bf16.mxu1 %v7613_v50  ;;  %v7632_v50 = vld [vmem:[%s12296_s3 + $0xb0] ss:$8 sps:$4 sm:$0xff]  }
 0x699   :  { %5253 = vmatprep.subr.bf16.mxu0 %v11301_v20 }
 0x69b   :  { %5396 = vmatpush1.bf16.msra.mxu1 %v7614_v15  ;;  %v13103_v15 = vld [vmem:[#allocation82_spill] sm:$0xff] }
 0x69c   :  { %5254 = vmatpush1.bf16.msra.mxu0 %v11308_v40  ;;  %5397 = vmatprep.subr.bf16.mxu1 %v7615_v63  ;;  %v7633_v63 = vld [vmem:[%s12296_s3 + $0x184] ss:$8 sps:$4 sm:$0xff]  }
 0x69d   :  { %5255 = vmatprep.subr.bf16.mxu0 %v11315_v36 }
 0x69f   :  { %5398 = vmatpush1.bf16.msra.mxu1 %v7616_v19  ;;  %v13104_v19 = vld [vmem:[#allocation83_spill] sm:$0xff] }
 0x6a0   :  { %5256 = vmatpush1.bf16.msra.mxu0 %v11322_v18  ;;  %5399 = vmatprep.subr.bf16.mxu1 %v7617_v2  ;;  %v13105_v2 = vld [vmem:[#allocation13_spill] sm:$0xff] }
 0x6a1   :  { %5257 = vmatprep.subr.bf16.mxu0 %v11329_v35 }
 0x6a3   :  { %5400 = vmatpush1.bf16.msra.mxu1 %v7618_v29  ;;  %v7634_v29 = vld [vmem:[%s12296_s3 + $0x180] ss:$8 sps:$4 sm:$0xff]  }
 0x6a4   :  { %5258 = vmatpush1.bf16.msra.mxu0 %v11336_v46  ;;  %5401 = vmatprep.subr.bf16.mxu1 %v7619_v0  ;;  %v13106_v0 = vld [vmem:[#allocation84_spill] sm:$0xff] }
 0x6a5   :  { %5259 = vmatprep.subr.bf16.mxu0 %v11343_v45 }
 0x6a7   :  { %5402 = vmatpush1.bf16.msra.mxu1 %v7620_v1  ;;  %v13107_v1 = vld [vmem:[#allocation5_spill] sm:$0xff] }
 0x6a8   :  { %5260 = vmatpush1.bf16.msra.mxu0 %v11350_v10  ;;  %5403 = vmatprep.subr.bf16.mxu1 %v7621_v52  ;;  %v13108_v52 = vld [vmem:[#allocation87_spill] sm:$0xff] }
 0x6a9   :  { %5261 = vmatprep.subr.bf16.mxu0 %v11357_v9 }
 0x6ab   :  { %5404 = vmatpush1.bf16.msra.mxu1 %v7622_v41  ;;  %v7635_v41 = vld [vmem:[%s12296_s3 + $0x194] ss:$8 sps:$4 sm:$0xff]  }
 0x6ac   :  { %5262 = vmatpush1.bf16.msra.mxu0 %v11364_v56  ;;  %5405 = vmatprep.subr.bf16.mxu1 %v7623_v7  ;;  %v7636_v7 = vld [vmem:[%s12296_s3 + $0x190] ss:$8 sps:$4 sm:$0xff]  }
 0x6ad   :  { %5263 = vmatprep.subr.bf16.mxu0 %v11371_v57 }
 0x6af   :  { %5406 = vmatpush1.bf16.msra.mxu1 %v7624_v31  ;;  %v13109_v31 = vld [vmem:[#allocation88_spill] sm:$0xff] }
 0x6b0   :  { %5264 = vmatpush1.bf16.msra.mxu0 %v11378_v23  ;;  %5407 = vmatprep.subr.bf16.mxu1 %v7625_v6  ;;  %v7637_v6 = vld [vmem:[%s12296_s3 + $0x1a4] ss:$8 sps:$4 sm:$0xff]  }
 0x6b1   :  { %5265 = vmatprep.subr.bf16.mxu0 %v11385_v17 }
 0x6b3   :  { %5408 = vmatpush1.bf16.msra.mxu1 %v7626_v55  ;;  %v7638_v55 = vld [vmem:[%s12296_s3 + $0x1a0] ss:$8 sps:$4 sm:$0xff]  }
 0x6b4   :  { %5266 = vmatpush1.bf16.msra.mxu0 %v11392_v37  ;;  %5409 = vmatprep.subr.bf16.mxu1 %v7627_v54  ;;  %v13111_v54 = vld [vmem:[#allocation20_spill] sm:$0xff] }
 0x6b5   :  { %5267 = vmatprep.subr.bf16.mxu0 %v11399_v34 }
 0x6b7   :  { %5410 = vmatpush1.bf16.msra.mxu1 %v7628_v53  ;;  %v7639_v53 = vld [vmem:[%s12296_s3 + $0x1b4] ss:$8 sps:$4 sm:$0xff]  }
 0x6b8   :  { %5268 = vmatpush1.bf16.msra.mxu0 %v11406_v32  ;;  %5411 = vmatprep.subr.bf16.mxu1 %v7629_v51  ;;  %v13112_v51 = vld [vmem:[#allocation22_spill] sm:$0xff] }
 0x6b9   :  { %5269 = vmatprep.subr.bf16.mxu0 %v11413_v44 }
 0x6bb   :  { %5412 = vmatpush1.bf16.msra.mxu1 %v7630_v62  ;;  %v7640_v62 = vld [vmem:[%s12296_s3 + $0x1b0] ss:$8 sps:$4 sm:$0xff]  }
 0x6bc   :  { %5270 = vmatpush1.bf16.msra.mxu0 %v13041_v60  ;;  %5413 = vmatprep.subr.bf16.mxu1 %v7631_v33  ;;  %v13113_v33 = vld [vmem:[#allocation24_spill] sm:$0xff] }
 0x6bd   :  { %5271 = vmatprep.subr.bf16.mxu0 %v13102_v27 }
 0x6bf   :  { %5414 = vmatpush1.bf16.msra.mxu1 %v7632_v50  ;;  %v7641_v50 = vld [vmem:[%s12296_s3 + $0x1c4] ss:$8 sps:$4 sm:$0xff]  }
 0x6c0   :  { %5272 = vmatpush1.bf16.msra.mxu0 %v13103_v15  ;;  %5434 = vmatprep.subr.bf16.mxu1 %v7633_v63  ;;  %v13114_v63 = vld [vmem:[#allocation27_spill] sm:$0xff] }
 0x6c1   :  { %5299 = vmatprep.subr.bf16.mxu0 %v13104_v19 }
 0x6c2   :  { %5424 = vmatmul.mubr.bf16.vlgmr.msra.gmra.mrb[112].mxu1 %v13105_v2  ;;  %v7642_v2 = vld [vmem:[%s12296_s3 + $0x1c0] ss:$8 sps:$4 sm:$0xff]  }
 0x6c3   :  { %5282 = vmatmul.mubr.bf16.vlgmr.msra.gmra.mrb[108].mxu0 %v13079_v43  ;;  %5435 = vmatpush1.bf16.msra.mxu1 %v7634_v29  ;;  %v13115_v29 = vld [vmem:[#allocation30_spill] sm:$0xff] }
 0x6c4   :  { %5300 = vmatpush1.bf16.msra.mxu0 %v13106_v0  ;;  %6663 = vmatprep.mubr.msk.bf16.mxu0 %vm3129_vm2, %v13107_v1 }
 0x6c5   :  { %6666 = vmatprep.mubr.msk.bf16.mxu1 %vm3129_vm2, %v13046_v8  ;;  %5301 = vmatprep.subr.bf16.mxu0 %v13108_v52  ;;  %v13110_v8 = vld [vmem:[#allocation89_spill] sm:$0xff] }
 0x6c6   :  { %5436 = vmatprep.subr.bf16.mxu1 %v7635_v41  ;;  %v7643_v41 = vld [vmem:[%s12296_s3 + $0x1d4] ss:$8 sps:$4 sm:$0xff]  }
 0x6c7   :  { %5437 = vmatpush1.bf16.msra.mxu1 %v7636_v7  ;;  %v13116_v7 = vld [vmem:[#allocation85_spill] sm:$0xff] }
 0x6c8   :  { %5302 = vmatpush1.bf16.msra.mxu0 %v13109_v31  ;;  %5438 = vmatprep.subr.bf16.mxu1 %v7637_v6 }
 0x6c9   :  { %5303 = vmatprep.subr.bf16.mxu0 %v13110_v8 }
 0x6cb   :  { %5439 = vmatpush1.bf16.msra.mxu1 %v7638_v55 }
 0x6cc   :  { %5304 = vmatpush1.bf16.msra.mxu0 %v13111_v54  ;;  %5440 = vmatprep.subr.bf16.mxu1 %v7639_v53  ;;  %v7644_v53 = vld [vmem:[%s12296_s3 + $0x1d0] ss:$8 sps:$4 sm:$0xff]  }
 0x6cd   :  { %5305 = vmatprep.subr.bf16.mxu0 %v13112_v51 }
 0x6cf   :  { %5441 = vmatpush1.bf16.msra.mxu1 %v7640_v62  ;;  %v7647_v62 = vld [vmem:[%s12296_s3 + $0x1f4] ss:$8 sps:$4 sm:$0xff]  }
 0x6d0   :  { %5306 = vmatpush1.bf16.msra.mxu0 %v13113_v33  ;;  %5442 = vmatprep.subr.bf16.mxu1 %v7641_v50 }
 0x6d1   :  { %5307 = vmatprep.subr.bf16.mxu0 %v13114_v63 }
 0x6d3   :  { %5443 = vmatpush1.bf16.msra.mxu1 %v7642_v2  ;;  %v7645_v2 = vld [vmem:[%s12296_s3 + $0x1e4] ss:$8 sps:$4 sm:$0xff]  }
 0x6d4   :  { %5308 = vmatpush1.bf16.msra.mxu0 %v13115_v29  ;;  %5444 = vmatprep.subr.bf16.mxu1 %v7643_v41 }
 0x6d5   :  { %5309 = vmatprep.subr.bf16.mxu0 %v13116_v7  ;;  %v13117_v7 = vld [vmem:[#allocation86_spill] sm:$0xff] }
 0x6d6   :  { %v11988_v6 = vpop.f32.mrb[104].mxu0 }
 0x6d7   :  { %v11990_v55 = vpop.f32.mrb[105].mxu0  ;;  %5445 = vmatpush1.bf16.msra.mxu1 %v7644_v53  ;;  %v7646_v53 = vld [vmem:[%s12296_s3 + $0x1e0] ss:$8 sps:$4 sm:$0xff]  }
 0x6d8   :  { %v11997_v50 = vpop.f32.mrb[106].mxu0  ;;  %5310 = vmatpush1.bf16.msra.mxu0 %v11532_v42  ;;  %5446 = vmatprep.subr.bf16.mxu1 %v7645_v2  ;;  %v7648_v2 = vld [vmem:[%s12296_s3 + $0x1f0] ss:$8 sps:$4 sm:$0xff]  }
 0x6d9   :  { %v12003_v41 = vpop.f32.mrb[107].mxu0  ;;  %5311 = vmatprep.subr.bf16.mxu0 %v13117_v7 }
 0x6da   :  { %v4876_v29 = vmax.f32 %v11997_v50, %v12003_v41  ;;  %v7391_v50 = vld [vmem:[%s12299_s7 + $0x28] sm:$0xff]  }
 0x6db   :  { %5447 = vmatpush1.bf16.msra.mxu1 %v7646_v53  ;;  %v7649_v53 = vld [vmem:[%s12296_s3 + $0x204] ss:$8 sps:$4 sm:$0xff]  }
 0x6dc   :  { %5312 = vmatpush1.bf16.msra.mxu0 %v11550_v12  ;;  %5448 = vmatprep.subr.bf16.mxu1 %v7647_v62 }
 0x6dd   :  { %5313 = vmatprep.subr.bf16.mxu0 %v11557_v58 }
 0x6df   :  { %5449 = vmatpush1.bf16.msra.mxu1 %v7648_v2 }
 0x6e0   :  { %5314 = vmatpush1.bf16.msra.mxu0 %v11564_v13  ;;  %5450 = vmatprep.subr.bf16.mxu1 %v7649_v53 }
 0x6e1   :  { %5315 = vmatprep.subr.bf16.mxu0 %v11571_v26 }
 0x6e3   :  { %5451 = vmatpush1.bf16.msra.mxu1 %v13096_v49  ;;  %v7354_v49 = vld [vmem:[%s12298_s5] sm:$0xff]  }
 0x6e4   :  { %5316 = vmatpush1.bf16.msra.mxu0 %v11578_v3  ;;  %5452 = vmatprep.subr.bf16.mxu1 %v13097_v61  ;;  %v7651_v61 = vmov 0.0  }
 0x6e5   :  { %5317 = vmatprep.subr.bf16.mxu0 %v11585_v4 }
 0x6e7   :  { %5453 = vmatpush1.bf16.msra.mxu1 %v13098_v16  ;;  %v13118_v16 = vld [vmem:[#allocation2_spill] sm:$0xff] }
 0x6e8   :  { %5318 = vmatpush1.bf16.msra.mxu0 %v11592_v24  ;;  %5454 = vmatprep.subr.bf16.mxu1 %v13099_v22 }
 0x6e9   :  { %5319 = vmatprep.subr.bf16.mxu0 %v11599_v11 }
 0x6eb   :  { %5455 = vmatpush1.bf16.msra.mxu1 %v13100_v38  ;;  %v7372_v38 = vld [vmem:[%s12298_s5 + $0x90] sm:$0xff]  }
 0x6ec   :  { %5320 = vmatpush1.bf16.msra.mxu0 %v11606_v28  ;;  %5456 = vmatprep.subr.bf16.mxu1 %v13101_v14  ;;  %v13123_v14 = vmax.f32 %v11988_v6, %v11990_v55  ;;  %v7389_v6 = vld [vmem:[%s12299_s7 + $0x18] sm:$0xff]   ;;  %v7390_v55 = vld [vmem:[%s12299_s7 + $0x20] sm:$0xff]  }
 0x6ed   :  { %5321 = vmatprep.subr.bf16.mxu0 %v11613_v21 }
 0x6ef   :  { %5457 = vmatpush1.bf16.msra.mxu1 %v11260_v25  ;;  %v7355_v25 = vld [vmem:[%s12298_s5 + $0x8] sm:$0xff]  }
 0x6f0   :  { %5322 = vmatpush1.bf16.msra.mxu0 %v11620_v59  ;;  %5481 = vmatprep.subr.bf16.mxu1 %v11267_v48  ;;  %v7356_v48 = vld [vmem:[%s12298_s5 + $0x10] sm:$0xff]  }
 0x6f1   :  { %6804 = vmatprep.subr.bf16.mxu0 %v7651_v61 }
 0x6f2   :  { %5467 = vmatmul.mubr.bf16.vlgmr.msra.gmra.mrb[112].mxu1 %v13079_v43 }
 0x6f3   :  { %5332 = vmatmul.mubr.bf16.vlgmr.msra.gmra.mrb[108].mxu0 %v13118_v16  ;;  %5482 = vmatpush1.bf16.msra.mxu1 %v11276_v30  ;;  %v7357_v30 = vld [vmem:[%s12298_s5 + $0x18] sm:$0xff]  }
 0x6f4   :  { %6667 = vmatprep.mubr.msk.bf16.mxu1 %vm3129_vm2, %v13107_v1  ;;  %6805 = vmatpush3.bf16.msra.mxu0 %v7354_v49  ;;  %v7373_v1 = vld [vmem:[%s12298_s5 + $0x98] sm:$0xff]  }
 0x6f5   :  { %5483 = vmatprep.subr.bf16.mxu1 %v11286_v47  ;;  %6806 = vmatprep.subr.bf16.mxu0 %v7651_v61  ;;  %v7371_v47 = vld [vmem:[%s12298_s5 + $0x88] sm:$0xff]  }
 0x6f6   :  { %6820 = vmatprep.mubr.msk.bf16.mxu0 %vm7652_vm3, %v7651_v61 }
 0x6f7   :  { %5484 = vmatpush1.bf16.msra.mxu1 %v11294_v5  ;;  %v7358_v5 = vld [vmem:[%s12298_s5 + $0x20] sm:$0xff]  }
 0x6f8   :  { %6807 = vmatpush3.bf16.msra.mxu0 %v7355_v25  ;;  %5485 = vmatprep.subr.bf16.mxu1 %v11301_v20 }
 0x6f9   :  { %6808 = vmatprep.subr.bf16.mxu0 %v7651_v61 }
 0x6fb   :  { %5486 = vmatpush1.bf16.msra.mxu1 %v11308_v40  ;;  %v7366_v40 = vld [vmem:[%s12298_s5 + $0x60] sm:$0xff]  }
 0x6fc   :  { %6809 = vmatpush3.bf16.msra.mxu0 %v7356_v48  ;;  %5487 = vmatprep.subr.bf16.mxu1 %v11315_v36  ;;  %v7359_v36 = vld [vmem:[%s12298_s5 + $0x28] sm:$0xff]  }
 0x6fd   :  { %6810 = vmatprep.subr.bf16.mxu0 %v7651_v61 }
 0x6ff   :  { %5488 = vmatpush1.bf16.msra.mxu1 %v11322_v18  ;;  %v7365_v18 = vld [vmem:[%s12298_s5 + $0x58] sm:$0xff]  }
 0x700   :  { %6811 = vmatpush3.bf16.msra.mxu0 %v7357_v30  ;;  %5489 = vmatprep.subr.bf16.mxu1 %v11329_v35  ;;  %v7360_v35 = vld [vmem:[%s12298_s5 + $0x30] sm:$0xff]  }
 0x701   :  { %6812 = vmatprep.subr.bf16.mxu0 %v7651_v61 }
 0x703   :  { %5490 = vmatpush1.bf16.msra.mxu1 %v11336_v46  ;;  %v7364_v46 = vld [vmem:[%s12298_s5 + $0x50] sm:$0xff]  }
 0x704   :  { %6813 = vmatpush3.bf16.msra.mxu0 %v7358_v5  ;;  %5491 = vmatprep.subr.bf16.mxu1 %v11343_v45  ;;  %v7361_v45 = vld [vmem:[%s12298_s5 + $0x38] sm:$0xff]  }
 0x705   :  { %6814 = vmatprep.subr.bf16.mxu0 %v7651_v61 }
 0x707   :  { %5492 = vmatpush1.bf16.msra.mxu1 %v11350_v10  ;;  %v7363_v10 = vld [vmem:[%s12298_s5 + $0x48] sm:$0xff]  }
 0x708   :  { %6815 = vmatpush3.bf16.msra.mxu0 %v7359_v36  ;;  %5493 = vmatprep.subr.bf16.mxu1 %v11357_v9  ;;  %v7362_v9 = vld [vmem:[%s12298_s5 + $0x40] sm:$0xff]  }
 0x709   :  { %6816 = vmatprep.subr.bf16.mxu0 %v7651_v61 }
 0x70b   :  { %5494 = vmatpush1.bf16.msra.mxu1 %v11364_v56  ;;  %v13119_v56 = vld [vmem:[#allocation72_spill] sm:$0xff] }
 0x70c   :  { %6817 = vmatpush3.bf16.msra.mxu0 %v7360_v35  ;;  %5495 = vmatprep.subr.bf16.mxu1 %v11371_v57  ;;  %v7367_v57 = vld [vmem:[%s12298_s5 + $0x68] sm:$0xff]  }
 0x70d   :  { %6818 = vmatprep.subr.bf16.mxu0 %v7651_v61 }
 0x70f   :  { %5496 = vmatpush1.bf16.msra.mxu1 %v11378_v23  ;;  %v13120_v23 = vld [vmem:[#allocation16_spill] sm:$0xff] }
 0x710   :  { %6819 = vmatpush3.bf16.msra.mxu0 %v7361_v45  ;;  %5497 = vmatprep.subr.bf16.mxu1 %v11385_v17  ;;  %v7368_v17 = vld [vmem:[%s12298_s5 + $0x70] sm:$0xff]  }
 0x711   :  { %6824 = vmatprep.subr.bf16.mxu0 %v7651_v61 }
 0x713   :  { %6821 = vmatmul.mubr.bf16.vlgmr.msra.gmra.mrb[112].mxu0 %v13119_v56  ;;  %5498 = vmatpush1.bf16.msra.mxu1 %v11392_v37  ;;  %v7369_v37 = vld [vmem:[%s12298_s5 + $0x78] sm:$0xff]  }
 0x714   :  { %6825 = vmatpush3.bf16.msra.mxu0 %v7362_v9  ;;  %5499 = vmatprep.subr.bf16.mxu1 %v11399_v34  ;;  %v7370_v34 = vld [vmem:[%s12298_s5 + $0x80] sm:$0xff]  }
 0x715   :  { %6826 = vmatprep.subr.bf16.mxu0 %v7651_v61  ;;  %6840 = vmatprep.mubr.msk.bf16.mxu0 %vm7652_vm3, %v7651_v61 }
 0x717   :  { %5500 = vmatpush1.bf16.msra.mxu1 %v11406_v32  ;;  %v13121_v32 = vld [vmem:[#allocation30_spill] sm:$0xff] }
 0x718   :  { %6827 = vmatpush3.bf16.msra.mxu0 %v7363_v10  ;;  %5501 = vmatprep.subr.bf16.mxu1 %v11413_v44  ;;  %v13122_v44 = vld [vmem:[#allocation85_spill] sm:$0xff] }
 0x719   :  { %6828 = vmatprep.subr.bf16.mxu0 %v7651_v61 }
 0x71b   :  { %5502 = vmatpush1.bf16.msra.mxu1 %v13041_v60 }
 0x71c   :  { %6829 = vmatpush3.bf16.msra.mxu0 %v7364_v46  ;;  %5503 = vmatprep.subr.bf16.mxu1 %v13102_v27 }
 0x71d   :  { %6830 = vmatprep.subr.bf16.mxu0 %v7651_v61 }
 0x71f   :  { %5504 = vmatpush1.bf16.msra.mxu1 %v13103_v15 }
 0x720   :  { %6831 = vmatpush3.bf16.msra.mxu0 %v7365_v18  ;;  %5531 = vmatprep.subr.bf16.mxu1 %v13104_v19  ;;  %v12172_v19 = vld [vmem:[%s12297_s4] ss:$0 sm:$0xff] }
 0x721   :  { %6832 = vmatprep.subr.bf16.mxu0 %v7651_v61 }
 0x722   :  { %5514 = vmatmul.mubr.bf16.vlgmr.msra.gmra.mrb[112].mxu1 %v13118_v16 }
 0x723   :  { %5532 = vmatpush1.bf16.msra.mxu1 %v13106_v0  ;;  %6668 = vmatprep.mubr.msk.bf16.mxu1 %vm3129_vm2, %v13120_v23  ;;  %v7392_v23 = vld [vmem:[%s12299_s7 + $0x30] sm:$0xff]  }
 0x724   :  { %6833 = vmatpush3.bf16.msra.mxu0 %v7366_v40  ;;  %5533 = vmatprep.subr.bf16.mxu1 %v13108_v52 }
 0x725   :  { %6834 = vmatprep.subr.bf16.mxu0 %v7651_v61 }
 0x727   :  { %5534 = vmatpush1.bf16.msra.mxu1 %v13109_v31 }
 0x728   :  { %6835 = vmatpush3.bf16.msra.mxu0 %v7367_v57  ;;  %5535 = vmatprep.subr.bf16.mxu1 %v13110_v8  ;;  %v7393_v57 = vld [vmem:[%s12299_s7 + $0x38] sm:$0xff]  }
 0x729   :  { %6836 = vmatprep.subr.bf16.mxu0 %v7651_v61 }
 0x72b   :  { %5536 = vmatpush1.bf16.msra.mxu1 %v13111_v54  ;;  %v7375_v54 = vld [vmem:[%s12298_s5 + $0xa8] sm:$0xff]  }
 0x72c   :  { %6837 = vmatpush3.bf16.msra.mxu0 %v7368_v17  ;;  %5537 = vmatprep.subr.bf16.mxu1 %v13112_v51  ;;  %v7384_v51 = vld [vmem:[%s12298_s5 + $0xf0] sm:$0xff]   ;;  %v6677_v17 = vld [vmem:[%s12300_s6] ss:$0 sm:$0xff] }
 0x72d   :  { %6838 = vmatprep.subr.bf16.mxu0 %v7651_v61 }
 0x72f   :  { %5538 = vmatpush1.bf16.msra.mxu1 %v13113_v33  ;;  %v7385_v33 = vld [vmem:[%s12298_s5 + $0xf8] sm:$0xff]  }
 0x730   :  { %6839 = vmatpush3.bf16.msra.mxu0 %v7369_v37  ;;  %5539 = vmatprep.subr.bf16.mxu1 %v13114_v63  ;;  %v7386_v63 = vld [vmem:[%s12299_s7] sm:$0xff]  }
 0x731   :  { %6844 = vmatprep.subr.bf16.mxu0 %v7651_v61 }
 0x733   :  { %6841 = vmatmul.mubr.bf16.vlgmr.msra.gmra.mrb[112].mxu0 %v11729_v39  ;;  %5540 = vmatpush1.bf16.msra.mxu1 %v13121_v32 }
 0x734   :  { %6845 = vmatpush3.bf16.msra.mxu0 %v7370_v34  ;;  %5541 = vmatprep.subr.bf16.mxu1 %v13122_v44 }
 0x735   :  { %v5094_v20 = vpop.f32.mrb[108].mxu1  ;;  %6846 = vmatprep.subr.bf16.mxu0 %v7651_v61  ;;  %6860 = vmatprep.mubr.msk.bf16.mxu0 %vm7652_vm3, %v7651_v61 }
 0x736   :  { %v5096_v60 = vpop.f32.mrb[109].mxu1 }
 0x737   :  { %v5107_v43 = vmax.f32 %v5094_v20, %v5096_v60  ;;  %v5098_v22 = vpop.f32.mrb[110].mxu1  ;;  %5542 = vmatpush1.bf16.msra.mxu1 %v11532_v42 }
 0x738   :  { %6847 = vmatpush3.bf16.msra.mxu0 %v7371_v47  ;;  %v5100_v39 = vpop.f32.mrb[111].mxu1  ;;  %5543 = vmatprep.subr.bf16.mxu1 %v13117_v7  ;;  %v7388_v7 = vld [vmem:[%s12299_s7 + $0x10] sm:$0xff]  }
 0x739   :  { %v5109_v27 = vmax.f32 %v13123_v14, %v5107_v43  ;;  %v5108_v15 = vmax.f32 %v5098_v22, %v5100_v39  ;;  %6848 = vmatprep.subr.bf16.mxu0 %v7651_v61 }
 0x73b   :  { %v5111_v42 = vadd.f32 %v12172_v19, %v5109_v27  ;;  %v5110_v0 = vmax.f32 %v4876_v29, %v5108_v15  ;;  %5544 = vmatpush1.bf16.msra.mxu1 %v11550_v12  ;;  %v7374_v12 = vld [vmem:[%s12298_s5 + $0xa0] sm:$0xff]   ;;  %v7387_v29 = vld [vmem:[%s12299_s7 + $0x8] sm:$0xff]  }
 0x73c   :  { %6849 = vmatpush3.bf16.msra.mxu0 %v7372_v38  ;;  %5545 = vmatprep.subr.bf16.mxu1 %v11557_v58 }
 0x73d   :  { %v5112_v52 = vadd.f32 %v12172_v19, %v5110_v0  ;;  %6850 = vmatprep.subr.bf16.mxu0 %v7651_v61  ;;  %v5113_v31 = vmax.f32 %v5111_v42, 0.0 }
 0x73f   :  { %v5114_v8 = vmax.f32 %v5112_v52, 0.0  ;;  %5546 = vmatpush1.bf16.msra.mxu1 %v11564_v13  ;;  %v7381_v13 = vld [vmem:[%s12298_s5 + $0xd8] sm:$0xff]  }
 0x740   :  { %6851 = vmatpush3.bf16.msra.mxu0 %v7373_v1  ;;  %5547 = vmatprep.subr.bf16.mxu1 %v11571_v26  ;;  %v7376_v26 = vld [vmem:[%s12298_s5 + $0xb0] sm:$0xff]  }
 0x741   :  { %v5115_v58 = vpack.c.bf16 %v5114_v8, %v5113_v31  ;;  %6852 = vmatprep.subr.bf16.mxu0 %v7651_v61 }
 0x743   :  { %5548 = vmatpush1.bf16.msra.mxu1 %v11578_v3  ;;  %v7377_v3 = vld [vmem:[%s12298_s5 + $0xb8] sm:$0xff]  }
 0x744   :  { %6853 = vmatpush3.bf16.msra.mxu0 %v7374_v12  ;;  %5549 = vmatprep.subr.bf16.mxu1 %v11585_v4  ;;  %v7378_v4 = vld [vmem:[%s12298_s5 + $0xc0] sm:$0xff]  }
 0x745   :  { %6854 = vmatprep.subr.bf16.mxu0 %v7651_v61 }
 0x747   :  { %5550 = vmatpush1.bf16.msra.mxu1 %v11592_v24  ;;  %v7382_v24 = vld [vmem:[%s12298_s5 + $0xe0] sm:$0xff]  }
 0x748   :  { %6855 = vmatpush3.bf16.msra.mxu0 %v7375_v54  ;;  %5551 = vmatprep.subr.bf16.mxu1 %v11599_v11  ;;  %v7383_v11 = vld [vmem:[%s12298_s5 + $0xe8] sm:$0xff]  }
 0x749   :  { %6856 = vmatprep.subr.bf16.mxu0 %v7651_v61 }
 0x74b   :  { %5552 = vmatpush1.bf16.msra.mxu1 %v11606_v28  ;;  %v13124_v28 = vld [vmem:[#allocation15_spill] sm:$0xff] }
 0x74c   :  { %6857 = vmatpush3.bf16.msra.mxu0 %v7376_v26  ;;  %5553 = vmatprep.subr.bf16.mxu1 %v11613_v21  ;;  %v7380_v21 = vld [vmem:[%s12298_s5 + $0xd0] sm:$0xff]  }
 0x74d   :  { %6858 = vmatprep.subr.bf16.mxu0 %v7651_v61 }
 0x74f   :  { %5554 = vmatpush1.bf16.msra.mxu1 %v11620_v59  ;;  %v7379_v59 = vld [vmem:[%s12298_s5 + $0xc8] sm:$0xff]  }
 0x750   :  { %6859 = vmatpush3.bf16.msra.mxu0 %v7377_v3  ;;  %6884 = vmatprep.subr.bf16.mxu1 %v7651_v61 }
 0x751   :  { %6864 = vmatprep.subr.bf16.mxu0 %v7651_v61 }
 0x752   :  { %5564 = vmatmul.mubr.bf16.vlgmr.msra.gmra.mrb[112].mxu1 %v13124_v28 }
 0x753   :  { %6861 = vmatmul.mubr.bf16.vlgmr.msra.gmra.mrb[112].mxu0 %v5115_v58  ;;  %6900 = vmatprep.mubr.msk.bf16.mxu1 %vm7652_vm3, %v7651_v61 }
 0x754   :  { %6865 = vmatpush3.bf16.msra.mxu0 %v7378_v4  ;;  %6880 = vmatprep.mubr.msk.bf16.mxu0 %vm7652_vm3, %v7651_v61 }
 0x755   :  { %6866 = vmatprep.subr.bf16.mxu0 %v7651_v61  ;;  %6885 = vmatpush3.bf16.msra.mxu1 %v7386_v63 }
 0x756   :  { %6886 = vmatprep.subr.bf16.mxu1 %v7651_v61 }
 0x758   :  { %6867 = vmatpush3.bf16.msra.mxu0 %v7379_v59 }
 0x759   :  { %6868 = vmatprep.subr.bf16.mxu0 %v7651_v61  ;;  %6887 = vmatpush3.bf16.msra.mxu1 %v7387_v29 }
 0x75a   :  { %6888 = vmatprep.subr.bf16.mxu1 %v7651_v61 }
 0x75c   :  { %6869 = vmatpush3.bf16.msra.mxu0 %v7380_v21 }
 0x75d   :  { %6870 = vmatprep.subr.bf16.mxu0 %v7651_v61  ;;  %6889 = vmatpush3.bf16.msra.mxu1 %v7388_v7 }
 0x75e   :  { %6890 = vmatprep.subr.bf16.mxu1 %v7651_v61 }
 0x760   :  { %6871 = vmatpush3.bf16.msra.mxu0 %v7381_v13 }
 0x761   :  { %6872 = vmatprep.subr.bf16.mxu0 %v7651_v61  ;;  %6891 = vmatpush3.bf16.msra.mxu1 %v7389_v6 }
 0x762   :  { %6892 = vmatprep.subr.bf16.mxu1 %v7651_v61 }
 0x764   :  { %6873 = vmatpush3.bf16.msra.mxu0 %v7382_v24 }
 0x765   :  { %6874 = vmatprep.subr.bf16.mxu0 %v7651_v61  ;;  %6893 = vmatpush3.bf16.msra.mxu1 %v7390_v55 }
 0x766   :  { %6894 = vmatprep.subr.bf16.mxu1 %v7651_v61 }
 0x768   :  { %6875 = vmatpush3.bf16.msra.mxu0 %v7383_v11 }
 0x769   :  { %6876 = vmatprep.subr.bf16.mxu0 %v7651_v61  ;;  %6895 = vmatpush3.bf16.msra.mxu1 %v7391_v50 }
 0x76a   :  { %6896 = vmatprep.subr.bf16.mxu1 %v7651_v61 }
 0x76c   :  { %6877 = vmatpush3.bf16.msra.mxu0 %v7384_v51 }
 0x76d   :  { %6878 = vmatprep.subr.bf16.mxu0 %v7651_v61  ;;  %6897 = vmatpush3.bf16.msra.mxu1 %v7392_v23 }
 0x76e   :  { %6898 = vmatprep.subr.bf16.mxu1 %v7651_v61  ;;  %v6750_v61 = vld [vmem:[%s12301_s8] ss:$0 sm:$0xff] }
 0x770   :  { %6879 = vmatpush3.bf16.msra.mxu0 %v7385_v33 }
 0x771   :  { %6899 = vmatpush3.bf16.msra.mxu1 %v7393_v57 }
 0x7c6   :  { %v5333_v62 = vpop.f32.mrb[108].mxu0 }
 0x7c7   :  { %v5335_v41 = vpop.f32.mrb[109].mxu0 }
 0x7c8   :  { %v5346_v2 = vmax.f32 %v5333_v62, %v5335_v41  ;;  %v5337_v53 = vpop.f32.mrb[110].mxu0 }
 0x7c9   :  { %v5339_v49 = vpop.f32.mrb[111].mxu0 }
 0x7ca   :  { %v5347_v16 = vmax.f32 %v5337_v53, %v5339_v49 }
 0x825   :  { %v5565_v25 = vpop.f32.mrb[112].mxu1 }
 0x826   :  { %v5567_v48 = vpop.f32.mrb[113].mxu1 }
 0x827   :  { %v5578_v30 = vmax.f32 %v5565_v25, %v5567_v48  ;;  %v5569_v5 = vpop.f32.mrb[114].mxu1 }
 0x828   :  { %v5571_v36 = vpop.f32.mrb[115].mxu1 }
 0x829   :  { %v5580_v35 = vmax.f32 %v5346_v2, %v5578_v30  ;;  %v5579_v45 = vmax.f32 %v5569_v5, %v5571_v36 }
 0x82b   :  { %v5582_v9 = vadd.f32 %v12172_v19, %v5580_v35  ;;  %v5581_v56 = vmax.f32 %v5347_v16, %v5579_v45 }
 0x82d   :  { %v5583_v10 = vadd.f32 %v12172_v19, %v5581_v56  ;;  %v5584_v46 = vmax.f32 %v5582_v9, 0.0 }
 0x82f   :  { %v5585_v18 = vmax.f32 %v5583_v10, 0.0 }
 0x831   :  { %v5586_v40 = vpack.c.bf16 %v5585_v18, %v5584_v46 }
 0x833   :  { %6881 = vmatmul.mubr.bf16.vlgmr.msra.gmra.mrb[112].mxu0 %v5586_v40 }
 0x906   :  { %v6016_v37 = vpop.f32.mrb[112].mxu0 }
 0x907   :  { %v6908_v34 = vadd.f32 %v6677_v17, %v6016_v37  ;;  %v6882_v32 = vpop.f32.mrb[113].mxu0 }
 0x908   :  { %v6019_v44 = vpop.f32.mrb[114].mxu0 }
 0x909   :  { %v6909_v47 = vadd.f32 %v6677_v17, %v6019_v44  ;;  %v6883_v20 = vpop.f32.mrb[115].mxu0  ;;  %v6025_v60 = vmax.f32 %v6908_v34, 0.0 }
 0x90b   :  { %v6026_v43 = vmax.f32 %v6909_v47, 0.0 }
 0x90d   :  { %v6027_v22 = vpack.c.bf16 %v6026_v43, %v6025_v60 }
 0x90f   :  { %6901 = vmatmul.mubr.bf16.vlgmr.msra.gmra.mrb[116].mxu1 %v6027_v22 }
 0x9e2   :  { %v6133_v39 = vpop.f32.mrb[116].mxu1 }
 0x9e3   :  { %v6134_v38 = vadd.f32 %v6750_v61, %v6133_v39  ;;  %v6902_v14 = vpop.f32.mrb[117].mxu1 }
 0x9e4   :  { %v6136_v27 = vpop.f32.mrb[118].mxu1 }
 0x9e5   :  { %6140 = vmax.xlane.f32.xlu0 %v6134_v38  ;;  %v6903_v15 = vpop.f32.mrb[119].mxu1  ;;  %v6137_v19 = vadd.f32 %v6750_v61, %v6136_v27 }
 0x9e9   :  { %6142 = vmax.xlane.f32.xlu0 %v6137_v19 }
 0xa72   :  { %v6141_v42 = vpop.xlane.xlu0 %6140 }
 0xa73   :  { %v6144_v0 = vsub.f32 %v6134_v38, %v6141_v42 }
 0xa75   :  { %v6146_v1 = vmul.f32 1.442695, %v6144_v0 }
 0xa76   :  { %v6143_v52 = vpop.xlane.xlu0 %6142 }
 0xa77   :  { %v6145_v31 = vsub.f32 %v6137_v19, %v6143_v52  ;;  %7394 = vpow2.f32 %v6146_v1 }
 0xa79   :  { %v6148_v8 = vmul.f32 1.442695, %v6145_v31 }
 0xa7b   :  { %7396 = vpow2.f32 %v6148_v8 }
 0xa81   :  { %v7395_v12 = vpop.eup %7394 }
 0xa82   :  { %6150 = vadd.xlane.f32.xlu1 %v7395_v12 }
 0xa85   :  { %v7397_v58 = vpop.eup %7396 }
 0xa86   :  { %6152 = vadd.xlane.f32.xlu1 %v7397_v58 }
 0xb0f   :  { %v6151_v54 = vpop.xlane.xlu1 %6150 }
 0xb10   :  { %7398 = vlog2.f32 %v6151_v54 }
 0xb13   :  { %v6153_v26 = vpop.xlane.xlu1 %6152 }
 0xb14   :  { %7400 = vlog2.f32 %v6153_v26 }
 0xb1a   :  { %v7399_v3 = vpop.eup %7398 }
 0xb1b   :  { %v6155_v4 = vmul.f32 0.6931472, %v7399_v3 }
 0xb1d   :  { %v6158_v28 = vadd.f32 %v6155_v4, %v6141_v42 }
 0xb1e   :  { %v7401_v59 = vpop.eup %7400 }
 0xb1f   :  { %v6160_v21 = vsub.f32 %v6134_v38, %v6158_v28  ;;  %v6157_v13 = vmul.f32 0.6931472, %v7401_v59 }
 0xb21   :  { %6162 = vst [vmem:[%s12302_s9] sm:$0xff] %v6160_v21  ;;  %v6159_v24 = vadd.f32 %v6157_v13, %v6143_v52 }
 0xb23   :  { %v6161_v11 = vsub.f32 %v6137_v19, %v6159_v24 }
 0xb25   :  { %6163 = vst [vmem:[%s12302_s9 + $0x8] sm:$0xff] %v6161_v11 }

</bundles_post_ra>
